<compile_context>
chip_gen: v7x
topology: tpu7x:2x2x1
jax: 0.10.0
libtpu: 0.0.40
codegen_flags: <defaults>
</compile_context>

<pallas_src>
import functools

import numpy as np
import jax
import jax.numpy as jnp
from jax import lax
from jax.experimental import pallas as pl
from jax.experimental.pallas import tpu as pltpu

EPS = 1e-5                       # nn.GroupNorm default eps
MXU_DTYPE = jnp.bfloat16         # MXU operand dtype (f32 accumulation everywhere)


# ----------------------------------------------------------------------------
# Fused kernel: one block of B images per grid step, everything stays in VMEM.
# ----------------------------------------------------------------------------
def _sapm_kernel(xp_ref, xw_ref, t1_ref, t2_ref, t3_ref, vecs_ref, b3l_ref,
                 p_ref, wf_ref, bf_ref, o_ref, pad_ref, att_ref, *,
                 B, H, W, Cin, Q):
    """xp_ref  : (B, H+4, (W+4)*Cin)  input in row/lane layout, halo-padded by 2
       xw_ref  : (B, H*W, Cin)        input for WP, spatial order s = w*H + h
       t*_ref  : (K, (W+K-1)*Cin, W*Cout) block-Toeplitz conv weights (bf16)
       vecs_ref: (6, W*Cin)  [b1, g1, be1, b2, g2, be2] expanded to lanes
       b3l_ref : (1, W*Q)    conv3 bias (tau folded in), expanded to lanes
       p_ref   : (W*Cin, W*Cin) same-group lane projection, includes 1/(H*W*cpg)
       wf_ref  : (2, Cin, Cin), bf_ref : (2, Cin)   CR fc1/fc2
       o_ref   : (1, B, Q*Cin) lane-dense output block
       pad_ref : (B, H+2, (W+2)*Cin) halo scratch for the 3x3 convs
       att_ref : (B, H*W, Q) scratch holding the softmax logits in (spatial, q) layout
    """
    WC, WQ, BH = W * Cin, W * Q, B * H

    def conv(rows, t_ref, K, cols):
        acc = jnp.zeros((BH, cols), jnp.float32)
        for i in range(K):
            lhs = rows(i)
            lhs = lhs.reshape(BH, lhs.shape[-1]).astype(MXU_DTYPE)
            acc = acc + jnp.dot(lhs, t_ref[i], preferred_element_type=jnp.float32)
        return acc

    def gn_relu(z2d, gamma_l, beta_l):
        # two-pass (centered) variance; group reduce = lane projection matmul (f32)
        zb = z2d.reshape(B, H, WC)
        mean_l = jnp.dot(jnp.sum(zb, axis=1), p_ref[...],
                         preferred_element_type=jnp.float32)          # (B, WC)
        d = zb - mean_l[:, None, :]
        var_l = jnp.dot(jnp.sum(d * d, axis=1), p_ref[...],
                        preferred_element_type=jnp.float32)           # (B, WC)
        y = d * lax.rsqrt(var_l + EPS)[:, None, :] * gamma_l + beta_l
        return jnp.maximum(y, 0.0)                                    # (B, H, WC)

    # --- conv1 (5x5, pad 2) + GN1 + ReLU -------------------------------------
    z1 = conv(lambda i: xp_ref[:, i:i + H, :], t1_ref, 5, WC) + vecs_ref[0]
    a1 = gn_relu(z1, vecs_ref[1], vecs_ref[2])

    # halo scratch: interior rewritten each use, border must stay zero
    pad_ref[...] = jnp.zeros(pad_ref.shape, jnp.float32)
    pad_ref[:, 1:H + 1, Cin:Cin + WC] = a1

    # --- conv2 (3x3, pad 1) + GN2 + ReLU -------------------------------------
    z2 = conv(lambda i: pad_ref[:, i:i + H, :], t2_ref, 3, WC) + vecs_ref[3]
    a2 = gn_relu(z2, vecs_ref[4], vecs_ref[5])

    # --- conv3 (3x3, pad 1), tau folded into weights/bias --------------------
    pad_ref[:, 1:H + 1, Cin:Cin + WC] = a2
    z3 = conv(lambda i: pad_ref[:, i:i + H, :], t3_ref, 3, WQ) + b3l_ref[0]  # (BH, WQ)

    # --- spatial softmax per (b, q) ------------------------------------------
    # re-layout logits (B, H, W*Q) -> (B, H*W, Q) via slice-stores (spatial order w*H+h,
    # matching xw_ref), then reduce along the spatial axis.
    z3_3d = z3.reshape(B, H, WQ)
    for w in range(W):
        att_ref[:, w * H:(w + 1) * H, :] = z3_3d[:, :, w * Q:(w + 1) * Q]
    zc = att_ref[...]                                                  # (B, HW, Q)
    m = jnp.max(zc, axis=1, keepdims=True)
    e = jnp.exp(zc - m)
    s = jnp.sum(e, axis=1, keepdims=True)
    a_n = e * pl.reciprocal(s, approx=True)                            # normalized A

    # --- WP + CR: F_P = A @ F^T ; F_O = sigmoid(fc2(relu(fc1(F_P)))) * F_P ----
    outs = []
    for b in range(B):
        ab = a_n[b].astype(MXU_DTYPE)                                  # (HW, Q)
        xb = xw_ref[b].astype(MXU_DTYPE)                               # (HW, Cin)
        fp = lax.dot_general(ab, xb, (((0,), (0,)), ((), ())),
                             preferred_element_type=jnp.float32)       # (Q, Cin)
        h1 = jnp.maximum(
            jnp.dot(fp, wf_ref[0], preferred_element_type=jnp.float32) + bf_ref[0],
            0.0)
        u = jnp.dot(h1, wf_ref[1], preferred_element_type=jnp.float32) + bf_ref[1]
        outs.append(fp * (1.0 / (1.0 + jnp.exp(-u))))                  # (Q, Cin)
    out3 = jnp.stack(outs, axis=0)                                     # (B, Q, Cin)

    # lane-dense (B, Q*Cin) store: the output DMA is a single dense 128-lane block
    for q in range(Q):
        o_ref[0, :, q * Cin:(q + 1) * Cin] = out3[:, q, :]


# ----------------------------------------------------------------------------
# Host-side parameter preparation (pure numpy / constants, done once)
# ----------------------------------------------------------------------------
def _toeplitz(w_hwio, W):
    """(K,K,Cin,Cout) HWIO conv weight -> (K, (W+K-1)*Cin, W*Cout) row-shift matrices."""
    w_np = np.asarray(w_hwio, np.float32)
    K, _, Cin, Cout = w_np.shape
    Wp = W + K - 1
    T = np.zeros((K, Wp * Cin, W * Cout), np.float32)
    for i in range(K):
        for j in range(K):
            for w in range(W):
                T[i, (w + j) * Cin:(w + j + 1) * Cin,
                     w * Cout:(w + 1) * Cout] = w_np[i, j]
    return T


def sapm_prepare(params, groups, tau, H, W):
    Cin = params["b1"].shape[0]
    Q = params["b3"].shape[0]
    cpg = Cin // groups
    WC = W * Cin

    tile = lambda v: np.tile(np.asarray(v, np.float32), W)   # per-channel -> per-lane
    lane_g = (np.arange(WC) % Cin) // cpg
    proj = (lane_g[:, None] == lane_g[None, :]).astype(np.float32) / float(H * W * cpg)

    return {
        "t1": jnp.asarray(_toeplitz(params["w1"], W)).astype(MXU_DTYPE),
        "t2": jnp.asarray(_toeplitz(params["w2"], W)).astype(MXU_DTYPE),
        "t3": jnp.asarray(_toeplitz(params["w3"], W) * tau).astype(MXU_DTYPE),
        "vecs": jnp.asarray(np.stack([tile(params["b1"]), tile(params["g1"]),
                                      tile(params["be1"]), tile(params["b2"]),
                                      tile(params["g2"]), tile(params["be2"])])),
        "b3l": jnp.asarray((tile(params["b3"]) * tau).reshape(1, W * Q)),
        "p": jnp.asarray(proj),
        "wf": jnp.stack([params["wf1"], params["wf2"]]).astype(jnp.float32),
        "bf": jnp.stack([params["bf1"], params["bf2"]]).astype(jnp.float32),
        "Q": Q,
    }


# ----------------------------------------------------------------------------
# Wrapper
# ----------------------------------------------------------------------------
def sapm_forward(x_nchw, prep, *, batch_block=4):
    N, Cin, H, W = x_nchw.shape
    Q = prep["Q"]
    B = batch_block if (N % batch_block == 0) else 1
    nb = N // B

    # conv-chain input: NHWC halo-padded by 2, lanes = (w, ci)
    x_nhwc = jnp.transpose(x_nchw, (0, 2, 3, 1))
    xp = jnp.pad(x_nhwc, ((0, 0), (2, 2), (2, 2), (0, 0))).reshape(N, H + 4, (W + 4) * Cin)
    # WP input: spatial order s = w*H + h (matches the kernel's logit re-layout)
    x_wp = jnp.transpose(x_nchw, (0, 3, 2, 1)).reshape(N, W * H, Cin)

    kernel = functools.partial(_sapm_kernel, B=B, H=H, W=W, Cin=Cin, Q=Q)

    def const(arr):
        return pl.BlockSpec(arr.shape, lambda n: (0,) * arr.ndim)

    out = pl.pallas_call(
        kernel,
        out_shape=jax.ShapeDtypeStruct((nb, B, Q * Cin), jnp.float32),
        grid=(nb,),
        in_specs=[
            pl.BlockSpec((B, H + 4, (W + 4) * Cin), lambda n: (n, 0, 0)),
            pl.BlockSpec((B, H * W, Cin), lambda n: (n, 0, 0)),
            const(prep["t1"]), const(prep["t2"]), const(prep["t3"]),
            const(prep["vecs"]), const(prep["b3l"]), const(prep["p"]),
            const(prep["wf"]), const(prep["bf"]),
        ],
        out_specs=pl.BlockSpec((1, B, Q * Cin), lambda n: (n, 0, 0)),
        scratch_shapes=[
            pltpu.VMEM((B, H + 2, (W + 2) * Cin), jnp.float32),   # conv halo scratch
            pltpu.VMEM((B, H * W, Q), jnp.float32),               # softmax logits
        ],
        compiler_params=pltpu.CompilerParams(dimension_semantics=("parallel",)),
    )(xp, x_wp, prep["t1"], prep["t2"], prep["t3"], prep["vecs"], prep["b3l"],
      prep["p"], prep["wf"], prep["bf"])

    return out.reshape(N, Q, Cin)                                 # F_O


# ----------------------------------------------------------------------------
# Pure-JAX reference (mirrors the PyTorch SAPM forward)
# ----------------------------------------------------------------------------
def _conv2d_ref(x_nhwc, w_hwio, b, pad):
    y = lax.conv_general_dilated(
        x_nhwc, w_hwio, window_strides=(1, 1),
        padding=[(pad, pad), (pad, pad)],
        dimension_numbers=("NHWC", "HWIO", "NHWC"))
    return y + b


def _gn_ref(x, groups, gamma, beta):
    N, H, W, C = x.shape
    xg = x.reshape(N, H, W, groups, C // groups)
    mean = xg.mean(axis=(1, 2, 4), keepdims=True)
    var = xg.var(axis=(1, 2, 4), keepdims=True)
    xn = (xg - mean) * lax.rsqrt(var + EPS)
    return xn.reshape(N, H, W, C) * gamma + beta


def sapm_ref(x_nchw, params, groups, tau):
    N, Cin, H, W = x_nchw.shape
    x = jnp.transpose(x_nchw, (0, 2, 3, 1))
    a = jax.nn.relu(_gn_ref(_conv2d_ref(x, params["w1"], params["b1"], 2),
                            groups, params["g1"], params["be1"]))
    a = jax.nn.relu(_gn_ref(_conv2d_ref(a, params["w2"], params["b2"], 1),
                            groups, params["g2"], params["be2"]))
    z = _conv2d_ref(a, params["w3"], params["b3"], 1) * tau           # (N, H, W, Q)
    Q = z.shape[-1]
    A = jax.nn.softmax(jnp.transpose(z, (0, 3, 1, 2)).reshape(N, Q, H * W), axis=2)
    F_flat = x_nchw.reshape(N, Cin, H * W)
    F_P = jnp.einsum("nqs,ncs->nqc", A, F_flat)                       # WP
    h = jax.nn.relu(F_P @ params["wf1"] + params["bf1"])              # CR
    F_C = jax.nn.sigmoid(h @ params["wf2"] + params["bf2"])
    return F_C * F_P                                                   # (N, Q, Cin)


# ----------------------------------------------------------------------------
if __name__ == "__main__":
    # Small shapes consistent with SAPM(in_channels, q, groups, tau)
    N, Cin, H, W = 8, 8, 16, 16
    Q, groups, tau = 16, 4, 1.2

    key = jax.random.PRNGKey(0)
    ks = jax.random.split(key, 15)
    params = {
        "w1": 0.1 * jax.random.normal(ks[0], (5, 5, Cin, Cin), jnp.float32),
        "b1": 0.1 * jax.random.normal(ks[1], (Cin,), jnp.float32),
        "g1": 1.0 + 0.1 * jax.random.normal(ks[2], (Cin,), jnp.float32),
        "be1": 0.1 * jax.random.normal(ks[3], (Cin,), jnp.float32),
        "w2": 0.1 * jax.random.normal(ks[4], (3, 3, Cin, Cin), jnp.float32),
        "b2": 0.1 * jax.random.normal(ks[5], (Cin,), jnp.float32),
        "g2": 1.0 + 0.1 * jax.random.normal(ks[6], (Cin,), jnp.float32),
        "be2": 0.1 * jax.random.normal(ks[7], (Cin,), jnp.float32),
        "w3": 0.1 * jax.random.normal(ks[8], (3, 3, Cin, Q), jnp.float32),
        "b3": 0.1 * jax.random.normal(ks[9], (Q,), jnp.float32),
        "wf1": 0.2 * jax.random.normal(ks[10], (Cin, Cin), jnp.float32),
        "bf1": 0.1 * jax.random.normal(ks[11], (Cin,), jnp.float32),
        "wf2": 0.2 * jax.random.normal(ks[12], (Cin, Cin), jnp.float32),
        "bf2": 0.1 * jax.random.normal(ks[13], (Cin,), jnp.float32),
    }
    x = jax.random.normal(ks[14], (N, Cin, H, W), jnp.float32)        # NCHW, like PyTorch

    prep = sapm_prepare(params, groups, tau, H, W)
    fwd = jax.jit(functools.partial(sapm_forward, prep=prep, batch_block=4))
    out = jax.block_until_ready(fwd(x))

    ref = sapm_ref(x, params, groups, tau)
    assert out.shape == (N, Q, Cin)
    # tolerance covers bf16 MXU operands + the approximate (EUP) softmax reciprocal
    np.testing.assert_allclose(np.asarray(out), np.asarray(ref), atol=4e-2, rtol=4e-2)

    print("KERNEL_OK")
</pallas_src>

<mosaic_0001>
module attributes {stable_mosaic.version = 11 : i64} {
  func.func @_sapm_kernel(%arg0: i32, %arg1: memref<4x20x160xf32, #tpu.memory_space<vmem>>, %arg2: memref<4x256x8xf32, #tpu.memory_space<vmem>>, %arg3: memref<5x160x128xbf16, #tpu.memory_space<vmem>>, %arg4: memref<3x144x128xbf16, #tpu.memory_space<vmem>>, %arg5: memref<3x144x256xbf16, #tpu.memory_space<vmem>>, %arg6: memref<6x128xf32, #tpu.memory_space<vmem>>, %arg7: memref<1x256xf32, #tpu.memory_space<vmem>>, %arg8: memref<128x128xf32, #tpu.memory_space<vmem>>, %arg9: memref<2x8x8xf32, #tpu.memory_space<vmem>>, %arg10: memref<2x8xf32, #tpu.memory_space<vmem>>, %arg11: memref<1x4x128xf32, #tpu.memory_space<vmem>>, %arg12: memref<4x18x144xf32, #tpu.memory_space<vmem>>, %arg13: memref<4x256x16xf32, #tpu.memory_space<vmem>>) attributes {dimension_semantics = [#tpu.dimension_semantics<parallel>], iteration_bounds = array<i64: 2>, scalar_prefetch = 0 : i64, scratch_operands = 2 : i64, tpu.core_type = #tpu.core_type<tc>, window_params = [{transform_indices = @transform_0, window_bounds = array<i64: 4, 20, 160>}, {transform_indices = @transform_1, window_bounds = array<i64: 4, 256, 8>}, {pipeline_mode = #tpu.pipeline_mode<synchronous>, transform_indices = @transform_2, window_bounds = array<i64: 5, 160, 128>}, {pipeline_mode = #tpu.pipeline_mode<synchronous>, transform_indices = @transform_3, window_bounds = array<i64: 3, 144, 128>}, {pipeline_mode = #tpu.pipeline_mode<synchronous>, transform_indices = @transform_4, window_bounds = array<i64: 3, 144, 256>}, {pipeline_mode = #tpu.pipeline_mode<synchronous>, transform_indices = @transform_5, window_bounds = array<i64: 6, 128>}, {pipeline_mode = #tpu.pipeline_mode<synchronous>, transform_indices = @transform_6, window_bounds = array<i64: 1, 256>}, {pipeline_mode = #tpu.pipeline_mode<synchronous>, transform_indices = @transform_7, window_bounds = array<i64: 128, 128>}, {pipeline_mode = #tpu.pipeline_mode<synchronous>, transform_indices = @transform_8, window_bounds = array<i64: 2, 8, 8>}, {pipeline_mode = #tpu.pipeline_mode<synchronous>, transform_indices = @transform_9, window_bounds = array<i64: 2, 8>}, {transform_indices = @transform_10, window_bounds = array<i64: 1, 4, 128>}]} {
    %cst = arith.constant 0.000000e+00 : f32
    %0 = vector.broadcast %cst : f32 to vector<64x128xf32>
    %c0 = arith.constant 0 : index
    %c0_0 = arith.constant 0 : index
    %c0_1 = arith.constant 0 : index
    %1 = vector.load %arg1[%c0, %c0_0, %c0_1] : memref<4x20x160xf32, #tpu.memory_space<vmem>>, vector<4x16x160xf32>
    %2 = vector.shape_cast %1 : vector<4x16x160xf32> to vector<64x160xf32>
    %3 = arith.truncf %2 : vector<64x160xf32> to vector<64x160xbf16>
    %c0_2 = arith.constant 0 : index
    %c0_3 = arith.constant 0 : index
    %c0_4 = arith.constant 0 : index
    %4 = vector.load %arg3[%c0_2, %c0_3, %c0_4] : memref<5x160x128xbf16, #tpu.memory_space<vmem>>, vector<1x160x128xbf16>
    %5 = vector.shape_cast %4 : vector<1x160x128xbf16> to vector<160x128xbf16>
    %cst_5 = arith.constant dense<0.000000e+00> : vector<64x128xf32>
    %6 = tpu.matmul %3, %5, %cst_5 {dimension_numbers = #tpu.dot_dimension_numbers<[1], [0], [0], [1], [0, 0, 1, 1], [], []>} : vector<64x160xbf16>, vector<160x128xbf16>, vector<64x128xf32> -> vector<64x128xf32>
    %7 = arith.addf %0, %6 : vector<64x128xf32>
    %c0_6 = arith.constant 0 : index
    %c1 = arith.constant 1 : index
    %c0_7 = arith.constant 0 : index
    %8 = vector.load %arg1[%c0_6, %c1, %c0_7] : memref<4x20x160xf32, #tpu.memory_space<vmem>>, vector<4x16x160xf32>
    %9 = vector.shape_cast %8 : vector<4x16x160xf32> to vector<64x160xf32>
    %10 = arith.truncf %9 : vector<64x160xf32> to vector<64x160xbf16>
    %c1_8 = arith.constant 1 : index
    %c0_9 = arith.constant 0 : index
    %c0_10 = arith.constant 0 : index
    %11 = vector.load %arg3[%c1_8, %c0_9, %c0_10] : memref<5x160x128xbf16, #tpu.memory_space<vmem>>, vector<1x160x128xbf16>
    %12 = vector.shape_cast %11 : vector<1x160x128xbf16> to vector<160x128xbf16>
    %cst_11 = arith.constant dense<0.000000e+00> : vector<64x128xf32>
    %13 = tpu.matmul %10, %12, %cst_11 {dimension_numbers = #tpu.dot_dimension_numbers<[1], [0], [0], [1], [0, 0, 1, 1], [], []>} : vector<64x160xbf16>, vector<160x128xbf16>, vector<64x128xf32> -> vector<64x128xf32>
    %14 = arith.addf %7, %13 : vector<64x128xf32>
    %c0_12 = arith.constant 0 : index
    %c2 = arith.constant 2 : index
    %c0_13 = arith.constant 0 : index
    %15 = vector.load %arg1[%c0_12, %c2, %c0_13] : memref<4x20x160xf32, #tpu.memory_space<vmem>>, vector<4x16x160xf32>
    %16 = vector.shape_cast %15 : vector<4x16x160xf32> to vector<64x160xf32>
    %17 = arith.truncf %16 : vector<64x160xf32> to vector<64x160xbf16>
    %c2_14 = arith.constant 2 : index
    %c0_15 = arith.constant 0 : index
    %c0_16 = arith.constant 0 : index
    %18 = vector.load %arg3[%c2_14, %c0_15, %c0_16] : memref<5x160x128xbf16, #tpu.memory_space<vmem>>, vector<1x160x128xbf16>
    %19 = vector.shape_cast %18 : vector<1x160x128xbf16> to vector<160x128xbf16>
    %cst_17 = arith.constant dense<0.000000e+00> : vector<64x128xf32>
    %20 = tpu.matmul %17, %19, %cst_17 {dimension_numbers = #tpu.dot_dimension_numbers<[1], [0], [0], [1], [0, 0, 1, 1], [], []>} : vector<64x160xbf16>, vector<160x128xbf16>, vector<64x128xf32> -> vector<64x128xf32>
    %21 = arith.addf %14, %20 : vector<64x128xf32>
    %c0_18 = arith.constant 0 : index
    %c3 = arith.constant 3 : index
    %c0_19 = arith.constant 0 : index
    %22 = vector.load %arg1[%c0_18, %c3, %c0_19] : memref<4x20x160xf32, #tpu.memory_space<vmem>>, vector<4x16x160xf32>
    %23 = vector.shape_cast %22 : vector<4x16x160xf32> to vector<64x160xf32>
    %24 = arith.truncf %23 : vector<64x160xf32> to vector<64x160xbf16>
    %c3_20 = arith.constant 3 : index
    %c0_21 = arith.constant 0 : index
    %c0_22 = arith.constant 0 : index
    %25 = vector.load %arg3[%c3_20, %c0_21, %c0_22] : memref<5x160x128xbf16, #tpu.memory_space<vmem>>, vector<1x160x128xbf16>
    %26 = vector.shape_cast %25 : vector<1x160x128xbf16> to vector<160x128xbf16>
    %cst_23 = arith.constant dense<0.000000e+00> : vector<64x128xf32>
    %27 = tpu.matmul %24, %26, %cst_23 {dimension_numbers = #tpu.dot_dimension_numbers<[1], [0], [0], [1], [0, 0, 1, 1], [], []>} : vector<64x160xbf16>, vector<160x128xbf16>, vector<64x128xf32> -> vector<64x128xf32>
    %28 = arith.addf %21, %27 : vector<64x128xf32>
    %c0_24 = arith.constant 0 : index
    %c4 = arith.constant 4 : index
    %c0_25 = arith.constant 0 : index
    %29 = vector.load %arg1[%c0_24, %c4, %c0_25] : memref<4x20x160xf32, #tpu.memory_space<vmem>>, vector<4x16x160xf32>
    %30 = vector.shape_cast %29 : vector<4x16x160xf32> to vector<64x160xf32>
    %31 = arith.truncf %30 : vector<64x160xf32> to vector<64x160xbf16>
    %c4_26 = arith.constant 4 : index
    %c0_27 = arith.constant 0 : index
    %c0_28 = arith.constant 0 : index
    %32 = vector.load %arg3[%c4_26, %c0_27, %c0_28] : memref<5x160x128xbf16, #tpu.memory_space<vmem>>, vector<1x160x128xbf16>
    %33 = vector.shape_cast %32 : vector<1x160x128xbf16> to vector<160x128xbf16>
    %cst_29 = arith.constant dense<0.000000e+00> : vector<64x128xf32>
    %34 = tpu.matmul %31, %33, %cst_29 {dimension_numbers = #tpu.dot_dimension_numbers<[1], [0], [0], [1], [0, 0, 1, 1], [], []>} : vector<64x160xbf16>, vector<160x128xbf16>, vector<64x128xf32> -> vector<64x128xf32>
    %35 = arith.addf %28, %34 : vector<64x128xf32>
    %c0_30 = arith.constant 0 : index
    %c0_31 = arith.constant 0 : index
    %36 = vector.load %arg6[%c0_30, %c0_31] : memref<6x128xf32, #tpu.memory_space<vmem>>, vector<1x128xf32>
    %37 = vector.shape_cast %36 : vector<1x128xf32> to vector<128xf32>
    %38 = vector.shape_cast %37 : vector<128xf32> to vector<1x128xf32>
    %39 = vector.broadcast %38 : vector<1x128xf32> to vector<64x128xf32>
    %40 = arith.addf %35, %39 : vector<64x128xf32>
    %c1_32 = arith.constant 1 : index
    %c0_33 = arith.constant 0 : index
    %41 = vector.load %arg6[%c1_32, %c0_33] : memref<6x128xf32, #tpu.memory_space<vmem>>, vector<1x128xf32>
    %42 = vector.shape_cast %41 : vector<1x128xf32> to vector<128xf32>
    %c2_34 = arith.constant 2 : index
    %c0_35 = arith.constant 0 : index
    %43 = vector.load %arg6[%c2_34, %c0_35] : memref<6x128xf32, #tpu.memory_space<vmem>>, vector<1x128xf32>
    %44 = vector.shape_cast %43 : vector<1x128xf32> to vector<128xf32>
    %45 = vector.shape_cast %40 : vector<64x128xf32> to vector<4x16x128xf32>
    %cst_36 = arith.constant dense<0.000000e+00> : vector<4x128xf32>
    %46 = vector.multi_reduction <add>, %45, %cst_36 [1] : vector<4x16x128xf32> to vector<4x128xf32>
    %c0_37 = arith.constant 0 : index
    %c0_38 = arith.constant 0 : index
    %47 = vector.load %arg8[%c0_37, %c0_38] : memref<128x128xf32, #tpu.memory_space<vmem>>, vector<128x128xf32>
    %cst_39 = arith.constant dense<0.000000e+00> : vector<4x128xf32>
    %48 = tpu.matmul %46, %47, %cst_39 {dimension_numbers = #tpu.dot_dimension_numbers<[1], [0], [0], [1], [0, 0, 1, 1], [], []>} : vector<4x128xf32>, vector<128x128xf32>, vector<4x128xf32> -> vector<4x128xf32>
    %49 = vector.shape_cast %48 : vector<4x128xf32> to vector<4x1x128xf32>
    %50 = vector.broadcast %49 : vector<4x1x128xf32> to vector<4x16x128xf32>
    %51 = arith.subf %45, %50 : vector<4x16x128xf32>
    %52 = arith.mulf %51, %51 : vector<4x16x128xf32>
    %cst_40 = arith.constant dense<0.000000e+00> : vector<4x128xf32>
    %53 = vector.multi_reduction <add>, %52, %cst_40 [1] : vector<4x16x128xf32> to vector<4x128xf32>
    %c0_41 = arith.constant 0 : index
    %c0_42 = arith.constant 0 : index
    %54 = vector.load %arg8[%c0_41, %c0_42] : memref<128x128xf32, #tpu.memory_space<vmem>>, vector<128x128xf32>
    %cst_43 = arith.constant dense<0.000000e+00> : vector<4x128xf32>
    %55 = tpu.matmul %53, %54, %cst_43 {dimension_numbers = #tpu.dot_dimension_numbers<[1], [0], [0], [1], [0, 0, 1, 1], [], []>} : vector<4x128xf32>, vector<128x128xf32>, vector<4x128xf32> -> vector<4x128xf32>
    %cst_44 = arith.constant 9.99999974E-6 : f32
    %56 = vector.broadcast %cst_44 : f32 to vector<4x128xf32>
    %57 = arith.addf %55, %56 : vector<4x128xf32>
    %58 = math.rsqrt %57 : vector<4x128xf32>
    %59 = vector.shape_cast %58 : vector<4x128xf32> to vector<4x1x128xf32>
    %60 = vector.broadcast %59 : vector<4x1x128xf32> to vector<4x16x128xf32>
    %61 = arith.mulf %51, %60 : vector<4x16x128xf32>
    %62 = vector.shape_cast %42 : vector<128xf32> to vector<1x1x128xf32>
    %63 = vector.broadcast %62 : vector<1x1x128xf32> to vector<4x16x128xf32>
    %64 = arith.mulf %61, %63 : vector<4x16x128xf32>
    %65 = vector.shape_cast %44 : vector<128xf32> to vector<1x1x128xf32>
    %66 = vector.broadcast %65 : vector<1x1x128xf32> to vector<4x16x128xf32>
    %67 = arith.addf %64, %66 : vector<4x16x128xf32>
    %cst_45 = arith.constant 0.000000e+00 : f32
    %68 = vector.broadcast %cst_45 : f32 to vector<4x16x128xf32>
    %69 = arith.maximumf %67, %68 : vector<4x16x128xf32>
    %cst_46 = arith.constant 0.000000e+00 : f32
    %70 = vector.broadcast %cst_46 : f32 to vector<4x18x144xf32>
    %c0_47 = arith.constant 0 : index
    %c0_48 = arith.constant 0 : index
    %c0_49 = arith.constant 0 : index
    %71 = vector.load %arg12[%c0_47, %c0_48, %c0_49] : memref<4x18x144xf32, #tpu.memory_space<vmem>>, vector<4x18x144xf32>
    tpu.vector_store %arg12[%c0_47, %c0_48, %c0_49], %70 {strides = array<i32>} : memref<4x18x144xf32, #tpu.memory_space<vmem>>, vector<4x18x144xf32>,
    %c0_50 = arith.constant 0 : index
    %c1_51 = arith.constant 1 : index
    %c8 = arith.constant 8 : index
    %72 = vector.load %arg12[%c0_50, %c1_51, %c8] : memref<4x18x144xf32, #tpu.memory_space<vmem>>, vector<4x16x128xf32>
    tpu.vector_store %arg12[%c0_50, %c1_51, %c8], %69 {strides = array<i32>} : memref<4x18x144xf32, #tpu.memory_space<vmem>>, vector<4x16x128xf32>,
    %cst_52 = arith.constant 0.000000e+00 : f32
    %73 = vector.broadcast %cst_52 : f32 to vector<64x128xf32>
    %c0_53 = arith.constant 0 : index
    %c0_54 = arith.constant 0 : index
    %c0_55 = arith.constant 0 : index
    %74 = vector.load %arg12[%c0_53, %c0_54, %c0_55] : memref<4x18x144xf32, #tpu.memory_space<vmem>>, vector<4x16x144xf32>
    %75 = vector.shape_cast %74 : vector<4x16x144xf32> to vector<64x144xf32>
    %76 = arith.truncf %75 : vector<64x144xf32> to vector<64x144xbf16>
    %c0_56 = arith.constant 0 : index
    %c0_57 = arith.constant 0 : index
    %c0_58 = arith.constant 0 : index
    %77 = vector.load %arg4[%c0_56, %c0_57, %c0_58] : memref<3x144x128xbf16, #tpu.memory_space<vmem>>, vector<1x144x128xbf16>
    %78 = vector.shape_cast %77 : vector<1x144x128xbf16> to vector<144x128xbf16>
    %cst_59 = arith.constant dense<0.000000e+00> : vector<64x128xf32>
    %79 = tpu.matmul %76, %78, %cst_59 {dimension_numbers = #tpu.dot_dimension_numbers<[1], [0], [0], [1], [0, 0, 1, 1], [], []>} : vector<64x144xbf16>, vector<144x128xbf16>, vector<64x128xf32> -> vector<64x128xf32>
    %80 = arith.addf %73, %79 : vector<64x128xf32>
    %c0_60 = arith.constant 0 : index
    %c1_61 = arith.constant 1 : index
    %c0_62 = arith.constant 0 : index
    %81 = vector.load %arg12[%c0_60, %c1_61, %c0_62] : memref<4x18x144xf32, #tpu.memory_space<vmem>>, vector<4x16x144xf32>
    %82 = vector.shape_cast %81 : vector<4x16x144xf32> to vector<64x144xf32>
    %83 = arith.truncf %82 : vector<64x144xf32> to vector<64x144xbf16>
    %c1_63 = arith.constant 1 : index
    %c0_64 = arith.constant 0 : index
    %c0_65 = arith.constant 0 : index
    %84 = vector.load %arg4[%c1_63, %c0_64, %c0_65] : memref<3x144x128xbf16, #tpu.memory_space<vmem>>, vector<1x144x128xbf16>
    %85 = vector.shape_cast %84 : vector<1x144x128xbf16> to vector<144x128xbf16>
    %cst_66 = arith.constant dense<0.000000e+00> : vector<64x128xf32>
    %86 = tpu.matmul %83, %85, %cst_66 {dimension_numbers = #tpu.dot_dimension_numbers<[1], [0], [0], [1], [0, 0, 1, 1], [], []>} : vector<64x144xbf16>, vector<144x128xbf16>, vector<64x128xf32> -> vector<64x128xf32>
    %87 = arith.addf %80, %86 : vector<64x128xf32>
    %c0_67 = arith.constant 0 : index
    %c2_68 = arith.constant 2 : index
    %c0_69 = arith.constant 0 : index
    %88 = vector.load %arg12[%c0_67, %c2_68, %c0_69] : memref<4x18x144xf32, #tpu.memory_space<vmem>>, vector<4x16x144xf32>
    %89 = vector.shape_cast %88 : vector<4x16x144xf32> to vector<64x144xf32>
    %90 = arith.truncf %89 : vector<64x144xf32> to vector<64x144xbf16>
    %c2_70 = arith.constant 2 : index
    %c0_71 = arith.constant 0 : index
    %c0_72 = arith.constant 0 : index
    %91 = vector.load %arg4[%c2_70, %c0_71, %c0_72] : memref<3x144x128xbf16, #tpu.memory_space<vmem>>, vector<1x144x128xbf16>
    %92 = vector.shape_cast %91 : vector<1x144x128xbf16> to vector<144x128xbf16>
    %cst_73 = arith.constant dense<0.000000e+00> : vector<64x128xf32>
    %93 = tpu.matmul %90, %92, %cst_73 {dimension_numbers = #tpu.dot_dimension_numbers<[1], [0], [0], [1], [0, 0, 1, 1], [], []>} : vector<64x144xbf16>, vector<144x128xbf16>, vector<64x128xf32> -> vector<64x128xf32>
    %94 = arith.addf %87, %93 : vector<64x128xf32>
    %c3_74 = arith.constant 3 : index
    %c0_75 = arith.constant 0 : index
    %95 = vector.load %arg6[%c3_74, %c0_75] : memref<6x128xf32, #tpu.memory_space<vmem>>, vector<1x128xf32>
    %96 = vector.shape_cast %95 : vector<1x128xf32> to vector<128xf32>
    %97 = vector.shape_cast %96 : vector<128xf32> to vector<1x128xf32>
    %98 = vector.broadcast %97 : vector<1x128xf32> to vector<64x128xf32>
    %99 = arith.addf %94, %98 : vector<64x128xf32>
    %c4_76 = arith.constant 4 : index
    %c0_77 = arith.constant 0 : index
    %100 = vector.load %arg6[%c4_76, %c0_77] : memref<6x128xf32, #tpu.memory_space<vmem>>, vector<1x128xf32>
    %101 = vector.shape_cast %100 : vector<1x128xf32> to vector<128xf32>
    %c5 = arith.constant 5 : index
    %c0_78 = arith.constant 0 : index
    %102 = vector.load %arg6[%c5, %c0_78] : memref<6x128xf32, #tpu.memory_space<vmem>>, vector<1x128xf32>
    %103 = vector.shape_cast %102 : vector<1x128xf32> to vector<128xf32>
    %104 = vector.shape_cast %99 : vector<64x128xf32> to vector<4x16x128xf32>
    %cst_79 = arith.constant dense<0.000000e+00> : vector<4x128xf32>
    %105 = vector.multi_reduction <add>, %104, %cst_79 [1] : vector<4x16x128xf32> to vector<4x128xf32>
    %c0_80 = arith.constant 0 : index
    %c0_81 = arith.constant 0 : index
    %106 = vector.load %arg8[%c0_80, %c0_81] : memref<128x128xf32, #tpu.memory_space<vmem>>, vector<128x128xf32>
    %cst_82 = arith.constant dense<0.000000e+00> : vector<4x128xf32>
    %107 = tpu.matmul %105, %106, %cst_82 {dimension_numbers = #tpu.dot_dimension_numbers<[1], [0], [0], [1], [0, 0, 1, 1], [], []>} : vector<4x128xf32>, vector<128x128xf32>, vector<4x128xf32> -> vector<4x128xf32>
    %108 = vector.shape_cast %107 : vector<4x128xf32> to vector<4x1x128xf32>
    %109 = vector.broadcast %108 : vector<4x1x128xf32> to vector<4x16x128xf32>
    %110 = arith.subf %104, %109 : vector<4x16x128xf32>
    %111 = arith.mulf %110, %110 : vector<4x16x128xf32>
    %cst_83 = arith.constant dense<0.000000e+00> : vector<4x128xf32>
    %112 = vector.multi_reduction <add>, %111, %cst_83 [1] : vector<4x16x128xf32> to vector<4x128xf32>
    %c0_84 = arith.constant 0 : index
    %c0_85 = arith.constant 0 : index
    %113 = vector.load %arg8[%c0_84, %c0_85] : memref<128x128xf32, #tpu.memory_space<vmem>>, vector<128x128xf32>
    %cst_86 = arith.constant dense<0.000000e+00> : vector<4x128xf32>
    %114 = tpu.matmul %112, %113, %cst_86 {dimension_numbers = #tpu.dot_dimension_numbers<[1], [0], [0], [1], [0, 0, 1, 1], [], []>} : vector<4x128xf32>, vector<128x128xf32>, vector<4x128xf32> -> vector<4x128xf32>
    %cst_87 = arith.constant 9.99999974E-6 : f32
    %115 = vector.broadcast %cst_87 : f32 to vector<4x128xf32>
    %116 = arith.addf %114, %115 : vector<4x128xf32>
    %117 = math.rsqrt %116 : vector<4x128xf32>
    %118 = vector.shape_cast %117 : vector<4x128xf32> to vector<4x1x128xf32>
    %119 = vector.broadcast %118 : vector<4x1x128xf32> to vector<4x16x128xf32>
    %120 = arith.mulf %110, %119 : vector<4x16x128xf32>
    %121 = vector.shape_cast %101 : vector<128xf32> to vector<1x1x128xf32>
    %122 = vector.broadcast %121 : vector<1x1x128xf32> to vector<4x16x128xf32>
    %123 = arith.mulf %120, %122 : vector<4x16x128xf32>
    %124 = vector.shape_cast %103 : vector<128xf32> to vector<1x1x128xf32>
    %125 = vector.broadcast %124 : vector<1x1x128xf32> to vector<4x16x128xf32>
    %126 = arith.addf %123, %125 : vector<4x16x128xf32>
    %cst_88 = arith.constant 0.000000e+00 : f32
    %127 = vector.broadcast %cst_88 : f32 to vector<4x16x128xf32>
    %128 = arith.maximumf %126, %127 : vector<4x16x128xf32>
    %c0_89 = arith.constant 0 : index
    %c1_90 = arith.constant 1 : index
    %c8_91 = arith.constant 8 : index
    %129 = vector.load %arg12[%c0_89, %c1_90, %c8_91] : memref<4x18x144xf32, #tpu.memory_space<vmem>>, vector<4x16x128xf32>
    tpu.vector_store %arg12[%c0_89, %c1_90, %c8_91], %128 {strides = array<i32>} : memref<4x18x144xf32, #tpu.memory_space<vmem>>, vector<4x16x128xf32>,
    %cst_92 = arith.constant 0.000000e+00 : f32
    %130 = vector.broadcast %cst_92 : f32 to vector<64x256xf32>
    %c0_93 = arith.constant 0 : index
    %c0_94 = arith.constant 0 : index
    %c0_95 = arith.constant 0 : index
    %131 = vector.load %arg12[%c0_93, %c0_94, %c0_95] : memref<4x18x144xf32, #tpu.memory_space<vmem>>, vector<4x16x144xf32>
    %132 = vector.shape_cast %131 : vector<4x16x144xf32> to vector<64x144xf32>
    %133 = arith.truncf %132 : vector<64x144xf32> to vector<64x144xbf16>
    %c0_96 = arith.constant 0 : index
    %c0_97 = arith.constant 0 : index
    %c0_98 = arith.constant 0 : index
    %134 = vector.load %arg5[%c0_96, %c0_97, %c0_98] : memref<3x144x256xbf16, #tpu.memory_space<vmem>>, vector<1x144x256xbf16>
    %135 = vector.shape_cast %134 : vector<1x144x256xbf16> to vector<144x256xbf16>
    %cst_99 = arith.constant dense<0.000000e+00> : vector<64x256xf32>
    %136 = tpu.matmul %133, %135, %cst_99 {dimension_numbers = #tpu.dot_dimension_numbers<[1], [0], [0], [1], [0, 0, 1, 1], [], []>} : vector<64x144xbf16>, vector<144x256xbf16>, vector<64x256xf32> -> vector<64x256xf32>
    %137 = arith.addf %130, %136 : vector<64x256xf32>
    %c0_100 = arith.constant 0 : index
    %c1_101 = arith.constant 1 : index
    %c0_102 = arith.constant 0 : index
    %138 = vector.load %arg12[%c0_100, %c1_101, %c0_102] : memref<4x18x144xf32, #tpu.memory_space<vmem>>, vector<4x16x144xf32>
    %139 = vector.shape_cast %138 : vector<4x16x144xf32> to vector<64x144xf32>
    %140 = arith.truncf %139 : vector<64x144xf32> to vector<64x144xbf16>
    %c1_103 = arith.constant 1 : index
    %c0_104 = arith.constant 0 : index
    %c0_105 = arith.constant 0 : index
    %141 = vector.load %arg5[%c1_103, %c0_104, %c0_105] : memref<3x144x256xbf16, #tpu.memory_space<vmem>>, vector<1x144x256xbf16>
    %142 = vector.shape_cast %141 : vector<1x144x256xbf16> to vector<144x256xbf16>
    %cst_106 = arith.constant dense<0.000000e+00> : vector<64x256xf32>
    %143 = tpu.matmul %140, %142, %cst_106 {dimension_numbers = #tpu.dot_dimension_numbers<[1], [0], [0], [1], [0, 0, 1, 1], [], []>} : vector<64x144xbf16>, vector<144x256xbf16>, vector<64x256xf32> -> vector<64x256xf32>
    %144 = arith.addf %137, %143 : vector<64x256xf32>
    %c0_107 = arith.constant 0 : index
    %c2_108 = arith.constant 2 : index
    %c0_109 = arith.constant 0 : index
    %145 = vector.load %arg12[%c0_107, %c2_108, %c0_109] : memref<4x18x144xf32, #tpu.memory_space<vmem>>, vector<4x16x144xf32>
    %146 = vector.shape_cast %145 : vector<4x16x144xf32> to vector<64x144xf32>
    %147 = arith.truncf %146 : vector<64x144xf32> to vector<64x144xbf16>
    %c2_110 = arith.constant 2 : index
    %c0_111 = arith.constant 0 : index
    %c0_112 = arith.constant 0 : index
    %148 = vector.load %arg5[%c2_110, %c0_111, %c0_112] : memref<3x144x256xbf16, #tpu.memory_space<vmem>>, vector<1x144x256xbf16>
    %149 = vector.shape_cast %148 : vector<1x144x256xbf16> to vector<144x256xbf16>
    %cst_113 = arith.constant dense<0.000000e+00> : vector<64x256xf32>
    %150 = tpu.matmul %147, %149, %cst_113 {dimension_numbers = #tpu.dot_dimension_numbers<[1], [0], [0], [1], [0, 0, 1, 1], [], []>} : vector<64x144xbf16>, vector<144x256xbf16>, vector<64x256xf32> -> vector<64x256xf32>
    %151 = arith.addf %144, %150 : vector<64x256xf32>
    %c0_114 = arith.constant 0 : index
    %c0_115 = arith.constant 0 : index
    %152 = vector.load %arg7[%c0_114, %c0_115] : memref<1x256xf32, #tpu.memory_space<vmem>>, vector<1x256xf32>
    %153 = vector.shape_cast %152 : vector<1x256xf32> to vector<256xf32>
    %154 = vector.shape_cast %153 : vector<256xf32> to vector<1x256xf32>
    %155 = vector.broadcast %154 : vector<1x256xf32> to vector<64x256xf32>
    %156 = arith.addf %151, %155 : vector<64x256xf32>
    %157 = vector.shape_cast %156 : vector<64x256xf32> to vector<4x16x256xf32>
    %158 = vector.extract_strided_slice %157 {offsets = [0, 0, 0], sizes = [4, 16, 16], strides = [1, 1, 1]} : vector<4x16x256xf32> to vector<4x16x16xf32>
    %c0_116 = arith.constant 0 : index
    %c0_117 = arith.constant 0 : index
    %c0_118 = arith.constant 0 : index
    %159 = vector.load %arg13[%c0_116, %c0_117, %c0_118] : memref<4x256x16xf32, #tpu.memory_space<vmem>>, vector<4x16x16xf32>
    tpu.vector_store %arg13[%c0_116, %c0_117, %c0_118], %158 {strides = array<i32>} : memref<4x256x16xf32, #tpu.memory_space<vmem>>, vector<4x16x16xf32>,
    %160 = vector.extract_strided_slice %157 {offsets = [0, 0, 16], sizes = [4, 16, 16], strides = [1, 1, 1]} : vector<4x16x256xf32> to vector<4x16x16xf32>
    %c0_119 = arith.constant 0 : index
    %c16 = arith.constant 16 : index
    %c0_120 = arith.constant 0 : index
    %161 = vector.load %arg13[%c0_119, %c16, %c0_120] : memref<4x256x16xf32, #tpu.memory_space<vmem>>, vector<4x16x16xf32>
    tpu.vector_store %arg13[%c0_119, %c16, %c0_120], %160 {strides = array<i32>} : memref<4x256x16xf32, #tpu.memory_space<vmem>>, vector<4x16x16xf32>,
    %162 = vector.extract_strided_slice %157 {offsets = [0, 0, 32], sizes = [4, 16, 16], strides = [1, 1, 1]} : vector<4x16x256xf32> to vector<4x16x16xf32>
    %c0_121 = arith.constant 0 : index
    %c32 = arith.constant 32 : index
    %c0_122 = arith.constant 0 : index
    %163 = vector.load %arg13[%c0_121, %c32, %c0_122] : memref<4x256x16xf32, #tpu.memory_space<vmem>>, vector<4x16x16xf32>
    tpu.vector_store %arg13[%c0_121, %c32, %c0_122], %162 {strides = array<i32>} : memref<4x256x16xf32, #tpu.memory_space<vmem>>, vector<4x16x16xf32>,
    %164 = vector.extract_strided_slice %157 {offsets = [0, 0, 48], sizes = [4, 16, 16], strides = [1, 1, 1]} : vector<4x16x256xf32> to vector<4x16x16xf32>
    %c0_123 = arith.constant 0 : index
    %c48 = arith.constant 48 : index
    %c0_124 = arith.constant 0 : index
    %165 = vector.load %arg13[%c0_123, %c48, %c0_124] : memref<4x256x16xf32, #tpu.memory_space<vmem>>, vector<4x16x16xf32>
    tpu.vector_store %arg13[%c0_123, %c48, %c0_124], %164 {strides = array<i32>} : memref<4x256x16xf32, #tpu.memory_space<vmem>>, vector<4x16x16xf32>,
    %166 = vector.extract_strided_slice %157 {offsets = [0, 0, 64], sizes = [4, 16, 16], strides = [1, 1, 1]} : vector<4x16x256xf32> to vector<4x16x16xf32>
    %c0_125 = arith.constant 0 : index
    %c64 = arith.constant 64 : index
    %c0_126 = arith.constant 0 : index
    %167 = vector.load %arg13[%c0_125, %c64, %c0_126] : memref<4x256x16xf32, #tpu.memory_space<vmem>>, vector<4x16x16xf32>
    tpu.vector_store %arg13[%c0_125, %c64, %c0_126], %166 {strides = array<i32>} : memref<4x256x16xf32, #tpu.memory_space<vmem>>, vector<4x16x16xf32>,
    %168 = vector.extract_strided_slice %157 {offsets = [0, 0, 80], sizes = [4, 16, 16], strides = [1, 1, 1]} : vector<4x16x256xf32> to vector<4x16x16xf32>
    %c0_127 = arith.constant 0 : index
    %c80 = arith.constant 80 : index
    %c0_128 = arith.constant 0 : index
    %169 = vector.load %arg13[%c0_127, %c80, %c0_128] : memref<4x256x16xf32, #tpu.memory_space<vmem>>, vector<4x16x16xf32>
    tpu.vector_store %arg13[%c0_127, %c80, %c0_128], %168 {strides = array<i32>} : memref<4x256x16xf32, #tpu.memory_space<vmem>>, vector<4x16x16xf32>,
    %170 = vector.extract_strided_slice %157 {offsets = [0, 0, 96], sizes = [4, 16, 16], strides = [1, 1, 1]} : vector<4x16x256xf32> to vector<4x16x16xf32>
    %c0_129 = arith.constant 0 : index
    %c96 = arith.constant 96 : index
    %c0_130 = arith.constant 0 : index
    %171 = vector.load %arg13[%c0_129, %c96, %c0_130] : memref<4x256x16xf32, #tpu.memory_space<vmem>>, vector<4x16x16xf32>
    tpu.vector_store %arg13[%c0_129, %c96, %c0_130], %170 {strides = array<i32>} : memref<4x256x16xf32, #tpu.memory_space<vmem>>, vector<4x16x16xf32>,
    %172 = vector.extract_strided_slice %157 {offsets = [0, 0, 112], sizes = [4, 16, 16], strides = [1, 1, 1]} : vector<4x16x256xf32> to vector<4x16x16xf32>
    %c0_131 = arith.constant 0 : index
    %c112 = arith.constant 112 : index
    %c0_132 = arith.constant 0 : index
    %173 = vector.load %arg13[%c0_131, %c112, %c0_132] : memref<4x256x16xf32, #tpu.memory_space<vmem>>, vector<4x16x16xf32>
    tpu.vector_store %arg13[%c0_131, %c112, %c0_132], %172 {strides = array<i32>} : memref<4x256x16xf32, #tpu.memory_space<vmem>>, vector<4x16x16xf32>,
    %174 = vector.extract_strided_slice %157 {offsets = [0, 0, 128], sizes = [4, 16, 16], strides = [1, 1, 1]} : vector<4x16x256xf32> to vector<4x16x16xf32>
    %c0_133 = arith.constant 0 : index
    %c128 = arith.constant 128 : index
    %c0_134 = arith.constant 0 : index
    %175 = vector.load %arg13[%c0_133, %c128, %c0_134] : memref<4x256x16xf32, #tpu.memory_space<vmem>>, vector<4x16x16xf32>
    tpu.vector_store %arg13[%c0_133, %c128, %c0_134], %174 {strides = array<i32>} : memref<4x256x16xf32, #tpu.memory_space<vmem>>, vector<4x16x16xf32>,
    %176 = vector.extract_strided_slice %157 {offsets = [0, 0, 144], sizes = [4, 16, 16], strides = [1, 1, 1]} : vector<4x16x256xf32> to vector<4x16x16xf32>
    %c0_135 = arith.constant 0 : index
    %c144 = arith.constant 144 : index
    %c0_136 = arith.constant 0 : index
    %177 = vector.load %arg13[%c0_135, %c144, %c0_136] : memref<4x256x16xf32, #tpu.memory_space<vmem>>, vector<4x16x16xf32>
    tpu.vector_store %arg13[%c0_135, %c144, %c0_136], %176 {strides = array<i32>} : memref<4x256x16xf32, #tpu.memory_space<vmem>>, vector<4x16x16xf32>,
    %178 = vector.extract_strided_slice %157 {offsets = [0, 0, 160], sizes = [4, 16, 16], strides = [1, 1, 1]} : vector<4x16x256xf32> to vector<4x16x16xf32>
    %c0_137 = arith.constant 0 : index
    %c160 = arith.constant 160 : index
    %c0_138 = arith.constant 0 : index
    %179 = vector.load %arg13[%c0_137, %c160, %c0_138] : memref<4x256x16xf32, #tpu.memory_space<vmem>>, vector<4x16x16xf32>
    tpu.vector_store %arg13[%c0_137, %c160, %c0_138], %178 {strides = array<i32>} : memref<4x256x16xf32, #tpu.memory_space<vmem>>, vector<4x16x16xf32>,
    %180 = vector.extract_strided_slice %157 {offsets = [0, 0, 176], sizes = [4, 16, 16], strides = [1, 1, 1]} : vector<4x16x256xf32> to vector<4x16x16xf32>
    %c0_139 = arith.constant 0 : index
    %c176 = arith.constant 176 : index
    %c0_140 = arith.constant 0 : index
    %181 = vector.load %arg13[%c0_139, %c176, %c0_140] : memref<4x256x16xf32, #tpu.memory_space<vmem>>, vector<4x16x16xf32>
    tpu.vector_store %arg13[%c0_139, %c176, %c0_140], %180 {strides = array<i32>} : memref<4x256x16xf32, #tpu.memory_space<vmem>>, vector<4x16x16xf32>,
    %182 = vector.extract_strided_slice %157 {offsets = [0, 0, 192], sizes = [4, 16, 16], strides = [1, 1, 1]} : vector<4x16x256xf32> to vector<4x16x16xf32>
    %c0_141 = arith.constant 0 : index
    %c192 = arith.constant 192 : index
    %c0_142 = arith.constant 0 : index
    %183 = vector.load %arg13[%c0_141, %c192, %c0_142] : memref<4x256x16xf32, #tpu.memory_space<vmem>>, vector<4x16x16xf32>
    tpu.vector_store %arg13[%c0_141, %c192, %c0_142], %182 {strides = array<i32>} : memref<4x256x16xf32, #tpu.memory_space<vmem>>, vector<4x16x16xf32>,
    %184 = vector.extract_strided_slice %157 {offsets = [0, 0, 208], sizes = [4, 16, 16], strides = [1, 1, 1]} : vector<4x16x256xf32> to vector<4x16x16xf32>
    %c0_143 = arith.constant 0 : index
    %c208 = arith.constant 208 : index
    %c0_144 = arith.constant 0 : index
    %185 = vector.load %arg13[%c0_143, %c208, %c0_144] : memref<4x256x16xf32, #tpu.memory_space<vmem>>, vector<4x16x16xf32>
    tpu.vector_store %arg13[%c0_143, %c208, %c0_144], %184 {strides = array<i32>} : memref<4x256x16xf32, #tpu.memory_space<vmem>>, vector<4x16x16xf32>,
    %186 = vector.extract_strided_slice %157 {offsets = [0, 0, 224], sizes = [4, 16, 16], strides = [1, 1, 1]} : vector<4x16x256xf32> to vector<4x16x16xf32>
    %c0_145 = arith.constant 0 : index
    %c224 = arith.constant 224 : index
    %c0_146 = arith.constant 0 : index
    %187 = vector.load %arg13[%c0_145, %c224, %c0_146] : memref<4x256x16xf32, #tpu.memory_space<vmem>>, vector<4x16x16xf32>
    tpu.vector_store %arg13[%c0_145, %c224, %c0_146], %186 {strides = array<i32>} : memref<4x256x16xf32, #tpu.memory_space<vmem>>, vector<4x16x16xf32>,
    %188 = vector.extract_strided_slice %157 {offsets = [0, 0, 240], sizes = [4, 16, 16], strides = [1, 1, 1]} : vector<4x16x256xf32> to vector<4x16x16xf32>
    %c0_147 = arith.constant 0 : index
    %c240 = arith.constant 240 : index
    %c0_148 = arith.constant 0 : index
    %189 = vector.load %arg13[%c0_147, %c240, %c0_148] : memref<4x256x16xf32, #tpu.memory_space<vmem>>, vector<4x16x16xf32>
    tpu.vector_store %arg13[%c0_147, %c240, %c0_148], %188 {strides = array<i32>} : memref<4x256x16xf32, #tpu.memory_space<vmem>>, vector<4x16x16xf32>,
    %c0_149 = arith.constant 0 : index
    %c0_150 = arith.constant 0 : index
    %c0_151 = arith.constant 0 : index
    %190 = vector.load %arg13[%c0_149, %c0_150, %c0_151] : memref<4x256x16xf32, #tpu.memory_space<vmem>>, vector<4x256x16xf32>
    %cst_152 = arith.constant dense<0xFF800000> : vector<4x16xf32>
    %191 = vector.multi_reduction <maximumf>, %190, %cst_152 [1] : vector<4x256x16xf32> to vector<4x16xf32>
    %192 = vector.shape_cast %191 : vector<4x16xf32> to vector<4x1x16xf32>
    %193 = vector.broadcast %192 : vector<4x1x16xf32> to vector<4x256x16xf32>
    %194 = arith.subf %190, %193 : vector<4x256x16xf32>
    %195 = math.exp %194 : vector<4x256x16xf32>
    %cst_153 = arith.constant dense<0.000000e+00> : vector<4x16xf32>
    %196 = vector.multi_reduction <add>, %195, %cst_153 [1] : vector<4x256x16xf32> to vector<4x16xf32>
    %197 = vector.shape_cast %196 : vector<4x16xf32> to vector<4x1x16xf32>
    %198 = tpu.reciprocal %197 {approx = true} : vector<4x1x16xf32> -> vector<4x1x16xf32>
    %199 = vector.broadcast %198 : vector<4x1x16xf32> to vector<4x256x16xf32>
    %200 = arith.mulf %195, %199 : vector<4x256x16xf32>
    %201 = vector.extract_strided_slice %200 {offsets = [0, 0, 0], sizes = [1, 256, 16], strides = [1, 1, 1]} : vector<4x256x16xf32> to vector<1x256x16xf32>
    %202 = vector.shape_cast %201 : vector<1x256x16xf32> to vector<256x16xf32>
    %203 = arith.truncf %202 : vector<256x16xf32> to vector<256x16xbf16>
    %c0_154 = arith.constant 0 : index
    %c0_155 = arith.constant 0 : index
    %c0_156 = arith.constant 0 : index
    %204 = vector.load %arg2[%c0_154, %c0_155, %c0_156] : memref<4x256x8xf32, #tpu.memory_space<vmem>>, vector<1x256x8xf32>
    %205 = vector.shape_cast %204 : vector<1x256x8xf32> to vector<256x8xf32>
    %206 = arith.truncf %205 : vector<256x8xf32> to vector<256x8xbf16>
    %cst_157 = arith.constant dense<0.000000e+00> : vector<16x8xf32>
    %207 = tpu.matmul %203, %206, %cst_157 {dimension_numbers = #tpu.dot_dimension_numbers<[0], [0], [1], [1], [0, 1, 1, 1], [], []>} : vector<256x16xbf16>, vector<256x8xbf16>, vector<16x8xf32> -> vector<16x8xf32>
    %c0_158 = arith.constant 0 : index
    %c0_159 = arith.constant 0 : index
    %c0_160 = arith.constant 0 : index
    %208 = vector.load %arg9[%c0_158, %c0_159, %c0_160] : memref<2x8x8xf32, #tpu.memory_space<vmem>>, vector<1x8x8xf32>
    %209 = vector.shape_cast %208 : vector<1x8x8xf32> to vector<8x8xf32>
    %cst_161 = arith.constant dense<0.000000e+00> : vector<16x8xf32>
    %210 = tpu.matmul %207, %209, %cst_161 {dimension_numbers = #tpu.dot_dimension_numbers<[1], [0], [0], [1], [0, 0, 1, 1], [], []>} : vector<16x8xf32>, vector<8x8xf32>, vector<16x8xf32> -> vector<16x8xf32>
    %c0_162 = arith.constant 0 : index
    %c0_163 = arith.constant 0 : index
    %211 = vector.load %arg10[%c0_162, %c0_163] : memref<2x8xf32, #tpu.memory_space<vmem>>, vector<1x8xf32>
    %212 = vector.shape_cast %211 : vector<1x8xf32> to vector<8xf32>
    %213 = vector.shape_cast %212 : vector<8xf32> to vector<1x8xf32>
    %214 = vector.broadcast %213 : vector<1x8xf32> to vector<16x8xf32>
    %215 = arith.addf %210, %214 : vector<16x8xf32>
    %cst_164 = arith.constant 0.000000e+00 : f32
    %216 = vector.broadcast %cst_164 : f32 to vector<16x8xf32>
    %217 = arith.maximumf %215, %216 : vector<16x8xf32>
    %c1_165 = arith.constant 1 : index
    %c0_166 = arith.constant 0 : index
    %c0_167 = arith.constant 0 : index
    %218 = vector.load %arg9[%c1_165, %c0_166, %c0_167] : memref<2x8x8xf32, #tpu.memory_space<vmem>>, vector<1x8x8xf32>
    %219 = vector.shape_cast %218 : vector<1x8x8xf32> to vector<8x8xf32>
    %cst_168 = arith.constant dense<0.000000e+00> : vector<16x8xf32>
    %220 = tpu.matmul %217, %219, %cst_168 {dimension_numbers = #tpu.dot_dimension_numbers<[1], [0], [0], [1], [0, 0, 1, 1], [], []>} : vector<16x8xf32>, vector<8x8xf32>, vector<16x8xf32> -> vector<16x8xf32>
    %c1_169 = arith.constant 1 : index
    %c0_170 = arith.constant 0 : index
    %221 = vector.load %arg10[%c1_169, %c0_170] : memref<2x8xf32, #tpu.memory_space<vmem>>, vector<1x8xf32>
    %222 = vector.shape_cast %221 : vector<1x8xf32> to vector<8xf32>
    %223 = vector.shape_cast %222 : vector<8xf32> to vector<1x8xf32>
    %224 = vector.broadcast %223 : vector<1x8xf32> to vector<16x8xf32>
    %225 = arith.addf %220, %224 : vector<16x8xf32>
    %cst_171 = arith.constant 0.000000e+00 : f32
    %226 = vector.broadcast %cst_171 : f32 to vector<16x8xf32>
    %227 = arith.subf %226, %225 : vector<16x8xf32>
    %228 = math.exp %227 : vector<16x8xf32>
    %cst_172 = arith.constant 1.000000e+00 : f32
    %229 = vector.broadcast %cst_172 : f32 to vector<16x8xf32>
    %230 = arith.addf %229, %228 : vector<16x8xf32>
    %cst_173 = arith.constant 1.000000e+00 : f32
    %231 = vector.broadcast %cst_173 : f32 to vector<16x8xf32>
    %232 = arith.divf %231, %230 : vector<16x8xf32>
    %233 = arith.mulf %207, %232 : vector<16x8xf32>
    %234 = vector.extract_strided_slice %200 {offsets = [1, 0, 0], sizes = [1, 256, 16], strides = [1, 1, 1]} : vector<4x256x16xf32> to vector<1x256x16xf32>
    %235 = vector.shape_cast %234 : vector<1x256x16xf32> to vector<256x16xf32>
    %236 = arith.truncf %235 : vector<256x16xf32> to vector<256x16xbf16>
    %c1_174 = arith.constant 1 : index
    %c0_175 = arith.constant 0 : index
    %c0_176 = arith.constant 0 : index
    %237 = vector.load %arg2[%c1_174, %c0_175, %c0_176] : memref<4x256x8xf32, #tpu.memory_space<vmem>>, vector<1x256x8xf32>
    %238 = vector.shape_cast %237 : vector<1x256x8xf32> to vector<256x8xf32>
    %239 = arith.truncf %238 : vector<256x8xf32> to vector<256x8xbf16>
    %cst_177 = arith.constant dense<0.000000e+00> : vector<16x8xf32>
    %240 = tpu.matmul %236, %239, %cst_177 {dimension_numbers = #tpu.dot_dimension_numbers<[0], [0], [1], [1], [0, 1, 1, 1], [], []>} : vector<256x16xbf16>, vector<256x8xbf16>, vector<16x8xf32> -> vector<16x8xf32>
    %c0_178 = arith.constant 0 : index
    %c0_179 = arith.constant 0 : index
    %c0_180 = arith.constant 0 : index
    %241 = vector.load %arg9[%c0_178, %c0_179, %c0_180] : memref<2x8x8xf32, #tpu.memory_space<vmem>>, vector<1x8x8xf32>
    %242 = vector.shape_cast %241 : vector<1x8x8xf32> to vector<8x8xf32>
    %cst_181 = arith.constant dense<0.000000e+00> : vector<16x8xf32>
    %243 = tpu.matmul %240, %242, %cst_181 {dimension_numbers = #tpu.dot_dimension_numbers<[1], [0], [0], [1], [0, 0, 1, 1], [], []>} : vector<16x8xf32>, vector<8x8xf32>, vector<16x8xf32> -> vector<16x8xf32>
    %c0_182 = arith.constant 0 : index
    %c0_183 = arith.constant 0 : index
    %244 = vector.load %arg10[%c0_182, %c0_183] : memref<2x8xf32, #tpu.memory_space<vmem>>, vector<1x8xf32>
    %245 = vector.shape_cast %244 : vector<1x8xf32> to vector<8xf32>
    %246 = vector.shape_cast %245 : vector<8xf32> to vector<1x8xf32>
    %247 = vector.broadcast %246 : vector<1x8xf32> to vector<16x8xf32>
    %248 = arith.addf %243, %247 : vector<16x8xf32>
    %cst_184 = arith.constant 0.000000e+00 : f32
    %249 = vector.broadcast %cst_184 : f32 to vector<16x8xf32>
    %250 = arith.maximumf %248, %249 : vector<16x8xf32>
    %c1_185 = arith.constant 1 : index
    %c0_186 = arith.constant 0 : index
    %c0_187 = arith.constant 0 : index
    %251 = vector.load %arg9[%c1_185, %c0_186, %c0_187] : memref<2x8x8xf32, #tpu.memory_space<vmem>>, vector<1x8x8xf32>
    %252 = vector.shape_cast %251 : vector<1x8x8xf32> to vector<8x8xf32>
    %cst_188 = arith.constant dense<0.000000e+00> : vector<16x8xf32>
    %253 = tpu.matmul %250, %252, %cst_188 {dimension_numbers = #tpu.dot_dimension_numbers<[1], [0], [0], [1], [0, 0, 1, 1], [], []>} : vector<16x8xf32>, vector<8x8xf32>, vector<16x8xf32> -> vector<16x8xf32>
    %c1_189 = arith.constant 1 : index
    %c0_190 = arith.constant 0 : index
    %254 = vector.load %arg10[%c1_189, %c0_190] : memref<2x8xf32, #tpu.memory_space<vmem>>, vector<1x8xf32>
    %255 = vector.shape_cast %254 : vector<1x8xf32> to vector<8xf32>
    %256 = vector.shape_cast %255 : vector<8xf32> to vector<1x8xf32>
    %257 = vector.broadcast %256 : vector<1x8xf32> to vector<16x8xf32>
    %258 = arith.addf %253, %257 : vector<16x8xf32>
    %cst_191 = arith.constant 0.000000e+00 : f32
    %259 = vector.broadcast %cst_191 : f32 to vector<16x8xf32>
    %260 = arith.subf %259, %258 : vector<16x8xf32>
    %261 = math.exp %260 : vector<16x8xf32>
    %cst_192 = arith.constant 1.000000e+00 : f32
    %262 = vector.broadcast %cst_192 : f32 to vector<16x8xf32>
    %263 = arith.addf %262, %261 : vector<16x8xf32>
    %cst_193 = arith.constant 1.000000e+00 : f32
    %264 = vector.broadcast %cst_193 : f32 to vector<16x8xf32>
    %265 = arith.divf %264, %263 : vector<16x8xf32>
    %266 = arith.mulf %240, %265 : vector<16x8xf32>
    %267 = vector.extract_strided_slice %200 {offsets = [2, 0, 0], sizes = [1, 256, 16], strides = [1, 1, 1]} : vector<4x256x16xf32> to vector<1x256x16xf32>
    %268 = vector.shape_cast %267 : vector<1x256x16xf32> to vector<256x16xf32>
    %269 = arith.truncf %268 : vector<256x16xf32> to vector<256x16xbf16>
    %c2_194 = arith.constant 2 : index
    %c0_195 = arith.constant 0 : index
    %c0_196 = arith.constant 0 : index
    %270 = vector.load %arg2[%c2_194, %c0_195, %c0_196] : memref<4x256x8xf32, #tpu.memory_space<vmem>>, vector<1x256x8xf32>
    %271 = vector.shape_cast %270 : vector<1x256x8xf32> to vector<256x8xf32>
    %272 = arith.truncf %271 : vector<256x8xf32> to vector<256x8xbf16>
    %cst_197 = arith.constant dense<0.000000e+00> : vector<16x8xf32>
    %273 = tpu.matmul %269, %272, %cst_197 {dimension_numbers = #tpu.dot_dimension_numbers<[0], [0], [1], [1], [0, 1, 1, 1], [], []>} : vector<256x16xbf16>, vector<256x8xbf16>, vector<16x8xf32> -> vector<16x8xf32>
    %c0_198 = arith.constant 0 : index
    %c0_199 = arith.constant 0 : index
    %c0_200 = arith.constant 0 : index
    %274 = vector.load %arg9[%c0_198, %c0_199, %c0_200] : memref<2x8x8xf32, #tpu.memory_space<vmem>>, vector<1x8x8xf32>
    %275 = vector.shape_cast %274 : vector<1x8x8xf32> to vector<8x8xf32>
    %cst_201 = arith.constant dense<0.000000e+00> : vector<16x8xf32>
    %276 = tpu.matmul %273, %275, %cst_201 {dimension_numbers = #tpu.dot_dimension_numbers<[1], [0], [0], [1], [0, 0, 1, 1], [], []>} : vector<16x8xf32>, vector<8x8xf32>, vector<16x8xf32> -> vector<16x8xf32>
    %c0_202 = arith.constant 0 : index
    %c0_203 = arith.constant 0 : index
    %277 = vector.load %arg10[%c0_202, %c0_203] : memref<2x8xf32, #tpu.memory_space<vmem>>, vector<1x8xf32>
    %278 = vector.shape_cast %277 : vector<1x8xf32> to vector<8xf32>
    %279 = vector.shape_cast %278 : vector<8xf32> to vector<1x8xf32>
    %280 = vector.broadcast %279 : vector<1x8xf32> to vector<16x8xf32>
    %281 = arith.addf %276, %280 : vector<16x8xf32>
    %cst_204 = arith.constant 0.000000e+00 : f32
    %282 = vector.broadcast %cst_204 : f32 to vector<16x8xf32>
    %283 = arith.maximumf %281, %282 : vector<16x8xf32>
    %c1_205 = arith.constant 1 : index
    %c0_206 = arith.constant 0 : index
    %c0_207 = arith.constant 0 : index
    %284 = vector.load %arg9[%c1_205, %c0_206, %c0_207] : memref<2x8x8xf32, #tpu.memory_space<vmem>>, vector<1x8x8xf32>
    %285 = vector.shape_cast %284 : vector<1x8x8xf32> to vector<8x8xf32>
    %cst_208 = arith.constant dense<0.000000e+00> : vector<16x8xf32>
    %286 = tpu.matmul %283, %285, %cst_208 {dimension_numbers = #tpu.dot_dimension_numbers<[1], [0], [0], [1], [0, 0, 1, 1], [], []>} : vector<16x8xf32>, vector<8x8xf32>, vector<16x8xf32> -> vector<16x8xf32>
    %c1_209 = arith.constant 1 : index
    %c0_210 = arith.constant 0 : index
    %287 = vector.load %arg10[%c1_209, %c0_210] : memref<2x8xf32, #tpu.memory_space<vmem>>, vector<1x8xf32>
    %288 = vector.shape_cast %287 : vector<1x8xf32> to vector<8xf32>
    %289 = vector.shape_cast %288 : vector<8xf32> to vector<1x8xf32>
    %290 = vector.broadcast %289 : vector<1x8xf32> to vector<16x8xf32>
    %291 = arith.addf %286, %290 : vector<16x8xf32>
    %cst_211 = arith.constant 0.000000e+00 : f32
    %292 = vector.broadcast %cst_211 : f32 to vector<16x8xf32>
    %293 = arith.subf %292, %291 : vector<16x8xf32>
    %294 = math.exp %293 : vector<16x8xf32>
    %cst_212 = arith.constant 1.000000e+00 : f32
    %295 = vector.broadcast %cst_212 : f32 to vector<16x8xf32>
    %296 = arith.addf %295, %294 : vector<16x8xf32>
    %cst_213 = arith.constant 1.000000e+00 : f32
    %297 = vector.broadcast %cst_213 : f32 to vector<16x8xf32>
    %298 = arith.divf %297, %296 : vector<16x8xf32>
    %299 = arith.mulf %273, %298 : vector<16x8xf32>
    %300 = vector.extract_strided_slice %200 {offsets = [3, 0, 0], sizes = [1, 256, 16], strides = [1, 1, 1]} : vector<4x256x16xf32> to vector<1x256x16xf32>
    %301 = vector.shape_cast %300 : vector<1x256x16xf32> to vector<256x16xf32>
    %302 = arith.truncf %301 : vector<256x16xf32> to vector<256x16xbf16>
    %c3_214 = arith.constant 3 : index
    %c0_215 = arith.constant 0 : index
    %c0_216 = arith.constant 0 : index
    %303 = vector.load %arg2[%c3_214, %c0_215, %c0_216] : memref<4x256x8xf32, #tpu.memory_space<vmem>>, vector<1x256x8xf32>
    %304 = vector.shape_cast %303 : vector<1x256x8xf32> to vector<256x8xf32>
    %305 = arith.truncf %304 : vector<256x8xf32> to vector<256x8xbf16>
    %cst_217 = arith.constant dense<0.000000e+00> : vector<16x8xf32>
    %306 = tpu.matmul %302, %305, %cst_217 {dimension_numbers = #tpu.dot_dimension_numbers<[0], [0], [1], [1], [0, 1, 1, 1], [], []>} : vector<256x16xbf16>, vector<256x8xbf16>, vector<16x8xf32> -> vector<16x8xf32>
    %c0_218 = arith.constant 0 : index
    %c0_219 = arith.constant 0 : index
    %c0_220 = arith.constant 0 : index
    %307 = vector.load %arg9[%c0_218, %c0_219, %c0_220] : memref<2x8x8xf32, #tpu.memory_space<vmem>>, vector<1x8x8xf32>
    %308 = vector.shape_cast %307 : vector<1x8x8xf32> to vector<8x8xf32>
    %cst_221 = arith.constant dense<0.000000e+00> : vector<16x8xf32>
    %309 = tpu.matmul %306, %308, %cst_221 {dimension_numbers = #tpu.dot_dimension_numbers<[1], [0], [0], [1], [0, 0, 1, 1], [], []>} : vector<16x8xf32>, vector<8x8xf32>, vector<16x8xf32> -> vector<16x8xf32>
    %c0_222 = arith.constant 0 : index
    %c0_223 = arith.constant 0 : index
    %310 = vector.load %arg10[%c0_222, %c0_223] : memref<2x8xf32, #tpu.memory_space<vmem>>, vector<1x8xf32>
    %311 = vector.shape_cast %310 : vector<1x8xf32> to vector<8xf32>
    %312 = vector.shape_cast %311 : vector<8xf32> to vector<1x8xf32>
    %313 = vector.broadcast %312 : vector<1x8xf32> to vector<16x8xf32>
    %314 = arith.addf %309, %313 : vector<16x8xf32>
    %cst_224 = arith.constant 0.000000e+00 : f32
    %315 = vector.broadcast %cst_224 : f32 to vector<16x8xf32>
    %316 = arith.maximumf %314, %315 : vector<16x8xf32>
    %c1_225 = arith.constant 1 : index
    %c0_226 = arith.constant 0 : index
    %c0_227 = arith.constant 0 : index
    %317 = vector.load %arg9[%c1_225, %c0_226, %c0_227] : memref<2x8x8xf32, #tpu.memory_space<vmem>>, vector<1x8x8xf32>
    %318 = vector.shape_cast %317 : vector<1x8x8xf32> to vector<8x8xf32>
    %cst_228 = arith.constant dense<0.000000e+00> : vector<16x8xf32>
    %319 = tpu.matmul %316, %318, %cst_228 {dimension_numbers = #tpu.dot_dimension_numbers<[1], [0], [0], [1], [0, 0, 1, 1], [], []>} : vector<16x8xf32>, vector<8x8xf32>, vector<16x8xf32> -> vector<16x8xf32>
    %c1_229 = arith.constant 1 : index
    %c0_230 = arith.constant 0 : index
    %320 = vector.load %arg10[%c1_229, %c0_230] : memref<2x8xf32, #tpu.memory_space<vmem>>, vector<1x8xf32>
    %321 = vector.shape_cast %320 : vector<1x8xf32> to vector<8xf32>
    %322 = vector.shape_cast %321 : vector<8xf32> to vector<1x8xf32>
    %323 = vector.broadcast %322 : vector<1x8xf32> to vector<16x8xf32>
    %324 = arith.addf %319, %323 : vector<16x8xf32>
    %cst_231 = arith.constant 0.000000e+00 : f32
    %325 = vector.broadcast %cst_231 : f32 to vector<16x8xf32>
    %326 = arith.subf %325, %324 : vector<16x8xf32>
    %327 = math.exp %326 : vector<16x8xf32>
    %cst_232 = arith.constant 1.000000e+00 : f32
    %328 = vector.broadcast %cst_232 : f32 to vector<16x8xf32>
    %329 = arith.addf %328, %327 : vector<16x8xf32>
    %cst_233 = arith.constant 1.000000e+00 : f32
    %330 = vector.broadcast %cst_233 : f32 to vector<16x8xf32>
    %331 = arith.divf %330, %329 : vector<16x8xf32>
    %332 = arith.mulf %306, %331 : vector<16x8xf32>
    %333 = vector.shape_cast %233 : vector<16x8xf32> to vector<1x16x8xf32>
    %334 = vector.shape_cast %266 : vector<16x8xf32> to vector<1x16x8xf32>
    %335 = vector.shape_cast %299 : vector<16x8xf32> to vector<1x16x8xf32>
    %336 = vector.shape_cast %332 : vector<16x8xf32> to vector<1x16x8xf32>
    %337 = tpu.concatenate %333, %334, %335, %336 in 0 : vector<1x16x8xf32>, vector<1x16x8xf32>, vector<1x16x8xf32>, vector<1x16x8xf32> -> vector<4x16x8xf32>
    %338 = vector.extract_strided_slice %337 {offsets = [0, 0, 0], sizes = [4, 1, 8], strides = [1, 1, 1]} : vector<4x16x8xf32> to vector<4x1x8xf32>
    %339 = vector.shape_cast %338 : vector<4x1x8xf32> to vector<4x8xf32>
    %c0_234 = arith.constant 0 : index
    %c0_235 = arith.constant 0 : index
    %c0_236 = arith.constant 0 : index
    %340 = vector.load %arg11[%c0_234, %c0_235, %c0_236] : memref<1x4x128xf32, #tpu.memory_space<vmem>>, vector<1x4x8xf32>
    %341 = vector.shape_cast %340 : vector<1x4x8xf32> to vector<4x8xf32>
    %342 = vector.shape_cast %339 : vector<4x8xf32> to vector<1x4x8xf32>
    tpu.vector_store %arg11[%c0_234, %c0_235, %c0_236], %342 {strides = array<i32>} : memref<1x4x128xf32, #tpu.memory_space<vmem>>, vector<1x4x8xf32>,
    %343 = vector.extract_strided_slice %337 {offsets = [0, 1, 0], sizes = [4, 1, 8], strides = [1, 1, 1]} : vector<4x16x8xf32> to vector<4x1x8xf32>
    %344 = vector.shape_cast %343 : vector<4x1x8xf32> to vector<4x8xf32>
    %c0_237 = arith.constant 0 : index
    %c0_238 = arith.constant 0 : index
    %c8_239 = arith.constant 8 : index
    %345 = vector.load %arg11[%c0_237, %c0_238, %c8_239] : memref<1x4x128xf32, #tpu.memory_space<vmem>>, vector<1x4x8xf32>
    %346 = vector.shape_cast %345 : vector<1x4x8xf32> to vector<4x8xf32>
    %347 = vector.shape_cast %344 : vector<4x8xf32> to vector<1x4x8xf32>
    tpu.vector_store %arg11[%c0_237, %c0_238, %c8_239], %347 {strides = array<i32>} : memref<1x4x128xf32, #tpu.memory_space<vmem>>, vector<1x4x8xf32>,
    %348 = vector.extract_strided_slice %337 {offsets = [0, 2, 0], sizes = [4, 1, 8], strides = [1, 1, 1]} : vector<4x16x8xf32> to vector<4x1x8xf32>
    %349 = vector.shape_cast %348 : vector<4x1x8xf32> to vector<4x8xf32>
    %c0_240 = arith.constant 0 : index
    %c0_241 = arith.constant 0 : index
    %c16_242 = arith.constant 16 : index
    %350 = vector.load %arg11[%c0_240, %c0_241, %c16_242] : memref<1x4x128xf32, #tpu.memory_space<vmem>>, vector<1x4x8xf32>
    %351 = vector.shape_cast %350 : vector<1x4x8xf32> to vector<4x8xf32>
    %352 = vector.shape_cast %349 : vector<4x8xf32> to vector<1x4x8xf32>
    tpu.vector_store %arg11[%c0_240, %c0_241, %c16_242], %352 {strides = array<i32>} : memref<1x4x128xf32, #tpu.memory_space<vmem>>, vector<1x4x8xf32>,
    %353 = vector.extract_strided_slice %337 {offsets = [0, 3, 0], sizes = [4, 1, 8], strides = [1, 1, 1]} : vector<4x16x8xf32> to vector<4x1x8xf32>
    %354 = vector.shape_cast %353 : vector<4x1x8xf32> to vector<4x8xf32>
    %c0_243 = arith.constant 0 : index
    %c0_244 = arith.constant 0 : index
    %c24 = arith.constant 24 : index
    %355 = vector.load %arg11[%c0_243, %c0_244, %c24] : memref<1x4x128xf32, #tpu.memory_space<vmem>>, vector<1x4x8xf32>
    %356 = vector.shape_cast %355 : vector<1x4x8xf32> to vector<4x8xf32>
    %357 = vector.shape_cast %354 : vector<4x8xf32> to vector<1x4x8xf32>
    tpu.vector_store %arg11[%c0_243, %c0_244, %c24], %357 {strides = array<i32>} : memref<1x4x128xf32, #tpu.memory_space<vmem>>, vector<1x4x8xf32>,
    %358 = vector.extract_strided_slice %337 {offsets = [0, 4, 0], sizes = [4, 1, 8], strides = [1, 1, 1]} : vector<4x16x8xf32> to vector<4x1x8xf32>
    %359 = vector.shape_cast %358 : vector<4x1x8xf32> to vector<4x8xf32>
    %c0_245 = arith.constant 0 : index
    %c0_246 = arith.constant 0 : index
    %c32_247 = arith.constant 32 : index
    %360 = vector.load %arg11[%c0_245, %c0_246, %c32_247] : memref<1x4x128xf32, #tpu.memory_space<vmem>>, vector<1x4x8xf32>
    %361 = vector.shape_cast %360 : vector<1x4x8xf32> to vector<4x8xf32>
    %362 = vector.shape_cast %359 : vector<4x8xf32> to vector<1x4x8xf32>
    tpu.vector_store %arg11[%c0_245, %c0_246, %c32_247], %362 {strides = array<i32>} : memref<1x4x128xf32, #tpu.memory_space<vmem>>, vector<1x4x8xf32>,
    %363 = vector.extract_strided_slice %337 {offsets = [0, 5, 0], sizes = [4, 1, 8], strides = [1, 1, 1]} : vector<4x16x8xf32> to vector<4x1x8xf32>
    %364 = vector.shape_cast %363 : vector<4x1x8xf32> to vector<4x8xf32>
    %c0_248 = arith.constant 0 : index
    %c0_249 = arith.constant 0 : index
    %c40 = arith.constant 40 : index
    %365 = vector.load %arg11[%c0_248, %c0_249, %c40] : memref<1x4x128xf32, #tpu.memory_space<vmem>>, vector<1x4x8xf32>
    %366 = vector.shape_cast %365 : vector<1x4x8xf32> to vector<4x8xf32>
    %367 = vector.shape_cast %364 : vector<4x8xf32> to vector<1x4x8xf32>
    tpu.vector_store %arg11[%c0_248, %c0_249, %c40], %367 {strides = array<i32>} : memref<1x4x128xf32, #tpu.memory_space<vmem>>, vector<1x4x8xf32>,
    %368 = vector.extract_strided_slice %337 {offsets = [0, 6, 0], sizes = [4, 1, 8], strides = [1, 1, 1]} : vector<4x16x8xf32> to vector<4x1x8xf32>
    %369 = vector.shape_cast %368 : vector<4x1x8xf32> to vector<4x8xf32>
    %c0_250 = arith.constant 0 : index
    %c0_251 = arith.constant 0 : index
    %c48_252 = arith.constant 48 : index
    %370 = vector.load %arg11[%c0_250, %c0_251, %c48_252] : memref<1x4x128xf32, #tpu.memory_space<vmem>>, vector<1x4x8xf32>
    %371 = vector.shape_cast %370 : vector<1x4x8xf32> to vector<4x8xf32>
    %372 = vector.shape_cast %369 : vector<4x8xf32> to vector<1x4x8xf32>
    tpu.vector_store %arg11[%c0_250, %c0_251, %c48_252], %372 {strides = array<i32>} : memref<1x4x128xf32, #tpu.memory_space<vmem>>, vector<1x4x8xf32>,
    %373 = vector.extract_strided_slice %337 {offsets = [0, 7, 0], sizes = [4, 1, 8], strides = [1, 1, 1]} : vector<4x16x8xf32> to vector<4x1x8xf32>
    %374 = vector.shape_cast %373 : vector<4x1x8xf32> to vector<4x8xf32>
    %c0_253 = arith.constant 0 : index
    %c0_254 = arith.constant 0 : index
    %c56 = arith.constant 56 : index
    %375 = vector.load %arg11[%c0_253, %c0_254, %c56] : memref<1x4x128xf32, #tpu.memory_space<vmem>>, vector<1x4x8xf32>
    %376 = vector.shape_cast %375 : vector<1x4x8xf32> to vector<4x8xf32>
    %377 = vector.shape_cast %374 : vector<4x8xf32> to vector<1x4x8xf32>
    tpu.vector_store %arg11[%c0_253, %c0_254, %c56], %377 {strides = array<i32>} : memref<1x4x128xf32, #tpu.memory_space<vmem>>, vector<1x4x8xf32>,
    %378 = vector.extract_strided_slice %337 {offsets = [0, 8, 0], sizes = [4, 1, 8], strides = [1, 1, 1]} : vector<4x16x8xf32> to vector<4x1x8xf32>
    %379 = vector.shape_cast %378 : vector<4x1x8xf32> to vector<4x8xf32>
    %c0_255 = arith.constant 0 : index
    %c0_256 = arith.constant 0 : index
    %c64_257 = arith.constant 64 : index
    %380 = vector.load %arg11[%c0_255, %c0_256, %c64_257] : memref<1x4x128xf32, #tpu.memory_space<vmem>>, vector<1x4x8xf32>
    %381 = vector.shape_cast %380 : vector<1x4x8xf32> to vector<4x8xf32>
    %382 = vector.shape_cast %379 : vector<4x8xf32> to vector<1x4x8xf32>
    tpu.vector_store %arg11[%c0_255, %c0_256, %c64_257], %382 {strides = array<i32>} : memref<1x4x128xf32, #tpu.memory_space<vmem>>, vector<1x4x8xf32>,
    %383 = vector.extract_strided_slice %337 {offsets = [0, 9, 0], sizes = [4, 1, 8], strides = [1, 1, 1]} : vector<4x16x8xf32> to vector<4x1x8xf32>
    %384 = vector.shape_cast %383 : vector<4x1x8xf32> to vector<4x8xf32>
    %c0_258 = arith.constant 0 : index
    %c0_259 = arith.constant 0 : index
    %c72 = arith.constant 72 : index
    %385 = vector.load %arg11[%c0_258, %c0_259, %c72] : memref<1x4x128xf32, #tpu.memory_space<vmem>>, vector<1x4x8xf32>
    %386 = vector.shape_cast %385 : vector<1x4x8xf32> to vector<4x8xf32>
    %387 = vector.shape_cast %384 : vector<4x8xf32> to vector<1x4x8xf32>
    tpu.vector_store %arg11[%c0_258, %c0_259, %c72], %387 {strides = array<i32>} : memref<1x4x128xf32, #tpu.memory_space<vmem>>, vector<1x4x8xf32>,
    %388 = vector.extract_strided_slice %337 {offsets = [0, 10, 0], sizes = [4, 1, 8], strides = [1, 1, 1]} : vector<4x16x8xf32> to vector<4x1x8xf32>
    %389 = vector.shape_cast %388 : vector<4x1x8xf32> to vector<4x8xf32>
    %c0_260 = arith.constant 0 : index
    %c0_261 = arith.constant 0 : index
    %c80_262 = arith.constant 80 : index
    %390 = vector.load %arg11[%c0_260, %c0_261, %c80_262] : memref<1x4x128xf32, #tpu.memory_space<vmem>>, vector<1x4x8xf32>
    %391 = vector.shape_cast %390 : vector<1x4x8xf32> to vector<4x8xf32>
    %392 = vector.shape_cast %389 : vector<4x8xf32> to vector<1x4x8xf32>
    tpu.vector_store %arg11[%c0_260, %c0_261, %c80_262], %392 {strides = array<i32>} : memref<1x4x128xf32, #tpu.memory_space<vmem>>, vector<1x4x8xf32>,
    %393 = vector.extract_strided_slice %337 {offsets = [0, 11, 0], sizes = [4, 1, 8], strides = [1, 1, 1]} : vector<4x16x8xf32> to vector<4x1x8xf32>
    %394 = vector.shape_cast %393 : vector<4x1x8xf32> to vector<4x8xf32>
    %c0_263 = arith.constant 0 : index
    %c0_264 = arith.constant 0 : index
    %c88 = arith.constant 88 : index
    %395 = vector.load %arg11[%c0_263, %c0_264, %c88] : memref<1x4x128xf32, #tpu.memory_space<vmem>>, vector<1x4x8xf32>
    %396 = vector.shape_cast %395 : vector<1x4x8xf32> to vector<4x8xf32>
    %397 = vector.shape_cast %394 : vector<4x8xf32> to vector<1x4x8xf32>
    tpu.vector_store %arg11[%c0_263, %c0_264, %c88], %397 {strides = array<i32>} : memref<1x4x128xf32, #tpu.memory_space<vmem>>, vector<1x4x8xf32>,
    %398 = vector.extract_strided_slice %337 {offsets = [0, 12, 0], sizes = [4, 1, 8], strides = [1, 1, 1]} : vector<4x16x8xf32> to vector<4x1x8xf32>
    %399 = vector.shape_cast %398 : vector<4x1x8xf32> to vector<4x8xf32>
    %c0_265 = arith.constant 0 : index
    %c0_266 = arith.constant 0 : index
    %c96_267 = arith.constant 96 : index
    %400 = vector.load %arg11[%c0_265, %c0_266, %c96_267] : memref<1x4x128xf32, #tpu.memory_space<vmem>>, vector<1x4x8xf32>
    %401 = vector.shape_cast %400 : vector<1x4x8xf32> to vector<4x8xf32>
    %402 = vector.shape_cast %399 : vector<4x8xf32> to vector<1x4x8xf32>
    tpu.vector_store %arg11[%c0_265, %c0_266, %c96_267], %402 {strides = array<i32>} : memref<1x4x128xf32, #tpu.memory_space<vmem>>, vector<1x4x8xf32>,
    %403 = vector.extract_strided_slice %337 {offsets = [0, 13, 0], sizes = [4, 1, 8], strides = [1, 1, 1]} : vector<4x16x8xf32> to vector<4x1x8xf32>
    %404 = vector.shape_cast %403 : vector<4x1x8xf32> to vector<4x8xf32>
    %c0_268 = arith.constant 0 : index
    %c0_269 = arith.constant 0 : index
    %c104 = arith.constant 104 : index
    %405 = vector.load %arg11[%c0_268, %c0_269, %c104] : memref<1x4x128xf32, #tpu.memory_space<vmem>>, vector<1x4x8xf32>
    %406 = vector.shape_cast %405 : vector<1x4x8xf32> to vector<4x8xf32>
    %407 = vector.shape_cast %404 : vector<4x8xf32> to vector<1x4x8xf32>
    tpu.vector_store %arg11[%c0_268, %c0_269, %c104], %407 {strides = array<i32>} : memref<1x4x128xf32, #tpu.memory_space<vmem>>, vector<1x4x8xf32>,
    %408 = vector.extract_strided_slice %337 {offsets = [0, 14, 0], sizes = [4, 1, 8], strides = [1, 1, 1]} : vector<4x16x8xf32> to vector<4x1x8xf32>
    %409 = vector.shape_cast %408 : vector<4x1x8xf32> to vector<4x8xf32>
    %c0_270 = arith.constant 0 : index
    %c0_271 = arith.constant 0 : index
    %c112_272 = arith.constant 112 : index
    %410 = vector.load %arg11[%c0_270, %c0_271, %c112_272] : memref<1x4x128xf32, #tpu.memory_space<vmem>>, vector<1x4x8xf32>
    %411 = vector.shape_cast %410 : vector<1x4x8xf32> to vector<4x8xf32>
    %412 = vector.shape_cast %409 : vector<4x8xf32> to vector<1x4x8xf32>
    tpu.vector_store %arg11[%c0_270, %c0_271, %c112_272], %412 {strides = array<i32>} : memref<1x4x128xf32, #tpu.memory_space<vmem>>, vector<1x4x8xf32>,
    %413 = vector.extract_strided_slice %337 {offsets = [0, 15, 0], sizes = [4, 1, 8], strides = [1, 1, 1]} : vector<4x16x8xf32> to vector<4x1x8xf32>
    %414 = vector.shape_cast %413 : vector<4x1x8xf32> to vector<4x8xf32>
    %c0_273 = arith.constant 0 : index
    %c0_274 = arith.constant 0 : index
    %c120 = arith.constant 120 : index
    %415 = vector.load %arg11[%c0_273, %c0_274, %c120] : memref<1x4x128xf32, #tpu.memory_space<vmem>>, vector<1x4x8xf32>
    %416 = vector.shape_cast %415 : vector<1x4x8xf32> to vector<4x8xf32>
    %417 = vector.shape_cast %414 : vector<4x8xf32> to vector<1x4x8xf32>
    tpu.vector_store %arg11[%c0_273, %c0_274, %c120], %417 {strides = array<i32>} : memref<1x4x128xf32, #tpu.memory_space<vmem>>, vector<1x4x8xf32>,
    return
  }
  func.func @transform_0(%arg0: i32) -> (i32, i32, i32) {
    %c0_i32 = arith.constant 0 : i32
    %c0_i32_0 = arith.constant 0 : i32
    %c0_i32_1 = arith.constant 0 : i32
    return %arg0, %c0_i32, %c0_i32_0 : i32, i32, i32
  }
  func.func @transform_1(%arg0: i32) -> (i32, i32, i32) {
    %c0_i32 = arith.constant 0 : i32
    %c0_i32_0 = arith.constant 0 : i32
    %c0_i32_1 = arith.constant 0 : i32
    return %arg0, %c0_i32, %c0_i32_0 : i32, i32, i32
  }
  func.func @transform_2(%arg0: i32) -> (i32, i32, i32) {
    %c0_i32 = arith.constant 0 : i32
    %c0_i32_0 = arith.constant 0 : i32
    %c0_i32_1 = arith.constant 0 : i32
    %c0_i32_2 = arith.constant 0 : i32
    return %c0_i32, %c0_i32_0, %c0_i32_1 : i32, i32, i32
  }
  func.func @transform_3(%arg0: i32) -> (i32, i32, i32) {
    %c0_i32 = arith.constant 0 : i32
    %c0_i32_0 = arith.constant 0 : i32
    %c0_i32_1 = arith.constant 0 : i32
    %c0_i32_2 = arith.constant 0 : i32
    return %c0_i32, %c0_i32_0, %c0_i32_1 : i32, i32, i32
  }
  func.func @transform_4(%arg0: i32) -> (i32, i32, i32) {
    %c0_i32 = arith.constant 0 : i32
    %c0_i32_0 = arith.constant 0 : i32
    %c0_i32_1 = arith.constant 0 : i32
    %c0_i32_2 = arith.constant 0 : i32
    return %c0_i32, %c0_i32_0, %c0_i32_1 : i32, i32, i32
  }
  func.func @transform_5(%arg0: i32) -> (i32, i32) {
    %c0_i32 = arith.constant 0 : i32
    %c0_i32_0 = arith.constant 0 : i32
    %c0_i32_1 = arith.constant 0 : i32
    return %c0_i32, %c0_i32_0 : i32, i32
  }
  func.func @transform_6(%arg0: i32) -> (i32, i32) {
    %c0_i32 = arith.constant 0 : i32
    %c0_i32_0 = arith.constant 0 : i32
    %c0_i32_1 = arith.constant 0 : i32
    return %c0_i32, %c0_i32_0 : i32, i32
  }
  func.func @transform_7(%arg0: i32) -> (i32, i32) {
    %c0_i32 = arith.constant 0 : i32
    %c0_i32_0 = arith.constant 0 : i32
    %c0_i32_1 = arith.constant 0 : i32
    return %c0_i32, %c0_i32_0 : i32, i32
  }
  func.func @transform_8(%arg0: i32) -> (i32, i32, i32) {
    %c0_i32 = arith.constant 0 : i32
    %c0_i32_0 = arith.constant 0 : i32
    %c0_i32_1 = arith.constant 0 : i32
    %c0_i32_2 = arith.constant 0 : i32
    return %c0_i32, %c0_i32_0, %c0_i32_1 : i32, i32, i32
  }
  func.func @transform_9(%arg0: i32) -> (i32, i32) {
    %c0_i32 = arith.constant 0 : i32
    %c0_i32_0 = arith.constant 0 : i32
    %c0_i32_1 = arith.constant 0 : i32
    return %c0_i32, %c0_i32_0 : i32, i32
  }
  func.func @transform_10(%arg0: i32) -> (i32, i32, i32) {
    %c0_i32 = arith.constant 0 : i32
    %c0_i32_0 = arith.constant 0 : i32
    %c0_i32_1 = arith.constant 0 : i32
    return %arg0, %c0_i32, %c0_i32_0 : i32, i32, i32
  }
}

</mosaic_0001>

<bundles_post_ra>
// kernel: sapm_forward.1
= control target key start
LH: loop header
LB: loop body
LE: loop exit
PB: predicated region body
PF: predicated region fallthrough
CT: control target
= control target key end

     0   :  { %s8839_s13 = smov 0   ;;  %s12708_s0 = inlined_call_operand.vmem [shape: f32[8,20,160], index: 0, kind: input, shape index: {}]   ;;  %s12709_s1 = inlined_call_operand.vmem [shape: f32[8,256,8], index: 1, kind: input, shape index: {}]   ;;  %s12710_s2 = inlined_call_operand.vmem [shape: bf16[5,160,128], index: 2, kind: input, shape index: {}]   ;;  %s12711_s3 = inlined_call_operand.vmem [shape: bf16[3,144,128], index: 3, kind: input, shape index: {}]   ;;  %s12712_s4 = inlined_call_operand.vmem [shape: bf16[3,144,256], index: 4, kind: input, shape index: {}]   ;;  %s12713_s5 = inlined_call_operand.vmem [shape: f32[6,128], index: 5, kind: input, shape index: {}]   ;;  %s12714_s6 = inlined_call_operand.vmem [shape: f32[1,256], index: 6, kind: input, shape index: {}]   ;;  %s12715_s7 = inlined_call_operand.vmem [shape: f32[128,128], index: 7, kind: input, shape index: {}]   ;;  %s12716_s8 = inlined_call_operand.vmem [shape: f32[2,8,8], index: 8, kind: input, shape index: {}]   ;;  %s12717_s9 = inlined_call_operand.vmem [shape: f32[2,8], index: 9, kind: input, shape index: {}]   ;;  %s12718_s10 = inlined_call_operand.vmem [shape: f32[2,4,128], index: 10, kind: output, shape index: {}]  }
   0x1 LB: > { %s8845_s14 = sadd.s32 4294967295, %s8762_s13   ;;  %p7318_p0 = scmp.ge.s32.totalorder %s8762_s13, 1  ;;  %s8762_s13 = sphi %s8839_s13, %s20_s13  }
   0x2   : > { %p326_p1 = scmp.lt.s32.totalorder %s8762_s13, 3 }
   0x4   : > { %p327_p2 = pnand %p7318_p0, %p326_p1 }
   0x5   : > { %v8293_v0 = vld [vmem:[%s12710_s2 + $0x50] sm:$0xff] (!%p327_p2)   ;;  %v8764_v1 = vmov (!%p327_p2), 0   ;;  %v8294_v2 = vld [vmem:[%s12710_s2] sm:$0xff] (!%p327_p2)   ;;  %v8295_v3 = vld [vmem:[%s12710_s2 + $0x58] sm:$0xff] (!%p327_p2)   ;;  %s7319_s21 = sshll.u32 (!%p327_p2), %s8845_s14, 2  ;;  %vm473_vm0 = vcmask (!%p327_p2), 1046528  }
   0x6   : > { %330 = sbr.rel (%p327_p2) target bundleno = 4835 (0x12e3), region = 60  ;;  %632 = vmatprep.subr.bf16.mxu0 (!%p327_p2), %v8764_v1  ;;  %769 = vmatprep.subr.bf16.mxu1 (!%p327_p2), %v8764_v1  ;;  %v8296_v4 = vld [vmem:[%s12710_s2 + $0x8] sm:$0xff] (!%p327_p2)   ;;  %p371_p3 = scmp.lt.s32.totalorder (!%p327_p2), %s7319_s21, 7  ;;  %v8297_v5 = vld [vmem:[%s12710_s2 + $0x60] sm:$0xff] (!%p327_p2)   ;;  %v8298_v6 = vld [vmem:[%s12710_s2 + $0x10] sm:$0xff] (!%p327_p2)   ;;  %vm619_vm1 = vcmask (!%p327_p2), 261120  }
   0x7   : > { %633 = vmatpush1.bf16.msra.mxu0 (!%p327_p2), %v8293_v0  ;;  %770 = vmatpush1.bf16.msra.mxu1 (!%p327_p2), %v8294_v2  ;;  %v8299_v7 = vld [vmem:[%s12710_s2 + $0x68] sm:$0xff] (!%p327_p2)   ;;  %v8300_v8 = vld [vmem:[%s12710_s2 + $0x18] sm:$0xff] (!%p327_p2)   ;;  %v8301_v9 = vld [vmem:[%s12710_s2 + $0x70] sm:$0xff] (!%p327_p2)   ;;  %vm866_vm2 = vcmask (!%p327_p2), 1045504   ;;  %vm1129_vm3 = vcmask (!%p327_p2), 1044480   ;;  %vm1392_vm4 = vcmask (!%p327_p2), 1043456  }
   0x8   : > { %634 = vmatprep.subr.bf16.mxu0 (!%p327_p2), %v8764_v1  ;;  %771 = vmatprep.subr.bf16.mxu1 (!%p327_p2), %v8764_v1  ;;  %v8302_v10 = vld [vmem:[%s12710_s2 + $0x20] sm:$0xff] (!%p327_p2)   ;;  %v8303_v11 = vld [vmem:[%s12710_s2 + $0x78] sm:$0xff] (!%p327_p2)   ;;  %v8304_v12 = vld [vmem:[%s12710_s2 + $0x28] sm:$0xff] (!%p327_p2)   ;;  %vm8766_vm5 = vmmov (!%p327_p2), 0   ;;  %vm1686_vm6 = vcmask (!%p327_p2), 1041409   ;;  %vm1688_vm7 = vcmask (!%p327_p2), 1042434  }
   0x9   : > { %v8305_v20 = vld [vmem:[%s12710_s2 + $0x80] sm:$0xff] (!%p327_p2)   ;;  %v8306_v22 = vld [vmem:[%s12710_s2 + $0x30] sm:$0xff] (!%p327_p2)   ;;  %v8307_v25 = vld [vmem:[%s12710_s2 + $0x88] sm:$0xff] (!%p327_p2)   ;;  %vm1690_vm8 = vcmask (!%p327_p2), 1043459   ;;  %vm2022_vm9 = vcmask (!%p327_p2), 123904   ;;  %vm2017_vm10 = vcmask (!%p327_p2), 130048  }
   0xa   : > { %v8308_v27 = vld [vmem:[%s12710_s2 + $0x38] sm:$0xff] (!%p327_p2)   ;;  %v8309_v34 = vld [vmem:[%s12710_s2 + $0x90] sm:$0xff] (!%p327_p2)   ;;  %v8310_v38 = vld [vmem:[%s12710_s2 + $0x40] sm:$0xff] (!%p327_p2)   ;;  %s8769_s27 = smov (!%p327_p2), 8   ;;  %vm2050_vm11 = vcmask (!%p327_p2), 1040384   ;;  %vm2107_vm12 = vcmask (!%p327_p2), 1040448  }
   0xb   : > { %635 = vmatpush1.bf16.msra.mxu0 (!%p327_p2), %v8295_v3  ;;  %772 = vmatpush1.bf16.msra.mxu1 (!%p327_p2), %v8296_v4  ;;  %v8311_v39 = vld [vmem:[%s12710_s2 + $0x98] sm:$0xff] (!%p327_p2)   ;;  %v8312_v44 = vld [vmem:[%s12710_s2 + $0x48] sm:$0xff] (!%p327_p2)   ;;  %v8313_v50 = vld [vmem:[%s12710_s2 + $0xa0] sm:$0xff] (!%p327_p2)   ;;  %vm2109_vm13 = vcmask (!%p327_p2), 57344   ;;  %vm2099_vm14 = vcmask (!%p327_p2), 1047617   ;;  %vm2101_vm15 = vcmask (!%p327_p2), 64513  }
   0xc   : > { %636 = vmatprep.subr.bf16.mxu0 (!%p327_p2), %v8764_v1  ;;  %773 = vmatprep.subr.bf16.mxu1 (!%p327_p2), %v8764_v1  ;;  %v8314_v2 = vld [vmem:[%s12710_s2 + $0xf0] sm:$0xff] (!%p327_p2)   ;;  %s8770_s16 = smov (!%p327_p2), 112   ;;  %s8771_s17 = smov (!%p327_p2), 96  }
   0xd   : > { %s12738_s21 = smov (!%p371_p3, %s7319_s21), 7  ;;  %s8772_s18 = smov 80  }
   0xe   : > { %s8264_s12 = smul.u32 48, %s12738_s21  ;;  %s8773_s19 = smov 64  }
   0xf   : > { %637 = vmatpush1.bf16.msra.mxu0 %v8297_v5  ;;  %774 = vmatpush1.bf16.msra.mxu1 %v8298_v6  ;;  %s8774_s20 = smov 48   ;;  %s8775_s23 = smov 32  }
  0x10   : > { %638 = vmatprep.subr.bf16.mxu0 %v8764_v1  ;;  %775 = vmatprep.subr.bf16.mxu1 %v8764_v1  ;;  %s8896_s22 = scalar_lea.vmem %s12708_s0, %s8264_s12  ;;  %s8776_s24 = smov 16  }
  0x11   : > { %v8907_v13 = vld [vmem:[%s8896_s22 + $0x18] sm:$0xff]  ;;  %v434_v14 = vld [vmem:[%s8896_s22 + $0x8] sm:$0xfe]  ;;  %v436_v15 = vld [vmem:[%s8896_s22 + $0x28] sm:$0x1]  ;;  %s8777_s25 = smov 56  }
  0x12   : > { %v477_v16 = vrot.slane %v434_v14, 1  ;;  %v478_v17 = vrot.slane %v8907_v13, 1  ;;  %v482_v18 = vrot.slane %v436_v15, 1  ;;  %v390_v19 = vld [vmem:[%s8896_s22 + $0x8] sm:$0xff]  ;;  %v8932_v28 = vld [vmem:[%s8896_s22 + $0x10] sm:$0xff]  ;;  %v8958_v43 = vld [vmem:[%s8896_s22 + $0x40] sm:$0xff] }
  0x13   : > { %639 = vmatpush1.bf16.msra.mxu0 %v8299_v7  ;;  %776 = vmatpush1.bf16.msra.mxu1 %v8300_v8  ;;  %v406_v21 = vpack.c.bf16 %v8907_v13, %v390_v19  ;;  %v433_v29 = vld [vmem:[%s8896_s22] sm:$0xfe]  ;;  %v435_v30 = vld [vmem:[%s8896_s22 + $0x20] sm:$0x1]  ;;  %v8940_v31 = vld [vmem:[%s8896_s22 + $0x48] sm:$0xff]  ;;  %v475_v36 = vrot.slane %v8932_v28, 1 }
  0x14   : > { %640 = vmatprep.subr.bf16.mxu0 %v8764_v1  ;;  %777 = vmatprep.subr.bf16.mxu1 %v8764_v1  ;;  %v479_v23 = vsel %vm473_vm0, %v477_v16, %v478_v17  ;;  %v483_v24 = vsel %vm473_vm0, %v478_v17, %v482_v18  ;;  %v438_v32 = vld [vmem:[%s8896_s22 + $0x38] sm:$0xfe]  ;;  %v440_v33 = vld [vmem:[%s8896_s22 + $0x58] sm:$0x1]  ;;  %v474_v35 = vrot.slane %v433_v29, 1  ;;  %v480_v37 = vrot.slane %v435_v30, 1 }
  0x15   : > { %v531_v26 = vpack.c.bf16 %v483_v24, %v479_v23  ;;  %7369 = vmatprep.mubr.msk.bf16.mxu1 %vm619_vm1, %v406_v21  ;;  %v487_v40 = vrot.slane %v438_v32, 1  ;;  %v488_v41 = vrot.slane %v8940_v31, 1  ;;  %v492_v42 = vrot.slane %v440_v33, 1  ;;  %v437_v45 = vld [vmem:[%s8896_s22 + $0x30] sm:$0xfe]  ;;  %v389_v49 = vld [vmem:[%s8896_s22] sm:$0xff] }
  0x16   : > { %v476_v46 = vsel %vm473_vm0, %v474_v35, %v475_v36  ;;  %v481_v47 = vsel %vm473_vm0, %v475_v36, %v480_v37  ;;  %v439_v48 = vld [vmem:[%s8896_s22 + $0x50] sm:$0x1]  ;;  %v484_v51 = vrot.slane %v437_v45, 1  ;;  %v485_v52 = vrot.slane %v8958_v43, 1  ;;  %v8979_v59 = vld [vmem:[%s8896_s22 + $0x78] sm:$0xff]  ;;  %v8315_v8 = vld [vmem:[%s12710_s2 + $0xa8] sm:$0xff]  }
  0x17   : > { %641 = vmatpush1.bf16.msra.mxu0 %v8301_v9  ;;  %778 = vmatpush1.bf16.msra.mxu1 %v8302_v10  ;;  %v871_v53 = vrot.slane %v8907_v13, 2  ;;  %v868_v54 = vrot.slane %v8932_v28, 2  ;;  %v530_v55 = vpack.c.bf16 %v481_v47, %v476_v46  ;;  %v489_v56 = vsel %vm473_vm0, %v487_v40, %v488_v41  ;;  %v442_v60 = vld [vmem:[%s8896_s22 + $0x68] sm:$0xfe]  ;;  %v394_v62 = vld [vmem:[%s8896_s22 + $0x38] sm:$0xff]  ;;  %v393_v3 = vld [vmem:[%s8896_s22 + $0x30] sm:$0xff] }
  0x18   : > { %642 = vmatprep.subr.bf16.mxu0 %v8764_v1  ;;  %779 = vmatprep.subr.bf16.mxu1 %v8764_v1  ;;  %v493_v57 = vsel %vm473_vm0, %v488_v41, %v492_v42  ;;  %v490_v58 = vrot.slane %v439_v48, 1  ;;  %v405_v61 = vpack.c.bf16 %v8932_v28, %v389_v49  ;;  %v444_v63 = vld [vmem:[%s8896_s22 + $0x88] sm:$0x1]  ;;  %v1134_v0 = vrot.slane %v8907_v13, 3  ;;  %v9007_v18 = vld [vmem:[%s8896_s22 + $0x70] sm:$0xff]  ;;  %v8318_v36 = vld [vmem:[%s12710_s2 + $0x100] sm:$0xff]  }
  0x19   : > { %7355 = vmatprep.mubr.msk.bf16.mxu0 %vm619_vm1, %v531_v26  ;;  %v1131_v4 = vrot.slane %v8932_v28, 3  ;;  %v881_v5 = vrot.slane %v8940_v31, 2  ;;  %v1397_v6 = vrot.slane %v8907_v13, 4  ;;  %v1394_v7 = vrot.slane %v8932_v28, 4  ;;  %v441_v19 = vld [vmem:[%s8896_s22 + $0x60] sm:$0xfe] }
  0x1a   : > { %v533_v9 = vpack.c.bf16 %v493_v57, %v489_v56  ;;  %v497_v10 = vrot.slane %v442_v60, 1  ;;  %v486_v14 = vsel %vm473_vm0, %v484_v51, %v485_v52  ;;  %v491_v15 = vsel %vm473_vm0, %v485_v52, %v490_v58  ;;  %v9013_v21 = vld [vmem:[%s8896_s22 + $0xa8] sm:$0xff]  ;;  %v448_v26 = vld [vmem:[%s8896_s22 + $0xb8] sm:$0x1]  ;;  %v8317_v30 = vld [vmem:[%s12710_s2 + $0xb0] sm:$0xff]   ;;  %s8779_s29 = smov 40  }
  0x1b   : > { %643 = vmatpush1.bf16.msra.mxu0 %v8303_v11  ;;  %780 = vmatpush1.bf16.msra.mxu1 %v8304_v12  ;;  %v498_v11 = vrot.slane %v8979_v59, 1  ;;  %v8316_v12 = vld [vmem:[%s12710_s2 + $0xf8] sm:$0xff]   ;;  %v408_v16 = vpack.c.bf16 %v8940_v31, %v394_v62  ;;  %v502_v17 = vrot.slane %v444_v63, 1  ;;  %v878_v23 = vrot.slane %v8958_v43, 2  ;;  %v445_v47 = vld [vmem:[%s8896_s22 + $0x90] sm:$0xfe] }
  0x1c   : > { %644 = vmatprep.subr.bf16.mxu0 %v8764_v1  ;;  %781 = vmatprep.subr.bf16.mxu1 %v8764_v1  ;;  %v532_v24 = vpack.c.bf16 %v491_v15, %v486_v14  ;;  %v1141_v29 = vrot.slane %v8958_v43, 3  ;;  %v891_v35 = vrot.slane %v8979_v59, 2  ;;  %v495_v37 = vrot.slane %v9007_v18, 1  ;;  %v8319_v45 = vld [vmem:[%s12710_s2 + $0xb8] sm:$0xff]   ;;  %v8320_v48 = vld [vmem:[%s12710_s2 + $0x108] sm:$0xff]   ;;  %v8321_v63 = vld [vmem:[%s12710_s2 + $0xc0] sm:$0xff]  }
  0x1d   : > { %v499_v32 = vsel %vm473_vm0, %v497_v10, %v498_v11  ;;  %v503_v33 = vsel %vm473_vm0, %v498_v11, %v502_v17  ;;  %v508_v41 = vrot.slane %v9013_v21, 1  ;;  %v512_v42 = vrot.slane %v448_v26, 1  ;;  %v447_v51 = vld [vmem:[%s8896_s22 + $0xb0] sm:$0x1]  ;;  %v835_v15 = vld [vmem:[%s8896_s22 + $0x8] sm:$0xfc] }
  0x1e   : > { %v535_v46 = vpack.c.bf16 %v503_v33, %v499_v32  ;;  %v888_v56 = vrot.slane %v9007_v18, 2  ;;  %v1154_v57 = vrot.slane %v8979_v59, 3  ;;  %v504_v58 = vrot.slane %v445_v47, 1  ;;  %v8322_v10 = vld [vmem:[%s12710_s2 + $0x110] sm:$0xff]   ;;  %v9076_v17 = vld [vmem:[%s8896_s22] sm:$0xfc] }
  0x1f   : > { %645 = vmatpush1.bf16.msra.mxu0 %v8305_v20  ;;  %782 = vmatpush1.bf16.msra.mxu1 %v8306_v22  ;;  %v443_v20 = vld [vmem:[%s8896_s22 + $0x80] sm:$0x1]  ;;  %v446_v22 = vld [vmem:[%s8896_s22 + $0x98] sm:$0xfe]  ;;  %v513_v14 = vsel %vm473_vm0, %v508_v41, %v512_v42  ;;  %v8323_v26 = vld [vmem:[%s12710_s2 + $0xc8] sm:$0xff]   ;;  %v870_v33 = vrot.slane %v835_v15, 2 }
  0x20   : > { %646 = vmatprep.subr.bf16.mxu0 %v8764_v1  ;;  %783 = vmatprep.subr.bf16.mxu1 %v8764_v1  ;;  %v507_v40 = vrot.slane %v446_v22, 1  ;;  %v1098_v22 = vld [vmem:[%s8896_s22 + $0x8] sm:$0xf8]  ;;  %v8324_v42 = vld [vmem:[%s12710_s2 + $0x118] sm:$0xff]   ;;  %v9144_v15 = vld [vmem:[%s8896_s22 + $0x30] sm:$0xf8] }
  0x21   : > { %v1133_v47 = vrot.slane %v1098_v22, 3  ;;  %v8330_v62 = vld [vmem:[%s12710_s2 + $0x130] sm:$0xff]   ;;  %p384_p4 = scmp.lt.s32.totalorder %s8845_s14, 1 }
  0x23   : > { %647 = vmatpush1.bf16.msra.mxu0 %v8307_v25  ;;  %784 = vmatpush1.bf16.msra.mxu1 %v8308_v27  ;;  %v407_v25 = vpack.c.bf16 %v8958_v43, %v393_v3  ;;  %v1144_v27 = vrot.slane %v8940_v31, 3  ;;  %v402_v3 = vld [vmem:[%s8896_s22 + $0x98] sm:$0xff]  ;;  %s12740_s14 = smov (!%p384_p4, %s8845_s14), 1 }
  0x24   : > { %648 = vmatprep.subr.bf16.mxu0 %v8764_v1  ;;  %785 = vmatprep.subr.bf16.mxu1 %v8764_v1  ;;  %v412_v32 = vpack.c.bf16 %v9013_v21, %v402_v3  ;;  %s7324_s30 = sshll.u32 %s12740_s14, 2  ;;  %s8780_s14 = smov 72  }
  0x25   : > { %s12601_s15 = scalar_lea.vmem %s12718_s10, %s7324_s30 }
  0x27   : > { %649 = vmatpush1.bf16.msra.mxu0 %v8309_v34  ;;  %786 = vmatpush1.bf16.msra.mxu1 %v8310_v38  ;;  %v494_v34 = vrot.slane %v441_v19, 1  ;;  %v500_v38 = vrot.slane %v443_v20, 1  ;;  %v9080_v20 = vld [vmem:[%s8896_s22 + $0x20] sm:$0x3] }
  0x28   : > { %650 = vmatprep.subr.bf16.mxu0 %v8764_v1  ;;  %787 = vmatprep.subr.bf16.mxu1 %v8764_v1 }
  0x29   : > { %v496_v52 = vsel %vm473_vm0, %v494_v34, %v495_v37  ;;  %v9094_v34 = vld [vmem:[%s8896_s22 + $0x20] sm:$0x7] }
  0x2b   : > { %651 = vmatpush1.bf16.msra.mxu0 %v8311_v39  ;;  %788 = vmatpush1.bf16.msra.mxu1 %v8312_v44  ;;  %v398_v39 = vld [vmem:[%s8896_s22 + $0x68] sm:$0xff]  ;;  %v9038_v44 = vld [vmem:[%s8896_s22 + $0xa0] sm:$0xff] }
  0x2c   : > { %1024 = vmatprep.subr.bf16.mxu0 %v8764_v1  ;;  %1287 = vmatprep.subr.bf16.mxu1 %v8764_v1  ;;  %v410_v49 = vpack.c.bf16 %v8979_v59, %v398_v39  ;;  %v505_v60 = vrot.slane %v9038_v44, 1 }
  0x2e   : > { %665 = vmatmul.mubr.bf16.vlgmr.msra.gmra.mrb[0].mxu0 %v530_v55  ;;  %802 = vmatmul.mubr.bf16.vlgmr.msra.gmra.mrb[0].mxu1 %v405_v61  ;;  %v501_v55 = vsel %vm473_vm0, %v495_v37, %v500_v38  ;;  %v506_v37 = vsel %vm473_vm0, %v504_v58, %v505_v60  ;;  %v8325_v58 = vld [vmem:[%s12710_s2 + $0xd0] sm:$0xff]  }
  0x2f   : > { %1025 = vmatpush1.bf16.msra.mxu0 %v8313_v50  ;;  %1288 = vmatpush1.bf16.msra.mxu1 %v8314_v2  ;;  %v397_v50 = vld [vmem:[%s8896_s22 + $0x60] sm:$0xff]  ;;  %v510_v2 = vrot.slane %v447_v51, 1  ;;  %v534_v11 = vpack.c.bf16 %v501_v55, %v496_v52  ;;  %v9112_v51 = vld [vmem:[%s8896_s22 + $0x58] sm:$0x3]  ;;  %v9116_v55 = vld [vmem:[%s8896_s22 + $0x30] sm:$0xfc] }
  0x30   : > { %1026 = vmatprep.subr.bf16.mxu0 %v8764_v1  ;;  %1289 = vmatprep.subr.bf16.mxu1 %v8764_v1  ;;  %v409_v19 = vpack.c.bf16 %v9007_v18, %v397_v50  ;;  %v1136_v50 = vrot.slane %v9094_v34, 3  ;;  %v885_v22 = vrot.slane %v9112_v51, 2  ;;  %v9266_v34 = vld [vmem:[%s8896_s22 + $0x98] sm:$0xf8] }
  0x31   : > { %7356 = vmatprep.mubr.msk.bf16.mxu0 %vm619_vm1, %v533_v9  ;;  %7370 = vmatprep.mubr.msk.bf16.mxu1 %vm619_vm1, %v408_v16  ;;  %v837_v16 = vld [vmem:[%s8896_s22 + $0x28] sm:$0x3]  ;;  %v511_v38 = vsel %vm473_vm0, %v505_v60, %v510_v2  ;;  %v9124_v60 = vld [vmem:[%s8896_s22 + $0x50] sm:$0x3]  ;;  %v8326_v2 = vld [vmem:[%s12710_s2 + $0x120] sm:$0xff]  }
  0x32   : > { %v875_v39 = vrot.slane %v837_v16, 2  ;;  %v536_v3 = vpack.c.bf16 %v511_v38, %v506_v37  ;;  %v1135_v16 = vsel %vm1129_vm3, %v1133_v47, %v1134_v0  ;;  %v1140_v38 = vrot.slane %v9144_v15, 3  ;;  %v9189_v9 = vld [vmem:[%s8896_s22 + $0x88] sm:$0x7]  ;;  %v8332_v51 = vld [vmem:[%s12710_s2 + $0x138] sm:$0xff]  }
  0x33   : > { %1027 = vmatpush1.bf16.msra.mxu0 %v8315_v8  ;;  %1290 = vmatpush1.bf16.msra.mxu1 %v8316_v12  ;;  %v509_v12 = vsel %vm473_vm0, %v507_v40, %v508_v41  ;;  %v867_v40 = vrot.slane %v9076_v17, 2  ;;  %v9101_v41 = vld [vmem:[%s8896_s22 + $0x38] sm:$0xfc]  ;;  %v1369_v15 = vld [vmem:[%s8896_s22 + $0x68] sm:$0xf0] }
  0x34   : > { %1028 = vmatprep.subr.bf16.mxu0 %v8764_v1  ;;  %1291 = vmatprep.subr.bf16.mxu1 %v8764_v1  ;;  %v880_v52 = vrot.slane %v9101_v41, 2  ;;  %v9277_v41 = vsel %vm866_vm2, %v881_v5, %v885_v22 }
  0x35   : > { %v9215_v61 = vsel %vm866_vm2, %v867_v40, %v868_v54 }
  0x36   : > { %673 = vmatmul.mubr.bf16.gmra.mrb[4].mxu0 %v532_v24  ;;  %810 = vmatmul.mubr.bf16.gmra.mrb[4].mxu1 %v407_v25  ;;  %v1100_v24 = vld [vmem:[%s8896_s22 + $0x28] sm:$0x7]  ;;  %v9086_v25 = vld [vmem:[%s8896_s22] sm:$0xf8] }
  0x37   : > { %1029 = vmatpush1.bf16.msra.mxu0 %v8317_v30  ;;  %1292 = vmatpush1.bf16.msra.mxu1 %v8318_v36  ;;  %v537_v30 = vpack.c.bf16 %v513_v14, %v509_v12  ;;  %v876_v12 = vsel %vm866_vm2, %v871_v53, %v875_v39  ;;  %v9141_v14 = vld [vmem:[%s8896_s22 + $0x58] sm:$0x7]  ;;  %v9170_v39 = vld [vmem:[%s8896_s22 + $0x88] sm:$0x3]  ;;  %v9184_v36 = vld [vmem:[%s8896_s22 + $0x68] sm:$0xf8] }
  0x38   : > { %1030 = vmatprep.subr.bf16.mxu0 %v8764_v1  ;;  %1293 = vmatprep.subr.bf16.mxu1 %v8764_v1  ;;  %v1148_v37 = vrot.slane %v9141_v14, 3  ;;  %v895_v8 = vrot.slane %v9170_v39, 2  ;;  %v1407_v39 = vrot.slane %v8940_v31, 4 }
  0x39   : > { %7357 = vmatprep.mubr.msk.bf16.mxu0 %vm619_vm1, %v535_v46  ;;  %7371 = vmatprep.mubr.msk.bf16.mxu1 %vm619_vm1, %v410_v49  ;;  %v873_v46 = vrot.slane %v9080_v20, 2  ;;  %v1130_v49 = vrot.slane %v9086_v25, 3  ;;  %v1404_v20 = vrot.slane %v8958_v43, 4  ;;  %v9258_v25 = vsel %vm866_vm2, %v880_v52, %v881_v5 }
  0x3a   : > { %v1417_v52 = vrot.slane %v8979_v59, 4 }
  0x3b   : > { %1031 = vmatpush1.bf16.msra.mxu0 %v8319_v45  ;;  %1294 = vmatpush1.bf16.msra.mxu1 %v8320_v48  ;;  %v401_v45 = vld [vmem:[%s8896_s22 + $0x90] sm:$0xff]  ;;  %v1138_v48 = vrot.slane %v1100_v24, 3  ;;  %v877_v24 = vrot.slane %v9116_v55, 2  ;;  %v9228_v17 = vsel %vm866_vm2, %v868_v54, %v873_v46  ;;  %v9235_v40 = vsel %vm1129_vm3, %v1130_v49, %v1131_v4 }
  0x3c   : > { %1032 = vmatprep.subr.bf16.mxu0 %v8764_v1  ;;  %1295 = vmatprep.subr.bf16.mxu1 %v8764_v1  ;;  %v9251_v54 = vsel %vm1129_vm3, %v1131_v4, %v1136_v50  ;;  %v9262_v49 = vld [vmem:[%s8896_s22 + $0xb0] sm:$0x3]  ;;  %v8331_v4 = vld [vmem:[%s12710_s2 + $0xe8] sm:$0xff]   ;;  %v1163_v46 = vrot.slane %v9266_v34, 3 }
  0x3d   : > { %v9284_v50 = vsel %vm866_vm2, %v877_v24, %v878_v23  ;;  %v9310_v24 = vld [vmem:[%s8896_s22 + $0x90] sm:$0xf8]  ;;  %v12731_v34 = vrot.slane %v9262_v49, 2 }
  0x3e   : > { %681 = vmatmul.mubr.bf16.gmra.mrb[8].mxu0 %v534_v11  ;;  %818 = vmatmul.mubr.bf16.gmra.mrb[8].mxu1 %v409_v19  ;;  %v872_v11 = vsel %vm866_vm2, %v870_v33, %v871_v53  ;;  %v1139_v19 = vsel %vm1129_vm3, %v1134_v0, %v1138_v48  ;;  %v9155_v53 = vld [vmem:[%s8896_s22 + $0x50] sm:$0x7]  ;;  %v8327_v0 = vld [vmem:[%s12710_s2 + $0xd8] sm:$0xff]   ;;  %v1160_v14 = vrot.slane %v9310_v24, 3 }
  0x3f   : > { %1033 = vmatpush1.bf16.msra.mxu0 %v8321_v63  ;;  %1296 = vmatpush1.bf16.msra.mxu1 %v8322_v10  ;;  %v9127_v63 = vld [vmem:[%s8896_s22 + $0x38] sm:$0xf8]  ;;  %v411_v10 = vpack.c.bf16 %v9038_v44, %v401_v45  ;;  %v924_v33 = vpack.c.bf16 %v876_v12, %v872_v11  ;;  %v8328_v45 = vld [vmem:[%s12710_s2 + $0x128] sm:$0xff]   ;;  %v1187_v47 = vpack.c.bf16 %v1139_v19, %v1135_v16  ;;  %v1146_v48 = vrot.slane %v9155_v53, 3  ;;  %v9181_v12 = vld [vmem:[%s8896_s22 + $0x80] sm:$0x3] }
  0x40   : > { %1034 = vmatprep.subr.bf16.mxu0 %v8764_v1  ;;  %1297 = vmatprep.subr.bf16.mxu1 %v8764_v1  ;;  %v1153_v19 = vrot.slane %v9184_v36, 3  ;;  %v9195_v53 = vld [vmem:[%s8896_s22 + $0x60] sm:$0xf8]  ;;  %v9220_v16 = vld [vmem:[%s8896_s22 + $0x98] sm:$0xfc]  ;;  %v8334_v36 = vld [vmem:[%s12710_s2 + $0x148] sm:$0xff]  }
  0x41   : > { %7358 = vmatprep.mubr.msk.bf16.mxu0 %vm619_vm1, %v537_v30  ;;  %7372 = vmatprep.mubr.msk.bf16.mxu1 %vm619_vm1, %v412_v32  ;;  %v1143_v30 = vrot.slane %v9127_v63, 3  ;;  %v9161_v32 = vld [vmem:[%s8896_s22 + $0x68] sm:$0xfc]  ;;  %v9330_v63 = vsel %vm1129_vm3, %v1141_v29, %v1146_v48  ;;  %v8340_v24 = vld [vmem:[%s12710_s2 + $0x178] sm:$0xff]  }
  0x42   : > { %v890_v11 = vrot.slane %v9161_v32, 2  ;;  %v8333_v32 = vld [vmem:[%s12710_s2 + $0x140] sm:$0xff]   ;;  %v1361_v48 = vld [vmem:[%s8896_s22 + $0x8] sm:$0xf0] }
  0x43   : > { %1035 = vmatpush1.bf16.msra.mxu0 %v8323_v26  ;;  %1298 = vmatpush1.bf16.msra.mxu1 %v8324_v42  ;;  %v883_v26 = vrot.slane %v9124_v60, 2  ;;  %v9173_v42 = vld [vmem:[%s8896_s22 + $0x60] sm:$0xfc]  ;;  %v9306_v55 = vsel %vm1129_vm3, %v1143_v30, %v1144_v27  ;;  %v9325_v60 = vsel %vm1129_vm3, %v1140_v38, %v1141_v29  ;;  %v9347_v29 = vsel %vm866_vm2, %v891_v35, %v895_v8 }
  0x44   : > { %1036 = vmatprep.subr.bf16.mxu0 %v8764_v1  ;;  %1299 = vmatprep.subr.bf16.mxu1 %v8764_v1  ;;  %v1414_v30 = vrot.slane %v9007_v18, 4 }
  0x45   : > { %v9299_v5 = vsel %vm866_vm2, %v878_v23, %v883_v26  ;;  %v9318_v23 = vsel %vm1129_vm3, %v1144_v27, %v1148_v37  ;;  %v9333_v26 = vld [vmem:[%s8896_s22 + $0xb0] sm:$0x7]  ;;  %v9342_v27 = vsel %vm866_vm2, %v890_v11, %v891_v35  ;;  %v1186_v37 = vpack.c.bf16 %v9251_v54, %v9235_v40  ;;  %v1363_v11 = vld [vmem:[%s8896_s22 + $0x28] sm:$0xf] }
  0x46   : > { %689 = vmatmul.mubr.bf16.gmra.mrb[12].mxu0 %v536_v3  ;;  %826 = vmatmul.mubr.bf16.gmra.mrb[12].mxu1 %v411_v10  ;;  %v887_v3 = vrot.slane %v9173_v42, 2  ;;  %v9204_v10 = vld [vmem:[%s8896_s22 + $0x80] sm:$0x7]  ;;  %v926_v35 = vpack.c.bf16 %v9277_v41, %v9258_v25  ;;  %v925_v8 = vpack.c.bf16 %v9299_v5, %v9284_v50  ;;  %v1189_v38 = vpack.c.bf16 %v9318_v23, %v9306_v55 }
  0x47   : > { %1037 = vmatpush1.bf16.msra.mxu0 %v8325_v58  ;;  %1300 = vmatpush1.bf16.msra.mxu1 %v8326_v2  ;;  %v8329_v58 = vld [vmem:[%s12710_s2 + $0xe0] sm:$0xff]   ;;  %v1158_v2 = vrot.slane %v9189_v9, 3  ;;  %v1396_v40 = vrot.slane %v1361_v48, 4  ;;  %v1401_v54 = vrot.slane %v1363_v11, 4  ;;  %v9379_v55 = vsel %vm1129_vm3, %v1153_v19, %v1154_v57  ;;  %v1365_v48 = vld [vmem:[%s8896_s22 + $0x38] sm:$0xf0] }
  0x48   : > { %1038 = vmatprep.subr.bf16.mxu0 %v8764_v1  ;;  %1301 = vmatprep.subr.bf16.mxu1 %v8764_v1  ;;  %v1362_v25 = vld [vmem:[%s8896_s22 + $0x20] sm:$0xf]  ;;  %v1427_v11 = vrot.slane %v9013_v21, 4  ;;  %v12719_v50 = vrot.slane %v9181_v12, 2  ;;  %v12721_v42 = vrot.slane %v9195_v53, 3  ;;  %v12722_v12 = vrot.slane %v9204_v10, 3 }
  0x49   : > { %7403 = vmatprep.mubr.msk.bf16.mxu0 %vm619_vm1, %v924_v33  ;;  %7437 = vmatprep.mubr.msk.bf16.mxu1 %vm619_vm1, %v1187_v47  ;;  %v9238_v47 = vld [vmem:[%s8896_s22 + $0xb8] sm:$0x3]  ;;  %v900_v33 = vrot.slane %v9220_v16, 2  ;;  %v1399_v23 = vrot.slane %v1362_v25, 4  ;;  %v9397_v9 = vsel %vm1392_vm4, %v1396_v40, %v1397_v6  ;;  %v1366_v25 = vld [vmem:[%s8896_s22 + $0x50] sm:$0xf] }
  0x4a   : > { %v1409_v28 = vrot.slane %v1366_v25, 4  ;;  %v1416_v40 = vrot.slane %v1369_v15, 4  ;;  %v894_v5 = vsel %vm866_vm2, %v888_v56, %v12719_v50 }
  0x4b   : > { %1039 = vmatpush1.bf16.msra.mxu0 %v8327_v0  ;;  %v9242_v0 = vld [vmem:[%s8896_s22 + $0x90] sm:$0xfc]  ;;  %1302 = vmatpush1.bf16.msra.mxu1 %v8328_v45  ;;  %v9288_v45 = vld [vmem:[%s8896_s22 + $0xb8] sm:$0x7]  ;;  %v9416_v13 = vsel %vm1392_vm4, %v1394_v7, %v1399_v23  ;;  %v1370_v23 = vld [vmem:[%s8896_s22 + $0x80] sm:$0xf] }
  0x4c   : > { %1040 = vmatprep.subr.bf16.mxu0 %v8764_v1  ;;  %1303 = vmatprep.subr.bf16.mxu1 %v8764_v1  ;;  %v1168_v22 = vrot.slane %v9288_v45, 3  ;;  %v9457_v25 = vsel %vm1392_vm4, %v1416_v40, %v1417_v52  ;;  %v12730_v45 = vrot.slane %v9242_v0, 2  ;;  %v12734_v0 = vrot.slane %v9333_v26, 3  ;;  %v8341_v26 = vld [vmem:[%s12710_s2 + $0x180] sm:$0xff]  }
  0x4f   : > { %1041 = vmatpush1.bf16.msra.mxu0 %v8329_v58  ;;  %1304 = vmatpush1.bf16.msra.mxu1 %v8330_v62  ;;  %v923_v62 = vpack.c.bf16 %v9228_v17, %v9215_v61  ;;  %v1188_v61 = vpack.c.bf16 %v9330_v63, %v9325_v60  ;;  %v1360_v58 = vld [vmem:[%s8896_s22] sm:$0xf0]  ;;  %v928_v17 = vpack.c.bf16 %v9347_v29, %v9342_v27  ;;  %v12720_v60 = vrot.slane %v9007_v18, 3 }
  0x50   : > { %1042 = vmatprep.subr.bf16.mxu0 %v8764_v1  ;;  %1305 = vmatprep.subr.bf16.mxu1 %v8764_v1  ;;  %v1393_v41 = vrot.slane %v1360_v58, 4  ;;  %v1364_v58 = vld [vmem:[%s8896_s22 + $0x30] sm:$0xf0]  ;;  %v8337_v27 = vld [vmem:[%s12710_s2 + $0x160] sm:$0xff]   ;;  %v12724_v29 = vrot.slane %v9013_v21, 2 }
  0x51   : > { %v12723_v63 = vmov %v12720_v60 }
  0x52   : > { %v9407_v19 = vsel %vm1392_vm4, %v1393_v41, %v1394_v7  ;;  %v1371_v41 = vld [vmem:[%s8896_s22 + $0x88] sm:$0xf]  ;;  %v1368_v7 = vld [vmem:[%s8896_s22 + $0x60] sm:$0xf0]  ;;  %v902_v53 = vsel %vm866_vm2, %v900_v33, %v12724_v29  ;;  %v12726_v10 = vmov %v12724_v29 }
  0x53   : > { %1043 = vmatpush1.bf16.msra.mxu0 %v8331_v4  ;;  %1306 = vmatpush1.bf16.msra.mxu1 %v8332_v51  ;;  %v9386_v4 = vsel %vm1129_vm3, %v1154_v57, %v1158_v2  ;;  %v1367_v51 = vld [vmem:[%s8896_s22 + $0x58] sm:$0xf]  ;;  %v9402_v57 = vsel %vm1392_vm4, %v1397_v6, %v1401_v54  ;;  %v1406_v2 = vrot.slane %v1365_v48, 4  ;;  %v1403_v54 = vrot.slane %v1364_v58, 4 }
  0x54   : > { %1550 = vmatprep.subr.bf16.mxu0 %v8764_v1  ;;  %v1411_v6 = vrot.slane %v1367_v51, 4  ;;  %v1449_v48 = vpack.c.bf16 %v9416_v13, %v9407_v19  ;;  %v1421_v51 = vrot.slane %v1371_v41, 4  ;;  %v1413_v15 = vrot.slane %v1368_v7, 4  ;;  %v1375_v58 = vld [vmem:[%s8896_s22 + $0xb8] sm:$0xf] }
  0x55   : > { %v8765_v13 = vmov 0.0|0.0  }
  0x56   : > { %1057 = vmatmul.mubr.bf16.vlgmr.msra.gmra.mrb[16].mxu0 %v923_v62  ;;  %1320 = vmatmul.mubr.bf16.vlgmr.msra.gmra.mrb[16].mxu1 %v1186_v37  ;;  %v9425_v62 = vsel %vm1392_vm4, %v1406_v2, %v1407_v39  ;;  %v9439_v37 = vsel %vm1392_vm4, %v1403_v54, %v1404_v20  ;;  %v1373_v2 = vld [vmem:[%s8896_s22 + $0x98] sm:$0xf0]  ;;  %v1372_v54 = vld [vmem:[%s8896_s22 + $0x90] sm:$0xf0]  ;;  %v9466_v7 = vsel %vm1392_vm4, %v1417_v52, %v1421_v51 }
  0x57   : > { %1551 = vmatpush1.bf16.msra.mxu0 %v8333_v32  ;;  %7404 = vmatprep.mubr.msk.bf16.mxu0 %vm619_vm1, %v926_v35  ;;  %v9434_v32 = vsel %vm1392_vm4, %v1407_v39, %v1411_v6  ;;  %v8335_v35 = vld [vmem:[%s12710_s2 + $0x150] sm:$0xff]   ;;  %v9452_v39 = vsel %vm1392_vm4, %v1404_v20, %v1409_v28  ;;  %v1419_v6 = vrot.slane %v1370_v23, 4  ;;  %v9471_v43 = vsel %vm1392_vm4, %v1413_v15, %v1414_v30 }
  0x58   : > { %1552 = vmatprep.subr.bf16.mxu0 %v8764_v1  ;;  %7438 = vmatprep.mubr.msk.bf16.mxu1 %vm619_vm1, %v1189_v38  ;;  %v1452_v31 = vpack.c.bf16 %v9434_v32, %v9425_v62  ;;  %v1374_v38 = vld [vmem:[%s8896_s22 + $0xb0] sm:$0xf]  ;;  %v1451_v41 = vpack.c.bf16 %v9452_v39, %v9439_v37  ;;  %v1426_v20 = vrot.slane %v1373_v2, 4  ;;  %v1454_v40 = vpack.c.bf16 %v9466_v7, %v9457_v25  ;;  %v8336_v2 = vld [vmem:[%s12710_s2 + $0x158] sm:$0xff]   ;;  %v1670_v37 = vld [vmem:[%s12715_s7 + $0x20] sm:$0xff]  ;;  %s7775_s22 = sshll.u32 %s12738_s21, 8 }
  0x59   : > { %v9478_v28 = vsel %vm1392_vm4, %v1414_v30, %v1419_v6  ;;  %v1431_v23 = vrot.slane %v1375_v58, 4  ;;  %v1423_v59 = vrot.slane %v1372_v54, 4  ;;  %v1429_v15 = vrot.slane %v1374_v38, 4  ;;  %v8338_v38 = vld [vmem:[%s12710_s2 + $0x168] sm:$0xff]   ;;  %8136 = vmatprep.subr.bf16.mxu1 %v8765_v13  ;;  %v1669_v62 = vld [vmem:[%s12715_s7 + $0x18] sm:$0xff]  ;;  %v1672_v25 = vld [vmem:[%s12715_s7 + $0x30] sm:$0xff]  ;;  %s10917_s21 = scalar_lea.vmem %s12709_s1, %s7775_s22 }
  0x5a   : > { %v1453_v52 = vpack.c.bf16 %v9478_v28, %v9471_v43  ;;  %v9484_v51 = vsel %vm1392_vm4, %v1426_v20, %v1427_v11  ;;  %v1191_v30 = vpack.c.bf16 %v9386_v4, %v9379_v55  ;;  %v889_v55 = vsel %vm866_vm2, %v887_v3, %v888_v56  ;;  %v1674_v43 = vld [vmem:[%s12715_s7 + $0x40] sm:$0xff] }
  0x5b   : > { %1553 = vmatpush1.bf16.msra.mxu0 %v8334_v36  ;;  %v1424_v36 = vrot.slane %v9038_v44, 4  ;;  %v1432_v58 = vsel %vm1392_vm4, %v1427_v11, %v1431_v23  ;;  %v1152_v3 = vsel %vm1129_vm3, %v12721_v42, %v12720_v60  ;;  %v1157_v56 = vsel %vm1129_vm3, %v12723_v63, %v12722_v12 }
  0x5c   : > { %1554 = vmatprep.subr.bf16.mxu0 %v8764_v1  ;;  %v1456_v6 = vpack.c.bf16 %v1432_v58, %v9484_v51  ;;  %v12727_v4 = vrot.slane %v9013_v21, 3  ;;  %v1190_v33 = vpack.c.bf16 %v1157_v56, %v1152_v3  ;;  %v12733_v51 = vrot.slane %v9038_v44, 3 }
  0x5d   : > { %v1425_v54 = vsel %vm1392_vm4, %v1423_v59, %v1424_v36  ;;  %v1430_v20 = vsel %vm1392_vm4, %v1424_v36, %v1429_v15  ;;  %v8767_v42 = vmov 0.0   ;;  %vm7092_vm4 = vcmask 60416  }
  0x5e   : > { %1065 = vmatmul.mubr.bf16.gmra.mrb[20].mxu0 %v925_v8  ;;  %1328 = vmatmul.mubr.bf16.gmra.mrb[20].mxu1 %v1188_v61  ;;  %v1455_v8 = vpack.c.bf16 %v1430_v20, %v1425_v54  ;;  %v12725_v61 = vrot.slane %v9238_v47, 2  ;;  %v1165_v11 = vsel %vm1129_vm3, %v1163_v46, %v12727_v4  ;;  %v12729_v46 = vrot.slane %v9038_v44, 2  ;;  %v1678_v20 = vld [vmem:[%s12715_s7 + $0x60] sm:$0xff]  ;;  %2016 = vst [vmem:[#allocation2] sm:$0xff] %v8767_v42 }
  0x5f   : > { %1555 = vmatpush1.bf16.msra.mxu0 %v8335_v35  ;;  %7405 = vmatprep.mubr.msk.bf16.mxu0 %vm619_vm1, %v928_v17  ;;  %v927_v17 = vpack.c.bf16 %v894_v5, %v889_v55  ;;  %v12728_v35 = vmov %v12727_v4  ;;  %v1162_v36 = vsel %vm1129_vm3, %v1160_v14, %v12733_v51  ;;  %v12735_v15 = vmov %v12733_v51  ;;  %v8342_v14 = vld [vmem:[%s12710_s2 + $0x188] sm:$0xff]   ;;  %v1680_v5 = vld [vmem:[%s12715_s7 + $0x70] sm:$0xff] }
  0x60   : > { %1556 = vmatprep.subr.bf16.mxu0 %v8764_v1  ;;  %7439 = vmatprep.mubr.msk.bf16.mxu1 %vm619_vm1, %v1191_v30  ;;  %v906_v18 = vsel %vm866_vm2, %v12726_v10, %v12725_v61  ;;  %v1169_v16 = vsel %vm1129_vm3, %v12728_v35, %v1168_v22  ;;  %v899_v21 = vsel %vm866_vm2, %v12730_v45, %v12729_v46  ;;  %v1679_v55 = vld [vmem:[%s12715_s7 + $0x68] sm:$0xff] }
  0x61   : > { %v930_v47 = vpack.c.bf16 %v906_v18, %v902_v53  ;;  %v1193_v23 = vpack.c.bf16 %v1169_v16, %v1165_v11  ;;  %v12732_v22 = vmov %v12729_v46  ;;  %v1167_v49 = vsel %vm1129_vm3, %v12735_v15, %v12734_v0  ;;  %2019 = vst [vmem:[#allocation2 + $0x10] sm:$0xff] %v8767_v42  ;;  %2021 = vst [vmem:[#allocation2 + $0x20] sm:$0x3] %v8767_v42 }
  0x62   : > { %v904_v59 = vsel %vm866_vm2, %v12732_v22, %v12731_v34  ;;  %v1192_v58 = vpack.c.bf16 %v1167_v49, %v1162_v36  ;;  %v12736_v44 = vpack.c.bf16 %v9402_v57, %v9397_v9  ;;  %v1666_v9 = vld [vmem:[%s12715_s7] sm:$0xff]  ;;  %v1667_v57 = vld [vmem:[%s12715_s7 + $0x8] sm:$0xff]  ;;  %v9684_v50 = vpack.c.bf16 %v1679_v55, %v1678_v20  ;;  %2024 = vst [vmem:[#allocation2 + $0x30] sm:$0xff] %v8767_v42 }
  0x63   : > { %1557 = vmatpush1.bf16.msra.mxu0 %v8336_v2  ;;  %v8339_v2 = vld [vmem:[%s12710_s2 + $0x170] sm:$0xff]   ;;  %v929_v30 = vpack.c.bf16 %v904_v59, %v899_v21  ;;  %v9623_v19 = vpack.c.bf16 %v1667_v57, %v1666_v9  ;;  %2026 = vst [vmem:[#allocation2 + $0x40] sm:$0xff] %v8767_v42  ;;  %2028 = vst [vmem:[#allocation2 + $0x50] sm:$0x3] %v8767_v42  ;;  %vm2105_vm3 = vcmask 64512  }
  0x64   : > { %1558 = vmatprep.subr.bf16.mxu0 %v8764_v1  ;;  %2030 = vst [vmem:[#allocation2 + $0x60] sm:$0xff] %v8767_v42  ;;  %2032 = vst [vmem:[#allocation2 + $0x70] sm:$0xff] %v8767_v42 }
  0x65   : > { %8138 = vmatpush3.bf16.msra.mxu1 %v9623_v19  ;;  %2034 = vst [vmem:[#allocation2 + $0x80] sm:$0x3] %v8767_v42  ;;  %2036 = vst [vmem:[#allocation2 + $0x90] sm:$0xff] %v8767_v42 }
  0x66   : > { %1073 = vmatmul.mubr.bf16.gmra.mrb[24].mxu0 %v927_v17  ;;  %1336 = vmatmul.mubr.bf16.gmra.mrb[24].mxu1 %v1190_v33  ;;  %2038 = vst [vmem:[#allocation2 + $0xa0] sm:$0xff] %v8767_v42  ;;  %2040 = vst [vmem:[#allocation2 + $0xb0] sm:$0x3] %v8767_v42 }
  0x67   : > { %1559 = vmatpush1.bf16.msra.mxu0 %v8337_v27  ;;  %7406 = vmatprep.mubr.msk.bf16.mxu0 %vm619_vm1, %v930_v47  ;;  %2023 = vst.msk [vmem:[#allocation2 + $0x28] sm:$0x3] %vm2022_vm9, %v8767_v42  ;;  %2029 = vst.msk [vmem:[#allocation2 + $0x58] sm:$0x3] %vm2022_vm9, %v8767_v42 }
  0x68   : > { %1560 = vmatprep.subr.bf16.mxu0 %v8764_v1  ;;  %7440 = vmatprep.mubr.msk.bf16.mxu1 %vm619_vm1, %v1193_v23  ;;  %2035 = vst.msk [vmem:[#allocation2 + $0x88] sm:$0x3] %vm2022_vm9, %v8767_v42  ;;  %2041 = vst.msk [vmem:[#allocation2 + $0xb8] sm:$0x3] %vm2022_vm9, %v8767_v42  ;;  %vm7105_vm9 = vcmask 1045509  }
  0x69   : > { %8139 = vmatprep.subr.bf16.mxu1 %v8765_v13  ;;  %2018 = vst.msk [vmem:[#allocation2 + $0x8] sm:$0xff] %vm2017_vm10, %v8767_v42  ;;  %2020 = vst.msk [vmem:[#allocation2 + $0x18] sm:$0xff] %vm2017_vm10, %v8767_v42 }
  0x6a   : > { %2025 = vst.msk [vmem:[#allocation2 + $0x38] sm:$0xff] %vm2017_vm10, %v8767_v42  ;;  %2027 = vst.msk [vmem:[#allocation2 + $0x48] sm:$0xff] %vm2017_vm10, %v8767_v42 }
  0x6b   : > { %1561 = vmatpush1.bf16.msra.mxu0 %v8338_v38  ;;  %2031 = vst.msk [vmem:[#allocation2 + $0x68] sm:$0xff] %vm2017_vm10, %v8767_v42  ;;  %2033 = vst.msk [vmem:[#allocation2 + $0x78] sm:$0xff] %vm2017_vm10, %v8767_v42 }
  0x6c   : > { %1562 = vmatprep.subr.bf16.mxu0 %v8764_v1  ;;  %2037 = vst.msk [vmem:[#allocation2 + $0x98] sm:$0xff] %vm2017_vm10, %v8767_v42  ;;  %2039 = vst.msk [vmem:[#allocation2 + $0xa8] sm:$0xff] %vm2017_vm10, %v8767_v42 }
  0x6e   : > { %1081 = vmatmul.mubr.bf16.gmra.mrb[28].mxu0 %v929_v30  ;;  %1344 = vmatmul.mubr.bf16.gmra.mrb[28].mxu1 %v1192_v58 }
  0x6f   : > { %1563 = vmatpush1.bf16.msra.mxu0 %v8339_v2  ;;  %7471 = vmatprep.mubr.msk.bf16.mxu0 %vm619_vm1, %v12736_v44 }
  0x70   : > { %1564 = vmatprep.subr.bf16.mxu0 %v8764_v1  ;;  %7988 = vmatprep.mubr.msk.f32.mxu1 %vm8766_vm5, %v8767_v42 }
  0x73   : > { %1565 = vmatpush1.bf16.msra.mxu0 %v8340_v24 }
  0x74   : > { %1566 = vmatprep.subr.bf16.mxu0 %v8764_v1 }
  0x77   : > { %1567 = vmatpush1.bf16.msra.mxu0 %v8341_v26 }
  0x78   : > { %1568 = vmatprep.subr.bf16.mxu0 %v8764_v1 }
  0x7b   : > { %1569 = vmatpush1.bf16.msra.mxu0 %v8342_v14 }
  0x7c   : > { %2360 = vmatprep.subr.bf16.mxu0 %v8764_v1 }
  0x7e   : > { %1583 = vmatmul.mubr.bf16.vlgmr.msra.gmra.mrb[32].mxu0 %v1449_v48  ;;  %v1668_v48 = vld [vmem:[%s12715_s7 + $0x10] sm:$0xff] }
  0x7f   : > { %7472 = vmatprep.mubr.msk.bf16.mxu0 %vm619_vm1, %v1452_v31  ;;  %v9634_v32 = vpack.c.bf16 %v1669_v62, %v1668_v48  ;;  %v1671_v31 = vld [vmem:[%s12715_s7 + $0x28] sm:$0xff] }
  0x80   : > { %v9644_v39 = vpack.c.bf16 %v1671_v31, %v1670_v37 }
  0x81   : > { %8141 = vmatpush3.bf16.msra.mxu1 %v9634_v32 }
  0x82   : > { %8142 = vmatprep.subr.bf16.mxu1 %v8765_v13 }
  0x85   : > { %8144 = vmatpush3.bf16.msra.mxu1 %v9644_v39 }
  0x86   : > { %1591 = vmatmul.mubr.bf16.gmra.mrb[36].mxu0 %v1451_v41  ;;  %8145 = vmatprep.subr.bf16.mxu1 %v8765_v13  ;;  %v1673_v41 = vld [vmem:[%s12715_s7 + $0x38] sm:$0xff] }
  0x87   : > { %7473 = vmatprep.mubr.msk.bf16.mxu0 %vm619_vm1, %v1454_v40  ;;  %v9654_v7 = vpack.c.bf16 %v1673_v41, %v1672_v25  ;;  %v1675_v40 = vld [vmem:[%s12715_s7 + $0x48] sm:$0xff] }
  0x88   : > { %v9664_v28 = vpack.c.bf16 %v1675_v40, %v1674_v43 }
  0x89   : > { %8147 = vmatpush3.bf16.msra.mxu1 %v9654_v7 }
  0x8a   : > { %8148 = vmatprep.subr.bf16.mxu1 %v8765_v13 }
  0x8d   : > { %8150 = vmatpush3.bf16.msra.mxu1 %v9664_v28 }
  0x8e   : > { %1599 = vmatmul.mubr.bf16.gmra.mrb[40].mxu0 %v1453_v52  ;;  %8151 = vmatprep.subr.bf16.mxu1 %v8765_v13  ;;  %v1676_v52 = vld [vmem:[%s12715_s7 + $0x50] sm:$0xff] }
  0x8f   : > { %7474 = vmatprep.mubr.msk.bf16.mxu0 %vm619_vm1, %v1456_v6  ;;  %v1677_v6 = vld [vmem:[%s12715_s7 + $0x58] sm:$0xff]  ;;  %vm2103_vm1 = vcmask 1047616  }
  0x90   : > { %v9674_v54 = vpack.c.bf16 %v1677_v6, %v1676_v52 }
  0x92   : > { %8153 = vmatpush3.bf16.msra.mxu1 %v9674_v54 }
  0x93   : > { %8154 = vmatprep.subr.bf16.mxu1 %v8765_v13 }
  0x96   : > { %1607 = vmatmul.mubr.bf16.gmra.mrb[44].mxu0 %v1455_v8  ;;  %8156 = vmatpush3.bf16.msra.mxu1 %v9684_v50  ;;  %v1681_v8 = vld [vmem:[%s12715_s7 + $0x78] sm:$0xff] }
  0x97   : > { %8157 = vmatprep.subr.bf16.mxu1 %v8765_v13  ;;  %v9694_v60 = vpack.c.bf16 %v1681_v8, %v1680_v5 }
  0x9a   : > { %8159 = vmatpush3.bf16.msra.mxu1 %v9694_v60 }
  0x9b   : > { %8160 = vmatprep.subr.bf16.mxu1 %v8765_v13 }
 0x101   : > { %v666_v3 = vpop.f32.mrb[0].mxu0  ;;  %v803_v12 = vpop.f32.mrb[0].mxu1 }
 0x102   : > { %v668_v63 = vpop.f32.mrb[1].mxu0  ;;  %v804_v56 = vadd.f32 %v803_v12, %v666_v3  ;;  %v805_v27 = vpop.f32.mrb[1].mxu1 }
 0x103   : > { %v669_v29 = vpop.f32.mrb[2].mxu0  ;;  %v806_v53 = vpop.f32.mrb[2].mxu1 }
 0x104   : > { %v671_v61 = vpop.f32.mrb[3].mxu0  ;;  %v807_v10 = vadd.f32 %v806_v53, %v669_v29  ;;  %v808_v18 = vpop.f32.mrb[3].mxu1 }
 0x109   : > { %v674_v17 = vpop.f32.mrb[4].mxu0  ;;  %v811_v11 = vpop.f32.mrb[4].mxu1 }
 0x10a   : > { %v676_v4 = vpop.f32.mrb[5].mxu0  ;;  %v812_v35 = vadd.f32 %v811_v11, %v674_v17  ;;  %v813_v33 = vpop.f32.mrb[5].mxu1 }
 0x10b   : > { %v677_v16 = vpop.f32.mrb[6].mxu0  ;;  %v814_v38 = vpop.f32.mrb[6].mxu1 }
 0x10c   : > { %v679_v47 = vpop.f32.mrb[7].mxu0  ;;  %v815_v23 = vadd.f32 %v814_v38, %v677_v16  ;;  %v816_v46 = vpop.f32.mrb[7].mxu1 }
 0x111   : > { %v682_v45 = vpop.f32.mrb[8].mxu0  ;;  %v819_v34 = vpop.f32.mrb[8].mxu1 }
 0x112   : > { %v684_v21 = vpop.f32.mrb[9].mxu0  ;;  %v820_v22 = vadd.f32 %v819_v34, %v682_v45  ;;  %v821_v51 = vpop.f32.mrb[9].mxu1 }
 0x113   : > { %v685_v59 = vpop.f32.mrb[10].mxu0  ;;  %v822_v0 = vpop.f32.mrb[10].mxu1 }
 0x114   : > { %v687_v36 = vpop.f32.mrb[11].mxu0  ;;  %v823_v15 = vadd.f32 %v822_v0, %v685_v59  ;;  %v824_v49 = vpop.f32.mrb[11].mxu1 }
 0x119   : > { %v690_v2 = vpop.f32.mrb[12].mxu0  ;;  %v827_v58 = vpop.f32.mrb[12].mxu1 }
 0x11a   : > { %v692_v30 = vpop.f32.mrb[13].mxu0  ;;  %v828_v24 = vadd.f32 %v827_v58, %v690_v2  ;;  %v829_v26 = vpop.f32.mrb[13].mxu1 }
 0x11b   : > { %v693_v44 = vpop.f32.mrb[14].mxu0  ;;  %v830_v9 = vpop.f32.mrb[14].mxu1 }
 0x11c   : > { %v695_v14 = vpop.f32.mrb[15].mxu0  ;;  %v831_v57 = vadd.f32 %v830_v9, %v693_v44  ;;  %v832_v48 = vpop.f32.mrb[15].mxu1 }
 0x129   : > { %v1058_v62 = vpop.f32.mrb[16].mxu0  ;;  %v1321_v25 = vpop.f32.mrb[16].mxu1 }
 0x12a   : > { %v1089_v37 = vadd.f32 %v1058_v62, %v804_v56  ;;  %v1060_v31 = vpop.f32.mrb[17].mxu0  ;;  %v1323_v43 = vpop.f32.mrb[17].mxu1 }
 0x12b   : > { %v1061_v41 = vpop.f32.mrb[18].mxu0  ;;  %v1324_v20 = vpop.f32.mrb[18].mxu1 }
 0x12c   : > { %v1090_v40 = vadd.f32 %v1061_v41, %v807_v10  ;;  %v1352_v52 = vadd.f32 %v1321_v25, %v1089_v37  ;;  %v1063_v6 = vpop.f32.mrb[19].mxu0  ;;  %v1326_v55 = vpop.f32.mrb[19].mxu1 }
 0x12e   : > { %v1353_v5 = vadd.f32 %v1324_v20, %v1090_v40 }
 0x131   : > { %v1066_v8 = vpop.f32.mrb[20].mxu0  ;;  %v1329_v63 = vpop.f32.mrb[20].mxu1 }
 0x132   : > { %v1091_v3 = vadd.f32 %v1066_v8, %v812_v35  ;;  %v1068_v12 = vpop.f32.mrb[21].mxu0  ;;  %v1331_v29 = vpop.f32.mrb[21].mxu1 }
 0x133   : > { %v1069_v27 = vpop.f32.mrb[22].mxu0  ;;  %v1332_v18 = vpop.f32.mrb[22].mxu1 }
 0x134   : > { %v1092_v53 = vadd.f32 %v1069_v27, %v815_v23  ;;  %v1354_v61 = vadd.f32 %v1329_v63, %v1091_v3  ;;  %v1071_v56 = vpop.f32.mrb[23].mxu0  ;;  %v1334_v17 = vpop.f32.mrb[23].mxu1 }
 0x136   : > { %v1355_v4 = vadd.f32 %v1332_v18, %v1092_v53 }
 0x139   : > { %v1074_v11 = vpop.f32.mrb[24].mxu0  ;;  %v1337_v33 = vpop.f32.mrb[24].mxu1 }
 0x13a   : > { %v1093_v16 = vadd.f32 %v1074_v11, %v820_v22  ;;  %v1076_v10 = vpop.f32.mrb[25].mxu0  ;;  %v1339_v38 = vpop.f32.mrb[25].mxu1 }
 0x13b   : > { %v1077_v47 = vpop.f32.mrb[26].mxu0  ;;  %v1340_v21 = vpop.f32.mrb[26].mxu1 }
 0x13c   : > { %v1094_v46 = vadd.f32 %v1077_v47, %v823_v15  ;;  %v1356_v45 = vadd.f32 %v1337_v33, %v1093_v16  ;;  %v1079_v35 = vpop.f32.mrb[27].mxu0  ;;  %v1342_v34 = vpop.f32.mrb[27].mxu1 }
 0x13e   : > { %v1357_v59 = vadd.f32 %v1340_v21, %v1094_v46 }
 0x141   : > { %v1082_v51 = vpop.f32.mrb[28].mxu0  ;;  %v1345_v0 = vpop.f32.mrb[28].mxu1 }
 0x142   : > { %v1095_v36 = vadd.f32 %v1082_v51, %v828_v24  ;;  %v1084_v23 = vpop.f32.mrb[29].mxu0  ;;  %v1347_v2 = vpop.f32.mrb[29].mxu1 }
 0x143   : > { %v1085_v49 = vpop.f32.mrb[30].mxu0  ;;  %v1348_v44 = vpop.f32.mrb[30].mxu1 }
 0x144   : > { %v1096_v30 = vadd.f32 %v1085_v49, %v831_v57  ;;  %v1358_v58 = vadd.f32 %v1345_v0, %v1095_v36  ;;  %v1087_v22 = vpop.f32.mrb[31].mxu0  ;;  %v1350_v26 = vpop.f32.mrb[31].mxu1  ;;  %v7475_v57 = vld [vmem:[%s12713_s5] ss:$0 sm:$0xff] }
 0x146   : > { %v1359_v14 = vadd.f32 %v1348_v44, %v1096_v30 }
 0x151   : > { %v1584_v9 = vpop.f32.mrb[32].mxu0 }
 0x152   : > { %v1615_v48 = vadd.f32 %v1584_v9, %v1352_v52  ;;  %v1586_v15 = vpop.f32.mrb[33].mxu0 }
 0x153   : > { %v1587_v62 = vpop.f32.mrb[34].mxu0 }
 0x154   : > { %v1616_v37 = vadd.f32 %v1587_v62, %v1353_v5  ;;  %v1589_v31 = vpop.f32.mrb[35].mxu0  ;;  %v9721_v52 = vadd.f32 %v7475_v57, %v1615_v48 }
 0x156   : > { %v9715_v20 = vadd.f32 %v7475_v57, %v1616_v37 }
 0x158   : > { %v1638_v12 = vadd.f32 %v9715_v20, %v9721_v52 }
 0x159   : > { %v1592_v25 = vpop.f32.mrb[36].mxu0 }
 0x15a   : > { %v1617_v41 = vadd.f32 %v1592_v25, %v1354_v61  ;;  %v1594_v43 = vpop.f32.mrb[37].mxu0  ;;  %v1639_v56 = vrot.slane %v1638_v12, 4 }
 0x15b   : > { %v1595_v24 = vpop.f32.mrb[38].mxu0 }
 0x15c   : > { %v1618_v40 = vadd.f32 %v1595_v24, %v1355_v4  ;;  %v1597_v6 = vpop.f32.mrb[39].mxu0  ;;  %v9717_v55 = vadd.f32 %v7475_v57, %v1617_v41  ;;  %v1640_v33 = vadd.f32 %v1639_v56, %v1638_v12 }
 0x15e   : > { %v9719_v8 = vadd.f32 %v7475_v57, %v1618_v40  ;;  %v1641_v51 = vrot.slane %v1640_v33, 2 }
 0x160   : > { %v1645_v5 = vadd.f32 %v9719_v8, %v9717_v55  ;;  %v1642_v44 = vadd.f32 %v1641_v51, %v1640_v33 }
 0x161   : > { %v1600_v3 = vpop.f32.mrb[40].mxu0 }
 0x162   : > { %v1619_v63 = vadd.f32 %v1600_v3, %v1356_v45  ;;  %v1602_v27 = vpop.f32.mrb[41].mxu0  ;;  %v1646_v53 = vrot.slane %v1645_v5, 4  ;;  %v1643_v48 = vrot.slane %v1642_v44, 1 }
 0x163   : > { %v1603_v29 = vpop.f32.mrb[42].mxu0 }
 0x164   : > { %v1620_v61 = vadd.f32 %v1603_v29, %v1357_v59  ;;  %v1605_v18 = vpop.f32.mrb[43].mxu0  ;;  %v9727_v17 = vadd.f32 %v7475_v57, %v1619_v63  ;;  %v1647_v11 = vadd.f32 %v1646_v53, %v1645_v5  ;;  %v1644_v31 = vadd.f32 %v1643_v48, %v1642_v44 }
 0x166   : > { %v9729_v4 = vadd.f32 %v7475_v57, %v1620_v61  ;;  %v1648_v21 = vrot.slane %v1647_v11, 2 }
 0x168   : > { %v1652_v16 = vadd.f32 %v9729_v4, %v9727_v17  ;;  %v1649_v49 = vadd.f32 %v1648_v21, %v1647_v11 }
 0x169   : > { %v1608_v10 = vpop.f32.mrb[44].mxu0 }
 0x16a   : > { %v1653_v47 = vrot.slane %v1652_v16, 4  ;;  %v1621_v38 = vadd.f32 %v1608_v10, %v1358_v58  ;;  %v1610_v46 = vpop.f32.mrb[45].mxu0  ;;  %v1650_v58 = vrot.slane %v1649_v49, 1 }
 0x16b   : > { %v1611_v45 = vpop.f32.mrb[46].mxu0 }
 0x16c   : > { %v1654_v35 = vadd.f32 %v1653_v47, %v1652_v16  ;;  %v1622_v34 = vadd.f32 %v1611_v45, %v1359_v14  ;;  %v1613_v59 = vpop.f32.mrb[47].mxu0  ;;  %v9733_v23 = vadd.f32 %v7475_v57, %v1621_v38  ;;  %v1651_v14 = vadd.f32 %v1650_v58, %v1649_v49 }
 0x16e   : > { %v1655_v36 = vrot.slane %v1654_v35, 2  ;;  %v9735_v0 = vadd.f32 %v7475_v57, %v1622_v34  ;;  %v1687_v43 = vsel %vm1686_vm6, %v1651_v14, %v1644_v31 }
 0x170   : > { %v1659_v2 = vadd.f32 %v9735_v0, %v9733_v23  ;;  %v1656_v30 = vadd.f32 %v1655_v36, %v1654_v35 }
 0x172   : > { %v1660_v22 = vrot.slane %v1659_v2, 4  ;;  %v1657_v9 = vrot.slane %v1656_v30, 1 }
 0x174   : > { %v1661_v26 = vadd.f32 %v1660_v22, %v1659_v2  ;;  %v1658_v37 = vadd.f32 %v1657_v9, %v1656_v30 }
 0x176   : > { %v1662_v15 = vrot.slane %v1661_v26, 2  ;;  %v1689_v24 = vsel %vm1688_vm7, %v1658_v37, %v1687_v43 }
 0x178   : > { %v1663_v62 = vadd.f32 %v1662_v15, %v1661_v26 }
 0x17a   : > { %v1664_v25 = vrot.slane %v1663_v62, 1 }
 0x17c   : > { %v1665_v41 = vadd.f32 %v1664_v25, %v1663_v62 }
 0x17e   : > { %v1691_v40 = vsel %vm1690_vm8, %v1665_v41, %v1689_v24 }
 0x17f   : > { %7989 = vmatmul.mubr.f32.vlgmr.msra.gmra.mrb[32].mxu1 %v1691_v40 }
 0x180   : > { %8162 = vmatpush3.bf16.msra.mxu1 %v9623_v19  ;;  %8023 = vmatprep.mubr.msk.f32.mxu1 %vm8766_vm5, %v8767_v42  ;;  %v8768_v19 = vmov 1966171168  }
 0x181   : > { %8163 = vmatprep.subr.bf16.mxu1 %v8765_v13 }
 0x184   : > { %8165 = vmatpush3.bf16.msra.mxu1 %v9634_v32  ;;  %v1765_v32 = vunpack.c.l.s4 %v8768_v19 }
 0x185   : > { %8166 = vmatprep.subr.bf16.mxu1 %v8765_v13 }
 0x188   : > { %8168 = vmatpush3.bf16.msra.mxu1 %v9644_v39  ;;  %v1767_v39 = vlaneseq }
 0x189   : > { %8169 = vmatprep.subr.bf16.mxu1 %v8765_v13 }
 0x18a   : > { %v9760_v6 = vshrl.u32 %v1767_v39, 7 }
 0x18c   : > { %8171 = vmatpush3.bf16.msra.mxu1 %v9654_v7  ;;  %v1766_v7 = vunpack.c.0.s8 %v1765_v32 }
 0x18d   : > { %8172 = vmatprep.subr.bf16.mxu1 %v8765_v13 }
 0x190   : > { %8174 = vmatpush3.bf16.msra.mxu1 %v9664_v28  ;;  %v9763_v28 = vsub.s32 %v1766_v7, %v9760_v6 }
 0x191   : > { %8175 = vmatprep.subr.bf16.mxu1 %v8765_v13 }
 0x194   : > { %8177 = vmatpush3.bf16.msra.mxu1 %v9674_v54 }
 0x195   : > { %8178 = vmatprep.subr.bf16.mxu1 %v8765_v13 }
 0x198   : > { %8180 = vmatpush3.bf16.msra.mxu1 %v9684_v50  ;;  %v9767_v50 = vsub.s32 0, %v9760_v6 }
 0x199   : > { %8181 = vmatprep.subr.bf16.mxu1 %v8765_v13 }
 0x19c   : > { %8183 = vmatpush3.bf16.msra.mxu1 %v9694_v60 }
 0x19d   : > { %2491 = vmatprep.subr.bf16.mxu1 %v8764_v1 }
 0x252   : > { %v1759_v54 = vpop.f32.mrb[32].mxu1 }
 0x253   : > { %v1770_v57 = vrot.slane %v1759_v54, %v9763_v28  ;;  %v7990_v5 = vpop.f32.mrb[33].mxu1 }
 0x254   : > { %v8344_v5 = vld [vmem:[%s12711_s3 + $0x48] sm:$0xff]  }
 0x255   : > { %v1771_v3 = vcombine.high %v1770_v57, %v1770_v57  ;;  %v1778_v60 = vrot.slane %v1770_v57, %v9763_v28  ;;  %v8343_v57 = vld [vmem:[%s12711_s3] sm:$0xff]   ;;  %2361 = vmatpush1.bf16.msra.mxu0 %v8344_v5 }
 0x256   : > { %2362 = vmatprep.subr.bf16.mxu0 %v8764_v1 }
 0x257   : > { %v1785_v12 = vrot.slane %v1771_v3, %v9763_v28  ;;  %v1786_v63 = vcombine.high %v1778_v60, %v1778_v60  ;;  %v1791_v27 = vrot.slane %v1778_v60, %v9767_v50  ;;  %v8345_v3 = vld [vmem:[%s12711_s3 + $0x8] sm:$0xff]   ;;  %v8346_v60 = vld [vmem:[%s12711_s3 + $0x50] sm:$0xff]  }
 0x259   : > { %v1787_v29 = vcombine.high %v1785_v12, %v1785_v12  ;;  %v1795_v53 = vrot.slane %v1785_v12, %v9767_v50  ;;  %v1799_v61 = vrot.slane %v1786_v63, %v9767_v50  ;;  %v9775_v18 = vsub.f32 %v9721_v52, %v1791_v27  ;;  %2363 = vmatpush1.bf16.msra.mxu0 %v8346_v60  ;;  %v8347_v12 = vld [vmem:[%s12711_s3 + $0x10] sm:$0xff]   ;;  %v8348_v63 = vld [vmem:[%s12711_s3 + $0x58] sm:$0xff]  }
 0x25a   : > { %v9778_v56 = vsub.f32 %v9715_v20, %v1791_v27  ;;  %2364 = vmatprep.subr.bf16.mxu0 %v8764_v1  ;;  %v8349_v27 = vld [vmem:[%s12711_s3 + $0x18] sm:$0xff]  }
 0x25b   : > { %v1803_v11 = vrot.slane %v1787_v29, %v9767_v50  ;;  %v9782_v16 = vsub.f32 %v9717_v55, %v1795_v53  ;;  %v9785_v10 = vsub.f32 %v9719_v8, %v1795_v53  ;;  %v9788_v33 = vsub.f32 %v9727_v17, %v1799_v61  ;;  %v8350_v29 = vld [vmem:[%s12711_s3 + $0x60] sm:$0xff]  }
 0x25c   : > { %v9791_v47 = vsub.f32 %v9729_v4, %v1799_v61  ;;  %v1816_v52 = vmul.f32 %v9775_v18, %v9775_v18  ;;  %v1817_v20 = vmul.f32 %v9778_v56, %v9778_v56  ;;  %v8351_v53 = vld [vmem:[%s12711_s3 + $0x20] sm:$0xff]   ;;  %v8352_v61 = vld [vmem:[%s12711_s3 + $0x68] sm:$0xff]  }
 0x25d   : > { %v9798_v38 = vsub.f32 %v9733_v23, %v1803_v11  ;;  %v9801_v55 = vsub.f32 %v9735_v0, %v1803_v11  ;;  %v1818_v8 = vmul.f32 %v9782_v16, %v9782_v16  ;;  %v1819_v17 = vmul.f32 %v9785_v10, %v9785_v10  ;;  %2365 = vmatpush1.bf16.msra.mxu0 %v8348_v63 }
 0x25e   : > { %v1820_v4 = vmul.f32 %v9788_v33, %v9788_v33  ;;  %v1821_v46 = vmul.f32 %v9791_v47, %v9791_v47  ;;  %v1824_v45 = vadd.f32 %v1817_v20, %v1816_v52  ;;  %2366 = vmatprep.subr.bf16.mxu0 %v8764_v1 }
 0x25f   : > { %v1822_v21 = vmul.f32 %v9798_v38, %v9798_v38  ;;  %v1823_v35 = vmul.f32 %v9801_v55, %v9801_v55  ;;  %v1831_v34 = vadd.f32 %v1819_v17, %v1818_v8 }
 0x260   : > { %v1825_v59 = vrot.slane %v1824_v45, 4  ;;  %v1838_v51 = vadd.f32 %v1821_v46, %v1820_v4 }
 0x261   : > { %v1832_v36 = vrot.slane %v1831_v34, 4  ;;  %v1845_v23 = vadd.f32 %v1823_v35, %v1822_v21  ;;  %2367 = vmatpush1.bf16.msra.mxu0 %v8350_v29  ;;  %v8354_v21 = vld [vmem:[%s12711_s3 + $0x70] sm:$0xff]  }
 0x262   : > { %v1826_v0 = vadd.f32 %v1825_v59, %v1824_v45  ;;  %v1839_v49 = vrot.slane %v1838_v51, 4  ;;  %2368 = vmatprep.subr.bf16.mxu0 %v8764_v1  ;;  %v8353_v45 = vld [vmem:[%s12711_s3 + $0x28] sm:$0xff]  }
 0x263   : > { %v1833_v2 = vadd.f32 %v1832_v36, %v1831_v34  ;;  %v1846_v30 = vrot.slane %v1845_v23, 4 }
 0x264   : > { %v1827_v44 = vrot.slane %v1826_v0, 2  ;;  %v1840_v22 = vadd.f32 %v1839_v49, %v1838_v51  ;;  %v7476_v51 = vld [vmem:[%s12713_s5 + $0x1] ss:$0 sm:$0xff] }
 0x265   : > { %v1834_v58 = vrot.slane %v1833_v2, 2  ;;  %v1847_v26 = vadd.f32 %v1846_v30, %v1845_v23  ;;  %2369 = vmatpush1.bf16.msra.mxu0 %v8352_v61  ;;  %v7477_v30 = vld [vmem:[%s12713_s5 + $0x2] ss:$0 sm:$0xff] }
 0x266   : > { %v1828_v9 = vadd.f32 %v1827_v44, %v1826_v0  ;;  %v1841_v48 = vrot.slane %v1840_v22, 2  ;;  %2370 = vmatprep.subr.bf16.mxu0 %v8764_v1 }
 0x267   : > { %v1835_v15 = vadd.f32 %v1834_v58, %v1833_v2  ;;  %v1848_v14 = vrot.slane %v1847_v26, 2  ;;  %v8355_v2 = vld [vmem:[%s12711_s3 + $0x30] sm:$0xff]  }
 0x268   : > { %v1829_v62 = vrot.slane %v1828_v9, 1  ;;  %v1842_v37 = vadd.f32 %v1841_v48, %v1840_v22 }
 0x269   : > { %v1836_v31 = vrot.slane %v1835_v15, 1  ;;  %v1849_v25 = vadd.f32 %v1848_v14, %v1847_v26  ;;  %2371 = vmatpush1.bf16.msra.mxu0 %v8354_v21 }
 0x26a   : > { %v1843_v41 = vrot.slane %v1842_v37, 1  ;;  %v1830_v43 = vadd.f32 %v1829_v62, %v1828_v9  ;;  %2372 = vmatprep.subr.bf16.mxu0 %v8764_v1 }
 0x26b   : > { %v1837_v24 = vadd.f32 %v1836_v31, %v1835_v15  ;;  %v1850_v40 = vrot.slane %v1849_v25, 1 }
 0x26c   : > { %v1844_v19 = vadd.f32 %v1843_v41, %v1842_v37 }
 0x26d   : > { %v1851_v32 = vadd.f32 %v1850_v40, %v1849_v25  ;;  %v1856_v39 = vsel %vm1686_vm6, %v1837_v24, %v1830_v43 }
 0x26e   : > { %v1857_v7 = vsel %vm1688_vm7, %v1844_v19, %v1856_v39 }
 0x26f   : > { %v1858_v54 = vsel %vm1690_vm8, %v1851_v32, %v1857_v7 }
 0x270   : > { %8024 = vmatmul.mubr.f32.vlgmr.msra.gmra.mrb[34].mxu1 %v1858_v54  ;;  %v8359_v54 = vld [vmem:[%s12711_s3 + $0x40] sm:$0xff]  }
 0x271   : > { %2492 = vmatpush1.bf16.msra.mxu1 %v8343_v57 }
 0x272   : > { %2493 = vmatprep.subr.bf16.mxu1 %v8764_v1 }
 0x275   : > { %2494 = vmatpush1.bf16.msra.mxu1 %v8345_v3 }
 0x276   : > { %2495 = vmatprep.subr.bf16.mxu1 %v8764_v1 }
 0x279   : > { %2496 = vmatpush1.bf16.msra.mxu1 %v8347_v12 }
 0x27a   : > { %2497 = vmatprep.subr.bf16.mxu1 %v8764_v1 }
 0x27d   : > { %2498 = vmatpush1.bf16.msra.mxu1 %v8349_v27 }
 0x27e   : > { %2499 = vmatprep.subr.bf16.mxu1 %v8764_v1 }
 0x281   : > { %2500 = vmatpush1.bf16.msra.mxu1 %v8351_v53 }
 0x282   : > { %2501 = vmatprep.subr.bf16.mxu1 %v8764_v1 }
 0x285   : > { %2502 = vmatpush1.bf16.msra.mxu1 %v8353_v45 }
 0x286   : > { %2503 = vmatprep.subr.bf16.mxu1 %v8764_v1 }
 0x289   : > { %2504 = vmatpush1.bf16.msra.mxu1 %v8355_v2 }
 0x28a   : > { %2505 = vmatprep.subr.bf16.mxu1 %v8764_v1 }
 0x343   : > { %v1926_v11 = vpop.f32.mrb[34].mxu1 }
 0x344   : > { %v1927_v52 = vadd.f32 1e-05, %v1926_v11  ;;  %v8025_v20 = vpop.f32.mrb[35].mxu1 }
 0x346   : > { %8451 = vrsqrt.f32 %v1927_v52 }
 0x350   : > { %v8452_v8 = vpop.eup %8451 }
 0x351   : > { %v1938_v17 = vrot.slane %v8452_v8, %v9763_v28 }
 0x353   : > { %v1939_v4 = vcombine.high %v1938_v17, %v1938_v17  ;;  %v1946_v46 = vrot.slane %v1938_v17, %v9763_v28 }
 0x355   : > { %v1959_v35 = vrot.slane %v1946_v46, %v9767_v50  ;;  %v1954_v34 = vcombine.high %v1946_v46, %v1946_v46  ;;  %v1953_v59 = vrot.slane %v1939_v4, %v9763_v28 }
 0x357   : > { %v1977_v36 = vmul.f32 %v1959_v35, %v9778_v56  ;;  %v1976_v23 = vmul.f32 %v1959_v35, %v9775_v18  ;;  %v1963_v0 = vrot.slane %v1953_v59, %v9767_v50  ;;  %v1967_v49 = vrot.slane %v1954_v34, %v9767_v50  ;;  %v8356_v56 = vld [vmem:[%s12711_s3 + $0x78] sm:$0xff]  }
 0x358   : > { %v1955_v44 = vcombine.high %v1953_v59, %v1953_v59  ;;  %2373 = vmatpush1.bf16.msra.mxu0 %v8356_v56 }
 0x359   : > { %v1989_v18 = vmul.f32 %v7476_v51, %v1977_v36  ;;  %v1988_v22 = vmul.f32 %v7476_v51, %v1976_v23  ;;  %v1978_v58 = vmul.f32 %v1963_v0, %v9782_v16  ;;  %v1979_v26 = vmul.f32 %v1963_v0, %v9785_v10  ;;  %v8357_v16 = vld [vmem:[%s12711_s3 + $0x38] sm:$0xff]   ;;  %2374 = vmatprep.subr.bf16.mxu0 %v8764_v1 }
 0x35a   : > { %v1980_v9 = vmul.f32 %v1967_v49, %v9788_v33  ;;  %v1981_v48 = vmul.f32 %v1967_v49, %v9791_v47  ;;  %v1971_v15 = vrot.slane %v1955_v44, %v9767_v50  ;;  %v8358_v33 = vld [vmem:[%s12711_s3 + $0x80] sm:$0xff]   ;;  %2506 = vmatpush1.bf16.msra.mxu1 %v8357_v16 }
 0x35b   : > { %v2001_v14 = vadd.f32 %v7477_v30, %v1989_v18  ;;  %v2000_v62 = vadd.f32 %v7477_v30, %v1988_v22  ;;  %v1990_v37 = vmul.f32 %v7476_v51, %v1978_v58  ;;  %v1991_v31 = vmul.f32 %v7476_v51, %v1979_v26  ;;  %2507 = vmatprep.subr.bf16.mxu1 %v8764_v1 }
 0x35c   : > { %v1992_v10 = vmul.f32 %v7476_v51, %v1980_v9  ;;  %v1993_v25 = vmul.f32 %v7476_v51, %v1981_v48  ;;  %v1982_v40 = vmul.f32 %v1971_v15, %v9798_v38  ;;  %2375 = vmatpush1.bf16.msra.mxu0 %v8358_v33  ;;  %v1983_v7 = vmul.f32 %v1971_v15, %v9801_v55  ;;  %v8360_v38 = vld [vmem:[%s12711_s3 + $0x88] sm:$0xff]  }
 0x35d   : > { %v2009_v47 = vmax.f32 %v2001_v14, 0.0  ;;  %v2008_v41 = vmax.f32 %v2000_v62, 0.0  ;;  %v2002_v43 = vadd.f32 %v7477_v30, %v1990_v37  ;;  %v2003_v24 = vadd.f32 %v7477_v30, %v1991_v31  ;;  %2376 = vmatprep.subr.bf16.mxu0 %v8764_v1 }
 0x35e   : > { %v2004_v5 = vadd.f32 %v7477_v30, %v1992_v10  ;;  %v2005_v3 = vadd.f32 %v7477_v30, %v1993_v25  ;;  %2508 = vmatpush1.bf16.msra.mxu1 %v8359_v54  ;;  %v1994_v60 = vmul.f32 %v7476_v51, %v1982_v40  ;;  %v1995_v12 = vmul.f32 %v7476_v51, %v1983_v7 }
 0x35f   : > { %v2052_v19 = vrot.slane %v2009_v47, 7  ;;  %v2051_v32 = vrot.slane %v2008_v41, 7  ;;  %v2010_v39 = vmax.f32 %v2002_v43, 0.0  ;;  %v2011_v57 = vmax.f32 %v2003_v24, 0.0  ;;  %8184 = vmatprep.subr.bf16.mxu1 %v8765_v13  ;;  %v8361_v43 = vld [vmem:[%s12711_s3 + $0x90] sm:$0xff]  }
 0x360   : > { %2377 = vmatpush1.bf16.msra.mxu0 %v8360_v38  ;;  %v2012_v29 = vmax.f32 %v2004_v5, 0.0  ;;  %v2013_v53 = vmax.f32 %v2005_v3, 0.0  ;;  %v2006_v61 = vadd.f32 %v7477_v30, %v1994_v60  ;;  %v2007_v8 = vadd.f32 %v7477_v30, %v1995_v12 }
 0x361   : > { %2067 = vrot.lane.b32.xlu1 %v2052_v19, %s8769_s27  ;;  %2063 = vrot.lane.b32.xlu0 %v2051_v32, %s8769_s27  ;;  %v2054_v55 = vrot.slane %v2010_v39, 7  ;;  %v2053_v63 = vsel %vm2050_vm11, %v2051_v32, %v2052_v19  ;;  %v2055_v27 = vrot.slane %v2011_v57, 7 }
 0x362   : > { %2737 = vmatprep.subr.bf16.mxu0 %v8764_v1  ;;  %v2057_v52 = vrot.slane %v2012_v29, 7  ;;  %v2058_v20 = vrot.slane %v2013_v53, 7  ;;  %v2014_v17 = vmax.f32 %v2006_v61, 0.0  ;;  %v2015_v46 = vmax.f32 %v2007_v8, 0.0 }
 0x363   : > { %v2056_v11 = vsel %vm2050_vm11, %v2054_v55, %v2055_v27 }
 0x364   : > { %v2059_v4 = vsel %vm2050_vm11, %v2057_v52, %v2058_v20  ;;  %v2060_v45 = vrot.slane %v2014_v17, 7  ;;  %v2061_v21 = vrot.slane %v2015_v46, 7 }
 0x365   : > { %2065 = vrot.lane.b32.xlu0 %v2053_v63, %s8769_s27  ;;  %2069 = vrot.lane.b32.xlu1 %v2054_v55, %s8769_s27 }
 0x366   : > { %v2062_v35 = vsel %vm2050_vm11, %v2060_v45, %v2061_v21 }
 0x369   : > { %2073 = vrot.lane.b32.xlu1 %v2055_v27, %s8769_s27  ;;  %2071 = vrot.lane.b32.xlu0 %v2056_v11, %s8769_s27 }
 0x36d   : > { %2077 = vrot.lane.b32.xlu1 %v2059_v4, %s8769_s27  ;;  %2075 = vrot.lane.b32.xlu0 %v2057_v52, %s8769_s27 }
 0x371   : > { %2079 = vrot.lane.b32.xlu0 %v2058_v20, %s8769_s27  ;;  %2081 = vrot.lane.b32.xlu1 %v2060_v45, %s8769_s27  ;;  %v8362_v45 = vld [vmem:[%s12711_s3 + $0x98] sm:$0xff]  }
 0x375   : > { %2085 = vrot.lane.b32.xlu1 %v2061_v21, %s8769_s27  ;;  %2083 = vrot.lane.b32.xlu0 %v2062_v35, %s8769_s27 }
 0x3d3   : > { %v2068_v34 = vpop.permute.xlu1 %2067  ;;  %v2064_v59 = vpop.permute.xlu0 %2063 }
 0x3d4   : > { %2108 = vst.msk [vmem:[#allocation2 + $0x20] sm:$0x1] %vm2107_vm12, %v2068_v34 }
 0x3d5   : > { %2110 = vst.msk [vmem:[#allocation2 + $0x28] sm:$0x1] %vm2109_vm13, %v2068_v34 }
 0x3d6   : > { %2100 = vst.msk [vmem:[#allocation2] sm:$0xfe] %vm2099_vm14, %v2064_v59 }
 0x3d7   : > { %2102 = vst.msk [vmem:[#allocation2 + $0x8] sm:$0xfe] %vm2101_vm15, %v2064_v59  ;;  %v2066_v51 = vpop.permute.xlu0 %2065  ;;  %v2070_v36 = vpop.permute.xlu1 %2069 }
 0x3d8   : > { %2104 = vst.msk [vmem:[#allocation2 + $0x10] sm:$0xff] %vm2103_vm1, %v2066_v51 }
 0x3d9   : > { %2106 = vst.msk [vmem:[#allocation2 + $0x18] sm:$0xff] %vm2105_vm3, %v2066_v51 }
 0x3da   : > { %2111 = vst.msk [vmem:[#allocation2 + $0x30] sm:$0xfe] %vm2099_vm14, %v2070_v36 }
 0x3db   : > { %2112 = vst.msk [vmem:[#allocation2 + $0x38] sm:$0xfe] %vm2101_vm15, %v2070_v36  ;;  %v2074_v23 = vpop.permute.xlu1 %2073  ;;  %v2072_v0 = vpop.permute.xlu0 %2071  ;;  %v2173_v2 = vld [vmem:[#allocation2 + $0x20] sm:$0x1] }
 0x3dc   : > { %2115 = vst.msk [vmem:[#allocation2 + $0x50] sm:$0x1] %vm2107_vm12, %v2074_v23  ;;  %v2174_v56 = vld [vmem:[#allocation2 + $0x28] sm:$0x1]  ;;  %v2217_v37 = vrot.slane %v2173_v2, 1  ;;  %v8363_v2 = vld [vmem:[%s12711_s3 + $0xa0] sm:$0xff]  }
 0x3dd   : > { %2116 = vst.msk [vmem:[#allocation2 + $0x58] sm:$0x1] %vm2109_vm13, %v2074_v23  ;;  %v2171_v49 = vld [vmem:[#allocation2] sm:$0xfe]  ;;  %v2219_v25 = vrot.slane %v2174_v56, 1 }
 0x3de   : > { %2113 = vst.msk [vmem:[#allocation2 + $0x40] sm:$0xff] %vm2103_vm1, %v2072_v0  ;;  %v2130_v30 = vld [vmem:[#allocation2 + $0x8] sm:$0xff]  ;;  %v2129_v26 = vld [vmem:[#allocation2] sm:$0xff]  ;;  %v2211_v48 = vrot.slane %v2171_v49, 1 }
 0x3df   : > { %2114 = vst.msk [vmem:[#allocation2 + $0x48] sm:$0xff] %vm2105_vm3, %v2072_v0  ;;  %v2172_v44 = vld [vmem:[#allocation2 + $0x8] sm:$0xfe]  ;;  %v2078_v18 = vpop.permute.xlu1 %2077  ;;  %v2076_v22 = vpop.permute.xlu0 %2075  ;;  %v9961_v9 = vld [vmem:[#allocation2 + $0x10] sm:$0xff] }
 0x3e0   : > { %v9959_v58 = vld [vmem:[#allocation2 + $0x18] sm:$0xff]  ;;  %2119 = vst.msk [vmem:[#allocation2 + $0x70] sm:$0xff] %vm2103_vm1, %v2078_v18  ;;  %v2145_v14 = vpack.c.bf16 %v9961_v9, %v2129_v26  ;;  %v2212_v62 = vrot.slane %v9961_v9, 1  ;;  %v2214_v16 = vrot.slane %v2172_v44, 1 }
 0x3e1   : > { %2120 = vst.msk [vmem:[#allocation2 + $0x78] sm:$0xff] %vm2105_vm3, %v2078_v18  ;;  %v2146_v15 = vpack.c.bf16 %v9959_v58, %v2130_v30  ;;  %v2215_v10 = vrot.slane %v9959_v58, 1  ;;  %v2175_v12 = vld [vmem:[#allocation2 + $0x30] sm:$0xfe] }
 0x3e2   : > { %2117 = vst.msk [vmem:[#allocation2 + $0x60] sm:$0xfe] %vm2099_vm14, %v2076_v22  ;;  %v2176_v31 = vld [vmem:[#allocation2 + $0x38] sm:$0xfe]  ;;  %v2213_v33 = vsel %vm473_vm0, %v2211_v48, %v2212_v62  ;;  %v2218_v47 = vsel %vm473_vm0, %v2212_v62, %v2217_v37  ;;  %v2221_v4 = vrot.slane %v2175_v12, 1  ;;  %v2133_v21 = vld [vmem:[#allocation2 + $0x30] sm:$0xff] }
 0x3e3   : > { %2118 = vst.msk [vmem:[#allocation2 + $0x68] sm:$0xfe] %vm2101_vm15, %v2076_v22  ;;  %7518 = vmatprep.mubr.msk.bf16.mxu1 %vm2017_vm10, %v2146_v15  ;;  %v2134_v41 = vld [vmem:[#allocation2 + $0x38] sm:$0xff]  ;;  %v2080_v24 = vpop.permute.xlu0 %2079  ;;  %v2082_v40 = vpop.permute.xlu1 %2081  ;;  %v2216_v19 = vsel %vm473_vm0, %v2214_v16, %v2215_v10  ;;  %v2220_v32 = vsel %vm473_vm0, %v2215_v10, %v2219_v25  ;;  %v2267_v39 = vpack.c.bf16 %v2218_v47, %v2213_v33  ;;  %v2224_v57 = vrot.slane %v2176_v31, 1  ;;  %v2177_v63 = vld [vmem:[#allocation2 + $0x50] sm:$0x1] }
 0x3e4   : > { %2524 = vmatmul.mubr.bf16.vlgmr.msra.gmra.mrb[36].mxu1 %v2145_v14  ;;  %v2178_v54 = vld [vmem:[#allocation2 + $0x58] sm:$0x1]  ;;  %2121 = vst.msk [vmem:[#allocation2 + $0x80] sm:$0x1] %vm2107_vm12, %v2080_v24  ;;  %v2268_v3 = vpack.c.bf16 %v2220_v32, %v2216_v19  ;;  %v2227_v61 = vrot.slane %v2177_v63, 1  ;;  %v8364_v16 = vld [vmem:[%s12711_s3 + $0xa8] sm:$0xff]  }
 0x3e5   : > { %v9981_v5 = vld [vmem:[#allocation2 + $0x40] sm:$0xff]  ;;  %2122 = vst.msk [vmem:[#allocation2 + $0x88] sm:$0x1] %vm2109_vm13, %v2080_v24  ;;  %v2229_v60 = vrot.slane %v2178_v54, 1 }
 0x3e6   : > { %v9979_v7 = vld [vmem:[#allocation2 + $0x48] sm:$0xff]  ;;  %2123 = vst.msk [vmem:[#allocation2 + $0x90] sm:$0xfe] %vm2099_vm14, %v2082_v40  ;;  %v2222_v27 = vrot.slane %v9981_v5, 1  ;;  %7505 = vmatprep.mubr.msk.bf16.mxu0 %vm2017_vm10, %v2268_v3  ;;  %v2147_v35 = vpack.c.bf16 %v9981_v5, %v2133_v21 }
 0x3e7   : > { %2124 = vst.msk [vmem:[#allocation2 + $0x98] sm:$0xfe] %vm2101_vm15, %v2082_v40  ;;  %v2148_v38 = vpack.c.bf16 %v9979_v7, %v2134_v41  ;;  %v2225_v55 = vrot.slane %v9979_v7, 1  ;;  %2393 = vmatmul.mubr.bf16.vlgmr.msra.gmra.mrb[48].mxu0 %v2267_v39  ;;  %v2086_v11 = vpop.permute.xlu1 %2085  ;;  %v2084_v52 = vpop.permute.xlu0 %2083  ;;  %v10015_v56 = vld [vmem:[#allocation2 + $0x70] sm:$0xff] }
 0x3e8   : > { %v9994_v17 = vld [vmem:[#allocation2 + $0x78] sm:$0xff]  ;;  %2738 = vmatpush1.bf16.msra.mxu0 %v8361_v43  ;;  %2127 = vst.msk [vmem:[#allocation2 + $0xb0] sm:$0x1] %vm2107_vm12, %v2086_v11  ;;  %v2223_v34 = vsel %vm473_vm0, %v2221_v4, %v2222_v27  ;;  %v2228_v51 = vsel %vm473_vm0, %v2222_v27, %v2227_v61  ;;  %v2232_v25 = vrot.slane %v10015_v56, 1  ;;  %v2592_v61 = vrot.slane %v9959_v58, 2 }
 0x3e9   : > { %7519 = vmatprep.mubr.msk.bf16.mxu1 %vm2017_vm10, %v2148_v38  ;;  %v2226_v29 = vsel %vm473_vm0, %v2224_v57, %v2225_v55  ;;  %v2230_v53 = vsel %vm473_vm0, %v2225_v55, %v2229_v60  ;;  %2128 = vst.msk [vmem:[#allocation2 + $0xb8] sm:$0x1] %vm2109_vm13, %v2086_v11  ;;  %2739 = vmatprep.subr.bf16.mxu0 %v8764_v1  ;;  %v2235_v23 = vrot.slane %v9994_v17, 1  ;;  %v2179_v18 = vld [vmem:[#allocation2 + $0x60] sm:$0xfe]  ;;  %v8365_v38 = vld [vmem:[%s12711_s3 + $0xb0] sm:$0xff]  }
 0x3ea   : > { %v2270_v20 = vpack.c.bf16 %v2230_v53, %v2226_v29  ;;  %v2138_v8 = vld [vmem:[#allocation2 + $0x68] sm:$0xff]  ;;  %2125 = vst.msk [vmem:[#allocation2 + $0xa0] sm:$0xff] %vm2103_vm1, %v2084_v52  ;;  %v2269_v44 = vpack.c.bf16 %v2228_v51, %v2223_v34  ;;  %v2137_v48 = vld [vmem:[#allocation2 + $0x60] sm:$0xff]  ;;  %v2231_v10 = vrot.slane %v2179_v18, 1  ;;  %v8366_v11 = vld [vmem:[%s12711_s3 + $0xb8] sm:$0xff]  }
 0x3eb   : > { %v2180_v46 = vld [vmem:[#allocation2 + $0x68] sm:$0xfe]  ;;  %2126 = vst.msk [vmem:[#allocation2 + $0xa8] sm:$0xff] %vm2105_vm3, %v2084_v52  ;;  %v2150_v59 = vpack.c.bf16 %v9994_v17, %v2138_v8  ;;  %v2181_v49 = vld [vmem:[#allocation2 + $0x80] sm:$0x1]  ;;  %v2149_v41 = vpack.c.bf16 %v10015_v56, %v2137_v48 }
 0x3ec   : > { %7506 = vmatprep.mubr.msk.bf16.mxu0 %vm2017_vm10, %v2270_v20  ;;  %v2234_v36 = vrot.slane %v2180_v46, 1  ;;  %2532 = vmatmul.mubr.bf16.gmra.mrb[40].mxu1 %v2147_v35  ;;  %v2182_v0 = vld [vmem:[#allocation2 + $0x88] sm:$0x1]  ;;  %v2237_v15 = vrot.slane %v2181_v49, 1  ;;  %v2233_v3 = vsel %vm473_vm0, %v2231_v10, %v2232_v25  ;;  %v2557_v29 = vld [vmem:[#allocation2 + $0x8] sm:$0xfc] }
 0x3ed   : > { %2740 = vmatpush1.bf16.msra.mxu0 %v8362_v45  ;;  %7520 = vmatprep.mubr.msk.bf16.mxu1 %vm2017_vm10, %v2150_v59  ;;  %v2239_v30 = vrot.slane %v2182_v0, 1  ;;  %v2183_v60 = vld [vmem:[#allocation2 + $0x90] sm:$0xfe]  ;;  %v2559_v53 = vld [vmem:[#allocation2 + $0x28] sm:$0x3]  ;;  %v2591_v4 = vrot.slane %v2557_v29, 2 }
 0x3ee   : > { %2741 = vmatprep.subr.bf16.mxu0 %v8764_v1  ;;  %v2236_v22 = vsel %vm473_vm0, %v2234_v36, %v2235_v23  ;;  %v2184_v14 = vld [vmem:[#allocation2 + $0x98] sm:$0xfe]  ;;  %v2238_v19 = vsel %vm473_vm0, %v2232_v25, %v2237_v15  ;;  %v2141_v52 = vld [vmem:[#allocation2 + $0x90] sm:$0xff]  ;;  %v2241_v20 = vrot.slane %v2183_v60, 1  ;;  %v2596_v46 = vrot.slane %v2559_v53, 2  ;;  %v8367_v34 = vld [vmem:[%s12711_s3 + $0xc0] sm:$0xff]  }
 0x3ef   : > { %v2240_v26 = vsel %vm473_vm0, %v2235_v23, %v2239_v30  ;;  %2401 = vmatmul.mubr.bf16.gmra.mrb[52].mxu0 %v2269_v44  ;;  %v2142_v43 = vld [vmem:[#allocation2 + $0x98] sm:$0xff]  ;;  %v2244_v24 = vrot.slane %v2184_v14, 1  ;;  %v2185_v57 = vld [vmem:[#allocation2 + $0xb0] sm:$0x1]  ;;  %v2271_v55 = vpack.c.bf16 %v2238_v19, %v2233_v3  ;;  %v2593_v58 = vsel %vm866_vm2, %v2591_v4, %v2592_v61  ;;  %v8368_v36 = vld [vmem:[%s12711_s3 + $0xc8] sm:$0xff]  }
 0x3f0   : > { %v2272_v62 = vpack.c.bf16 %v2240_v26, %v2236_v22  ;;  %v2186_v31 = vld [vmem:[#allocation2 + $0xb8] sm:$0x1]  ;;  %v2247_v27 = vrot.slane %v2185_v57, 1  ;;  %v2597_v35 = vsel %vm866_vm2, %v2592_v61, %v2596_v46  ;;  %v2556_v0 = vld [vmem:[#allocation2] sm:$0xfc]  ;;  %v2602_v44 = vrot.slane %v9979_v7, 2 }
 0x3f1   : > { %2742 = vmatpush1.bf16.msra.mxu0 %v8363_v2  ;;  %v2249_v47 = vrot.slane %v2186_v31, 1  ;;  %v10033_v54 = vld [vmem:[#allocation2 + $0xa0] sm:$0xff]  ;;  %v2645_v51 = vpack.c.bf16 %v2597_v35, %v2593_v58  ;;  %v2563_v23 = vld [vmem:[#allocation2 + $0x58] sm:$0x3]  ;;  %v2589_v2 = vrot.slane %v9961_v9, 2  ;;  %v8369_v22 = vld [vmem:[%s12711_s3 + $0xd0] sm:$0xff]  }
 0x3f2   : > { %v10019_v37 = vld [vmem:[#allocation2 + $0xa8] sm:$0xff]  ;;  %7507 = vmatprep.mubr.msk.bf16.mxu0 %vm2017_vm10, %v2272_v62  ;;  %2743 = vmatprep.subr.bf16.mxu0 %v8764_v1  ;;  %v2242_v63 = vrot.slane %v10033_v54, 1  ;;  %v2151_v8 = vpack.c.bf16 %v10033_v54, %v2141_v52  ;;  %v2558_v49 = vld [vmem:[#allocation2 + $0x20] sm:$0x3]  ;;  %v2561_v30 = vld [vmem:[#allocation2 + $0x38] sm:$0xfc] }
 0x3f3   : > { %v2245_v33 = vrot.slane %v10019_v37, 1  ;;  %v2152_v40 = vpack.c.bf16 %v10019_v37, %v2142_v43  ;;  %v2606_v18 = vrot.slane %v2563_v23, 2  ;;  %v2588_v26 = vrot.slane %v2556_v0, 2  ;;  %v2562_v7 = vld [vmem:[#allocation2 + $0x50] sm:$0x3] }
 0x3f4   : > { %2540 = vmatmul.mubr.bf16.gmra.mrb[44].mxu1 %v2149_v41  ;;  %v2243_v45 = vsel %vm473_vm0, %v2241_v20, %v2242_v63  ;;  %v2248_v21 = vsel %vm473_vm0, %v2242_v63, %v2247_v27  ;;  %v2594_v48 = vrot.slane %v2558_v49, 2  ;;  %v2601_v15 = vrot.slane %v2561_v30, 2  ;;  %v2560_v25 = vld [vmem:[#allocation2 + $0x30] sm:$0xfc]  ;;  %v2565_v41 = vld [vmem:[#allocation2 + $0x68] sm:$0xfc] }
 0x3f5   : > { %v2246_v32 = vsel %vm473_vm0, %v2244_v24, %v2245_v33  ;;  %v2250_v39 = vsel %vm473_vm0, %v2245_v33, %v2249_v47  ;;  %2744 = vmatpush1.bf16.msra.mxu0 %v8364_v16  ;;  %7521 = vmatprep.mubr.msk.bf16.mxu1 %vm2017_vm10, %v2152_v40  ;;  %v2273_v59 = vpack.c.bf16 %v2248_v21, %v2243_v45  ;;  %v2567_v16 = vld [vmem:[#allocation2 + $0x88] sm:$0x3]  ;;  %v2599_v47 = vrot.slane %v9981_v5, 2  ;;  %v2566_v3 = vld [vmem:[#allocation2 + $0x80] sm:$0x3]  ;;  %v2855_v0 = vld [vmem:[%s12715_s7 + $0x10] sm:$0xff] }
 0x3f6   : > { %2745 = vmatprep.subr.bf16.mxu0 %v8764_v1  ;;  %v2274_v12 = vpack.c.bf16 %v2250_v39, %v2246_v32  ;;  %v2590_v14 = vsel %vm866_vm2, %v2588_v26, %v2589_v2  ;;  %v2595_v62 = vsel %vm866_vm2, %v2589_v2, %v2594_v48  ;;  %v2603_v9 = vsel %vm866_vm2, %v2601_v15, %v2602_v44  ;;  %v2564_v60 = vld [vmem:[#allocation2 + $0x60] sm:$0xfc]  ;;  %v2569_v27 = vld [vmem:[#allocation2 + $0x98] sm:$0xfc]  ;;  %v2570_v4 = vld [vmem:[#allocation2 + $0xb0] sm:$0x3] }
 0x3f7   : > { %2409 = vmatmul.mubr.bf16.gmra.mrb[56].mxu0 %v2271_v55  ;;  %v2607_v31 = vsel %vm866_vm2, %v2602_v44, %v2606_v18  ;;  %v2644_v10 = vpack.c.bf16 %v2595_v62, %v2590_v14  ;;  %v2616_v43 = vrot.slane %v2567_v16, 2  ;;  %v2598_v24 = vrot.slane %v2560_v25, 2  ;;  %v2568_v21 = vld [vmem:[#allocation2 + $0x90] sm:$0xfc]  ;;  %v2857_v2 = vld [vmem:[%s12715_s7 + $0x20] sm:$0xff]  ;;  %v2858_v30 = vld [vmem:[%s12715_s7 + $0x28] sm:$0xff] }
 0x3f8   : > { %7508 = vmatprep.mubr.msk.bf16.mxu0 %vm2017_vm10, %v2274_v12  ;;  %v2647_v33 = vpack.c.bf16 %v2607_v31, %v2603_v9  ;;  %v2611_v40 = vrot.slane %v2565_v41, 2  ;;  %v2612_v19 = vrot.slane %v9994_v17, 2  ;;  %v2614_v63 = vrot.slane %v2566_v3, 2  ;;  %v2859_v18 = vld [vmem:[%s12715_s7 + $0x30] sm:$0xff]  ;;  %v2861_v48 = vld [vmem:[%s12715_s7 + $0x40] sm:$0xff]  ;;  %v2862_v15 = vld [vmem:[%s12715_s7 + $0x48] sm:$0xff] }
 0x3f9   : > { %2746 = vmatpush1.bf16.msra.mxu0 %v8365_v38  ;;  %v2600_v32 = vsel %vm866_vm2, %v2598_v24, %v2599_v47  ;;  %v2571_v38 = vld [vmem:[#allocation2 + $0xb8] sm:$0x3]  ;;  %v2622_v29 = vrot.slane %v10019_v37, 2  ;;  %v2608_v17 = vrot.slane %v2564_v60, 2  ;;  %v2609_v61 = vrot.slane %v10015_v56, 2  ;;  %v2863_v62 = vld [vmem:[%s12715_s7 + $0x50] sm:$0xff] }
 0x3fa   : > { %2747 = vmatprep.subr.bf16.mxu0 %v8764_v1  ;;  %v2617_v57 = vsel %vm866_vm2, %v2612_v19, %v2616_v43  ;;  %v2613_v5 = vsel %vm866_vm2, %v2611_v40, %v2612_v19  ;;  %v2626_v53 = vrot.slane %v2571_v38, 2  ;;  %v2619_v37 = vrot.slane %v10033_v54, 2  ;;  %v2854_v54 = vld [vmem:[%s12715_s7 + $0x8] sm:$0xff]  ;;  %v2864_v9 = vld [vmem:[%s12715_s7 + $0x58] sm:$0xff]  ;;  %v2867_v25 = vld [vmem:[%s12715_s7 + $0x70] sm:$0xff] }
 0x3fb   : > { %v2649_v12 = vpack.c.bf16 %v2617_v57, %v2613_v5  ;;  %v2615_v52 = vsel %vm866_vm2, %v2609_v61, %v2614_v63  ;;  %v2610_v46 = vsel %vm866_vm2, %v2608_v17, %v2609_v61  ;;  %v2624_v35 = vrot.slane %v2570_v4, 2  ;;  %v2866_v16 = vld [vmem:[%s12715_s7 + $0x68] sm:$0xff] }
 0x3fc   : > { %2548 = vmatmul.mubr.bf16.gmra.mrb[48].mxu1 %v2151_v8  ;;  %v2627_v8 = vsel %vm866_vm2, %v2622_v29, %v2626_v53  ;;  %v2648_v45 = vpack.c.bf16 %v2615_v52, %v2610_v46  ;;  %v2618_v56 = vrot.slane %v2568_v21, 2  ;;  %v8191_v44 = vpack.c.bf16 %v2858_v30, %v2857_v2 }
 0x3fd   : > { %2748 = vmatpush1.bf16.msra.mxu0 %v8366_v11  ;;  %8058 = vmatprep.mubr.msk.f32.mxu1 %vm8766_vm5, %v8767_v42  ;;  %v2621_v11 = vrot.slane %v2569_v27, 2  ;;  %v8197_v14 = vpack.c.bf16 %v2862_v15, %v2861_v48  ;;  %v8200_v31 = vpack.c.bf16 %v2864_v9, %v2863_v62  ;;  %v7553_v62 = vld [vmem:[%s12713_s5 + $0x3] ss:$0 sm:$0xff] }
 0x3fe   : > { %2749 = vmatprep.subr.bf16.mxu0 %v8764_v1 }
 0x3ff   : > { %2417 = vmatmul.mubr.bf16.gmra.mrb[60].mxu0 %v2273_v59  ;;  %v2623_v20 = vsel %vm866_vm2, %v2621_v11, %v2622_v29  ;;  %v2625_v59 = vsel %vm866_vm2, %v2619_v37, %v2624_v35 }
 0x400   : > { %7549 = vmatprep.mubr.msk.bf16.mxu0 %vm2017_vm10, %v2645_v51  ;;  %v2651_v58 = vpack.c.bf16 %v2627_v8, %v2623_v20 }
 0x401   : > { %2750 = vmatpush1.bf16.msra.mxu0 %v8367_v34  ;;  %v2620_v34 = vsel %vm866_vm2, %v2618_v56, %v2619_v37 }
 0x402   : > { %2751 = vmatprep.subr.bf16.mxu0 %v8764_v1  ;;  %v2650_v51 = vpack.c.bf16 %v2625_v59, %v2620_v34 }
 0x405   : > { %2752 = vmatpush1.bf16.msra.mxu0 %v8368_v36  ;;  %v2853_v36 = vld [vmem:[%s12715_s7] sm:$0xff] }
 0x406   : > { %2753 = vmatprep.subr.bf16.mxu0 %v8764_v1  ;;  %v2604_v1 = vrot.slane %v2562_v7, 2  ;;  %v8185_v23 = vpack.c.bf16 %v2854_v54, %v2853_v36  ;;  %v2865_v7 = vld [vmem:[%s12715_s7 + $0x60] sm:$0xff] }
 0x408   : > { %v2605_v39 = vsel %vm866_vm2, %v2599_v47, %v2604_v1  ;;  %8186 = vmatpush3.bf16.msra.mxu1 %v8185_v23 }
 0x409   : > { %2754 = vmatpush1.bf16.msra.mxu0 %v8369_v22  ;;  %v2646_v55 = vpack.c.bf16 %v2605_v39, %v2600_v32  ;;  %8187 = vmatprep.subr.bf16.mxu1 %v8765_v13  ;;  %v2860_v22 = vld [vmem:[%s12715_s7 + $0x38] sm:$0xff] }
 0x40a   : > { %8208 = vmatprep.subr.bf16.mxu0 %v8765_v13  ;;  %v8194_v26 = vpack.c.bf16 %v2860_v22, %v2859_v18 }
 0x40c   : > { %2770 = vmatmul.mubr.bf16.vlgmr.msra.gmra.mrb[64].mxu0 %v2644_v10  ;;  %v8203_v10 = vpack.c.bf16 %v2866_v16, %v2865_v7 }
 0x40d   : > { %7550 = vmatprep.mubr.msk.bf16.mxu0 %vm2017_vm10, %v2647_v33  ;;  %8210 = vmatpush3.bf16.msra.mxu0 %v8185_v23  ;;  %v2868_v33 = vld [vmem:[%s12715_s7 + $0x78] sm:$0xff] }
 0x40e   : > { %8211 = vmatprep.subr.bf16.mxu0 %v8765_v13  ;;  %v8206_v47 = vpack.c.bf16 %v2868_v33, %v2867_v25 }
 0x414   : > { %2778 = vmatmul.mubr.bf16.gmra.mrb[68].mxu0 %v2646_v55 }
 0x415   : > { %7551 = vmatprep.mubr.msk.bf16.mxu0 %vm2017_vm10, %v2649_v12 }
 0x41c   : > { %2786 = vmatmul.mubr.bf16.gmra.mrb[72].mxu0 %v2648_v45 }
 0x41d   : > { %7552 = vmatprep.mubr.msk.bf16.mxu0 %vm2017_vm10, %v2651_v58 }
 0x424   : > { %2794 = vmatmul.mubr.bf16.gmra.mrb[76].mxu0 %v2650_v51 }
 0x425   : > { %8093 = vmatprep.mubr.msk.f32.mxu0 %vm8766_vm5, %v8767_v42  ;;  %v2856_v42 = vld [vmem:[%s12715_s7 + $0x18] sm:$0xff]  ;;  %vm7096_vm5 = vcmask 1044484  }
 0x426   : > { %v8188_v49 = vpack.c.bf16 %v2856_v42, %v2855_v0 }
 0x428   : > { %8189 = vmatpush3.bf16.msra.mxu1 %v8188_v49  ;;  %8213 = vmatpush3.bf16.msra.mxu0 %v8188_v49 }
 0x429   : > { %8190 = vmatprep.subr.bf16.mxu1 %v8765_v13  ;;  %8214 = vmatprep.subr.bf16.mxu0 %v8765_v13 }
 0x42c   : > { %8192 = vmatpush3.bf16.msra.mxu1 %v8191_v44  ;;  %8216 = vmatpush3.bf16.msra.mxu0 %v8191_v44 }
 0x42d   : > { %8193 = vmatprep.subr.bf16.mxu1 %v8765_v13  ;;  %8217 = vmatprep.subr.bf16.mxu0 %v8765_v13 }
 0x430   : > { %8195 = vmatpush3.bf16.msra.mxu1 %v8194_v26  ;;  %8219 = vmatpush3.bf16.msra.mxu0 %v8194_v26 }
 0x431   : > { %8196 = vmatprep.subr.bf16.mxu1 %v8765_v13  ;;  %8220 = vmatprep.subr.bf16.mxu0 %v8765_v13 }
 0x434   : > { %8198 = vmatpush3.bf16.msra.mxu1 %v8197_v14  ;;  %8222 = vmatpush3.bf16.msra.mxu0 %v8197_v14 }
 0x435   : > { %8199 = vmatprep.subr.bf16.mxu1 %v8765_v13  ;;  %8223 = vmatprep.subr.bf16.mxu0 %v8765_v13 }
 0x438   : > { %8201 = vmatpush3.bf16.msra.mxu1 %v8200_v31  ;;  %8225 = vmatpush3.bf16.msra.mxu0 %v8200_v31 }
 0x439   : > { %8202 = vmatprep.subr.bf16.mxu1 %v8765_v13  ;;  %8226 = vmatprep.subr.bf16.mxu0 %v8765_v13 }
 0x43c   : > { %8204 = vmatpush3.bf16.msra.mxu1 %v8203_v10  ;;  %8228 = vmatpush3.bf16.msra.mxu0 %v8203_v10 }
 0x43d   : > { %8205 = vmatprep.subr.bf16.mxu1 %v8765_v13  ;;  %8229 = vmatprep.subr.bf16.mxu0 %v8765_v13 }
 0x440   : > { %8207 = vmatpush3.bf16.msra.mxu1 %v8206_v47  ;;  %8231 = vmatpush3.bf16.msra.mxu0 %v8206_v47 }
 0x4b7   : > { %v2525_v1 = vpop.f32.mrb[36].mxu1 }
 0x4b8   : > { %v2527_v41 = vpop.f32.mrb[37].mxu1 }
 0x4b9   : > { %v2528_v43 = vpop.f32.mrb[38].mxu1 }
 0x4ba   : > { %v2530_v24 = vpop.f32.mrb[39].mxu1  ;;  %v2394_v40 = vpop.f32.mrb[48].mxu0 }
 0x4bb   : > { %v2526_v19 = vadd.f32 %v2525_v1, %v2394_v40  ;;  %v2396_v32 = vpop.f32.mrb[49].mxu0 }
 0x4bc   : > { %v2397_v39 = vpop.f32.mrb[50].mxu0 }
 0x4bd   : > { %v2529_v57 = vadd.f32 %v2528_v43, %v2397_v39  ;;  %v2399_v3 = vpop.f32.mrb[51].mxu0 }
 0x4bf   : > { %v2533_v38 = vpop.f32.mrb[40].mxu1 }
 0x4c0   : > { %v2535_v55 = vpop.f32.mrb[41].mxu1 }
 0x4c1   : > { %v2536_v5 = vpop.f32.mrb[42].mxu1 }
 0x4c2   : > { %v2538_v60 = vpop.f32.mrb[43].mxu1  ;;  %v2402_v12 = vpop.f32.mrb[52].mxu0 }
 0x4c3   : > { %v2534_v63 = vadd.f32 %v2533_v38, %v2402_v12  ;;  %v2404_v27 = vpop.f32.mrb[53].mxu0 }
 0x4c4   : > { %v2405_v13 = vpop.f32.mrb[54].mxu0 }
 0x4c5   : > { %v2537_v29 = vadd.f32 %v2536_v5, %v2405_v13  ;;  %v2407_v53 = vpop.f32.mrb[55].mxu0 }
 0x4c7   : > { %v2541_v17 = vpop.f32.mrb[44].mxu1 }
 0x4c8   : > { %v2543_v61 = vpop.f32.mrb[45].mxu1 }
 0x4c9   : > { %v2544_v11 = vpop.f32.mrb[46].mxu1 }
 0x4ca   : > { %v2546_v52 = vpop.f32.mrb[47].mxu1  ;;  %v2410_v20 = vpop.f32.mrb[56].mxu0 }
 0x4cb   : > { %v2542_v8 = vadd.f32 %v2541_v17, %v2410_v20  ;;  %v2412_v4 = vpop.f32.mrb[57].mxu0 }
 0x4cc   : > { %v2413_v46 = vpop.f32.mrb[58].mxu0 }
 0x4cd   : > { %v2545_v45 = vadd.f32 %v2544_v11, %v2413_v46  ;;  %v2415_v21 = vpop.f32.mrb[59].mxu0 }
 0x4cf   : > { %v2549_v58 = vpop.f32.mrb[48].mxu1 }
 0x4d0   : > { %v2551_v37 = vpop.f32.mrb[49].mxu1 }
 0x4d1   : > { %v2552_v35 = vpop.f32.mrb[50].mxu1 }
 0x4d2   : > { %v2554_v56 = vpop.f32.mrb[51].mxu1  ;;  %v2418_v34 = vpop.f32.mrb[60].mxu0 }
 0x4d3   : > { %v2550_v59 = vadd.f32 %v2549_v58, %v2418_v34  ;;  %v2420_v51 = vpop.f32.mrb[61].mxu0 }
 0x4d4   : > { %v2421_v36 = vpop.f32.mrb[62].mxu0 }
 0x4d5   : > { %v2553_v54 = vadd.f32 %v2552_v35, %v2421_v36  ;;  %v2423_v23 = vpop.f32.mrb[63].mxu0 }
 0x4df   : > { %v2771_v0 = vpop.f32.mrb[64].mxu0 }
 0x4e0   : > { %v2802_v42 = vadd.f32 %v2771_v0, %v2526_v19  ;;  %v2773_v49 = vpop.f32.mrb[65].mxu0 }
 0x4e1   : > { %v2774_v2 = vpop.f32.mrb[66].mxu0 }
 0x4e2   : > { %v2803_v30 = vadd.f32 %v2774_v2, %v2529_v57  ;;  %v2776_v44 = vpop.f32.mrb[67].mxu0  ;;  %v2815_v16 = vadd.f32 %v7553_v62, %v2802_v42 }
 0x4e4   : > { %v10160_v9 = vadd.f32 %v7553_v62, %v2803_v30 }
 0x4e6   : > { %v2825_v33 = vadd.f32 %v10160_v9, %v2815_v16 }
 0x4e7   : > { %v2779_v18 = vpop.f32.mrb[68].mxu0 }
 0x4e8   : > { %v2804_v22 = vadd.f32 %v2779_v18, %v2534_v63  ;;  %v2781_v26 = vpop.f32.mrb[69].mxu0  ;;  %v2826_v19 = vrot.slane %v2825_v33, 4 }
 0x4e9   : > { %v2782_v48 = vpop.f32.mrb[70].mxu0 }
 0x4ea   : > { %v2805_v15 = vadd.f32 %v2782_v48, %v2537_v29  ;;  %v2784_v14 = vpop.f32.mrb[71].mxu0  ;;  %v10162_v31 = vadd.f32 %v7553_v62, %v2804_v22  ;;  %v2827_v55 = vadd.f32 %v2826_v19, %v2825_v33 }
 0x4ec   : > { %v10164_v7 = vadd.f32 %v7553_v62, %v2805_v15  ;;  %v2828_v17 = vrot.slane %v2827_v55, 2 }
 0x4ee   : > { %v2832_v10 = vadd.f32 %v10164_v7, %v10162_v31  ;;  %v2829_v46 = vadd.f32 %v2828_v17, %v2827_v55 }
 0x4ef   : > { %v2787_v25 = vpop.f32.mrb[72].mxu0 }
 0x4f0   : > { %v2806_v47 = vadd.f32 %v2787_v25, %v2542_v8  ;;  %v2789_v1 = vpop.f32.mrb[73].mxu0  ;;  %v2833_v43 = vrot.slane %v2832_v10, 4  ;;  %v2830_v35 = vrot.slane %v2829_v46, 1 }
 0x4f1   : > { %v2790_v41 = vpop.f32.mrb[74].mxu0 }
 0x4f2   : > { %v2807_v24 = vadd.f32 %v2790_v41, %v2545_v45  ;;  %v2792_v40 = vpop.f32.mrb[75].mxu0  ;;  %v2819_v32 = vadd.f32 %v7553_v62, %v2806_v47  ;;  %v2834_v57 = vadd.f32 %v2833_v43, %v2832_v10  ;;  %v2831_v36 = vadd.f32 %v2830_v35, %v2829_v46 }
 0x4f4   : > { %v2820_v39 = vadd.f32 %v7553_v62, %v2807_v24  ;;  %v2835_v27 = vrot.slane %v2834_v57, 2 }
 0x4f6   : > { %v2839_v3 = vadd.f32 %v2820_v39, %v2819_v32  ;;  %v2836_v20 = vadd.f32 %v2835_v27, %v2834_v57 }
 0x4f7   : > { %v2795_v38 = vpop.f32.mrb[76].mxu0 }
 0x4f8   : > { %v2840_v5 = vrot.slane %v2839_v3, 4  ;;  %v2808_v60 = vadd.f32 %v2795_v38, %v2550_v59  ;;  %v2797_v12 = vpop.f32.mrb[77].mxu0  ;;  %v2837_v21 = vrot.slane %v2836_v20, 1 }
 0x4f9   : > { %v2798_v63 = vpop.f32.mrb[78].mxu0 }
 0x4fa   : > { %v2841_v13 = vadd.f32 %v2840_v5, %v2839_v3  ;;  %v2809_v29 = vadd.f32 %v2798_v63, %v2553_v54  ;;  %v2800_v53 = vpop.f32.mrb[79].mxu0  ;;  %v2821_v11 = vadd.f32 %v7553_v62, %v2808_v60  ;;  %v2838_v34 = vadd.f32 %v2837_v21, %v2836_v20 }
 0x4fc   : > { %v2842_v61 = vrot.slane %v2841_v13, 2  ;;  %v2822_v52 = vadd.f32 %v7553_v62, %v2809_v29  ;;  %v2873_v0 = vsel %vm1686_vm6, %v2838_v34, %v2831_v36 }
 0x4fe   : > { %v2846_v8 = vadd.f32 %v2822_v52, %v2821_v11  ;;  %v2843_v4 = vadd.f32 %v2842_v61, %v2841_v13 }
 0x500   : > { %v2847_v45 = vrot.slane %v2846_v8, 4  ;;  %v2844_v37 = vrot.slane %v2843_v4, 1 }
 0x502   : > { %v2848_v58 = vadd.f32 %v2847_v45, %v2846_v8  ;;  %v2845_v51 = vadd.f32 %v2844_v37, %v2843_v4 }
 0x504   : > { %v2849_v56 = vrot.slane %v2848_v58, 2  ;;  %v2874_v42 = vsel %vm1688_vm7, %v2845_v51, %v2873_v0 }
 0x506   : > { %v2850_v59 = vadd.f32 %v2849_v56, %v2848_v58 }
 0x508   : > { %v2851_v54 = vrot.slane %v2850_v59, 1 }
 0x50a   : > { %v2852_v23 = vadd.f32 %v2851_v54, %v2850_v59 }
 0x50c   : > { %v2875_v49 = vsel %vm1690_vm8, %v2852_v23, %v2874_v42  ;;  %v8370_v42 = vld [vmem:[%s12712_s4 + $0x90] ss:$8 sps:$4 sm:$0xff]  }
 0x50d   : > { %8059 = vmatmul.mubr.f32.vlgmr.msra.gmra.mrb[52].mxu1 %v2875_v49  ;;  %v8372_v49 = vld [vmem:[%s12712_s4 + $0x94] ss:$8 sps:$4 sm:$0xff]  }
 0x50e   : > { %3547 = vmatprep.subr.bf16.mxu1 %v8372_v49 }
 0x50f   : > { %3548 = vmatpush1.bf16.msra.mxu1 %v8370_v42  ;;  %v8396_v42 = vld [vmem:[%s12712_s4 + $0x114] ss:$8 sps:$4 sm:$0xff]  }
 0x5e0   : > { %v2943_v2 = vpop.f32.mrb[52].mxu1 }
 0x5e1   : > { %v2954_v30 = vrot.slane %v2943_v2, %v9763_v28  ;;  %v8060_v44 = vpop.f32.mrb[53].mxu1  ;;  %v8375_v2 = vld [vmem:[%s12712_s4 + $0xa4] ss:$8 sps:$4 sm:$0xff]  }
 0x5e2   : > { %3549 = vmatprep.subr.bf16.mxu1 %v8375_v2  ;;  %v8378_v44 = vld [vmem:[%s12712_s4 + $0xb4] ss:$8 sps:$4 sm:$0xff]  }
 0x5e3   : > { %v2955_v18 = vcombine.high %v2954_v30, %v2954_v30  ;;  %v2962_v22 = vrot.slane %v2954_v30, %v9763_v28  ;;  %v8373_v30 = vld [vmem:[%s12712_s4 + $0xa0] ss:$8 sps:$4 sm:$0xff]  }
 0x5e4   : > { %3550 = vmatpush1.bf16.msra.mxu1 %v8373_v30 }
 0x5e5   : > { %v2969_v26 = vrot.slane %v2955_v18, %v9763_v28  ;;  %v2970_v48 = vcombine.high %v2962_v22, %v2962_v22  ;;  %v2975_v15 = vrot.slane %v2962_v22, %v9767_v50  ;;  %v8376_v18 = vld [vmem:[%s12712_s4 + $0xb0] ss:$8 sps:$4 sm:$0xff]   ;;  %3551 = vmatprep.subr.bf16.mxu1 %v8378_v44  ;;  %v8381_v22 = vld [vmem:[%s12712_s4 + $0xc4] ss:$8 sps:$4 sm:$0xff]  }
 0x5e7   : > { %v2971_v14 = vcombine.high %v2969_v26, %v2969_v26  ;;  %v2979_v62 = vrot.slane %v2969_v26, %v9767_v50  ;;  %v2983_v10 = vrot.slane %v2970_v48, %v9767_v50  ;;  %v10178_v25 = vsub.f32 %v2815_v16, %v2975_v15  ;;  %v8379_v26 = vld [vmem:[%s12712_s4 + $0xc0] ss:$8 sps:$4 sm:$0xff]   ;;  %v8384_v48 = vld [vmem:[%s12712_s4 + $0xd4] ss:$8 sps:$4 sm:$0xff]  }
 0x5e8   : > { %v10181_v33 = vsub.f32 %v10160_v9, %v2975_v15  ;;  %3552 = vmatpush1.bf16.msra.mxu1 %v8376_v18  ;;  %v8382_v15 = vld [vmem:[%s12712_s4 + $0xd0] ss:$8 sps:$4 sm:$0xff]   ;;  %v8399_v18 = vld [vmem:[%s12712_s4 + $0x4] ss:$8 sps:$4 sm:$0xff]  }
 0x5e9   : > { %v2987_v47 = vrot.slane %v2971_v14, %v9767_v50  ;;  %v10185_v1 = vsub.f32 %v10162_v31, %v2979_v62  ;;  %v10188_v41 = vsub.f32 %v10164_v7, %v2979_v62  ;;  %v10190_v43 = vsub.f32 %v2819_v32, %v2983_v10  ;;  %3553 = vmatprep.subr.bf16.mxu1 %v8381_v22 }
 0x5ea   : > { %v10192_v24 = vsub.f32 %v2820_v39, %v2983_v10  ;;  %v3000_v40 = vmul.f32 %v10178_v25, %v10178_v25  ;;  %v3001_v16 = vmul.f32 %v10181_v33, %v10181_v33 }
 0x5eb   : > { %v10198_v9 = vsub.f32 %v2821_v11, %v2987_v47  ;;  %v10200_v19 = vsub.f32 %v2822_v52, %v2987_v47  ;;  %v3002_v31 = vmul.f32 %v10185_v1, %v10185_v1  ;;  %v3003_v7 = vmul.f32 %v10188_v41, %v10188_v41 }
 0x5ec   : > { %v3004_v32 = vmul.f32 %v10190_v43, %v10190_v43  ;;  %v3005_v39 = vmul.f32 %v10192_v24, %v10192_v24  ;;  %v3008_v57 = vadd.f32 %v3001_v16, %v3000_v40  ;;  %3554 = vmatpush1.bf16.msra.mxu1 %v8379_v26 }
 0x5ed   : > { %v3006_v3 = vmul.f32 %v10198_v9, %v10198_v9  ;;  %v3007_v38 = vmul.f32 %v10200_v19, %v10200_v19  ;;  %v3015_v55 = vadd.f32 %v3003_v7, %v3002_v31  ;;  %3555 = vmatprep.subr.bf16.mxu1 %v8384_v48 }
 0x5ee   : > { %v3009_v5 = vrot.slane %v3008_v57, 4  ;;  %v3022_v60 = vadd.f32 %v3005_v39, %v3004_v32 }
 0x5ef   : > { %v3016_v12 = vrot.slane %v3015_v55, 4  ;;  %v3029_v63 = vadd.f32 %v3007_v38, %v3006_v3  ;;  %v8387_v3 = vld [vmem:[%s12712_s4 + $0xe4] ss:$8 sps:$4 sm:$0xff]  }
 0x5f0   : > { %v3010_v27 = vadd.f32 %v3009_v5, %v3008_v57  ;;  %v3023_v13 = vrot.slane %v3022_v60, 4  ;;  %3556 = vmatpush1.bf16.msra.mxu1 %v8382_v15  ;;  %v8385_v57 = vld [vmem:[%s12712_s4 + $0xe0] ss:$8 sps:$4 sm:$0xff]   ;;  %v7554_v38 = vld [vmem:[%s12713_s5 + $0x4] ss:$0 sm:$0xff] }
 0x5f1   : > { %v3017_v29 = vadd.f32 %v3016_v12, %v3015_v55  ;;  %v3030_v53 = vrot.slane %v3029_v63, 4  ;;  %3557 = vmatprep.subr.bf16.mxu1 %v8387_v3  ;;  %v7555_v12 = vld [vmem:[%s12713_s5 + $0x5] ss:$0 sm:$0xff] }
 0x5f2   : > { %v3011_v17 = vrot.slane %v3010_v27, 2  ;;  %v3024_v61 = vadd.f32 %v3023_v13, %v3022_v60 }
 0x5f3   : > { %v3018_v11 = vrot.slane %v3017_v29, 2  ;;  %v3031_v52 = vadd.f32 %v3030_v53, %v3029_v63 }
 0x5f4   : > { %v3012_v20 = vadd.f32 %v3011_v17, %v3010_v27  ;;  %v3025_v8 = vrot.slane %v3024_v61, 2  ;;  %3558 = vmatpush1.bf16.msra.mxu1 %v8385_v57 }
 0x5f5   : > { %v3019_v4 = vadd.f32 %v3018_v11, %v3017_v29  ;;  %v3032_v46 = vrot.slane %v3031_v52, 2 }
 0x5f6   : > { %v3013_v45 = vrot.slane %v3012_v20, 1  ;;  %v3026_v21 = vadd.f32 %v3025_v8, %v3024_v61 }
 0x5f7   : > { %v3020_v58 = vrot.slane %v3019_v4, 1  ;;  %v3033_v37 = vadd.f32 %v3032_v46, %v3031_v52 }
 0x5f8   : > { %v3027_v35 = vrot.slane %v3026_v21, 1  ;;  %v3014_v56 = vadd.f32 %v3013_v45, %v3012_v20 }
 0x5f9   : > { %v3021_v34 = vadd.f32 %v3020_v58, %v3019_v4  ;;  %v3034_v59 = vrot.slane %v3033_v37, 1 }
 0x5fa   : > { %v3028_v51 = vadd.f32 %v3027_v35, %v3026_v21 }
 0x5fb   : > { %v3035_v36 = vadd.f32 %v3034_v59, %v3033_v37  ;;  %v3040_v54 = vsel %vm1686_vm6, %v3021_v34, %v3014_v56 }
 0x5fc   : > { %v3041_v23 = vsel %vm1688_vm7, %v3028_v51, %v3040_v54 }
 0x5fd   : > { %v3042_v0 = vsel %vm1690_vm8, %v3035_v36, %v3041_v23 }
 0x5fe   : > { %8094 = vmatmul.mubr.f32.vlgmr.msra.gmra.mrb[80].mxu0 %v3042_v0  ;;  %v8394_v0 = vld [vmem:[%s12712_s4 + $0x110] ss:$8 sps:$4 sm:$0xff]  }
 0x6d1   : > { %v3110_v14 = vpop.f32.mrb[80].mxu0 }
 0x6d2   : > { %v3111_v62 = vadd.f32 1e-05, %v3110_v14  ;;  %v8095_v10 = vpop.f32.mrb[81].mxu0 }
 0x6d4   : > { %8453 = vrsqrt.f32 %v3111_v62 }
 0x6de   : > { %v8454_v47 = vpop.eup %8453 }
 0x6df   : > { %v3122_v40 = vrot.slane %v8454_v47, %v9763_v28 }
 0x6e1   : > { %v3123_v16 = vcombine.high %v3122_v40, %v3122_v40  ;;  %v3130_v31 = vrot.slane %v3122_v40, %v9763_v28 }
 0x6e3   : > { %v3143_v7 = vrot.slane %v3130_v31, %v9767_v50  ;;  %v3137_v32 = vrot.slane %v3123_v16, %v9763_v28  ;;  %v3138_v39 = vcombine.high %v3130_v31, %v3130_v31 }
 0x6e5   : > { %v3160_v55 = vmul.f32 %v3143_v7, %v10178_v25  ;;  %v3161_v5 = vmul.f32 %v3143_v7, %v10181_v33  ;;  %v3147_v60 = vrot.slane %v3137_v32, %v9767_v50  ;;  %v3151_v28 = vrot.slane %v3138_v39, %v9767_v50  ;;  %v8388_v25 = vld [vmem:[%s12712_s4 + $0xf0] ss:$8 sps:$4 sm:$0xff]   ;;  %v8390_v33 = vld [vmem:[%s12712_s4 + $0xf4] ss:$8 sps:$4 sm:$0xff]  }
 0x6e6   : > { %v3139_v63 = vcombine.high %v3137_v32, %v3137_v32  ;;  %3559 = vmatprep.subr.bf16.mxu1 %v8390_v33 }
 0x6e7   : > { %v3172_v27 = vmul.f32 %v7554_v38, %v3160_v55  ;;  %v3173_v13 = vmul.f32 %v7554_v38, %v3161_v5  ;;  %v3162_v29 = vmul.f32 %v3147_v60, %v10185_v1  ;;  %v3163_v53 = vmul.f32 %v3147_v60, %v10188_v41  ;;  %3560 = vmatpush1.bf16.msra.mxu1 %v8388_v25 }
 0x6e8   : > { %v3164_v17 = vmul.f32 %v3151_v28, %v10190_v43  ;;  %v3165_v61 = vmul.f32 %v3151_v28, %v10192_v24  ;;  %v3155_v41 = vrot.slane %v3139_v63, %v9767_v50  ;;  %v8391_v43 = vld [vmem:[%s12712_s4 + $0x100] ss:$8 sps:$4 sm:$0xff]   ;;  %v8393_v24 = vld [vmem:[%s12712_s4 + $0x104] ss:$8 sps:$4 sm:$0xff]  }
 0x6e9   : > { %v3184_v11 = vadd.f32 %v7555_v12, %v3172_v27  ;;  %v3185_v52 = vadd.f32 %v7555_v12, %v3173_v13  ;;  %v3174_v20 = vmul.f32 %v7554_v38, %v3162_v29  ;;  %v3175_v8 = vmul.f32 %v7554_v38, %v3163_v53  ;;  %3561 = vmatprep.subr.bf16.mxu1 %v8393_v24 }
 0x6ea   : > { %v3176_v1 = vmul.f32 %v7554_v38, %v3164_v17  ;;  %v3177_v4 = vmul.f32 %v7554_v38, %v3165_v61  ;;  %v3166_v59 = vmul.f32 %v3155_v41, %v10198_v9  ;;  %v3167_v51 = vmul.f32 %v3155_v41, %v10200_v19  ;;  %v8402_v41 = vld [vmem:[%s12712_s4 + $0x14] ss:$8 sps:$4 sm:$0xff]  }
 0x6eb   : > { %v3192_v46 = vmax.f32 %v3184_v11, 0.0  ;;  %v3193_v45 = vmax.f32 %v3185_v52, 0.0  ;;  %v3186_v21 = vadd.f32 %v7555_v12, %v3174_v20  ;;  %v3187_v58 = vadd.f32 %v7555_v12, %v3175_v8  ;;  %3562 = vmatpush1.bf16.msra.mxu1 %v8391_v43  ;;  %v8397_v8 = vld [vmem:[%s12712_s4] ss:$8 sps:$4 sm:$0xff]  }
 0x6ec   : > { %v3188_v54 = vadd.f32 %v7555_v12, %v3176_v1  ;;  %v3189_v23 = vadd.f32 %v7555_v12, %v3177_v4  ;;  %3563 = vmatprep.subr.bf16.mxu1 %v8396_v42  ;;  %v3178_v49 = vmul.f32 %v7554_v38, %v3166_v59  ;;  %v3179_v2 = vmul.f32 %v7554_v38, %v3167_v51  ;;  %v8400_v42 = vld [vmem:[%s12712_s4 + $0x10] ss:$8 sps:$4 sm:$0xff]  }
 0x6ed   : > { %v3208_v37 = vrot.slane %v3192_v46, 7  ;;  %v3209_v35 = vrot.slane %v3193_v45, 7  ;;  %v3194_v56 = vmax.f32 %v3186_v21, 0.0  ;;  %v3195_v34 = vmax.f32 %v3187_v58, 0.0 }
 0x6ee   : > { %v3196_v30 = vmax.f32 %v3188_v54, 0.0  ;;  %v3197_v44 = vmax.f32 %v3189_v23, 0.0  ;;  %v3190_v26 = vadd.f32 %v7555_v12, %v3178_v49  ;;  %v3191_v48 = vadd.f32 %v7555_v12, %v3179_v2 }
 0x6ef   : > { %3220 = vrot.lane.b32.xlu0 %v3208_v37, %s8769_s27  ;;  %v3210_v36 = vsel %vm2050_vm11, %v3208_v37, %v3209_v35  ;;  %v3211_v9 = vrot.slane %v3194_v56, 7  ;;  %v3212_v19 = vrot.slane %v3195_v34, 7  ;;  %3564 = vmatpush1.bf16.msra.mxu1 %v8394_v0 }
 0x6f0   : > { %3222 = vrot.lane.b32.xlu1 %v3210_v36, %s8769_s27  ;;  %3722 = vmatprep.subr.bf16.mxu1 %v8399_v18  ;;  %v3214_v15 = vrot.slane %v3196_v30, 7  ;;  %v3215_v14 = vrot.slane %v3197_v44, 7  ;;  %v3198_v62 = vmax.f32 %v3190_v26, 0.0  ;;  %v3199_v10 = vmax.f32 %v3191_v48, 0.0  ;;  %v8405_v44 = vld [vmem:[%s12712_s4 + $0x24] ss:$8 sps:$4 sm:$0xff]  }
 0x6f1   : > { %v3213_v22 = vsel %vm2050_vm11, %v3211_v9, %v3212_v19 }
 0x6f2   : > { %v3216_v47 = vsel %vm2050_vm11, %v3214_v15, %v3215_v14  ;;  %v3217_v40 = vrot.slane %v3198_v62, 7  ;;  %v3218_v16 = vrot.slane %v3199_v10, 7 }
 0x6f3   : > { %3224 = vrot.lane.b32.xlu0 %v3209_v35, %s8769_s27 }
 0x6f4   : > { %3226 = vrot.lane.b32.xlu1 %v3211_v9, %s8769_s27  ;;  %v3219_v31 = vsel %vm2050_vm11, %v3217_v40, %v3218_v16  ;;  %vm7138_vm11 = vcmask 392517  }
 0x6f7   : > { %3228 = vrot.lane.b32.xlu0 %v3213_v22, %s8769_s27 }
 0x6f8   : > { %3230 = vrot.lane.b32.xlu1 %v3212_v19, %s8769_s27 }
 0x6fb   : > { %3232 = vrot.lane.b32.xlu0 %v3214_v15, %s8769_s27 }
 0x6fc   : > { %3234 = vrot.lane.b32.xlu1 %v3216_v47, %s8769_s27 }
 0x6ff   : > { %3236 = vrot.lane.b32.xlu0 %v3215_v14, %s8769_s27  ;;  %v8403_v14 = vld [vmem:[%s12712_s4 + $0x20] ss:$8 sps:$4 sm:$0xff]  }
 0x700   : > { %3238 = vrot.lane.b32.xlu1 %v3217_v40, %s8769_s27 }
 0x703   : > { %3240 = vrot.lane.b32.xlu0 %v3219_v31, %s8769_s27 }
 0x704   : > { %3242 = vrot.lane.b32.xlu1 %v3218_v16, %s8769_s27  ;;  %v8408_v16 = vld [vmem:[%s12712_s4 + $0x34] ss:$8 sps:$4 sm:$0xff]  }
 0x761   : > { %v3221_v7 = vpop.permute.xlu0 %3220 }
 0x762   : > { %3256 = vst.msk [vmem:[#allocation2] sm:$0xfe] %vm2099_vm14, %v3221_v7  ;;  %v3223_v32 = vpop.permute.xlu1 %3222 }
 0x763   : > { %3257 = vst.msk [vmem:[#allocation2 + $0x8] sm:$0xfe] %vm2101_vm15, %v3221_v7 }
 0x764   : > { %3258 = vst.msk [vmem:[#allocation2 + $0x10] sm:$0xff] %vm2103_vm1, %v3223_v32 }
 0x765   : > { %3259 = vst.msk [vmem:[#allocation2 + $0x18] sm:$0xff] %vm2105_vm3, %v3223_v32  ;;  %v3225_v39 = vpop.permute.xlu0 %3224 }
 0x766   : > { %3260 = vst.msk [vmem:[#allocation2 + $0x20] sm:$0x1] %vm2107_vm12, %v3225_v39  ;;  %v3227_v57 = vpop.permute.xlu1 %3226 }
 0x767   : > { %3261 = vst.msk [vmem:[#allocation2 + $0x28] sm:$0x1] %vm2109_vm13, %v3225_v39 }
 0x768   : > { %3262 = vst.msk [vmem:[#allocation2 + $0x30] sm:$0xfe] %vm2099_vm14, %v3227_v57 }
 0x769   : > { %3263 = vst.msk [vmem:[#allocation2 + $0x38] sm:$0xfe] %vm2101_vm15, %v3227_v57  ;;  %v3229_v3 = vpop.permute.xlu0 %3228  ;;  %v3322_v55 = vld [vmem:[#allocation2] sm:$0xfe] }
 0x76a   : > { %v3323_v38 = vld [vmem:[#allocation2 + $0x8] sm:$0xfe]  ;;  %3264 = vst.msk [vmem:[#allocation2 + $0x40] sm:$0xff] %vm2103_vm1, %v3229_v3  ;;  %v3231_v5 = vpop.permute.xlu1 %3230  ;;  %v3362_v27 = vrot.slane %v3322_v55, 1  ;;  %v8406_v55 = vld [vmem:[%s12712_s4 + $0x30] ss:$8 sps:$4 sm:$0xff]  }
 0x76b   : > { %3265 = vst.msk [vmem:[#allocation2 + $0x48] sm:$0xff] %vm2105_vm3, %v3229_v3  ;;  %v10323_v28 = vld [vmem:[#allocation2 + $0x10] sm:$0xff]  ;;  %v3365_v12 = vrot.slane %v3323_v38, 1 }
 0x76c   : > { %v10321_v60 = vld [vmem:[#allocation2 + $0x18] sm:$0xff]  ;;  %3266 = vst.msk [vmem:[#allocation2 + $0x50] sm:$0x1] %vm2107_vm12, %v3231_v5  ;;  %v3363_v13 = vrot.slane %v10323_v28, 1 }
 0x76d   : > { %3267 = vst.msk [vmem:[#allocation2 + $0x58] sm:$0x1] %vm2109_vm13, %v3231_v5  ;;  %v3366_v63 = vrot.slane %v10321_v60, 1  ;;  %v3233_v29 = vpop.permute.xlu0 %3232  ;;  %v3324_v25 = vld [vmem:[#allocation2 + $0x20] sm:$0x1] }
 0x76e   : > { %v3325_v53 = vld [vmem:[#allocation2 + $0x28] sm:$0x1]  ;;  %3268 = vst.msk [vmem:[#allocation2 + $0x60] sm:$0xfe] %vm2099_vm14, %v3233_v29  ;;  %v3235_v33 = vpop.permute.xlu1 %3234  ;;  %v3368_v61 = vrot.slane %v3324_v25, 1  ;;  %v3364_v1 = vsel %vm473_vm0, %v3362_v27, %v3363_v13 }
 0x76f   : > { %3269 = vst.msk [vmem:[#allocation2 + $0x68] sm:$0xfe] %vm2101_vm15, %v3233_v29  ;;  %v3370_v17 = vrot.slane %v3325_v53, 1  ;;  %v3367_v52 = vsel %vm473_vm0, %v3365_v12, %v3366_v63  ;;  %v3326_v24 = vld [vmem:[#allocation2 + $0x30] sm:$0xfe] }
 0x770   : > { %3270 = vst.msk [vmem:[#allocation2 + $0x70] sm:$0xff] %vm2103_vm1, %v3235_v33  ;;  %v3327_v11 = vld [vmem:[#allocation2 + $0x38] sm:$0xfe]  ;;  %v3369_v4 = vsel %vm473_vm0, %v3363_v13, %v3368_v61  ;;  %v3372_v19 = vrot.slane %v3326_v24, 1  ;;  %v8411_v27 = vld [vmem:[%s12712_s4 + $0x44] ss:$8 sps:$4 sm:$0xff]  }
 0x771   : > { %3271 = vst.msk [vmem:[#allocation2 + $0x78] sm:$0xff] %vm2105_vm3, %v3235_v33  ;;  %v3371_v20 = vsel %vm473_vm0, %v3366_v63, %v3370_v17  ;;  %v3237_v46 = vpop.permute.xlu0 %3236  ;;  %v3418_v21 = vpack.c.bf16 %v3369_v4, %v3364_v1  ;;  %v10345_v43 = vld [vmem:[#allocation2 + $0x40] sm:$0xff]  ;;  %v3375_v56 = vrot.slane %v3327_v11, 1  ;;  %v8412_v24 = vld [vmem:[%s12712_s4 + $0x50] ss:$8 sps:$4 sm:$0xff]  }
 0x772   : > { %v3419_v45 = vpack.c.bf16 %v3371_v20, %v3367_v52  ;;  %v10343_v58 = vld [vmem:[#allocation2 + $0x48] sm:$0xff]  ;;  %3272 = vst.msk [vmem:[#allocation2 + $0x80] sm:$0x1] %vm2107_vm12, %v3237_v46  ;;  %v3239_v37 = vpop.permute.xlu1 %3238  ;;  %v3373_v36 = vrot.slane %v10345_v43, 1 }
 0x773   : > { %3273 = vst.msk [vmem:[#allocation2 + $0x88] sm:$0x1] %vm2109_vm13, %v3237_v46  ;;  %v3376_v34 = vrot.slane %v10343_v58, 1  ;;  %v3328_v59 = vld [vmem:[#allocation2 + $0x50] sm:$0x1] }
 0x774   : > { %v3329_v35 = vld [vmem:[#allocation2 + $0x58] sm:$0x1]  ;;  %3274 = vst.msk [vmem:[#allocation2 + $0x90] sm:$0xfe] %vm2099_vm14, %v3239_v37  ;;  %7592 = vmatprep.mubr.msk.bf16.mxu1 %vm2017_vm10, %v3419_v45  ;;  %v3378_v54 = vrot.slane %v3328_v59, 1  ;;  %v3374_v22 = vsel %vm473_vm0, %v3372_v19, %v3373_v36  ;;  %v3281_v59 = vld [vmem:[#allocation2 + $0x8] sm:$0xff] }
 0x775   : > { %3275 = vst.msk [vmem:[#allocation2 + $0x98] sm:$0xfe] %vm2101_vm15, %v3239_v37  ;;  %v3380_v51 = vrot.slane %v3329_v35, 1  ;;  %3580 = vmatmul.mubr.bf16.vlgmr.msra.gmra.mrb[56].mxu1 %v3418_v21  ;;  %v3377_v23 = vsel %vm473_vm0, %v3375_v56, %v3376_v34  ;;  %v3241_v0 = vpop.permute.xlu0 %3240  ;;  %v3330_v7 = vld [vmem:[#allocation2 + $0x60] sm:$0xfe]  ;;  %vm7162_vm14 = vcmask 523719  }
 0x776   : > { %3723 = vmatpush1.bf16.msra.mxu1 %v8397_v8  ;;  %v3331_v49 = vld [vmem:[#allocation2 + $0x68] sm:$0xfe]  ;;  %3276 = vst.msk [vmem:[#allocation2 + $0xa0] sm:$0xff] %vm2103_vm1, %v3241_v0  ;;  %v3243_v2 = vpop.permute.xlu1 %3242  ;;  %v3379_v26 = vsel %vm473_vm0, %v3373_v36, %v3378_v54  ;;  %v3382_v5 = vrot.slane %v3330_v7, 1  ;;  %v8420_v54 = vld [vmem:[%s12712_s4 + $0x74] ss:$8 sps:$4 sm:$0xff]  }
 0x777   : > { %v3381_v9 = vsel %vm473_vm0, %v3376_v34, %v3380_v51  ;;  %3277 = vst.msk [vmem:[#allocation2 + $0xa8] sm:$0xff] %vm2105_vm3, %v3241_v0  ;;  %3724 = vmatprep.subr.bf16.mxu1 %v8402_v41  ;;  %v3385_v48 = vrot.slane %v3331_v49, 1  ;;  %v3420_v47 = vpack.c.bf16 %v3379_v26, %v3374_v22  ;;  %v10378_v31 = vld [vmem:[#allocation2 + $0x70] sm:$0xff]  ;;  %v8409_v52 = vld [vmem:[%s12712_s4 + $0x40] ss:$8 sps:$4 sm:$0xff]   ;;  %vm7152_vm15 = vcmask 451968  }
 0x778   : > { %v3421_v30 = vpack.c.bf16 %v3381_v9, %v3377_v23  ;;  %v10364_v18 = vld [vmem:[#allocation2 + $0x78] sm:$0xff]  ;;  %3278 = vst.msk [vmem:[#allocation2 + $0xb0] sm:$0x1] %vm2107_vm12, %v3243_v2  ;;  %v3383_v12 = vrot.slane %v10378_v31, 1  ;;  %v8417_v35 = vld [vmem:[%s12712_s4 + $0x64] ss:$8 sps:$4 sm:$0xff]   ;;  %v3297_v23 = vpack.c.bf16 %v10321_v60, %v3281_v59 }
 0x779   : > { %3279 = vst.msk [vmem:[#allocation2 + $0xb8] sm:$0x1] %vm2109_vm13, %v3243_v2  ;;  %v3386_v15 = vrot.slane %v10364_v18, 1  ;;  %v3332_v10 = vld [vmem:[#allocation2 + $0x80] sm:$0x1]  ;;  %vm7140_vm12 = vcmask 385344  }
 0x77a   : > { %7593 = vmatprep.mubr.msk.bf16.mxu1 %vm2017_vm10, %v3421_v30  ;;  %3725 = vmatpush1.bf16.msra.mxu1 %v8400_v42  ;;  %v3333_v62 = vld [vmem:[#allocation2 + $0x88] sm:$0x1]  ;;  %v3388_v32 = vrot.slane %v3332_v10, 1  ;;  %v3384_v20 = vsel %vm473_vm0, %v3382_v5, %v3383_v12  ;;  %v8414_v41 = vld [vmem:[%s12712_s4 + $0x54] ss:$8 sps:$4 sm:$0xff]   ;;  %v3280_v49 = vld [vmem:[#allocation2] sm:$0xff] }
 0x77b   : > { %3726 = vmatprep.subr.bf16.mxu1 %v8405_v44  ;;  %v3390_v40 = vrot.slane %v3333_v62, 1  ;;  %v3387_v57 = vsel %vm473_vm0, %v3385_v48, %v3386_v15  ;;  %v3334_v46 = vld [vmem:[#allocation2 + $0x90] sm:$0xfe]  ;;  %v8415_v51 = vld [vmem:[%s12712_s4 + $0x60] ss:$8 sps:$4 sm:$0xff]   ;;  %v3296_v30 = vpack.c.bf16 %v10323_v28, %v3280_v49  ;;  %v3285_v44 = vld [vmem:[#allocation2 + $0x38] sm:$0xff] }
 0x77c   : > { %v3335_v39 = vld [vmem:[#allocation2 + $0x98] sm:$0xfe]  ;;  %v3389_v25 = vsel %vm473_vm0, %v3383_v12, %v3388_v32  ;;  %v3392_v37 = vrot.slane %v3334_v46, 1  ;;  %v8423_v42 = vld [vmem:[%s12712_s4 + $0x84] ss:$8 sps:$4 sm:$0xff]   ;;  %v3299_v26 = vpack.c.bf16 %v10343_v58, %v3285_v44  ;;  %v3284_v62 = vld [vmem:[#allocation2 + $0x30] sm:$0xff] }
 0x77d   : > { %3590 = vmatmul.mubr.bf16.gmra.mrb[60].mxu1 %v3420_v47  ;;  %v3391_v3 = vsel %vm473_vm0, %v3386_v15, %v3390_v40  ;;  %v3395_v29 = vrot.slane %v3335_v39, 1  ;;  %v10395_v61 = vld [vmem:[#allocation2 + $0xa0] sm:$0xff]  ;;  %v3422_v1 = vpack.c.bf16 %v3389_v25, %v3384_v20  ;;  %v8418_v0 = vld [vmem:[%s12712_s4 + $0x70] ss:$8 sps:$4 sm:$0xff]   ;;  %v8429_v22 = vld [vmem:[%s12712_s4 + $0x134] ss:$8 sps:$4 sm:$0xff]   ;;  %v3298_v47 = vpack.c.bf16 %v10345_v43, %v3284_v62 }
 0x77e   : > { %3727 = vmatpush1.bf16.msra.mxu1 %v8403_v14  ;;  %v3423_v38 = vpack.c.bf16 %v3391_v3, %v3387_v57  ;;  %v10386_v63 = vld [vmem:[#allocation2 + $0xa8] sm:$0xff]  ;;  %v3393_v45 = vrot.slane %v10395_v61, 1  ;;  %v8427_v48 = vld [vmem:[%s12712_s4 + $0x130] ss:$8 sps:$4 sm:$0xff]   ;;  %v8435_v40 = vld [vmem:[%s12712_s4 + $0x154] ss:$8 sps:$4 sm:$0xff]  }
 0x77f   : > { %3728 = vmatprep.subr.bf16.mxu1 %v8408_v16  ;;  %v3396_v53 = vrot.slane %v10386_v63, 1  ;;  %v3336_v11 = vld [vmem:[#allocation2 + $0xb0] sm:$0x1]  ;;  %v8421_v9 = vld [vmem:[%s12712_s4 + $0x80] ss:$8 sps:$4 sm:$0xff]   ;;  %vm7150_vm13 = vcmask 458118  }
 0x780   : > { %v3337_v13 = vld [vmem:[#allocation2 + $0xb8] sm:$0x1]  ;;  %7594 = vmatprep.mubr.msk.bf16.mxu1 %vm2017_vm10, %v3423_v38  ;;  %v3398_v21 = vrot.slane %v3336_v11, 1  ;;  %v3394_v56 = vsel %vm473_vm0, %v3392_v37, %v3393_v45  ;;  %v8426_v19 = vld [vmem:[%s12712_s4 + $0x124] ss:$8 sps:$4 sm:$0xff]   ;;  %v3292_v11 = vld [vmem:[#allocation2 + $0x90] sm:$0xff] }
 0x781   : > { %v3400_v33 = vrot.slane %v3337_v13, 1  ;;  %v3397_v17 = vsel %vm473_vm0, %v3395_v29, %v3396_v53  ;;  %v8424_v2 = vld [vmem:[%s12712_s4 + $0x120] ss:$8 sps:$4 sm:$0xff]   ;;  %v8432_v15 = vld [vmem:[%s12712_s4 + $0x144] ss:$8 sps:$4 sm:$0xff]   ;;  %v3302_v20 = vpack.c.bf16 %v10395_v61, %v3292_v11  ;;  %vm7164_vm1 = vcmask 518592  }
 0x782   : > { %3729 = vmatpush1.bf16.msra.mxu1 %v8406_v55  ;;  %v3399_v34 = vsel %vm473_vm0, %v3393_v45, %v3398_v21  ;;  %v3289_v14 = vld [vmem:[#allocation2 + $0x68] sm:$0xff]  ;;  %v8433_v7 = vld [vmem:[%s12712_s4 + $0x150] ss:$8 sps:$4 sm:$0xff]   ;;  %v3288_v39 = vld [vmem:[#allocation2 + $0x60] sm:$0xff] }
 0x783   : > { %v3401_v8 = vsel %vm473_vm0, %v3396_v53, %v3400_v33  ;;  %3730 = vmatprep.subr.bf16.mxu1 %v8411_v27  ;;  %v3424_v36 = vpack.c.bf16 %v3399_v34, %v3394_v56  ;;  %v8430_v10 = vld [vmem:[%s12712_s4 + $0x140] ss:$8 sps:$4 sm:$0xff]   ;;  %v3301_v16 = vpack.c.bf16 %v10364_v18, %v3289_v14  ;;  %v8438_v32 = vld [vmem:[%s12712_s4 + $0x164] ss:$8 sps:$4 sm:$0xff]   ;;  %v3300_v38 = vpack.c.bf16 %v10378_v31, %v3288_v39  ;;  %v3293_v55 = vld [vmem:[#allocation2 + $0x98] sm:$0xff] }
 0x784   : > { %v3425_v4 = vpack.c.bf16 %v3401_v8, %v3397_v17  ;;  %v8436_v57 = vld [vmem:[%s12712_s4 + $0x160] ss:$8 sps:$4 sm:$0xff]   ;;  %v8441_v5 = vld [vmem:[%s12712_s4 + $0x174] ss:$8 sps:$4 sm:$0xff]   ;;  %v3303_v12 = vpack.c.bf16 %v10386_v63, %v3293_v55  ;;  %v8439_v29 = vld [vmem:[%s12712_s4 + $0x170] ss:$8 sps:$4 sm:$0xff]  }
 0x785   : > { %3600 = vmatmul.mubr.bf16.gmra.mrb[64].mxu1 %v3422_v1  ;;  %v3798_v3 = vld [vmem:[#allocation2 + $0x28] sm:$0x3]  ;;  %v3796_v27 = vld [vmem:[#allocation2 + $0x8] sm:$0xfc]  ;;  %v3831_v33 = vrot.slane %v10321_v60, 2  ;;  %v3848_v55 = vrot.slane %v10378_v31, 2 }
 0x786   : > { %3731 = vmatpush1.bf16.msra.mxu1 %v8409_v52  ;;  %7595 = vmatprep.mubr.msk.bf16.mxu1 %vm2017_vm10, %v3425_v4  ;;  %v3835_v13 = vrot.slane %v3798_v3, 2  ;;  %v8444_v53 = vld [vmem:[%s12712_s4 + $0x184] ss:$8 sps:$4 sm:$0xff]   ;;  %v3830_v25 = vrot.slane %v3796_v27, 2  ;;  %v8442_v52 = vld [vmem:[%s12712_s4 + $0x180] ss:$8 sps:$4 sm:$0xff]  }
 0x787   : > { %3732 = vmatprep.subr.bf16.mxu1 %v8414_v41  ;;  %v8447_v1 = vld [vmem:[%s12712_s4 + $0x194] ss:$8 sps:$4 sm:$0xff]   ;;  %v3797_v60 = vld [vmem:[#allocation2 + $0x20] sm:$0x3]  ;;  %v8445_v41 = vld [vmem:[%s12712_s4 + $0x190] ss:$8 sps:$4 sm:$0xff]  }
 0x788   : > { %v3836_v17 = vsel %vm866_vm2, %v3831_v33, %v3835_v13  ;;  %v3832_v8 = vsel %vm866_vm2, %v3830_v25, %v3831_v33  ;;  %v3802_v46 = vld [vmem:[#allocation2 + $0x58] sm:$0x3]  ;;  %v8450_v45 = vld [vmem:[%s12712_s4 + $0x1a4] ss:$8 sps:$4 sm:$0xff]   ;;  %v3800_v37 = vld [vmem:[#allocation2 + $0x38] sm:$0xfc] }
 0x789   : > { %v3884_v4 = vpack.c.bf16 %v3836_v17, %v3832_v8  ;;  %v3795_v21 = vld [vmem:[#allocation2] sm:$0xfc]  ;;  %v3845_v56 = vrot.slane %v3802_v46, 2  ;;  %v3799_v49 = vld [vmem:[#allocation2 + $0x30] sm:$0xfc]  ;;  %v3861_v3 = vrot.slane %v10386_v63, 2 }
 0x78a   : > { %3733 = vmatpush1.bf16.msra.mxu1 %v8412_v24  ;;  %v3833_v24 = vrot.slane %v3797_v60, 2  ;;  %v8448_v34 = vld [vmem:[%s12712_s4 + $0x1a0] ss:$8 sps:$4 sm:$0xff]   ;;  %v3827_v59 = vrot.slane %v3795_v21, 2  ;;  %v3807_v33 = vld [vmem:[#allocation2 + $0x90] sm:$0xfc] }
 0x78b   : > { %3734 = vmatprep.subr.bf16.mxu1 %v8417_v35  ;;  %v3841_v35 = vrot.slane %v10343_v58, 2  ;;  %v3858_v63 = vrot.slane %v10395_v61, 2  ;;  %v3857_v31 = vrot.slane %v3807_v33, 2  ;;  %vm7123_vm0 = vcmask 1047559  }
 0x78d   : > { %3610 = vmatmul.mubr.bf16.gmra.mrb[68].mxu1 %v3424_v36  ;;  %v3840_v36 = vrot.slane %v3800_v37, 2 }
 0x78e   : > { %3735 = vmatpush1.bf16.msra.mxu1 %v8415_v51  ;;  %7614 = vmatprep.mubr.msk.bf16.mxu1 %vm2017_vm10, %v3297_v23  ;;  %v3828_v51 = vrot.slane %v10323_v28, 2  ;;  %v3804_v28 = vld [vmem:[#allocation2 + $0x68] sm:$0xfc] }
 0x78f   : > { %3736 = vmatprep.subr.bf16.mxu1 %v8420_v54  ;;  %v3842_v23 = vsel %vm866_vm2, %v3840_v36, %v3841_v35 }
 0x790   : > { %v3834_v54 = vsel %vm866_vm2, %v3828_v51, %v3833_v24  ;;  %v3829_v58 = vsel %vm866_vm2, %v3827_v59, %v3828_v51 }
 0x792   : > { %3737 = vmatpush1.bf16.msra.mxu1 %v8418_v0  ;;  %v3846_v0 = vsel %vm866_vm2, %v3841_v35, %v3845_v56 }
 0x793   : > { %3738 = vmatprep.subr.bf16.mxu1 %v8423_v42  ;;  %v3801_v42 = vld [vmem:[#allocation2 + $0x50] sm:$0x3] }
 0x794   : > { %v3843_v44 = vrot.slane %v3801_v42, 2 }
 0x796   : > { %3739 = vmatpush1.bf16.msra.mxu1 %v8421_v9  ;;  %v3806_v9 = vld [vmem:[#allocation2 + $0x88] sm:$0x3] }
 0x797   : > { %4012 = vmatprep.subr.bf16.mxu1 %v8426_v19  ;;  %v3883_v19 = vpack.c.bf16 %v3834_v54, %v3829_v58 }
 0x799   : > { %3755 = vmatmul.mubr.bf16.vlgmr.msra.gmra.mrb[56].mxu1 %v3296_v30  ;;  %v3838_v30 = vrot.slane %v10345_v43, 2 }
 0x79a   : > { %7615 = vmatprep.mubr.msk.bf16.mxu1 %vm2017_vm10, %v3299_v26  ;;  %4013 = vmatpush1.bf16.msra.mxu1 %v8424_v2  ;;  %v3886_v2 = vpack.c.bf16 %v3846_v0, %v3842_v23  ;;  %v3837_v26 = vrot.slane %v3799_v49, 2 }
 0x79b   : > { %4014 = vmatprep.subr.bf16.mxu1 %v8429_v22  ;;  %v3855_v22 = vrot.slane %v3806_v9, 2  ;;  %v3844_v62 = vsel %vm866_vm2, %v3838_v30, %v3843_v44 }
 0x79c   : > { %v3839_v14 = vsel %vm866_vm2, %v3837_v26, %v3838_v30 }
 0x79e   : > { %4015 = vmatpush1.bf16.msra.mxu1 %v8427_v48  ;;  %v3850_v48 = vrot.slane %v3804_v28, 2 }
 0x79f   : > { %4016 = vmatprep.subr.bf16.mxu1 %v8432_v15  ;;  %v3851_v15 = vrot.slane %v10364_v18, 2 }
 0x7a1   : > { %3765 = vmatmul.mubr.bf16.gmra.mrb[60].mxu1 %v3298_v47  ;;  %v3805_v47 = vld [vmem:[#allocation2 + $0x80] sm:$0x3]  ;;  %v3852_v43 = vsel %vm866_vm2, %v3850_v48, %v3851_v15 }
 0x7a2   : > { %7616 = vmatprep.mubr.msk.bf16.mxu1 %vm2017_vm10, %v3301_v16  ;;  %4017 = vmatpush1.bf16.msra.mxu1 %v8430_v10  ;;  %v3856_v10 = vsel %vm866_vm2, %v3851_v15, %v3855_v22  ;;  %v3885_v16 = vpack.c.bf16 %v3844_v62, %v3839_v14  ;;  %v3853_v39 = vrot.slane %v3805_v47, 2 }
 0x7a3   : > { %4018 = vmatprep.subr.bf16.mxu1 %v8435_v40  ;;  %v3810_v40 = vld [vmem:[#allocation2 + $0xb8] sm:$0x3] }
 0x7a6   : > { %4019 = vmatpush1.bf16.msra.mxu1 %v8433_v7  ;;  %v3803_v7 = vld [vmem:[#allocation2 + $0x60] sm:$0xfc] }
 0x7a7   : > { %4020 = vmatprep.subr.bf16.mxu1 %v8438_v32  ;;  %v3888_v32 = vpack.c.bf16 %v3856_v10, %v3852_v43  ;;  %v3847_v18 = vrot.slane %v3803_v7, 2 }
 0x7a9   : > { %3775 = vmatmul.mubr.bf16.gmra.mrb[64].mxu1 %v3300_v38  ;;  %v3865_v38 = vrot.slane %v3810_v40, 2 }
 0x7aa   : > { %7617 = vmatprep.mubr.msk.bf16.mxu1 %vm2017_vm10, %v3303_v12  ;;  %4021 = vmatpush1.bf16.msra.mxu1 %v8436_v57  ;;  %v3808_v57 = vld [vmem:[#allocation2 + $0x98] sm:$0xfc]  ;;  %v3854_v12 = vsel %vm866_vm2, %v3848_v55, %v3853_v39 }
 0x7ab   : > { %4022 = vmatprep.subr.bf16.mxu1 %v8441_v5  ;;  %v3860_v5 = vrot.slane %v3808_v57, 2  ;;  %v3866_v13 = vsel %vm866_vm2, %v3861_v3, %v3865_v38 }
 0x7ad   : > { %v3862_v27 = vsel %vm866_vm2, %v3860_v5, %v3861_v3 }
 0x7ae   : > { %4023 = vmatpush1.bf16.msra.mxu1 %v8439_v29  ;;  %v3809_v29 = vld [vmem:[#allocation2 + $0xb0] sm:$0x3]  ;;  %v3890_v17 = vpack.c.bf16 %v3866_v13, %v3862_v27 }
 0x7af   : > { %4024 = vmatprep.subr.bf16.mxu1 %v8444_v53  ;;  %v3849_v53 = vsel %vm866_vm2, %v3847_v18, %v3848_v55  ;;  %v3863_v11 = vrot.slane %v3809_v29, 2 }
 0x7b0   : > { %v3887_v25 = vpack.c.bf16 %v3854_v12, %v3849_v53 }
 0x7b1   : > { %3785 = vmatmul.mubr.bf16.gmra.mrb[68].mxu1 %v3302_v20  ;;  %v3864_v20 = vsel %vm866_vm2, %v3858_v63, %v3863_v11 }
 0x7b2   : > { %4025 = vmatpush1.bf16.msra.mxu1 %v8442_v52  ;;  %7654 = vmatprep.mubr.msk.bf16.mxu1 %vm2017_vm10, %v3884_v4  ;;  %v3859_v52 = vsel %vm866_vm2, %v3857_v31, %v3858_v63  ;;  %v4109_v4 = vsub.s32 1, %v9760_v6  ;;  %vm7114_vm2 = vcmask 1046534  }
 0x7b3   : > { %4026 = vmatprep.subr.bf16.mxu1 %v8447_v1  ;;  %v3889_v8 = vpack.c.bf16 %v3864_v20, %v3859_v52  ;;  %v4101_v1 = vld [vmem:[%s12714_s6] sm:$0x3] }
 0x7b4   : > { %v4106_v60 = vrot.slane %v4101_v1, %v9767_v50  ;;  %v10529_v61 = vrot.slane %v4101_v1, %v4109_v4 }
 0x7b6   : > { %4027 = vmatpush1.bf16.msra.mxu1 %v8445_v41 }
 0x7b7   : > { %4028 = vmatprep.subr.bf16.mxu1 %v8450_v45 }
 0x7ba   : > { %4029 = vmatpush1.bf16.msra.mxu1 %v8448_v34 }
 0x7bd   : > { %4045 = vmatmul.mubr.bf16.vlgmr.msra.gmra.mrb[56].mxu1 %v3883_v19 }
 0x7be   : > { %7655 = vmatprep.mubr.msk.bf16.mxu1 %vm2017_vm10, %v3886_v2 }
 0x7c5   : > { %4055 = vmatmul.mubr.bf16.gmra.mrb[60].mxu1 %v3885_v16 }
 0x7c6   : > { %7656 = vmatprep.mubr.msk.bf16.mxu1 %vm2017_vm10, %v3888_v32 }
 0x7cd   : > { %4065 = vmatmul.mubr.bf16.gmra.mrb[64].mxu1 %v3887_v25 }
 0x7ce   : > { %7657 = vmatprep.mubr.msk.bf16.mxu1 %vm2017_vm10, %v3890_v17 }
 0x7d5   : > { %4075 = vmatmul.mubr.bf16.gmra.mrb[68].mxu1 %v3889_v8 }
 0x890   : > { %v4046_v41 = vpop.f32.mrb[56].mxu1 }
 0x891   : > { %v4113_v46 = vadd.f32 %v4106_v60, %v4046_v41  ;;  %v4048_v45 = vpop.f32.mrb[57].mxu1 }
 0x892   : > { %v10532_v21 = vadd.f32 %v10529_v61, %v4048_v45  ;;  %v4050_v24 = vpop.f32.mrb[58].mxu1 }
 0x893   : > { %4129 = vst.msk [vmem:[#allocation3] sm:$0xff] %vm2017_vm10, %v4113_v46  ;;  %v4115_v37 = vadd.f32 %v4106_v60, %v4050_v24  ;;  %4145 = vrot.lane.b32.xlu0 %v4113_v46, %s8770_s16  ;;  %v4052_v35 = vpop.f32.mrb[59].mxu1 }
 0x894   : > { %4369 = vst.msk [vmem:[#allocation3 + $0x80] sm:$0xff] %vm2017_vm10, %v10532_v21  ;;  %v10539_v6 = vadd.f32 %v10529_v61, %v4052_v35 }
 0x895   : > { %4130 = vst.msk [vmem:[#allocation3 + $0x8] sm:$0xff] %vm2017_vm10, %v4115_v37  ;;  %4147 = vrot.lane.b32.xlu1 %v4115_v37, %s8770_s16 }
 0x896   : > { %4370 = vst.msk [vmem:[#allocation3 + $0x88] sm:$0xff] %vm2017_vm10, %v10539_v6 }
 0x897   : > { %4177 = vrot.lane.b32.xlu0 %v4113_v46, %s8771_s17 }
 0x898   : > { %v4056_v50 = vpop.f32.mrb[60].mxu1 }
 0x899   : > { %v10546_v56 = vadd.f32 %v4106_v60, %v4056_v50  ;;  %4179 = vrot.lane.b32.xlu1 %v4115_v37, %s8771_s17  ;;  %v4058_v34 = vpop.f32.mrb[61].mxu1 }
 0x89a   : > { %v10550_v59 = vadd.f32 %v10529_v61, %v4058_v34  ;;  %v4060_v51 = vpop.f32.mrb[62].mxu1  ;;  %v10643_v16 = vld [vmem:[#allocation3] sm:$0xff] }
 0x89b   : > { %4131 = vst.msk [vmem:[#allocation3 + $0x100] sm:$0xff] %vm2017_vm10, %v10546_v56  ;;  %v10554_v36 = vadd.f32 %v4106_v60, %v4060_v51  ;;  %4209 = vrot.lane.b32.xlu0 %v4113_v46, %s8772_s18  ;;  %v4062_v54 = vpop.f32.mrb[63].mxu1  ;;  %v4737_v39 = vsel %vm2017_vm10, %v10643_v16, -inf }
 0x89c   : > { %4371 = vst.msk [vmem:[#allocation3 + $0x180] sm:$0xff] %vm2017_vm10, %v10550_v59  ;;  %v10560_v23 = vadd.f32 %v10529_v61, %v4062_v54  ;;  %v10640_v47 = vld [vmem:[#allocation3 + $0x8] sm:$0xff] }
 0x89d   : > { %4132 = vst.msk [vmem:[#allocation3 + $0x108] sm:$0xff] %vm2017_vm10, %v10554_v36  ;;  %4211 = vrot.lane.b32.xlu1 %v4115_v37, %s8772_s18  ;;  %v4738_v7 = vsel %vm2017_vm10, %v10640_v47, -inf }
 0x89e   : > { %4372 = vst.msk [vmem:[#allocation3 + $0x188] sm:$0xff] %vm2017_vm10, %v10560_v23  ;;  %v4739_v3 = vmax.f32 %v4737_v39, %v4738_v7 }
 0x89f   : > { %4241 = vrot.lane.b32.xlu0 %v4113_v46, %s8773_s19 }
 0x8a0   : > { %v4066_v0 = vpop.f32.mrb[64].mxu1 }
 0x8a1   : > { %v10568_v42 = vadd.f32 %v4106_v60, %v4066_v0  ;;  %4243 = vrot.lane.b32.xlu1 %v4115_v37, %s8773_s19  ;;  %v4068_v58 = vpop.f32.mrb[65].mxu1 }
 0x8a2   : > { %v10572_v9 = vadd.f32 %v10529_v61, %v4068_v58  ;;  %v4070_v19 = vpop.f32.mrb[66].mxu1 }
 0x8a3   : > { %4133 = vst.msk [vmem:[#allocation3 + $0x200] sm:$0xff] %vm2017_vm10, %v10568_v42  ;;  %v10576_v49 = vadd.f32 %v4106_v60, %v4070_v19  ;;  %4273 = vrot.lane.b32.xlu0 %v4113_v46, %s8774_s20  ;;  %v4072_v2 = vpop.f32.mrb[67].mxu1 }
 0x8a4   : > { %4373 = vst.msk [vmem:[#allocation3 + $0x280] sm:$0xff] %vm2017_vm10, %v10572_v9  ;;  %v10582_v30 = vadd.f32 %v10529_v61, %v4072_v2 }
 0x8a5   : > { %4134 = vst.msk [vmem:[#allocation3 + $0x208] sm:$0xff] %vm2017_vm10, %v10576_v49  ;;  %4275 = vrot.lane.b32.xlu1 %v4115_v37, %s8774_s20 }
 0x8a6   : > { %4374 = vst.msk [vmem:[#allocation3 + $0x288] sm:$0xff] %vm2017_vm10, %v10582_v30 }
 0x8a7   : > { %4305 = vrot.lane.b32.xlu0 %v4113_v46, %s8775_s23 }
 0x8a8   : > { %v4076_v44 = vpop.f32.mrb[68].mxu1 }
 0x8a9   : > { %v10590_v28 = vadd.f32 %v4106_v60, %v4076_v44  ;;  %4307 = vrot.lane.b32.xlu1 %v4115_v37, %s8775_s23  ;;  %v4078_v22 = vpop.f32.mrb[69].mxu1 }
 0x8aa   : > { %v10594_v26 = vadd.f32 %v10529_v61, %v4078_v22  ;;  %v4080_v48 = vpop.f32.mrb[70].mxu1 }
 0x8ab   : > { %4135 = vst.msk [vmem:[#allocation3 + $0x300] sm:$0xff] %vm2017_vm10, %v10590_v28  ;;  %v10598_v15 = vadd.f32 %v4106_v60, %v4080_v48  ;;  %4337 = vrot.lane.b32.xlu0 %v4113_v46, %s8776_s24  ;;  %v4082_v14 = vpop.f32.mrb[71].mxu1 }
 0x8ac   : > { %4375 = vst.msk [vmem:[#allocation3 + $0x380] sm:$0xff] %vm2017_vm10, %v10594_v26  ;;  %v10604_v62 = vadd.f32 %v10529_v61, %v4082_v14 }
 0x8ad   : > { %4136 = vst.msk [vmem:[#allocation3 + $0x308] sm:$0xff] %vm2017_vm10, %v10598_v15  ;;  %4339 = vrot.lane.b32.xlu1 %v4115_v37, %s8776_s24 }
 0x8ae   : > { %4376 = vst.msk [vmem:[#allocation3 + $0x388] sm:$0xff] %vm2017_vm10, %v10604_v62 }
 0x8af   : > { %4385 = vrot.lane.b32.xlu0 %v10532_v21, %s8770_s16 }
 0x8b1   : > { %4387 = vrot.lane.b32.xlu1 %v10539_v6, %s8770_s16 }
 0x8b3   : > { %4417 = vrot.lane.b32.xlu0 %v10532_v21, %s8771_s17 }
 0x8b5   : > { %4419 = vrot.lane.b32.xlu1 %v10539_v6, %s8771_s17 }
 0x8b7   : > { %4449 = vrot.lane.b32.xlu0 %v10532_v21, %s8772_s18 }
 0x8b9   : > { %4451 = vrot.lane.b32.xlu1 %v10539_v6, %s8772_s18 }
 0x8bb   : > { %4481 = vrot.lane.b32.xlu0 %v10532_v21, %s8773_s19 }
 0x8bd   : > { %4483 = vrot.lane.b32.xlu1 %v10539_v6, %s8773_s19 }
 0x8bf   : > { %4513 = vrot.lane.b32.xlu0 %v10532_v21, %s8774_s20 }
 0x8c1   : > { %4515 = vrot.lane.b32.xlu1 %v10539_v6, %s8774_s20 }
 0x8c3   : > { %4545 = vrot.lane.b32.xlu0 %v10532_v21, %s8775_s23 }
 0x8c5   : > { %4547 = vrot.lane.b32.xlu1 %v10539_v6, %s8775_s23 }
 0x8c7   : > { %4577 = vrot.lane.b32.xlu0 %v10532_v21, %s8776_s24 }
 0x8c9   : > { %4579 = vrot.lane.b32.xlu1 %v10539_v6, %s8776_s24 }
 0x905   : > { %v4146_v10 = vpop.permute.xlu0 %4145 }
 0x906   : > { %4169 = vst.msk [vmem:[#allocation3 + $0x10] sm:$0xff] %vm2017_vm10, %v4146_v10 }
 0x907   : > { %v4148_v40 = vpop.permute.xlu1 %4147 }
 0x908   : > { %4170 = vst.msk [vmem:[#allocation3 + $0x18] sm:$0xff] %vm2017_vm10, %v4148_v40 }
 0x909   : > { %v4178_v43 = vpop.permute.xlu0 %4177 }
 0x90a   : > { %4201 = vst.msk [vmem:[#allocation3 + $0x20] sm:$0xff] %vm2017_vm10, %v4178_v43 }
 0x90b   : > { %v4180_v32 = vpop.permute.xlu1 %4179 }
 0x90c   : > { %4202 = vst.msk [vmem:[#allocation3 + $0x28] sm:$0xff] %vm2017_vm10, %v4180_v32 }
 0x90d   : > { %v10651_v57 = vld [vmem:[#allocation3 + $0x10] sm:$0xff]  ;;  %v4210_v38 = vpop.permute.xlu0 %4209 }
 0x90e   : > { %v4740_v18 = vsel %vm2017_vm10, %v10651_v57, -inf  ;;  %4233 = vst.msk [vmem:[#allocation3 + $0x30] sm:$0xff] %vm2017_vm10, %v4210_v38 }
 0x90f   : > { %v4741_v55 = vmax.f32 %v4739_v3, %v4740_v18  ;;  %v10656_v5 = vld [vmem:[#allocation3 + $0x18] sm:$0xff]  ;;  %v4212_v12 = vpop.permute.xlu1 %4211 }
 0x910   : > { %v4742_v27 = vsel %vm2017_vm10, %v10656_v5, -inf  ;;  %4234 = vst.msk [vmem:[#allocation3 + $0x38] sm:$0xff] %vm2017_vm10, %v4212_v12  ;;  %v10718_v12 = vld [vmem:[#allocation3 + $0x80] sm:$0xff] }
 0x911   : > { %v4743_v13 = vmax.f32 %v4741_v55, %v4742_v27  ;;  %v10661_v29 = vld [vmem:[#allocation3 + $0x20] sm:$0xff]  ;;  %v4242_v53 = vpop.permute.xlu0 %4241 }
 0x912   : > { %v4744_v25 = vsel %vm2017_vm10, %v10661_v29, -inf  ;;  %4265 = vst.msk [vmem:[#allocation3 + $0x40] sm:$0xff] %vm2017_vm10, %v4242_v53 }
 0x913   : > { %v4745_v33 = vmax.f32 %v4743_v13, %v4744_v25  ;;  %v10666_v17 = vld [vmem:[#allocation3 + $0x28] sm:$0xff]  ;;  %v4244_v63 = vpop.permute.xlu1 %4243 }
 0x914   : > { %v4746_v11 = vsel %vm2017_vm10, %v10666_v17, -inf  ;;  %4266 = vst.msk [vmem:[#allocation3 + $0x48] sm:$0xff] %vm2017_vm10, %v4244_v63  ;;  %v4768_v63 = vsel %vm2017_vm10, %v10718_v12, -inf }
 0x915   : > { %v4747_v31 = vmax.f32 %v4745_v33, %v4746_v11  ;;  %v10671_v52 = vld [vmem:[#allocation3 + $0x30] sm:$0xff]  ;;  %v4274_v20 = vpop.permute.xlu0 %4273  ;;  %v10723_v33 = vld [vmem:[#allocation3 + $0x88] sm:$0xff] }
 0x916   : > { %v4748_v8 = vsel %vm2017_vm10, %v10671_v52, -inf  ;;  %4297 = vst.msk [vmem:[#allocation3 + $0x50] sm:$0xff] %vm2017_vm10, %v4274_v20 }
 0x917   : > { %v4749_v1 = vmax.f32 %v4747_v31, %v4748_v8  ;;  %v10676_v4 = vld [vmem:[#allocation3 + $0x38] sm:$0xff]  ;;  %v4276_v60 = vpop.permute.xlu1 %4275  ;;  %v4770_v8 = vsel %vm2017_vm10, %v10723_v33, -inf }
 0x918   : > { %v4750_v61 = vsel %vm2017_vm10, %v10676_v4, -inf  ;;  %4298 = vst.msk [vmem:[#allocation3 + $0x58] sm:$0xff] %vm2017_vm10, %v4276_v60 }
 0x919   : > { %v4751_v41 = vmax.f32 %v4749_v1, %v4750_v61  ;;  %v10681_v46 = vld [vmem:[#allocation3 + $0x40] sm:$0xff]  ;;  %v4306_v45 = vpop.permute.xlu0 %4305 }
 0x91a   : > { %v4752_v21 = vsel %vm2017_vm10, %v10681_v46, -inf  ;;  %4329 = vst.msk [vmem:[#allocation3 + $0x60] sm:$0xff] %vm2017_vm10, %v4306_v45 }
 0x91b   : > { %v10686_v24 = vld [vmem:[#allocation3 + $0x48] sm:$0xff]  ;;  %v4308_v37 = vpop.permute.xlu1 %4307  ;;  %v4753_v35 = vmax.f32 %v4751_v41, %v4752_v21 }
 0x91c   : > { %4330 = vst.msk [vmem:[#allocation3 + $0x68] sm:$0xff] %vm2017_vm10, %v4308_v37  ;;  %v4754_v6 = vsel %vm2017_vm10, %v10686_v24, -inf }
 0x91d   : > { %v4338_v50 = vpop.permute.xlu0 %4337  ;;  %v10691_v34 = vld [vmem:[#allocation3 + $0x50] sm:$0xff]  ;;  %v4755_v51 = vmax.f32 %v4753_v35, %v4754_v6 }
 0x91e   : > { %4361 = vst.msk [vmem:[#allocation3 + $0x70] sm:$0xff] %vm2017_vm10, %v4338_v50  ;;  %v4756_v54 = vsel %vm2017_vm10, %v10691_v34, -inf }
 0x91f   : > { %v4340_v0 = vpop.permute.xlu1 %4339  ;;  %v10696_v58 = vld [vmem:[#allocation3 + $0x58] sm:$0xff]  ;;  %v4757_v19 = vmax.f32 %v4755_v51, %v4756_v54 }
 0x920   : > { %4362 = vst.msk [vmem:[#allocation3 + $0x78] sm:$0xff] %vm2017_vm10, %v4340_v0  ;;  %v4758_v2 = vsel %vm2017_vm10, %v10696_v58, -inf }
 0x921   : > { %v4386_v44 = vpop.permute.xlu0 %4385  ;;  %v10701_v22 = vld [vmem:[#allocation3 + $0x60] sm:$0xff]  ;;  %v4759_v48 = vmax.f32 %v4757_v19, %v4758_v2 }
 0x922   : > { %4409 = vst.msk [vmem:[#allocation3 + $0x90] sm:$0xff] %vm2017_vm10, %v4386_v44  ;;  %v4760_v14 = vsel %vm2017_vm10, %v10701_v22, -inf }
 0x923   : > { %v4388_v10 = vpop.permute.xlu1 %4387  ;;  %v10706_v40 = vld [vmem:[#allocation3 + $0x68] sm:$0xff]  ;;  %v4761_v43 = vmax.f32 %v4759_v48, %v4760_v14 }
 0x924   : > { %4410 = vst.msk [vmem:[#allocation3 + $0x98] sm:$0xff] %vm2017_vm10, %v4388_v10  ;;  %v4762_v7 = vsel %vm2017_vm10, %v10706_v40, -inf }
 0x925   : > { %v4418_v32 = vpop.permute.xlu0 %4417  ;;  %v10711_v39 = vld [vmem:[#allocation3 + $0x70] sm:$0xff]  ;;  %v4763_v3 = vmax.f32 %v4761_v43, %v4762_v7 }
 0x926   : > { %4441 = vst.msk [vmem:[#allocation3 + $0xa0] sm:$0xff] %vm2017_vm10, %v4418_v32  ;;  %v4764_v38 = vsel %vm2017_vm10, %v10711_v39, -inf }
 0x927   : > { %v4420_v18 = vpop.permute.xlu1 %4419  ;;  %v10716_v55 = vld [vmem:[#allocation3 + $0x78] sm:$0xff]  ;;  %v4765_v27 = vmax.f32 %v4763_v3, %v4764_v38 }
 0x928   : > { %4442 = vst.msk [vmem:[#allocation3 + $0xa8] sm:$0xff] %vm2017_vm10, %v4420_v18  ;;  %v4766_v13 = vsel %vm2017_vm10, %v10716_v55, -inf }
 0x929   : > { %v4450_v53 = vpop.permute.xlu0 %4449  ;;  %v4767_v25 = vmax.f32 %v4765_v27, %v4766_v13  ;;  %v10728_v31 = vld [vmem:[#allocation3 + $0x90] sm:$0xff] }
 0x92a   : > { %4473 = vst.msk [vmem:[#allocation3 + $0xb0] sm:$0xff] %vm2017_vm10, %v4450_v53  ;;  %v4772_v41 = vsel %vm2017_vm10, %v10728_v31, -inf }
 0x92b   : > { %v4452_v11 = vpop.permute.xlu1 %4451  ;;  %v4769_v20 = vmax.f32 %v4767_v25, %v4768_v63  ;;  %v10733_v60 = vld [vmem:[#allocation3 + $0x98] sm:$0xff] }
 0x92c   : > { %4474 = vst.msk [vmem:[#allocation3 + $0xb8] sm:$0xff] %vm2017_vm10, %v4452_v11  ;;  %v4774_v35 = vsel %vm2017_vm10, %v10733_v60, -inf }
 0x92d   : > { %v4482_v1 = vpop.permute.xlu0 %4481  ;;  %v4771_v61 = vmax.f32 %v4769_v20, %v4770_v8  ;;  %v10738_v21 = vld [vmem:[#allocation3 + $0xa0] sm:$0xff] }
 0x92e   : > { %4505 = vst.msk [vmem:[#allocation3 + $0xc0] sm:$0xff] %vm2017_vm10, %v4482_v1  ;;  %v4776_v54 = vsel %vm2017_vm10, %v10738_v21, -inf }
 0x92f   : > { %v4484_v45 = vpop.permute.xlu1 %4483  ;;  %v4773_v37 = vmax.f32 %v4771_v61, %v4772_v41  ;;  %v10743_v50 = vld [vmem:[#allocation3 + $0xa8] sm:$0xff] }
 0x930   : > { %4506 = vst.msk [vmem:[#allocation3 + $0xc8] sm:$0xff] %vm2017_vm10, %v4484_v45  ;;  %v4778_v44 = vsel %vm2017_vm10, %v10743_v50, -inf }
 0x931   : > { %v4514_v6 = vpop.permute.xlu0 %4513  ;;  %v4775_v51 = vmax.f32 %v4773_v37, %v4774_v35  ;;  %v10748_v19 = vld [vmem:[#allocation3 + $0xb0] sm:$0xff] }
 0x932   : > { %4537 = vst.msk [vmem:[#allocation3 + $0xd0] sm:$0xff] %vm2017_vm10, %v4514_v6  ;;  %v4780_v43 = vsel %vm2017_vm10, %v10748_v19, -inf }
 0x933   : > { %v4516_v0 = vpop.permute.xlu1 %4515  ;;  %v4777_v2 = vmax.f32 %v4775_v51, %v4776_v54  ;;  %v10753_v14 = vld [vmem:[#allocation3 + $0xb8] sm:$0xff] }
 0x934   : > { %4538 = vst.msk [vmem:[#allocation3 + $0xd8] sm:$0xff] %vm2017_vm10, %v4516_v0  ;;  %v4782_v38 = vsel %vm2017_vm10, %v10753_v14, -inf }
 0x935   : > { %v4546_v48 = vpop.permute.xlu0 %4545  ;;  %v4779_v10 = vmax.f32 %v4777_v2, %v4778_v44  ;;  %v10758_v7 = vld [vmem:[#allocation3 + $0xc0] sm:$0xff] }
 0x936   : > { %4569 = vst.msk [vmem:[#allocation3 + $0xe0] sm:$0xff] %vm2017_vm10, %v4546_v48  ;;  %v4784_v53 = vsel %vm2017_vm10, %v10758_v7, -inf }
 0x937   : > { %v4548_v32 = vpop.permute.xlu1 %4547  ;;  %v4781_v3 = vmax.f32 %v4779_v10, %v4780_v43  ;;  %v10763_v18 = vld [vmem:[#allocation3 + $0xc8] sm:$0xff] }
 0x938   : > { %4570 = vst.msk [vmem:[#allocation3 + $0xe8] sm:$0xff] %vm2017_vm10, %v4548_v32  ;;  %v4786_v20 = vsel %vm2017_vm10, %v10763_v18, -inf }
 0x939   : > { %v4578_v27 = vpop.permute.xlu0 %4577  ;;  %v4783_v13 = vmax.f32 %v4781_v3, %v4782_v38  ;;  %v10768_v25 = vld [vmem:[#allocation3 + $0xd0] sm:$0xff] }
 0x93a   : > { %4601 = vst.msk [vmem:[#allocation3 + $0xf0] sm:$0xff] %vm2017_vm10, %v4578_v27  ;;  %v4788_v61 = vsel %vm2017_vm10, %v10768_v25, -inf }
 0x93b   : > { %v4580_v63 = vpop.permute.xlu1 %4579  ;;  %v4785_v11 = vmax.f32 %v4783_v13, %v4784_v53  ;;  %v10773_v8 = vld [vmem:[#allocation3 + $0xd8] sm:$0xff] }
 0x93c   : > { %4602 = vst.msk [vmem:[#allocation3 + $0xf8] sm:$0xff] %vm2017_vm10, %v4580_v63  ;;  %v4790_v37 = vsel %vm2017_vm10, %v10773_v8, -inf }
 0x93d   : > { %v4787_v1 = vmax.f32 %v4785_v11, %v4786_v20  ;;  %v10777_v41 = vld [vmem:[#allocation3 + $0xe0] sm:$0xff] }
 0x93e   : > { %v4792_v51 = vsel %vm2017_vm10, %v10777_v41, -inf }
 0x93f   : > { %v4789_v45 = vmax.f32 %v4787_v1, %v4788_v61  ;;  %v10781_v35 = vld [vmem:[#allocation3 + $0xe8] sm:$0xff] }
 0x940   : > { %v4794_v2 = vsel %vm2017_vm10, %v10781_v35, -inf }
 0x941   : > { %v4791_v6 = vmax.f32 %v4789_v45, %v4790_v37  ;;  %v10785_v54 = vld [vmem:[#allocation3 + $0xf0] sm:$0xff] }
 0x942   : > { %v4796_v10 = vsel %vm2017_vm10, %v10785_v54, -inf }
 0x943   : > { %v4793_v0 = vmax.f32 %v4791_v6, %v4792_v51  ;;  %v10789_v44 = vld [vmem:[#allocation3 + $0xf8] sm:$0xff] }
 0x944   : > { %v4798_v32 = vsel %vm2017_vm10, %v10789_v44, -inf }
 0x945   : > { %v4795_v48 = vmax.f32 %v4793_v0, %v4794_v2 }
 0x947   : > { %v4797_v43 = vmax.f32 %v4795_v48, %v4796_v10 }
 0x949   : > { %v4799_v3 = vmax.f32 %v4797_v43, %v4798_v32 }
 0x94b   : > { %v4800_v38 = vrot.slane %v4799_v3, 4 }
 0x94d   : > { %v4801_v27 = vmax.f32 %v4799_v3, %v4800_v38 }
 0x94f   : > { %v4802_v13 = vrot.slane %v4801_v27, 2 }
 0x951   : > { %v4803_v53 = vmax.f32 %v4801_v27, %v4802_v13 }
 0x953   : > { %v4804_v63 = vrot.slane %v4803_v53, 1 }
 0x955   : > { %v10795_v11 = vmax.f32 %v4803_v53, %v4804_v63 }
 0x957   : > { %v5013_v20 = vsub.f32 %v10643_v16, %v10795_v11  ;;  %v5014_v1 = vsub.f32 %v10640_v47, %v10795_v11  ;;  %v5015_v61 = vsub.f32 %v10651_v57, %v10795_v11  ;;  %v5016_v45 = vsub.f32 %v10656_v5, %v10795_v11 }
 0x958   : > { %v5017_v37 = vsub.f32 %v10661_v29, %v10795_v11  ;;  %v5018_v0 = vsub.f32 %v10666_v17, %v10795_v11  ;;  %v5019_v47 = vsub.f32 %v10671_v52, %v10795_v11  ;;  %v5020_v57 = vsub.f32 %v10676_v4, %v10795_v11 }
 0x959   : > { %v5141_v6 = vmul.f32 1.442695, %v5013_v20  ;;  %v5143_v51 = vmul.f32 1.442695, %v5014_v1  ;;  %v5145_v2 = vmul.f32 1.442695, %v5015_v61  ;;  %v5021_v29 = vsub.f32 %v10681_v46, %v10795_v11 }
 0x95a   : > { %v5147_v48 = vmul.f32 1.442695, %v5016_v45  ;;  %v5149_v16 = vmul.f32 1.442695, %v5017_v37  ;;  %v5151_v5 = vmul.f32 1.442695, %v5018_v0  ;;  %v5022_v17 = vsub.f32 %v10686_v24, %v10795_v11 }
 0x95b   : > { %8455 = vpow2.f32 %v5141_v6  ;;  %v5153_v10 = vmul.f32 1.442695, %v5019_v47  ;;  %v5155_v43 = vmul.f32 1.442695, %v5020_v57  ;;  %v5023_v52 = vsub.f32 %v10691_v34, %v10795_v11 }
 0x95c   : > { %8457 = vpow2.f32 %v5143_v51  ;;  %v5157_v32 = vmul.f32 1.442695, %v5021_v29  ;;  %v5024_v38 = vsub.f32 %v10696_v58, %v10795_v11  ;;  %v5159_v46 = vmul.f32 1.442695, %v5022_v17 }
 0x95d   : > { %8459 = vpow2.f32 %v5145_v2  ;;  %v5025_v53 = vsub.f32 %v10701_v22, %v10795_v11  ;;  %v5161_v63 = vmul.f32 1.442695, %v5023_v52  ;;  %v5026_v61 = vsub.f32 %v10706_v40, %v10795_v11 }
 0x95e   : > { %8461 = vpow2.f32 %v5147_v48  ;;  %v5163_v45 = vmul.f32 1.442695, %v5024_v38  ;;  %v5027_v22 = vsub.f32 %v10711_v39, %v10795_v11  ;;  %v5028_v40 = vsub.f32 %v10716_v55, %v10795_v11 }
 0x95f   : > { %8463 = vpow2.f32 %v5149_v16  ;;  %v5165_v0 = vmul.f32 1.442695, %v5025_v53  ;;  %v5167_v16 = vmul.f32 1.442695, %v5026_v61  ;;  %v5029_v39 = vsub.f32 %v10718_v12, %v10795_v11 }
 0x960   : > { %8465 = vpow2.f32 %v5151_v5  ;;  %v5030_v55 = vsub.f32 %v10723_v33, %v10795_v11  ;;  %v5031_v12 = vsub.f32 %v10728_v31, %v10795_v11  ;;  %v5032_v33 = vsub.f32 %v10733_v60, %v10795_v11 }
 0x961   : > { %8467 = vpow2.f32 %v5153_v10  ;;  %v5169_v10 = vmul.f32 1.442695, %v5027_v22  ;;  %v5033_v31 = vsub.f32 %v10738_v21, %v10795_v11  ;;  %v5034_v60 = vsub.f32 %v10743_v50, %v10795_v11 }
 0x962   : > { %8469 = vpow2.f32 %v5155_v43  ;;  %v5035_v21 = vsub.f32 %v10748_v19, %v10795_v11  ;;  %v5036_v50 = vsub.f32 %v10753_v14, %v10795_v11  ;;  %v5037_v19 = vsub.f32 %v10758_v7, %v10795_v11 }
 0x963   : > { %8471 = vpow2.f32 %v5157_v32  ;;  %v5171_v32 = vmul.f32 1.442695, %v5028_v40  ;;  %v5038_v14 = vsub.f32 %v10763_v18, %v10795_v11 }
 0x964   : > { %8473 = vpow2.f32 %v5159_v46  ;;  %v5189_v18 = vmul.f32 1.442695, %v5037_v19 }
 0x965   : > { %v10819_v3 = vpop.eup %8455  ;;  %8475 = vpow2.f32 %v5161_v63 }
 0x966   : > { %v10821_v4 = vpop.eup %8457  ;;  %v5397_v27 = vsel %vm2017_vm10, %v10819_v3, 0.0  ;;  %8477 = vpow2.f32 %v5163_v45 }
 0x967   : > { %v10827_v24 = vpop.eup %8459  ;;  %v5398_v13 = vsel %vm2017_vm10, %v10821_v4, 0.0  ;;  %8479 = vpow2.f32 %v5165_v0 }
 0x968   : > { %v10831_v34 = vpop.eup %8461  ;;  %v5399_v20 = vadd.f32 %v5398_v13, %v5397_v27  ;;  %v5400_v58 = vsel %vm2017_vm10, %v10827_v24, 0.0  ;;  %8481 = vpow2.f32 %v5167_v16  ;;  %v5173_v13 = vmul.f32 1.442695, %v5029_v39 }
 0x969   : > { %v10837_v1 = vpop.eup %8463  ;;  %v5402_v6 = vsel %vm2017_vm10, %v10831_v34, 0.0  ;;  %8483 = vpow2.f32 %v5169_v10 }
 0x96a   : > { %v5401_v37 = vadd.f32 %v5400_v58, %v5399_v20  ;;  %v10843_v51 = vpop.eup %8465  ;;  %v5404_v48 = vsel %vm2017_vm10, %v10837_v1, 0.0  ;;  %8485 = vpow2.f32 %v5171_v32  ;;  %v5175_v58 = vmul.f32 1.442695, %v5030_v55 }
 0x96b   : > { %v10849_v47 = vpop.eup %8467  ;;  %v5406_v5 = vsel %vm2017_vm10, %v10843_v51, 0.0  ;;  %8487 = vpow2.f32 %v5173_v13 }
 0x96c   : > { %v5403_v2 = vadd.f32 %v5402_v6, %v5401_v37  ;;  %v10855_v29 = vpop.eup %8469  ;;  %v5408_v43 = vsel %vm2017_vm10, %v10849_v47, 0.0  ;;  %v5177_v6 = vmul.f32 1.442695, %v5031_v12  ;;  %8489 = vpow2.f32 %v5175_v58 }
 0x96d   : > { %v10861_v52 = vpop.eup %8471  ;;  %v5410_v46 = vsel %vm2017_vm10, %v10855_v29, 0.0 }
 0x96e   : > { %v5405_v57 = vadd.f32 %v5404_v48, %v5403_v2  ;;  %v10867_v27 = vpop.eup %8473  ;;  %v5412_v63 = vsel %vm2017_vm10, %v10861_v52, 0.0  ;;  %v5179_v48 = vmul.f32 1.442695, %v5032_v33  ;;  %8491 = vpow2.f32 %v5177_v6 }
 0x96f   : > { %v10873_v20 = vpop.eup %8475  ;;  %v5414_v45 = vsel %vm2017_vm10, %v10867_v27, 0.0 }
 0x970   : > { %v5407_v17 = vadd.f32 %v5406_v5, %v5405_v57  ;;  %v10879_v37 = vpop.eup %8477  ;;  %v5416_v0 = vsel %vm2017_vm10, %v10873_v20, 0.0  ;;  %v5181_v5 = vmul.f32 1.442695, %v5033_v31  ;;  %8493 = vpow2.f32 %v5179_v48  ;;  %v5837_v48 = vld [vmem:[%s10917_s21 + $0x80] sm:$0xff] }
 0x971   : > { %v10885_v2 = vpop.eup %8479  ;;  %v5418_v16 = vsel %vm2017_vm10, %v10879_v37, 0.0 }
 0x972   : > { %v5409_v38 = vadd.f32 %v5408_v43, %v5407_v17  ;;  %v10891_v57 = vpop.eup %8481  ;;  %v5420_v10 = vsel %vm2017_vm10, %v10885_v2, 0.0  ;;  %v5183_v43 = vmul.f32 1.442695, %v5034_v60  ;;  %8495 = vpow2.f32 %v5181_v5 }
 0x973   : > { %v10897_v17 = vpop.eup %8483  ;;  %v5422_v32 = vsel %vm2017_vm10, %v10891_v57, 0.0 }
 0x974   : > { %v5411_v53 = vadd.f32 %v5410_v46, %v5409_v38  ;;  %v10903_v38 = vpop.eup %8485  ;;  %v5185_v46 = vmul.f32 1.442695, %v5035_v21  ;;  %v5424_v13 = vsel %vm2017_vm10, %v10897_v17, 0.0  ;;  %8497 = vpow2.f32 %v5183_v43 }
 0x975   : > { %v5426_v7 = vsel %vm2017_vm10, %v10903_v38, 0.0 }
 0x976   : > { %v5413_v61 = vadd.f32 %v5412_v63, %v5411_v53  ;;  %v10910_v53 = vpop.eup %8487  ;;  %v5187_v63 = vmul.f32 1.442695, %v5036_v50  ;;  %8499 = vpow2.f32 %v5185_v46 }
 0x977   : > { %v10921_v58 = vpop.eup %8489  ;;  %v5428_v31 = vsel %vm2017_vm10, %v10910_v53, 0.0 }
 0x978   : > { %v5415_v22 = vadd.f32 %v5414_v45, %v5413_v61  ;;  %v5039_v61 = vsub.f32 %v10768_v25, %v10795_v11  ;;  %v10927_v6 = vpop.eup %8491  ;;  %8501 = vpow2.f32 %v5187_v63  ;;  %v5041_v25 = vsub.f32 %v10777_v41, %v10795_v11 }
 0x979   : > { %v5430_v21 = vsel %vm2017_vm10, %v10921_v58, 0.0  ;;  %8503 = vpow2.f32 %v5189_v18  ;;  %v5043_v63 = vsub.f32 %v10785_v54, %v10795_v11 }
 0x97a   : > { %v5417_v40 = vadd.f32 %v5416_v0, %v5415_v22  ;;  %v5040_v22 = vsub.f32 %v10773_v8, %v10795_v11  ;;  %v5191_v0 = vmul.f32 1.442695, %v5038_v14  ;;  %v5193_v8 = vmul.f32 1.442695, %v5039_v61  ;;  %v5823_v14 = vld [vmem:[%s10917_s21 + $0x10] sm:$0xff]  ;;  %v5824_v61 = vld [vmem:[%s10917_s21 + $0x18] sm:$0xff] }
 0x97c   : > { %v5419_v39 = vadd.f32 %v5418_v16, %v5417_v40  ;;  %v5838_v40 = vld [vmem:[%s10917_s21 + $0x88] sm:$0xff]  ;;  %v5821_v16 = vld [vmem:[%s10917_s21] sm:$0xff]  ;;  %8505 = vpow2.f32 %v5191_v0  ;;  %v5195_v19 = vmul.f32 1.442695, %v5040_v22  ;;  %v5044_v0 = vsub.f32 %v10789_v44, %v10795_v11 }
 0x97d   : > { %v5861_v5 = vpack.c.bf16 %v5838_v40, %v5837_v48  ;;  %8507 = vpow2.f32 %v5193_v8  ;;  %v5841_v40 = vld [vmem:[%s10917_s21 + $0xa0] sm:$0xff]  ;;  %v5201_v44 = vmul.f32 1.442695, %v5043_v63 }
 0x97e   : > { %v5421_v55 = vadd.f32 %v5420_v10, %v5419_v39  ;;  %v5822_v39 = vld [vmem:[%s10917_s21 + $0x8] sm:$0xff]  ;;  %v10939_v10 = vpop.eup %8493  ;;  %8509 = vpow2.f32 %v5195_v19 }
 0x97f   : > { %v5853_v43 = vpack.c.bf16 %v5822_v39, %v5821_v16  ;;  %7844 = vmatprep.subr.bf16.mxu1 %v5861_v5  ;;  %v10943_v41 = vpop.eup %8495  ;;  %v5842_v16 = vld [vmem:[%s10917_s21 + $0xa8] sm:$0xff] }
 0x980   : > { %v5423_v12 = vadd.f32 %v5422_v32, %v5421_v55  ;;  %v5432_v55 = vsel %vm2017_vm10, %v10927_v6, 0.0  ;;  %v5042_v32 = vsub.f32 %v10781_v35, %v10795_v11  ;;  %v10955_v18 = vpop.eup %8497  ;;  %v5197_v35 = vmul.f32 1.442695, %v5041_v25  ;;  %v5826_v39 = vld [vmem:[%s10917_s21 + $0x28] sm:$0xff] }
 0x981   : > { %7845 = vmatpush3.bf16.msra.mxu1 %v5853_v43  ;;  %v5436_v22 = vsel %vm2017_vm10, %v10943_v41, 0.0  ;;  %v10959_v54 = vpop.eup %8499  ;;  %v5438_v25 = vsel %vm2017_vm10, %v10955_v18, 0.0  ;;  %v5863_v5 = vpack.c.bf16 %v5842_v16, %v5841_v40 }
 0x982   : > { %v5425_v33 = vadd.f32 %v5424_v13, %v5423_v12  ;;  %v5839_v12 = vld [vmem:[%s10917_s21 + $0x90] sm:$0xff]  ;;  %v5840_v13 = vld [vmem:[%s10917_s21 + $0x98] sm:$0xff]  ;;  %v10969_v8 = vpop.eup %8501  ;;  %8511 = vpow2.f32 %v5197_v35  ;;  %v5440_v43 = vsel %vm2017_vm10, %v10959_v54, 0.0 }
 0x984   : > { %v5427_v45 = vadd.f32 %v5426_v7, %v5425_v33  ;;  %v5434_v33 = vsel %vm2017_vm10, %v10939_v10, 0.0  ;;  %v5862_v7 = vpack.c.bf16 %v5840_v13, %v5839_v12  ;;  %v5844_v12 = vld [vmem:[%s10917_s21 + $0xb8] sm:$0xff]  ;;  %v5827_v13 = vld [vmem:[%s10917_s21 + $0x30] sm:$0xff] }
 0x986   : > { %v5429_v60 = vadd.f32 %v5428_v31, %v5427_v45  ;;  %v5854_v31 = vpack.c.bf16 %v5824_v61, %v5823_v14  ;;  %7846 = vmatprep.subr.bf16.mxu1 %v5862_v7  ;;  %v5442_v14 = vsel %vm2017_vm10, %v10969_v8, 0.0 }
 0x988   : > { %v5431_v50 = vadd.f32 %v5430_v21, %v5429_v60  ;;  %v5199_v60 = vmul.f32 1.442695, %v5042_v32  ;;  %7847 = vmatpush3.bf16.msra.mxu1 %v5854_v31  ;;  %v5825_v21 = vld [vmem:[%s10917_s21 + $0x20] sm:$0xff]  ;;  %v5203_v32 = vmul.f32 1.442695, %v5044_v0 }
 0x989   : > { %7848 = vmatprep.subr.bf16.mxu1 %v5863_v5  ;;  %v5845_v0 = vld [vmem:[%s10917_s21 + $0xc0] sm:$0xff] }
 0x98a   : > { %v5433_v46 = vadd.f32 %v5432_v55, %v5431_v50  ;;  %v5855_v50 = vpack.c.bf16 %v5826_v39, %v5825_v21  ;;  %v10973_v55 = vpop.eup %8503  ;;  %8513 = vpow2.f32 %v5199_v60  ;;  %v5846_v60 = vld [vmem:[%s10917_s21 + $0xc8] sm:$0xff] }
 0x98b   : > { %v10981_v7 = vpop.eup %8505  ;;  %8515 = vpow2.f32 %v5201_v44  ;;  %v5865_v16 = vpack.c.bf16 %v5846_v60, %v5845_v0  ;;  %v5830_v21 = vld [vmem:[%s10917_s21 + $0x48] sm:$0xff]  ;;  %v5851_v60 = vld [vmem:[%s10917_s21 + $0xf0] sm:$0xff] }
 0x98c   : > { %v5435_v45 = vadd.f32 %v5434_v33, %v5433_v46  ;;  %7849 = vmatpush3.bf16.msra.mxu1 %v5855_v50  ;;  %v5843_v46 = vld [vmem:[%s10917_s21 + $0xb0] sm:$0xff]  ;;  %v5828_v33 = vld [vmem:[%s10917_s21 + $0x38] sm:$0xff]  ;;  %v10985_v31 = vpop.eup %8507  ;;  %8517 = vpow2.f32 %v5203_v32  ;;  %v5446_v40 = vsel %vm2017_vm10, %v10981_v7, 0.0  ;;  %v5834_v0 = vld [vmem:[%s10917_s21 + $0x68] sm:$0xff] }
 0x98d   : > { %v5864_v63 = vpack.c.bf16 %v5844_v12, %v5843_v46  ;;  %v5856_v35 = vpack.c.bf16 %v5828_v33, %v5827_v13  ;;  %v5448_v44 = vsel %vm2017_vm10, %v10985_v31, 0.0  ;;  %v5848_v32 = vld [vmem:[%s10917_s21 + $0xd8] sm:$0xff] }
 0x98e   : > { %v5437_v48 = vadd.f32 %v5436_v22, %v5435_v45  ;;  %v5444_v45 = vsel %vm2017_vm10, %v10973_v55, 0.0  ;;  %v5832_v13 = vld [vmem:[%s10917_s21 + $0x58] sm:$0xff] }
 0x98f   : > { %7850 = vmatprep.subr.bf16.mxu1 %v5864_v63  ;;  %v5850_v63 = vld [vmem:[%s10917_s21 + $0xe8] sm:$0xff] }
 0x990   : > { %v5439_v11 = vadd.f32 %v5438_v25, %v5437_v48  ;;  %7851 = vmatpush3.bf16.msra.mxu1 %v5856_v35  ;;  %v5829_v48 = vld [vmem:[%s10917_s21 + $0x40] sm:$0xff]  ;;  %v10993_v25 = vpop.eup %8509 }
 0x991   : > { %v5857_v39 = vpack.c.bf16 %v5830_v21, %v5829_v48  ;;  %7852 = vmatprep.subr.bf16.mxu1 %v5865_v16  ;;  %v5450_v46 = vsel %vm2017_vm10, %v10993_v25, 0.0 }
 0x992   : > { %v5441_v19 = vadd.f32 %v5440_v43, %v5439_v11  ;;  %v10997_v11 = vpop.eup %8511  ;;  %v5847_v43 = vld [vmem:[%s10917_s21 + $0xd0] sm:$0xff] }
 0x993   : > { %v5866_v12 = vpack.c.bf16 %v5848_v32, %v5847_v43  ;;  %v5452_v48 = vsel %vm2017_vm10, %v10997_v11, 0.0  ;;  %v5836_v43 = vld [vmem:[%s10917_s21 + $0x78] sm:$0xff] }
 0x994   : > { %v5443_v61 = vadd.f32 %v5442_v14, %v5441_v19  ;;  %7853 = vmatpush3.bf16.msra.mxu1 %v5857_v39  ;;  %v5831_v19 = vld [vmem:[%s10917_s21 + $0x50] sm:$0xff]  ;;  %v5849_v14 = vld [vmem:[%s10917_s21 + $0xe0] sm:$0xff]  ;;  %v11007_v33 = vpop.eup %8513 }
 0x995   : > { %v5858_v35 = vpack.c.bf16 %v5832_v13, %v5831_v19  ;;  %7854 = vmatprep.subr.bf16.mxu1 %v5866_v12  ;;  %v8516_v16 = vpop.eup %8515  ;;  %v5454_v39 = vsel %vm2017_vm10, %v11007_v33, 0.0 }
 0x996   : > { %v5445_v22 = vadd.f32 %v5444_v45, %v5443_v61  ;;  %v5867_v45 = vpack.c.bf16 %v5850_v63, %v5849_v14  ;;  %v8518_v32 = vpop.eup %8517 }
 0x997   : > { %v5458_v12 = vsel %vm2017_vm10, %v8518_v32, 0.0 }
 0x998   : > { %v5447_v5 = vadd.f32 %v5446_v40, %v5445_v22  ;;  %v5833_v22 = vld [vmem:[%s10917_s21 + $0x60] sm:$0xff]  ;;  %v5852_v40 = vld [vmem:[%s10917_s21 + $0xf8] sm:$0xff]  ;;  %7855 = vmatpush3.bf16.msra.mxu1 %v5858_v35 }
 0x999   : > { %7856 = vmatprep.subr.bf16.mxu1 %v5867_v45 }
 0x99a   : > { %v5449_v50 = vadd.f32 %v5448_v44, %v5447_v5  ;;  %v5859_v5 = vpack.c.bf16 %v5834_v0, %v5833_v22  ;;  %v5868_v44 = vpack.c.bf16 %v5852_v40, %v5851_v60 }
 0x99c   : > { %v5451_v61 = vadd.f32 %v5450_v46, %v5449_v50  ;;  %v5835_v50 = vld [vmem:[%s10917_s21 + $0x70] sm:$0xff]  ;;  %v5456_v46 = vsel %vm2017_vm10, %v8516_v16, 0.0  ;;  %7857 = vmatpush3.bf16.msra.mxu1 %v5859_v5 }
 0x99d   : > { %v5860_v14 = vpack.c.bf16 %v5836_v43, %v5835_v50  ;;  %7858 = vmatprep.subr.bf16.mxu1 %v5868_v44 }
 0x99e   : > { %v5453_v21 = vadd.f32 %v5452_v48, %v5451_v61 }
 0x9a0   : > { %v5455_v19 = vadd.f32 %v5454_v39, %v5453_v21  ;;  %7859 = vmatpush3.bf16.msra.mxu1 %v5860_v14 }
 0x9a2   : > { %v5457_v13 = vadd.f32 %v5456_v46, %v5455_v19 }
 0x9a4   : > { %v5459_v63 = vadd.f32 %v5458_v12, %v5457_v13 }
 0x9a6   : > { %v5460_v61 = vrot.slane %v5459_v63, 4 }
 0x9a8   : > { %v5461_v35 = vadd.f32 %v5460_v61, %v5459_v63 }
 0x9aa   : > { %v5462_v22 = vrot.slane %v5461_v35, 2 }
 0x9ac   : > { %v5463_v0 = vadd.f32 %v5462_v22, %v5461_v35 }
 0x9ae   : > { %v5464_v45 = vrot.slane %v5463_v0, 1 }
 0x9b0   : > { %v5465_v60 = vadd.f32 %v5464_v45, %v5463_v0 }
 0x9b2   : > { %8519 = vrcp.f32 %v5465_v60 }
 0x9bc   : > { %v8520_v48 = vpop.eup %8519 }
 0x9bd   : > { %v5693_v40 = vmul.f32 %v8520_v48, %v10910_v53  ;;  %v5694_v21 = vmul.f32 %v8520_v48, %v10921_v58  ;;  %v5677_v5 = vmul.f32 %v8520_v48, %v10819_v3  ;;  %v5678_v39 = vmul.f32 %v8520_v48, %v10821_v4 }
 0x9be   : > { %v5695_v44 = vmul.f32 %v8520_v48, %v10927_v6  ;;  %v5696_v50 = vmul.f32 %v8520_v48, %v10939_v10  ;;  %v5679_v43 = vmul.f32 %v8520_v48, %v10827_v24  ;;  %v5680_v19 = vmul.f32 %v8520_v48, %v10831_v34 }
 0x9bf   : > { %v5813_v46 = vpack.c.bf16 %v5694_v21, %v5693_v40  ;;  %v5805_v13 = vpack.c.bf16 %v5678_v39, %v5677_v5  ;;  %v5697_v14 = vmul.f32 %v8520_v48, %v10943_v41  ;;  %v5698_v53 = vmul.f32 %v8520_v48, %v10955_v18 }
 0x9c0   : > { %v5814_v12 = vpack.c.bf16 %v5696_v50, %v5695_v44  ;;  %v5699_v4 = vmul.f32 %v8520_v48, %v10959_v54  ;;  %v5700_v58 = vmul.f32 %v8520_v48, %v10969_v8  ;;  %v5681_v6 = vmul.f32 %v8520_v48, %v10837_v1 }
 0x9c1   : > { %5885 = vxpose.xlu0.c.b16.start [1/8] (narrow) %v5813_v46, 16  ;;  %5869 = vxpose.xlu1.c.b16.start [1/8] (narrow) %v5805_v13, 16  ;;  %v5815_v3 = vpack.c.bf16 %v5698_v53, %v5697_v14  ;;  %v5682_v24 = vmul.f32 %v8520_v48, %v10843_v51  ;;  %v5701_v34 = vmul.f32 %v8520_v48, %v10973_v55 }
 0x9c2   : > { %v5806_v10 = vpack.c.bf16 %v5680_v19, %v5679_v43  ;;  %v5816_v63 = vpack.c.bf16 %v5700_v58, %v5699_v4  ;;  %v5702_v41 = vmul.f32 %v8520_v48, %v10981_v7  ;;  %v5703_v18 = vmul.f32 %v8520_v48, %v10985_v31 }
 0x9c3   : > { %v5704_v61 = vmul.f32 %v8520_v48, %v10993_v25  ;;  %v5807_v54 = vpack.c.bf16 %v5682_v24, %v5681_v6  ;;  %v5705_v8 = vmul.f32 %v8520_v48, %v10997_v11  ;;  %v5706_v1 = vmul.f32 %v8520_v48, %v11007_v33 }
 0x9c4   : > { %v5817_v35 = vpack.c.bf16 %v5702_v41, %v5701_v34  ;;  %v5683_v51 = vmul.f32 %v8520_v48, %v10849_v47  ;;  %v5684_v55 = vmul.f32 %v8520_v48, %v10855_v29  ;;  %v5707_v0 = vmul.f32 %v8520_v48, %v8516_v16 }
 0x9c5   : > { %5886 = vxpose.xlu0.c.b16.cont [2/8] (narrow) %v5814_v12, 16  ;;  %5870 = vxpose.xlu1.c.b16.cont [2/8] (narrow) %v5806_v10, 16  ;;  %v5818_v22 = vpack.c.bf16 %v5704_v61, %v5703_v18  ;;  %v5708_v45 = vmul.f32 %v8520_v48, %v8518_v32  ;;  %v5819_v7 = vpack.c.bf16 %v5706_v1, %v5705_v8 }
 0x9c6   : > { %v5808_v25 = vpack.c.bf16 %v5684_v55, %v5683_v51  ;;  %v5685_v60 = vmul.f32 %v8520_v48, %v10861_v52  ;;  %v5686_v40 = vmul.f32 %v8520_v48, %v10867_v27  ;;  %v5687_v33 = vmul.f32 %v8520_v48, %v10873_v20 }
 0x9c7   : > { %v5820_v31 = vpack.c.bf16 %v5708_v45, %v5707_v0  ;;  %v5688_v47 = vmul.f32 %v8520_v48, %v10879_v37  ;;  %v5689_v16 = vmul.f32 %v8520_v48, %v10885_v2  ;;  %v5690_v32 = vmul.f32 %v8520_v48, %v10891_v57 }
 0x9c8   : > { %v5809_v11 = vpack.c.bf16 %v5686_v40, %v5685_v60  ;;  %v5691_v52 = vmul.f32 %v8520_v48, %v10897_v17  ;;  %v5692_v27 = vmul.f32 %v8520_v48, %v10903_v38  ;;  %v11112_v17 = vld [vmem:[#allocation3 + $0x100] sm:$0xff] }
 0x9c9   : > { %5887 = vxpose.xlu0.c.b16.cont [3/8] (narrow) %v5815_v3, 16  ;;  %5871 = vxpose.xlu1.c.b16.cont [3/8] (narrow) %v5807_v54, 16  ;;  %v5810_v29 = vpack.c.bf16 %v5688_v47, %v5687_v33  ;;  %v5811_v21 = vpack.c.bf16 %v5690_v32, %v5689_v16  ;;  %v4806_v48 = vsel %vm2017_vm10, %v11112_v17, -inf }
 0x9ca   : > { %v5812_v5 = vpack.c.bf16 %v5692_v27, %v5691_v52 }
 0x9cd   : > { %5888 = vxpose.xlu0.c.b16.cont [4/8] (narrow) %v5816_v63, 16  ;;  %5872 = vxpose.xlu1.c.b16.cont [4/8] (narrow) %v5808_v25, 16 }
 0x9d1   : > { %5889 = vxpose.xlu0.c.b16.cont [5/8] (narrow) %v5817_v35, 16  ;;  %5873 = vxpose.xlu1.c.b16.cont [5/8] (narrow) %v5809_v11, 16 }
 0x9d5   : > { %5890 = vxpose.xlu0.c.b16.cont [6/8] (narrow) %v5818_v22, 16  ;;  %5874 = vxpose.xlu1.c.b16.cont [6/8] (narrow) %v5810_v29, 16 }
 0x9d9   : > { %5891 = vxpose.xlu0.c.b16.cont [7/8] (narrow) %v5819_v7, 16  ;;  %5875 = vxpose.xlu1.c.b16.cont [7/8] (narrow) %v5811_v21, 16 }
 0x9dd   : > { %5892 = vxpose.xlu0.c.b16.end [8/8] (narrow) %v5820_v31, 16  ;;  %5876 = vxpose.xlu1.c.b16.end [8/8] (narrow) %v5812_v5, 16 }
 0x9e1   : > { %4151 = vrot.lane.b32.xlu1 %v10554_v36, %s8770_s16 }
 0x9e5   : > { %4183 = vrot.lane.b32.xlu1 %v10554_v36, %s8771_s17 }
 0x9e6   : > { %4149 = vrot.lane.b32.xlu0 %v10546_v56, %s8770_s16 }
 0x9e9   : > { %4215 = vrot.lane.b32.xlu1 %v10554_v36, %s8772_s18 }
 0x9ea   : > { %4181 = vrot.lane.b32.xlu0 %v10546_v56, %s8771_s17 }
 0x9ed   : > { %4247 = vrot.lane.b32.xlu1 %v10554_v36, %s8773_s19 }
 0x9ee   : > { %4213 = vrot.lane.b32.xlu0 %v10546_v56, %s8772_s18 }
 0x9f1   : > { %4279 = vrot.lane.b32.xlu1 %v10554_v36, %s8774_s20 }
 0x9f2   : > { %4245 = vrot.lane.b32.xlu0 %v10546_v56, %s8773_s19 }
 0x9f5   : > { %4311 = vrot.lane.b32.xlu1 %v10554_v36, %s8775_s23 }
 0x9f6   : > { %4277 = vrot.lane.b32.xlu0 %v10546_v56, %s8774_s20 }
 0x9f9   : > { %4343 = vrot.lane.b32.xlu1 %v10554_v36, %s8776_s24 }
 0x9fa   : > { %4309 = vrot.lane.b32.xlu0 %v10546_v56, %s8775_s23 }
 0x9fd   : > { %4391 = vrot.lane.b32.xlu1 %v10560_v23, %s8770_s16 }
 0x9fe   : > { %4341 = vrot.lane.b32.xlu0 %v10546_v56, %s8776_s24 }
 0xa01   : > { %4423 = vrot.lane.b32.xlu1 %v10560_v23, %s8771_s17 }
 0xa02   : > { %4389 = vrot.lane.b32.xlu0 %v10550_v59, %s8770_s16 }
 0xa05   : > { %4455 = vrot.lane.b32.xlu1 %v10560_v23, %s8772_s18 }
 0xa06   : > { %4421 = vrot.lane.b32.xlu0 %v10550_v59, %s8771_s17 }
 0xa09   : > { %4487 = vrot.lane.b32.xlu1 %v10560_v23, %s8773_s19 }
 0xa0a   : > { %4453 = vrot.lane.b32.xlu0 %v10550_v59, %s8772_s18 }
 0xa0d   : > { %4519 = vrot.lane.b32.xlu1 %v10560_v23, %s8774_s20 }
 0xa0e   : > { %4485 = vrot.lane.b32.xlu0 %v10550_v59, %s8773_s19 }
 0xa11   : > { %4551 = vrot.lane.b32.xlu1 %v10560_v23, %s8775_s23 }
 0xa12   : > { %4517 = vrot.lane.b32.xlu0 %v10550_v59, %s8774_s20 }
 0xa15   : > { %4583 = vrot.lane.b32.xlu1 %v10560_v23, %s8776_s24  ;;  %v11110_v23 = vld [vmem:[#allocation3 + $0x108] sm:$0xff] }
 0xa16   : > { %4549 = vrot.lane.b32.xlu0 %v10550_v59, %s8775_s23  ;;  %v4807_v38 = vsel %vm2017_vm10, %v11110_v23, -inf }
 0xa17   : > { %v4808_v43 = vmax.f32 %v4806_v48, %v4807_v38 }
 0xa1a   : > { %4581 = vrot.lane.b32.xlu0 %v10550_v59, %s8776_s24 }
 0xa27   : > { %v5893_v56 = vpop.trf.xlu0  ;;  %v5877_v36 = vpop.trf.xlu1 }
 0xa28   : > { %5933 = vmatprep.mubr.bf16.mxu1 %v5893_v56 }
 0xa29   : > { %5934 = vmatmul.mubr.bf16.vlgmr.msra.gmra.mrb[72].mxu1 %v5877_v36 }
 0xa53   : > { %v4152_v20 = vpop.permute.xlu1 %4151 }
 0xa54   : > { %4172 = vst.msk [vmem:[#allocation3 + $0x118] sm:$0xff] %vm2017_vm10, %v4152_v20 }
 0xa57   : > { %v4184_v37 = vpop.permute.xlu1 %4183 }
 0xa58   : > { %4204 = vst.msk [vmem:[#allocation3 + $0x128] sm:$0xff] %vm2017_vm10, %v4184_v37  ;;  %v4150_v2 = vpop.permute.xlu0 %4149 }
 0xa59   : > { %4171 = vst.msk [vmem:[#allocation3 + $0x110] sm:$0xff] %vm2017_vm10, %v4150_v2 }
 0xa5b   : > { %v4216_v57 = vpop.permute.xlu1 %4215  ;;  %v11120_v44 = vld [vmem:[#allocation3 + $0x118] sm:$0xff] }
 0xa5c   : > { %4236 = vst.msk [vmem:[#allocation3 + $0x138] sm:$0xff] %vm2017_vm10, %v4216_v57  ;;  %v4182_v59 = vpop.permute.xlu0 %4181  ;;  %v4811_v14 = vsel %vm2017_vm10, %v11120_v44, -inf }
 0xa5d   : > { %4203 = vst.msk [vmem:[#allocation3 + $0x120] sm:$0xff] %vm2017_vm10, %v4182_v59 }
 0xa5f   : > { %v4248_v39 = vpop.permute.xlu1 %4247  ;;  %v11130_v12 = vld [vmem:[#allocation3 + $0x128] sm:$0xff] }
 0xa60   : > { %v11122_v50 = vld [vmem:[#allocation3 + $0x110] sm:$0xff]  ;;  %4268 = vst.msk [vmem:[#allocation3 + $0x148] sm:$0xff] %vm2017_vm10, %v4248_v39  ;;  %v4214_v19 = vpop.permute.xlu0 %4213  ;;  %v4815_v34 = vsel %vm2017_vm10, %v11130_v12, -inf  ;;  %v11188_v39 = vld [vmem:[#allocation3 + $0x180] sm:$0xff] }
 0xa61   : > { %v4809_v46 = vsel %vm2017_vm10, %v11122_v50, -inf  ;;  %4235 = vst.msk [vmem:[#allocation3 + $0x130] sm:$0xff] %vm2017_vm10, %v4214_v19 }
 0xa62   : > { %v4810_v13 = vmax.f32 %v4808_v43, %v4809_v46 }
 0xa63   : > { %v4280_v53 = vpop.permute.xlu1 %4279  ;;  %v11140_v63 = vld [vmem:[#allocation3 + $0x138] sm:$0xff] }
 0xa64   : > { %v11132_v3 = vld [vmem:[#allocation3 + $0x120] sm:$0xff]  ;;  %v4812_v4 = vmax.f32 %v4810_v13, %v4811_v14  ;;  %4300 = vst.msk [vmem:[#allocation3 + $0x158] sm:$0xff] %vm2017_vm10, %v4280_v53  ;;  %v4246_v58 = vpop.permute.xlu0 %4245  ;;  %v4819_v22 = vsel %vm2017_vm10, %v11140_v63, -inf  ;;  %v11193_v14 = vld [vmem:[#allocation3 + $0x188] sm:$0xff] }
 0xa65   : > { %v4813_v6 = vsel %vm2017_vm10, %v11132_v3, -inf  ;;  %4267 = vst.msk [vmem:[#allocation3 + $0x140] sm:$0xff] %vm2017_vm10, %v4246_v58 }
 0xa66   : > { %v4814_v24 = vmax.f32 %v4812_v4, %v4813_v6  ;;  %v4837_v4 = vsel %vm2017_vm10, %v11188_v39, -inf }
 0xa67   : > { %v4312_v10 = vpop.permute.xlu1 %4311  ;;  %v11150_v1 = vld [vmem:[#allocation3 + $0x148] sm:$0xff] }
 0xa68   : > { %v11142_v41 = vld [vmem:[#allocation3 + $0x130] sm:$0xff]  ;;  %v4816_v18 = vmax.f32 %v4814_v24, %v4815_v34  ;;  %4332 = vst.msk [vmem:[#allocation3 + $0x168] sm:$0xff] %vm2017_vm10, %v4312_v10  ;;  %v4278_v61 = vpop.permute.xlu0 %4277  ;;  %v4823_v31 = vsel %vm2017_vm10, %v11150_v1, -inf  ;;  %v5942_v24 = vld [vmem:[%s12716_s8] sm:$0xff]  ;;  %v4839_v10 = vsel %vm2017_vm10, %v11193_v14, -inf }
 0xa69   : > { %v4817_v35 = vsel %vm2017_vm10, %v11142_v41, -inf  ;;  %4299 = vst.msk [vmem:[#allocation3 + $0x150] sm:$0xff] %vm2017_vm10, %v4278_v61  ;;  %8096 = vmatprep.subr.mxu0 %v5942_v24 }
 0xa6a   : > { %v4818_v54 = vmax.f32 %v4816_v18, %v4817_v35  ;;  %8097 = vmatpush3.msra.mxu0 %v5942_v24 }
 0xa6b   : > { %v4344_v8 = vpop.permute.xlu1 %4343  ;;  %v11163_v11 = vld [vmem:[#allocation3 + $0x158] sm:$0xff] }
 0xa6c   : > { %v11152_v51 = vld [vmem:[#allocation3 + $0x140] sm:$0xff]  ;;  %v4820_v55 = vmax.f32 %v4818_v54, %v4819_v22  ;;  %4364 = vst.msk [vmem:[#allocation3 + $0x178] sm:$0xff] %vm2017_vm10, %v4344_v8  ;;  %v4310_v0 = vpop.permute.xlu0 %4309  ;;  %v4827_v32 = vsel %vm2017_vm10, %v11163_v11, -inf }
 0xa6d   : > { %v4821_v45 = vsel %vm2017_vm10, %v11152_v51, -inf  ;;  %4331 = vst.msk [vmem:[#allocation3 + $0x160] sm:$0xff] %vm2017_vm10, %v4310_v0 }
 0xa6e   : > { %v4822_v7 = vmax.f32 %v4820_v55, %v4821_v45 }
 0xa6f   : > { %v4392_v25 = vpop.permute.xlu1 %4391  ;;  %v11173_v27 = vld [vmem:[#allocation3 + $0x168] sm:$0xff] }
 0xa70   : > { %v11160_v60 = vld [vmem:[#allocation3 + $0x150] sm:$0xff]  ;;  %4412 = vst.msk [vmem:[#allocation3 + $0x198] sm:$0xff] %vm2017_vm10, %v4392_v25  ;;  %v4342_v40 = vpop.permute.xlu0 %4341  ;;  %v4824_v33 = vmax.f32 %v4822_v7, %v4823_v31  ;;  %v4831_v37 = vsel %vm2017_vm10, %v11173_v27, -inf }
 0xa71   : > { %4363 = vst.msk [vmem:[#allocation3 + $0x170] sm:$0xff] %vm2017_vm10, %v4342_v40  ;;  %v4825_v47 = vsel %vm2017_vm10, %v11160_v60, -inf }
 0xa72   : > { %v4826_v29 = vmax.f32 %v4824_v33, %v4825_v47 }
 0xa73   : > { %v4424_v16 = vpop.permute.xlu1 %4423  ;;  %v11183_v59 = vld [vmem:[#allocation3 + $0x178] sm:$0xff] }
 0xa74   : > { %4444 = vst.msk [vmem:[#allocation3 + $0x1a8] sm:$0xff] %vm2017_vm10, %v4424_v16  ;;  %v4390_v21 = vpop.permute.xlu0 %4389  ;;  %v11171_v52 = vld [vmem:[#allocation3 + $0x160] sm:$0xff]  ;;  %v4828_v5 = vmax.f32 %v4826_v29, %v4827_v32  ;;  %v4835_v46 = vsel %vm2017_vm10, %v11183_v59, -inf }
 0xa75   : > { %4411 = vst.msk [vmem:[#allocation3 + $0x190] sm:$0xff] %vm2017_vm10, %v4390_v21  ;;  %v4829_v56 = vsel %vm2017_vm10, %v11171_v52, -inf }
 0xa76   : > { %v4830_v36 = vmax.f32 %v4828_v5, %v4829_v56 }
 0xa77   : > { %v4456_v20 = vpop.permute.xlu1 %4455  ;;  %v11206_v61 = vld [vmem:[#allocation3 + $0x198] sm:$0xff] }
 0xa78   : > { %4476 = vst.msk [vmem:[#allocation3 + $0x1b8] sm:$0xff] %vm2017_vm10, %v4456_v20  ;;  %v4422_v2 = vpop.permute.xlu0 %4421  ;;  %v11181_v57 = vld [vmem:[#allocation3 + $0x170] sm:$0xff]  ;;  %v4832_v38 = vmax.f32 %v4830_v36, %v4831_v37  ;;  %v4843_v0 = vsel %vm2017_vm10, %v11206_v61, -inf }
 0xa79   : > { %4443 = vst.msk [vmem:[#allocation3 + $0x1a0] sm:$0xff] %vm2017_vm10, %v4422_v2  ;;  %v4833_v48 = vsel %vm2017_vm10, %v11181_v57, -inf }
 0xa7a   : > { %v4834_v43 = vmax.f32 %v4832_v38, %v4833_v48 }
 0xa7b   : > { %v4488_v19 = vpop.permute.xlu1 %4487  ;;  %v11216_v7 = vld [vmem:[#allocation3 + $0x1a8] sm:$0xff] }
 0xa7c   : > { %4508 = vst.msk [vmem:[#allocation3 + $0x1c8] sm:$0xff] %vm2017_vm10, %v4488_v19  ;;  %v4454_v13 = vpop.permute.xlu0 %4453  ;;  %v4836_v53 = vmax.f32 %v4834_v43, %v4835_v46  ;;  %v11198_v58 = vld [vmem:[#allocation3 + $0x190] sm:$0xff]  ;;  %v4847_v29 = vsel %vm2017_vm10, %v11216_v7, -inf }
 0xa7d   : > { %4475 = vst.msk [vmem:[#allocation3 + $0x1b0] sm:$0xff] %vm2017_vm10, %v4454_v13  ;;  %v4841_v54 = vsel %vm2017_vm10, %v11198_v58, -inf }
 0xa7e   : > { %v4838_v6 = vmax.f32 %v4836_v53, %v4837_v4 }
 0xa7f   : > { %v4520_v34 = vpop.permute.xlu1 %4519  ;;  %v11225_v16 = vld [vmem:[#allocation3 + $0x1b8] sm:$0xff] }
 0xa80   : > { %4540 = vst.msk [vmem:[#allocation3 + $0x1d8] sm:$0xff] %vm2017_vm10, %v4520_v34  ;;  %v4486_v18 = vpop.permute.xlu0 %4485  ;;  %v4840_v35 = vmax.f32 %v4838_v6, %v4839_v10  ;;  %v11211_v22 = vld [vmem:[#allocation3 + $0x1a0] sm:$0xff]  ;;  %v4851_v20 = vsel %vm2017_vm10, %v11225_v16, -inf }
 0xa81   : > { %4507 = vst.msk [vmem:[#allocation3 + $0x1c0] sm:$0xff] %vm2017_vm10, %v4486_v18  ;;  %v4845_v25 = vsel %vm2017_vm10, %v11211_v22, -inf }
 0xa82   : > { %v4842_v8 = vmax.f32 %v4840_v35, %v4841_v54 }
 0xa83   : > { %v4552_v55 = vpop.permute.xlu1 %4551  ;;  %v11235_v37 = vld [vmem:[#allocation3 + $0x1c8] sm:$0xff] }
 0xa84   : > { %4572 = vst.msk [vmem:[#allocation3 + $0x1e8] sm:$0xff] %vm2017_vm10, %v4552_v55  ;;  %v4518_v45 = vpop.permute.xlu0 %4517  ;;  %v4844_v31 = vmax.f32 %v4842_v8, %v4843_v0  ;;  %v11221_v40 = vld [vmem:[#allocation3 + $0x1b0] sm:$0xff]  ;;  %v4855_v46 = vsel %vm2017_vm10, %v11235_v37, -inf }
 0xa85   : > { %4539 = vst.msk [vmem:[#allocation3 + $0x1d0] sm:$0xff] %vm2017_vm10, %v4518_v45  ;;  %v4849_v5 = vsel %vm2017_vm10, %v11221_v40, -inf }
 0xa86   : > { %v4846_v33 = vmax.f32 %v4844_v31, %v4845_v25 }
 0xa87   : > { %v4584_v47 = vpop.permute.xlu1 %4583  ;;  %v11244_v13 = vld [vmem:[#allocation3 + $0x1d8] sm:$0xff] }
 0xa88   : > { %4604 = vst.msk [vmem:[#allocation3 + $0x1f8] sm:$0xff] %vm2017_vm10, %v4584_v47  ;;  %v4550_v32 = vpop.permute.xlu0 %4549  ;;  %v4848_v21 = vmax.f32 %v4846_v33, %v4847_v29  ;;  %v11231_v56 = vld [vmem:[#allocation3 + $0x1c0] sm:$0xff]  ;;  %v4859_v34 = vsel %vm2017_vm10, %v11244_v13, -inf }
 0xa89   : > { %4571 = vst.msk [vmem:[#allocation3 + $0x1e0] sm:$0xff] %vm2017_vm10, %v4550_v32  ;;  %v4853_v48 = vsel %vm2017_vm10, %v11231_v56, -inf }
 0xa8a   : > { %v4850_v36 = vmax.f32 %v4848_v21, %v4849_v5 }
 0xa8b   : > { %v11252_v10 = vld [vmem:[#allocation3 + $0x1e8] sm:$0xff] }
 0xa8c   : > { %v4582_v2 = vpop.permute.xlu0 %4581  ;;  %v4852_v38 = vmax.f32 %v4850_v36, %v4851_v20  ;;  %v11240_v43 = vld [vmem:[#allocation3 + $0x1d0] sm:$0xff]  ;;  %v4863_v55 = vsel %vm2017_vm10, %v11252_v10, -inf }
 0xa8d   : > { %4603 = vst.msk [vmem:[#allocation3 + $0x1f0] sm:$0xff] %vm2017_vm10, %v4582_v2  ;;  %v4857_v4 = vsel %vm2017_vm10, %v11240_v43, -inf }
 0xa8e   : > { %v4854_v19 = vmax.f32 %v4852_v38, %v4853_v48 }
 0xa8f   : > { %v11260_v0 = vld [vmem:[#allocation3 + $0x1f8] sm:$0xff] }
 0xa90   : > { %v4856_v53 = vmax.f32 %v4854_v19, %v4855_v46  ;;  %v11248_v6 = vld [vmem:[#allocation3 + $0x1e0] sm:$0xff]  ;;  %v4867_v33 = vsel %vm2017_vm10, %v11260_v0, -inf }
 0xa91   : > { %v4861_v35 = vsel %vm2017_vm10, %v11248_v6, -inf }
 0xa92   : > { %v4858_v24 = vmax.f32 %v4856_v53, %v4857_v4 }
 0xa94   : > { %v4860_v18 = vmax.f32 %v4858_v24, %v4859_v34  ;;  %v11256_v54 = vld [vmem:[#allocation3 + $0x1f0] sm:$0xff] }
 0xa95   : > { %v4865_v31 = vsel %vm2017_vm10, %v11256_v54, -inf }
 0xa96   : > { %v4862_v8 = vmax.f32 %v4860_v18, %v4861_v35 }
 0xa98   : > { %v4864_v45 = vmax.f32 %v4862_v8, %v4863_v55 }
 0xa9a   : > { %v4866_v25 = vmax.f32 %v4864_v45, %v4865_v31 }
 0xa9c   : > { %v4868_v47 = vmax.f32 %v4866_v25, %v4867_v33 }
 0xa9e   : > { %v4869_v29 = vrot.slane %v4868_v47, 4 }
 0xaa0   : > { %v4870_v32 = vmax.f32 %v4868_v47, %v4869_v29 }
 0xaa2   : > { %v4871_v21 = vrot.slane %v4870_v32, 2 }
 0xaa4   : > { %v4872_v5 = vmax.f32 %v4870_v32, %v4871_v21 }
 0xaa6   : > { %v4873_v36 = vrot.slane %v4872_v5, 1 }
 0xaa8   : > { %v11266_v20 = vmax.f32 %v4872_v5, %v4873_v36 }
 0xaaa   : > { %v5045_v2 = vsub.f32 %v11112_v17, %v11266_v20  ;;  %v5046_v38 = vsub.f32 %v11110_v23, %v11266_v20  ;;  %v5047_v48 = vsub.f32 %v11122_v50, %v11266_v20  ;;  %v5048_v19 = vsub.f32 %v11120_v44, %v11266_v20 }
 0xaab   : > { %v5049_v46 = vsub.f32 %v11132_v3, %v11266_v20  ;;  %v5050_v4 = vsub.f32 %v11130_v12, %v11266_v20  ;;  %v5051_v23 = vsub.f32 %v11142_v41, %v11266_v20  ;;  %v5052_v44 = vsub.f32 %v11140_v63, %v11266_v20 }
 0xaac   : > { %v5205_v53 = vmul.f32 1.442695, %v5045_v2  ;;  %v5207_v24 = vmul.f32 1.442695, %v5046_v38  ;;  %v5209_v34 = vmul.f32 1.442695, %v5047_v48  ;;  %v5053_v3 = vsub.f32 %v11152_v51, %v11266_v20 }
 0xaad   : > { %v5211_v18 = vmul.f32 1.442695, %v5048_v19  ;;  %v5213_v17 = vmul.f32 1.442695, %v5049_v46  ;;  %v5215_v50 = vmul.f32 1.442695, %v5050_v4  ;;  %v5054_v35 = vsub.f32 %v11150_v1, %v11266_v20 }
 0xaae   : > { %8521 = vpow2.f32 %v5205_v53  ;;  %v5217_v12 = vmul.f32 1.442695, %v5051_v23  ;;  %v5219_v8 = vmul.f32 1.442695, %v5052_v44  ;;  %v5055_v41 = vsub.f32 %v11160_v60, %v11266_v20 }
 0xaaf   : > { %8523 = vpow2.f32 %v5207_v24  ;;  %v5221_v55 = vmul.f32 1.442695, %v5053_v3  ;;  %v5223_v31 = vmul.f32 1.442695, %v5054_v35  ;;  %v5056_v33 = vsub.f32 %v11163_v11, %v11266_v20 }
 0xab0   : > { %8525 = vpow2.f32 %v5209_v34  ;;  %v5225_v47 = vmul.f32 1.442695, %v5055_v41  ;;  %v5057_v32 = vsub.f32 %v11171_v52, %v11266_v20  ;;  %v5058_v2 = vsub.f32 %v11173_v27, %v11266_v20 }
 0xab1   : > { %8527 = vpow2.f32 %v5211_v18  ;;  %v5227_v38 = vmul.f32 1.442695, %v5056_v33  ;;  %v5059_v52 = vsub.f32 %v11181_v57, %v11266_v20  ;;  %v5060_v27 = vsub.f32 %v11183_v59, %v11266_v20 }
 0xab2   : > { %8529 = vpow2.f32 %v5213_v17  ;;  %v5229_v46 = vmul.f32 1.442695, %v5057_v32  ;;  %v5231_v34 = vmul.f32 1.442695, %v5058_v2  ;;  %v5061_v57 = vsub.f32 %v11188_v39, %v11266_v20 }
 0xab3   : > { %8531 = vpow2.f32 %v5215_v50  ;;  %v5233_v44 = vmul.f32 1.442695, %v5059_v52  ;;  %v5062_v59 = vsub.f32 %v11193_v14, %v11266_v20  ;;  %v5235_v35 = vmul.f32 1.442695, %v5060_v27 }
 0xab4   : > { %8533 = vpow2.f32 %v5217_v12  ;;  %v5063_v39 = vsub.f32 %v11198_v58, %v11266_v20  ;;  %v5064_v14 = vsub.f32 %v11206_v61, %v11266_v20  ;;  %v5065_v58 = vsub.f32 %v11211_v22, %v11266_v20 }
 0xab5   : > { %8535 = vpow2.f32 %v5219_v8  ;;  %v5239_v33 = vmul.f32 1.442695, %v5062_v59  ;;  %v5066_v61 = vsub.f32 %v11216_v7, %v11266_v20  ;;  %v5068_v7 = vsub.f32 %v11225_v16, %v11266_v20 }
 0xab6   : > { %8537 = vpow2.f32 %v5221_v55  ;;  %v5237_v55 = vmul.f32 1.442695, %v5061_v57  ;;  %v5241_v32 = vmul.f32 1.442695, %v5063_v39  ;;  %v5070_v16 = vsub.f32 %v11235_v37, %v11266_v20 }
 0xab7   : > { %8539 = vpow2.f32 %v5223_v31  ;;  %v5072_v37 = vsub.f32 %v11244_v13, %v11266_v20  ;;  %v5074_v13 = vsub.f32 %v11252_v10, %v11266_v20  ;;  %v5076_v10 = vsub.f32 %v11260_v0, %v11266_v20 }
 0xab8   : > { %v11290_v45 = vpop.eup %8521  ;;  %8541 = vpow2.f32 %v5225_v47 }
 0xab9   : > { %v11292_v63 = vpop.eup %8523  ;;  %v5466_v51 = vsel %vm2017_vm10, %v11290_v45, 0.0  ;;  %8543 = vpow2.f32 %v5227_v38  ;;  %v5243_v38 = vmul.f32 1.442695, %v5064_v14 }
 0xaba   : > { %v11296_v25 = vpop.eup %8525  ;;  %v5467_v1 = vsel %vm2017_vm10, %v11292_v63, 0.0  ;;  %8545 = vpow2.f32 %v5229_v46  ;;  %v5067_v46 = vsub.f32 %v11221_v40, %v11266_v20  ;;  %v5069_v40 = vsub.f32 %v11231_v56, %v11266_v20 }
 0xabb   : > { %v11302_v60 = vpop.eup %8527  ;;  %v5468_v29 = vadd.f32 %v5467_v1, %v5466_v51  ;;  %v5469_v21 = vsel %vm2017_vm10, %v11296_v25, 0.0  ;;  %8547 = vpow2.f32 %v5231_v34  ;;  %v5071_v56 = vsub.f32 %v11240_v43, %v11266_v20 }
 0xabc   : > { %v11308_v5 = vpop.eup %8529  ;;  %v5471_v11 = vsel %vm2017_vm10, %v11302_v60, 0.0  ;;  %8549 = vpow2.f32 %v5233_v44  ;;  %v5073_v43 = vsub.f32 %v11248_v6, %v11266_v20  ;;  %v5075_v6 = vsub.f32 %v11256_v54, %v11266_v20 }
 0xabd   : > { %v5470_v36 = vadd.f32 %v5469_v21, %v5468_v29  ;;  %v11314_v48 = vpop.eup %8531  ;;  %v5473_v53 = vsel %vm2017_vm10, %v11308_v5, 0.0  ;;  %8551 = vpow2.f32 %v5235_v35 }
 0xabe   : > { %v11320_v4 = vpop.eup %8533  ;;  %v5475_v18 = vsel %vm2017_vm10, %v11314_v48, 0.0  ;;  %8553 = vpow2.f32 %v5237_v55  ;;  %v5265_v54 = vmul.f32 1.442695, %v5075_v6 }
 0xabf   : > { %v5472_v19 = vadd.f32 %v5471_v11, %v5470_v36  ;;  %v11326_v23 = vpop.eup %8535  ;;  %v5477_v50 = vsel %vm2017_vm10, %v11320_v4, 0.0  ;;  %8555 = vpow2.f32 %v5239_v33 }
 0xac0   : > { %v11332_v3 = vpop.eup %8537  ;;  %v5479_v8 = vsel %vm2017_vm10, %v11326_v23, 0.0  ;;  %8557 = vpow2.f32 %v5241_v32 }
 0xac1   : > { %v5474_v24 = vadd.f32 %v5473_v53, %v5472_v19  ;;  %v11338_v41 = vpop.eup %8539  ;;  %v5481_v51 = vsel %vm2017_vm10, %v11332_v3, 0.0  ;;  %v5245_v53 = vmul.f32 1.442695, %v5065_v58  ;;  %8559 = vpow2.f32 %v5243_v38 }
 0xac2   : > { %v11344_v1 = vpop.eup %8541  ;;  %v5483_v29 = vsel %vm2017_vm10, %v11338_v41, 0.0 }
 0xac3   : > { %v5476_v17 = vadd.f32 %v5475_v18, %v5474_v24  ;;  %v11352_v36 = vpop.eup %8543  ;;  %v5485_v2 = vsel %vm2017_vm10, %v11344_v1, 0.0  ;;  %v5247_v18 = vmul.f32 1.442695, %v5066_v61  ;;  %8561 = vpow2.f32 %v5245_v53 }
 0xac4   : > { %v11356_v11 = vpop.eup %8545  ;;  %v5487_v52 = vsel %vm2017_vm10, %v11352_v36, 0.0 }
 0xac5   : > { %v5478_v12 = vadd.f32 %v5477_v50, %v5476_v17  ;;  %v11362_v22 = vpop.eup %8547  ;;  %v5489_v27 = vsel %vm2017_vm10, %v11356_v11, 0.0  ;;  %v5249_v50 = vmul.f32 1.442695, %v5067_v46  ;;  %8563 = vpow2.f32 %v5247_v18 }
 0xac6   : > { %v11368_v34 = vpop.eup %8549  ;;  %v5491_v57 = vsel %vm2017_vm10, %v11362_v22, 0.0 }
 0xac7   : > { %v5480_v31 = vadd.f32 %v5479_v8, %v5478_v12  ;;  %v11374_v44 = vpop.eup %8551  ;;  %v5493_v59 = vsel %vm2017_vm10, %v11368_v34, 0.0  ;;  %v5251_v8 = vmul.f32 1.442695, %v5068_v7  ;;  %8565 = vpow2.f32 %v5249_v50 }
 0xac8   : > { %v11380_v35 = vpop.eup %8553  ;;  %v5495_v55 = vsel %vm2017_vm10, %v11374_v44, 0.0 }
 0xac9   : > { %v5482_v47 = vadd.f32 %v5481_v51, %v5480_v31  ;;  %v11386_v31 = vpop.eup %8555  ;;  %v5253_v51 = vmul.f32 1.442695, %v5069_v40  ;;  %v5497_v33 = vsel %vm2017_vm10, %v11380_v35, 0.0  ;;  %8567 = vpow2.f32 %v5251_v8 }
 0xaca   : > { %v5499_v32 = vsel %vm2017_vm10, %v11386_v31, 0.0 }
 0xacb   : > { %v5484_v21 = vadd.f32 %v5483_v29, %v5482_v47  ;;  %v11392_v47 = vpop.eup %8557  ;;  %v5255_v29 = vmul.f32 1.442695, %v5070_v16  ;;  %8569 = vpow2.f32 %v5253_v51 }
 0xacc   : > { %v5501_v38 = vsel %vm2017_vm10, %v11392_v47, 0.0 }
 0xacd   : > { %v5486_v19 = vadd.f32 %v5485_v2, %v5484_v21  ;;  %v11398_v21 = vpop.eup %8559  ;;  %v5257_v2 = vmul.f32 1.442695, %v5071_v56  ;;  %8571 = vpow2.f32 %v5255_v29 }
 0xace   : > { %v5503_v53 = vsel %vm2017_vm10, %v11398_v21, 0.0 }
 0xacf   : > { %v5488_v24 = vadd.f32 %v5487_v52, %v5486_v19  ;;  %v11404_v19 = vpop.eup %8561  ;;  %v5259_v52 = vmul.f32 1.442695, %v5072_v37  ;;  %8573 = vpow2.f32 %v5257_v2 }
 0xad0   : > { %v5505_v18 = vsel %vm2017_vm10, %v11404_v19, 0.0 }
 0xad1   : > { %v5490_v17 = vadd.f32 %v5489_v27, %v5488_v24  ;;  %v11410_v24 = vpop.eup %8563  ;;  %v5261_v27 = vmul.f32 1.442695, %v5073_v43  ;;  %8575 = vpow2.f32 %v5259_v52 }
 0xad2   : > { %v5507_v50 = vsel %vm2017_vm10, %v11410_v24, 0.0 }
 0xad3   : > { %v5492_v12 = vadd.f32 %v5491_v57, %v5490_v17  ;;  %v11416_v17 = vpop.eup %8565  ;;  %v5263_v57 = vmul.f32 1.442695, %v5074_v13  ;;  %8577 = vpow2.f32 %v5261_v27 }
 0xad4   : > { %v5509_v16 = vsel %vm2017_vm10, %v11416_v17, 0.0 }
 0xad5   : > { %v5494_v39 = vadd.f32 %v5493_v59, %v5492_v12  ;;  %v11422_v12 = vpop.eup %8567  ;;  %8579 = vpow2.f32 %v5263_v57 }
 0xad6   : > { %v11426_v8 = vpop.eup %8569  ;;  %v5511_v0 = vsel %vm2017_vm10, %v11422_v12, 0.0  ;;  %8581 = vpow2.f32 %v5265_v54 }
 0xad7   : > { %v5496_v14 = vadd.f32 %v5495_v55, %v5494_v39  ;;  %v5267_v39 = vmul.f32 1.442695, %v5076_v10  ;;  %v11430_v20 = vpop.eup %8571  ;;  %v5513_v51 = vsel %vm2017_vm10, %v11426_v8, 0.0 }
 0xad8   : > { %v5515_v37 = vsel %vm2017_vm10, %v11430_v20, 0.0 }
 0xad9   : > { %v5498_v58 = vadd.f32 %v5497_v33, %v5496_v14  ;;  %v8574_v14 = vpop.eup %8573  ;;  %8583 = vpow2.f32 %v5267_v39 }
 0xadb   : > { %v5500_v61 = vadd.f32 %v5499_v32, %v5498_v58  ;;  %v8576_v29 = vpop.eup %8575  ;;  %v5517_v32 = vsel %vm2017_vm10, %v8574_v14, 0.0 }
 0xadd   : > { %v5502_v46 = vadd.f32 %v5501_v38, %v5500_v61  ;;  %v8578_v43 = vpop.eup %8577  ;;  %v5519_v61 = vsel %vm2017_vm10, %v8576_v29, 0.0 }
 0xade   : > { %v5521_v52 = vsel %vm2017_vm10, %v8578_v43, 0.0 }
 0xadf   : > { %v5504_v7 = vadd.f32 %v5503_v53, %v5502_v46  ;;  %v8580_v38 = vpop.eup %8579 }
 0xae0   : > { %v8582_v46 = vpop.eup %8581  ;;  %v5523_v6 = vsel %vm2017_vm10, %v8580_v38, 0.0 }
 0xae1   : > { %v5506_v40 = vadd.f32 %v5505_v18, %v5504_v7  ;;  %v5525_v18 = vsel %vm2017_vm10, %v8582_v46, 0.0 }
 0xae3   : > { %v5508_v59 = vadd.f32 %v5507_v50, %v5506_v40  ;;  %v8584_v27 = vpop.eup %8583 }
 0xae4   : > { %v5527_v57 = vsel %vm2017_vm10, %v8584_v27, 0.0 }
 0xae5   : > { %v5510_v55 = vadd.f32 %v5509_v16, %v5508_v59 }
 0xae7   : > { %v5512_v56 = vadd.f32 %v5511_v0, %v5510_v55 }
 0xae9   : > { %v5514_v33 = vadd.f32 %v5513_v51, %v5512_v56 }
 0xaeb   : > { %v5516_v58 = vadd.f32 %v5515_v37, %v5514_v33 }
 0xaed   : > { %v5518_v2 = vadd.f32 %v5517_v32, %v5516_v58 }
 0xaef   : > { %v5520_v13 = vadd.f32 %v5519_v61, %v5518_v2 }
 0xaf1   : > { %v5522_v53 = vadd.f32 %v5521_v52, %v5520_v13 }
 0xaf3   : > { %v5524_v7 = vadd.f32 %v5523_v6, %v5522_v53 }
 0xaf5   : > { %v5526_v10 = vadd.f32 %v5525_v18, %v5524_v7 }
 0xaf7   : > { %v5528_v40 = vadd.f32 %v5527_v57, %v5526_v10 }
 0xaf9   : > { %v5529_v54 = vrot.slane %v5528_v40, 4 }
 0xafb   : > { %v5530_v55 = vadd.f32 %v5529_v54, %v5528_v40 }
 0xafc   : > { %v7860_v50 = vpop.f32.mrb[72].mxu1 }
 0xafd   : > { %v7861_v59 = vpop.f32.mrb[73].mxu1  ;;  %v5531_v51 = vrot.slane %v5530_v55, 2 }
 0xafe   : > { %v11442_v16 = vadd.f32 %v7861_v59, %v7860_v50  ;;  %v7863_v39 = vpop.f32.mrb[74].mxu1 }
 0xaff   : > { %v7864_v0 = vpop.f32.mrb[75].mxu1  ;;  %v5532_v33 = vadd.f32 %v5531_v51, %v5530_v55 }
 0xb00   : > { %v11444_v56 = vadd.f32 %v7864_v0, %v7863_v39  ;;  %8098 = vmatprep.mubr.msk.f32.mxu0 %vm2105_vm3, %v11442_v16 }
 0xb01   : > { %v5533_v37 = vrot.slane %v5532_v33, 1 }
 0xb02   : > { %8099 = vmatmul.mubr.msk.f32.vlgmr.msra.gmra.mrb[82].mxu0 %vm2105_vm3, %v11444_v56 }
 0xb03   : > { %v5534_v58 = vadd.f32 %v5533_v37, %v5532_v33 }
 0xb05   : > { %8585 = vrcp.f32 %v5534_v58 }
 0xb0f   : > { %v8586_v32 = vpop.eup %8585 }
 0xb10   : > { %v5725_v2 = vmul.f32 %v8586_v32, %v11380_v35  ;;  %v5726_v61 = vmul.f32 %v8586_v32, %v11386_v31  ;;  %v5709_v13 = vmul.f32 %v8586_v32, %v11290_v45  ;;  %v5710_v52 = vmul.f32 %v8586_v32, %v11292_v63 }
 0xb11   : > { %v5727_v53 = vmul.f32 %v8586_v32, %v11392_v47  ;;  %v5728_v6 = vmul.f32 %v8586_v32, %v11398_v21  ;;  %v5711_v7 = vmul.f32 %v8586_v32, %v11296_v25  ;;  %v5712_v18 = vmul.f32 %v8586_v32, %v11302_v60 }
 0xb12   : > { %v6141_v10 = vpack.c.bf16 %v5726_v61, %v5725_v2  ;;  %v6133_v57 = vpack.c.bf16 %v5710_v52, %v5709_v13  ;;  %v5729_v40 = vmul.f32 %v8586_v32, %v11404_v19  ;;  %v5730_v35 = vmul.f32 %v8586_v32, %v11410_v24  ;;  %v11552_v13 = vld [vmem:[#allocation3 + $0x200] sm:$0xff] }
 0xb13   : > { %v6142_v50 = vpack.c.bf16 %v5728_v6, %v5727_v53  ;;  %v5731_v63 = vmul.f32 %v8586_v32, %v11416_v17  ;;  %v5732_v31 = vmul.f32 %v8586_v32, %v11422_v12  ;;  %v5713_v47 = vmul.f32 %v8586_v32, %v11308_v5 }
 0xb14   : > { %6214 = vxpose.xlu0.c.b16.start [1/8] (narrow) %v6141_v10, 16  ;;  %6198 = vxpose.xlu1.c.b16.start [1/8] (narrow) %v6133_v57, 16  ;;  %v6143_v45 = vpack.c.bf16 %v5730_v35, %v5729_v40  ;;  %v5714_v25 = vmul.f32 %v8586_v32, %v11314_v48  ;;  %v5733_v60 = vmul.f32 %v8586_v32, %v11426_v8  ;;  %v4875_v53 = vsel %vm2017_vm10, %v11552_v13, -inf }
 0xb15   : > { %v6134_v21 = vpack.c.bf16 %v5712_v18, %v5711_v7  ;;  %v6144_v54 = vpack.c.bf16 %v5732_v31, %v5731_v63  ;;  %v5734_v19 = vmul.f32 %v8586_v32, %v11430_v20  ;;  %v5735_v59 = vmul.f32 %v8586_v32, %v8574_v14 }
 0xb16   : > { %v5736_v24 = vmul.f32 %v8586_v32, %v8576_v29  ;;  %v6135_v55 = vpack.c.bf16 %v5714_v25, %v5713_v47  ;;  %v5737_v17 = vmul.f32 %v8586_v32, %v8578_v43  ;;  %v5738_v51 = vmul.f32 %v8586_v32, %v8580_v38 }
 0xb17   : > { %v6145_v39 = vpack.c.bf16 %v5734_v19, %v5733_v60  ;;  %v5715_v12 = vmul.f32 %v8586_v32, %v11320_v4  ;;  %v5716_v5 = vmul.f32 %v8586_v32, %v11326_v23  ;;  %v5739_v48 = vmul.f32 %v8586_v32, %v8582_v46 }
 0xb18   : > { %6215 = vxpose.xlu0.c.b16.cont [2/8] (narrow) %v6142_v50, 16  ;;  %6199 = vxpose.xlu1.c.b16.cont [2/8] (narrow) %v6134_v21, 16  ;;  %v6146_v0 = vpack.c.bf16 %v5736_v24, %v5735_v59  ;;  %v5740_v33 = vmul.f32 %v8586_v32, %v8584_v27  ;;  %v6147_v8 = vpack.c.bf16 %v5738_v51, %v5737_v17 }
 0xb19   : > { %v6136_v20 = vpack.c.bf16 %v5716_v5, %v5715_v12  ;;  %v5717_v14 = vmul.f32 %v8586_v32, %v11332_v3  ;;  %v5718_v29 = vmul.f32 %v8586_v32, %v11338_v41  ;;  %v5719_v43 = vmul.f32 %v8586_v32, %v11344_v1  ;;  %v7682_v1 = vld [vmem:[%s10917_s21 + $0x188] sm:$0xff] }
 0xb1a   : > { %v6148_v37 = vpack.c.bf16 %v5740_v33, %v5739_v48  ;;  %v5720_v4 = vmul.f32 %v8586_v32, %v11352_v36  ;;  %v5721_v38 = vmul.f32 %v8586_v32, %v11356_v11  ;;  %v5722_v46 = vmul.f32 %v8586_v32, %v11362_v22 }
 0xb1b   : > { %v6137_v58 = vpack.c.bf16 %v5718_v29, %v5717_v14  ;;  %v5723_v3 = vmul.f32 %v8586_v32, %v11368_v34  ;;  %v5724_v41 = vmul.f32 %v8586_v32, %v11374_v44 }
 0xb1c   : > { %6216 = vxpose.xlu0.c.b16.cont [3/8] (narrow) %v6143_v45, 16  ;;  %6200 = vxpose.xlu1.c.b16.cont [3/8] (narrow) %v6135_v55, 16  ;;  %v6138_v23 = vpack.c.bf16 %v5720_v4, %v5719_v43  ;;  %v6139_v27 = vpack.c.bf16 %v5722_v46, %v5721_v38 }
 0xb1d   : > { %v6140_v2 = vpack.c.bf16 %v5724_v41, %v5723_v3 }
 0xb20   : > { %6217 = vxpose.xlu0.c.b16.cont [4/8] (narrow) %v6144_v54, 16  ;;  %6201 = vxpose.xlu1.c.b16.cont [4/8] (narrow) %v6136_v20, 16 }
 0xb24   : > { %6218 = vxpose.xlu0.c.b16.cont [5/8] (narrow) %v6145_v39, 16  ;;  %6202 = vxpose.xlu1.c.b16.cont [5/8] (narrow) %v6137_v58, 16 }
 0xb28   : > { %6219 = vxpose.xlu0.c.b16.cont [6/8] (narrow) %v6146_v0, 16  ;;  %6203 = vxpose.xlu1.c.b16.cont [6/8] (narrow) %v6138_v23, 16 }
 0xb2c   : > { %6220 = vxpose.xlu0.c.b16.cont [7/8] (narrow) %v6147_v8, 16  ;;  %6204 = vxpose.xlu1.c.b16.cont [7/8] (narrow) %v6139_v27, 16 }
 0xb30   : > { %6221 = vxpose.xlu0.c.b16.end [8/8] (narrow) %v6148_v37, 16  ;;  %6205 = vxpose.xlu1.c.b16.end [8/8] (narrow) %v6140_v2, 16 }
 0xb34   : > { %4155 = vrot.lane.b32.xlu1 %v10576_v49, %s8770_s16 }
 0xb38   : > { %4187 = vrot.lane.b32.xlu1 %v10576_v49, %s8771_s17 }
 0xb39   : > { %4153 = vrot.lane.b32.xlu0 %v10568_v42, %s8770_s16 }
 0xb3c   : > { %4219 = vrot.lane.b32.xlu1 %v10576_v49, %s8772_s18 }
 0xb3d   : > { %4185 = vrot.lane.b32.xlu0 %v10568_v42, %s8771_s17 }
 0xb40   : > { %4251 = vrot.lane.b32.xlu1 %v10576_v49, %s8773_s19 }
 0xb41   : > { %4217 = vrot.lane.b32.xlu0 %v10568_v42, %s8772_s18 }
 0xb44   : > { %4283 = vrot.lane.b32.xlu1 %v10576_v49, %s8774_s20 }
 0xb45   : > { %4249 = vrot.lane.b32.xlu0 %v10568_v42, %s8773_s19 }
 0xb48   : > { %4315 = vrot.lane.b32.xlu1 %v10576_v49, %s8775_s23 }
 0xb49   : > { %4281 = vrot.lane.b32.xlu0 %v10568_v42, %s8774_s20 }
 0xb4c   : > { %4347 = vrot.lane.b32.xlu1 %v10576_v49, %s8776_s24  ;;  %v7681_v49 = vld [vmem:[%s10917_s21 + $0x180] sm:$0xff] }
 0xb4d   : > { %4313 = vrot.lane.b32.xlu0 %v10568_v42, %s8775_s23  ;;  %v6190_v36 = vpack.c.bf16 %v7682_v1, %v7681_v49 }
 0xb50   : > { %4395 = vrot.lane.b32.xlu1 %v10582_v30, %s8770_s16 }
 0xb51   : > { %4345 = vrot.lane.b32.xlu0 %v10568_v42, %s8776_s24  ;;  %v11523_v42 = vld [vmem:[%s12716_s8 + $0x8] sm:$0xff] }
 0xb52   : > { %8101 = vmatprep.subr.mxu0 %v11523_v42  ;;  %8131 = vmatprep.subr.mxu1 %v11523_v42 }
 0xb53   : > { %8102 = vmatpush3.msra.mxu0 %v11523_v42  ;;  %8132 = vmatpush3.msra.mxu1 %v11523_v42 }
 0xb54   : > { %4427 = vrot.lane.b32.xlu1 %v10582_v30, %s8771_s17  ;;  %7872 = vmatprep.subr.bf16.mxu0 %v6190_v36 }
 0xb55   : > { %4393 = vrot.lane.b32.xlu0 %v10572_v9, %s8770_s16 }
 0xb58   : > { %4459 = vrot.lane.b32.xlu1 %v10582_v30, %s8772_s18 }
 0xb59   : > { %4425 = vrot.lane.b32.xlu0 %v10572_v9, %s8771_s17 }
 0xb5c   : > { %4491 = vrot.lane.b32.xlu1 %v10582_v30, %s8773_s19 }
 0xb5d   : > { %4457 = vrot.lane.b32.xlu0 %v10572_v9, %s8772_s18 }
 0xb60   : > { %4523 = vrot.lane.b32.xlu1 %v10582_v30, %s8774_s20 }
 0xb61   : > { %4489 = vrot.lane.b32.xlu0 %v10572_v9, %s8773_s19 }
 0xb64   : > { %4555 = vrot.lane.b32.xlu1 %v10582_v30, %s8775_s23 }
 0xb65   : > { %4521 = vrot.lane.b32.xlu0 %v10572_v9, %s8774_s20 }
 0xb68   : > { %4587 = vrot.lane.b32.xlu1 %v10582_v30, %s8776_s24  ;;  %v11550_v30 = vld [vmem:[#allocation3 + $0x208] sm:$0xff] }
 0xb69   : > { %4553 = vrot.lane.b32.xlu0 %v10572_v9, %s8775_s23  ;;  %v4876_v52 = vsel %vm2017_vm10, %v11550_v30, -inf }
 0xb6a   : > { %v4877_v10 = vmax.f32 %v4875_v53, %v4876_v52 }
 0xb6d   : > { %4585 = vrot.lane.b32.xlu0 %v10572_v9, %s8776_s24 }
 0xb7a   : > { %v11543_v11 = vpop.trf.xlu1  ;;  %v11545_v22 = vpop.trf.xlu0 }
 0xba6   : > { %v4156_v34 = vpop.permute.xlu1 %4155 }
 0xba7   : > { %4174 = vst.msk [vmem:[#allocation3 + $0x218] sm:$0xff] %vm2017_vm10, %v4156_v34 }
 0xbaa   : > { %v4188_v44 = vpop.permute.xlu1 %4187 }
 0xbab   : > { %4206 = vst.msk [vmem:[#allocation3 + $0x228] sm:$0xff] %vm2017_vm10, %v4188_v44  ;;  %v4154_v32 = vpop.permute.xlu0 %4153 }
 0xbac   : > { %4173 = vst.msk [vmem:[#allocation3 + $0x210] sm:$0xff] %vm2017_vm10, %v4154_v32 }
 0xbae   : > { %v4220_v61 = vpop.permute.xlu1 %4219  ;;  %v11560_v7 = vld [vmem:[#allocation3 + $0x218] sm:$0xff] }
 0xbaf   : > { %4238 = vst.msk [vmem:[#allocation3 + $0x238] sm:$0xff] %vm2017_vm10, %v4220_v61  ;;  %v4186_v9 = vpop.permute.xlu0 %4185  ;;  %v4880_v50 = vsel %vm2017_vm10, %v11560_v7, -inf }
 0xbb0   : > { %4205 = vst.msk [vmem:[#allocation3 + $0x220] sm:$0xff] %vm2017_vm10, %v4186_v9 }
 0xbb2   : > { %v4252_v6 = vpop.permute.xlu1 %4251  ;;  %v11570_v63 = vld [vmem:[#allocation3 + $0x228] sm:$0xff] }
 0xbb3   : > { %v11562_v18 = vld [vmem:[#allocation3 + $0x210] sm:$0xff]  ;;  %4270 = vst.msk [vmem:[#allocation3 + $0x248] sm:$0xff] %vm2017_vm10, %v4252_v6  ;;  %v4218_v57 = vpop.permute.xlu0 %4217  ;;  %v4884_v54 = vsel %vm2017_vm10, %v11570_v63, -inf }
 0xbb4   : > { %v4878_v40 = vsel %vm2017_vm10, %v11562_v18, -inf  ;;  %4237 = vst.msk [vmem:[#allocation3 + $0x230] sm:$0xff] %vm2017_vm10, %v4218_v57 }
 0xbb5   : > { %v4879_v35 = vmax.f32 %v4877_v10, %v4878_v40  ;;  %v11628_v10 = vld [vmem:[#allocation3 + $0x280] sm:$0xff] }
 0xbb6   : > { %v4284_v45 = vpop.permute.xlu1 %4283  ;;  %v11580_v59 = vld [vmem:[#allocation3 + $0x238] sm:$0xff] }
 0xbb7   : > { %v11572_v31 = vld [vmem:[#allocation3 + $0x220] sm:$0xff]  ;;  %v4881_v47 = vmax.f32 %v4879_v35, %v4880_v50  ;;  %4302 = vst.msk [vmem:[#allocation3 + $0x258] sm:$0xff] %vm2017_vm10, %v4284_v45  ;;  %v4250_v25 = vpop.permute.xlu0 %4249  ;;  %v4888_v51 = vsel %vm2017_vm10, %v11580_v59, -inf  ;;  %v11633_v45 = vld [vmem:[#allocation3 + $0x288] sm:$0xff] }
 0xbb8   : > { %v4882_v60 = vsel %vm2017_vm10, %v11572_v31, -inf  ;;  %4269 = vst.msk [vmem:[#allocation3 + $0x240] sm:$0xff] %vm2017_vm10, %v4250_v25  ;;  %v7658_v25 = vld [vmem:[%s12717_s9] ss:$0 sm:$0xff] }
 0xbb9   : > { %v4883_v21 = vmax.f32 %v4881_v47, %v4882_v60  ;;  %v4906_v60 = vsel %vm2017_vm10, %v11628_v10, -inf }
 0xbba   : > { %v4316_v19 = vpop.permute.xlu1 %4315  ;;  %v11590_v5 = vld [vmem:[#allocation3 + $0x248] sm:$0xff] }
 0xbbb   : > { %v11582_v24 = vld [vmem:[#allocation3 + $0x230] sm:$0xff]  ;;  %v4885_v39 = vmax.f32 %v4883_v21, %v4884_v54  ;;  %4334 = vst.msk [vmem:[#allocation3 + $0x268] sm:$0xff] %vm2017_vm10, %v4316_v19  ;;  %v4282_v55 = vpop.permute.xlu0 %4281  ;;  %v4892_v14 = vsel %vm2017_vm10, %v11590_v5, -inf }
 0xbbc   : > { %v4886_v0 = vsel %vm2017_vm10, %v11582_v24, -inf  ;;  %4301 = vst.msk [vmem:[#allocation3 + $0x250] sm:$0xff] %vm2017_vm10, %v4282_v55  ;;  %v4908_v55 = vsel %vm2017_vm10, %v11633_v45, -inf }
 0xbbd   : > { %v4887_v17 = vmax.f32 %v4885_v39, %v4886_v0 }
 0xbbe   : > { %v4348_v12 = vpop.permute.xlu1 %4347  ;;  %v11600_v58 = vld [vmem:[#allocation3 + $0x258] sm:$0xff] }
 0xbbf   : > { %v11592_v48 = vld [vmem:[#allocation3 + $0x240] sm:$0xff]  ;;  %v4889_v33 = vmax.f32 %v4887_v17, %v4888_v51  ;;  %4366 = vst.msk [vmem:[#allocation3 + $0x278] sm:$0xff] %vm2017_vm10, %v4348_v12  ;;  %v4314_v8 = vpop.permute.xlu0 %4313  ;;  %v4896_v27 = vsel %vm2017_vm10, %v11600_v58, -inf }
 0xbc0   : > { %v4890_v37 = vsel %vm2017_vm10, %v11592_v48, -inf  ;;  %4333 = vst.msk [vmem:[#allocation3 + $0x260] sm:$0xff] %vm2017_vm10, %v4314_v8  ;;  %v7665_v12 = vld [vmem:[%s10917_s21 + $0x100] sm:$0xff] }
 0xbc1   : > { %v4891_v20 = vmax.f32 %v4889_v33, %v4890_v37  ;;  %v7666_v33 = vld [vmem:[%s10917_s21 + $0x108] sm:$0xff] }
 0xbc2   : > { %v4396_v29 = vpop.permute.xlu1 %4395  ;;  %v11613_v49 = vld [vmem:[#allocation3 + $0x268] sm:$0xff] }
 0xbc3   : > { %v11602_v43 = vld [vmem:[#allocation3 + $0x250] sm:$0xff]  ;;  %v4893_v4 = vmax.f32 %v4891_v20, %v4892_v14  ;;  %4414 = vst.msk [vmem:[#allocation3 + $0x298] sm:$0xff] %vm2017_vm10, %v4396_v29  ;;  %v4346_v23 = vpop.permute.xlu0 %4345  ;;  %v4900_v32 = vsel %vm2017_vm10, %v11613_v49, -inf }
 0xbc4   : > { %v4894_v38 = vsel %vm2017_vm10, %v11602_v43, -inf  ;;  %4365 = vst.msk [vmem:[#allocation3 + $0x270] sm:$0xff] %vm2017_vm10, %v4346_v23  ;;  %v7683_v29 = vld [vmem:[%s10917_s21 + $0x190] sm:$0xff] }
 0xbc5   : > { %v4895_v46 = vmax.f32 %v4893_v4, %v4894_v38  ;;  %v7684_v4 = vld [vmem:[%s10917_s21 + $0x198] sm:$0xff] }
 0xbc6   : > { %v4428_v3 = vpop.permute.xlu1 %4427  ;;  %v11623_v52 = vld [vmem:[#allocation3 + $0x278] sm:$0xff] }
 0xbc7   : > { %v11610_v41 = vld [vmem:[#allocation3 + $0x260] sm:$0xff]  ;;  %4446 = vst.msk [vmem:[#allocation3 + $0x2a8] sm:$0xff] %vm2017_vm10, %v4428_v3  ;;  %v4394_v2 = vpop.permute.xlu0 %4393  ;;  %v4897_v1 = vmax.f32 %v4895_v46, %v4896_v27  ;;  %v4904_v35 = vsel %vm2017_vm10, %v11623_v52, -inf  ;;  %v6182_v3 = vpack.c.bf16 %v7666_v33, %v7665_v12  ;;  %v7687_v12 = vld [vmem:[%s10917_s21 + $0x1b0] sm:$0xff] }
 0xbc8   : > { %4413 = vst.msk [vmem:[#allocation3 + $0x290] sm:$0xff] %vm2017_vm10, %v4394_v2  ;;  %v4898_v36 = vsel %vm2017_vm10, %v11610_v41, -inf }
 0xbc9   : > { %v4899_v34 = vmax.f32 %v4897_v1, %v4898_v36 }
 0xbca   : > { %v4460_v44 = vpop.permute.xlu1 %4459  ;;  %v11648_v8 = vld [vmem:[#allocation3 + $0x298] sm:$0xff] }
 0xbcb   : > { %4478 = vst.msk [vmem:[#allocation3 + $0x2b8] sm:$0xff] %vm2017_vm10, %v4460_v44  ;;  %v4426_v61 = vpop.permute.xlu0 %4425  ;;  %v11621_v9 = vld [vmem:[#allocation3 + $0x270] sm:$0xff]  ;;  %v4901_v53 = vmax.f32 %v4899_v34, %v4900_v32  ;;  %v4912_v2 = vsel %vm2017_vm10, %v11648_v8, -inf  ;;  %v6191_v32 = vpack.c.bf16 %v7684_v4, %v7683_v29 }
 0xbcc   : > { %4445 = vst.msk [vmem:[#allocation3 + $0x2a0] sm:$0xff] %vm2017_vm10, %v4426_v61  ;;  %v4902_v6 = vsel %vm2017_vm10, %v11621_v9, -inf  ;;  %v7667_v61 = vld [vmem:[%s10917_s21 + $0x110] sm:$0xff] }
 0xbcd   : > { %v4903_v57 = vmax.f32 %v4901_v53, %v4902_v6  ;;  %v7668_v53 = vld [vmem:[%s10917_s21 + $0x118] sm:$0xff] }
 0xbce   : > { %v4492_v40 = vpop.permute.xlu1 %4491  ;;  %v11659_v1 = vld [vmem:[#allocation3 + $0x2a8] sm:$0xff] }
 0xbcf   : > { %4510 = vst.msk [vmem:[#allocation3 + $0x2c8] sm:$0xff] %vm2017_vm10, %v4492_v40  ;;  %v4458_v50 = vpop.permute.xlu0 %4457  ;;  %v4905_v47 = vmax.f32 %v4903_v57, %v4904_v35  ;;  %v11641_v21 = vld [vmem:[#allocation3 + $0x290] sm:$0xff]  ;;  %v7685_v57 = vld [vmem:[%s10917_s21 + $0x1a0] sm:$0xff]  ;;  %v7686_v40 = vld [vmem:[%s10917_s21 + $0x1a8] sm:$0xff] }
 0xbd0   : > { %4477 = vst.msk [vmem:[#allocation3 + $0x2b0] sm:$0xff] %vm2017_vm10, %v4458_v50  ;;  %v4910_v14 = vsel %vm2017_vm10, %v11641_v21, -inf }
 0xbd1   : > { %v4907_v54 = vmax.f32 %v4905_v47, %v4906_v60  ;;  %v6183_v60 = vpack.c.bf16 %v7668_v53, %v7667_v61 }
 0xbd2   : > { %v4524_v19 = vpop.permute.xlu1 %4523 }
 0xbd3   : > { %4542 = vst.msk [vmem:[#allocation3 + $0x2d8] sm:$0xff] %vm2017_vm10, %v4524_v19  ;;  %v4490_v0 = vpop.permute.xlu0 %4489  ;;  %v4909_v37 = vmax.f32 %v4907_v54, %v4908_v55  ;;  %v11655_v23 = vld [vmem:[#allocation3 + $0x2a0] sm:$0xff]  ;;  %v11676_v54 = vld [vmem:[#allocation3 + $0x2b8] sm:$0xff]  ;;  %v6192_v55 = vpack.c.bf16 %v7686_v40, %v7685_v57 }
 0xbd4   : > { %4509 = vst.msk [vmem:[#allocation3 + $0x2c0] sm:$0xff] %vm2017_vm10, %v4490_v0  ;;  %v4914_v6 = vsel %vm2017_vm10, %v11655_v23, -inf  ;;  %v7669_v0 = vld [vmem:[%s10917_s21 + $0x120] sm:$0xff] }
 0xbd5   : > { %v8100_v39 = vpop.f32.mrb[82].mxu0  ;;  %v4911_v38 = vmax.f32 %v4909_v37, %v4910_v14 }
 0xbd6   : > { %v6026_v17 = vadd.f32 %v8100_v39, %v7658_v25  ;;  %v6020_v51 = vpop.f32.mrb[83].mxu0  ;;  %v4556_v46 = vpop.permute.xlu1 %4555  ;;  %v11690_v29 = vld [vmem:[#allocation3 + $0x2c8] sm:$0xff] }
 0xbd7   : > { %v6021_v20 = vadd.f32 %v7658_v25, %v6020_v51  ;;  %4574 = vst.msk [vmem:[#allocation3 + $0x2e8] sm:$0xff] %vm2017_vm10, %v4556_v46  ;;  %v4522_v34 = vpop.permute.xlu0 %4521  ;;  %v4913_v44 = vmax.f32 %v4911_v38, %v4912_v2  ;;  %v11670_v35 = vld [vmem:[#allocation3 + $0x2b0] sm:$0xff]  ;;  %v4916_v25 = vsel %vm2017_vm10, %v11659_v1, -inf  ;;  %v4924_v61 = vsel %vm2017_vm10, %v11690_v29, -inf }
 0xbd8   : > { %v6030_v36 = vmax.f32 %v6026_v17, 0.0  ;;  %4541 = vst.msk [vmem:[#allocation3 + $0x2d0] sm:$0xff] %vm2017_vm10, %v4522_v34  ;;  %v7670_v17 = vld [vmem:[%s10917_s21 + $0x128] sm:$0xff]  ;;  %v4918_v51 = vsel %vm2017_vm10, %v11670_v35, -inf }
 0xbd9   : > { %v6029_v27 = vmax.f32 %v6021_v20, 0.0  ;;  %v4915_v50 = vmax.f32 %v4913_v44, %v4914_v6  ;;  %v4920_v20 = vsel %vm2017_vm10, %v11676_v54, -inf  ;;  %v6184_v14 = vpack.c.bf16 %v7670_v17, %v7669_v0  ;;  %v7690_v34 = vld [vmem:[%s10917_s21 + $0x1c8] sm:$0xff] }
 0xbda   : > { %v4588_v47 = vpop.permute.xlu1 %4587  ;;  %v11703_v6 = vld [vmem:[#allocation3 + $0x2d8] sm:$0xff] }
 0xbdb   : > { %8103 = vmatprep.mubr.msk.f32.mxu0 %vm2105_vm3, %v6029_v27  ;;  %4606 = vst.msk [vmem:[#allocation3 + $0x2f8] sm:$0xff] %vm2017_vm10, %v4588_v47  ;;  %v4554_v19 = vpop.permute.xlu0 %4553  ;;  %v4917_v39 = vmax.f32 %v4915_v50, %v4916_v25  ;;  %v11686_v33 = vld [vmem:[#allocation3 + $0x2c0] sm:$0xff]  ;;  %v7671_v27 = vld [vmem:[%s10917_s21 + $0x130] sm:$0xff]  ;;  %v7674_v47 = vld [vmem:[%s10917_s21 + $0x148] sm:$0xff]  ;;  %v4928_v0 = vsel %vm2017_vm10, %v11703_v6, -inf }
 0xbdc   : > { %8104 = vmatmul.mubr.msk.f32.vlgmr.msra.gmra.mrb[84].mxu0 %vm2105_vm3, %v6030_v36  ;;  %4573 = vst.msk [vmem:[#allocation3 + $0x2e0] sm:$0xff] %vm2017_vm10, %v4554_v19  ;;  %v4922_v2 = vsel %vm2017_vm10, %v11686_v33, -inf  ;;  %v7689_v36 = vld [vmem:[%s10917_s21 + $0x1c0] sm:$0xff]  ;;  %v7692_v19 = vld [vmem:[%s10917_s21 + $0x1d8] sm:$0xff] }
 0xbdd   : > { %7873 = vmatpush3.bf16.msra.mxu0 %v6182_v3  ;;  %6262 = vmatprep.mubr.bf16.mxu0 %v11545_v22  ;;  %v7688_v22 = vld [vmem:[%s10917_s21 + $0x1b8] sm:$0xff]  ;;  %v4919_v37 = vmax.f32 %v4917_v39, %v4918_v51  ;;  %v6194_v40 = vpack.c.bf16 %v7690_v34, %v7689_v36  ;;  %v7673_v50 = vld [vmem:[%s10917_s21 + $0x140] sm:$0xff] }
 0xbde   : > { %7874 = vmatprep.subr.bf16.mxu0 %v6191_v32  ;;  %v6193_v46 = vpack.c.bf16 %v7688_v22, %v7687_v12  ;;  %v7672_v3 = vld [vmem:[%s10917_s21 + $0x138] sm:$0xff]  ;;  %v6186_v17 = vpack.c.bf16 %v7674_v47, %v7673_v50  ;;  %v11715_v51 = vld [vmem:[#allocation3 + $0x2e8] sm:$0xff] }
 0xbdf   : > { %v4586_v4 = vpop.permute.xlu0 %4585  ;;  %v4921_v38 = vmax.f32 %v4919_v37, %v4920_v20  ;;  %v11699_v44 = vld [vmem:[#allocation3 + $0x2d0] sm:$0xff]  ;;  %v6185_v53 = vpack.c.bf16 %v7672_v3, %v7671_v27  ;;  %v7676_v20 = vld [vmem:[%s10917_s21 + $0x158] sm:$0xff]  ;;  %v4932_v3 = vsel %vm2017_vm10, %v11715_v51, -inf }
 0xbe0   : > { %4605 = vst.msk [vmem:[#allocation3 + $0x2f0] sm:$0xff] %vm2017_vm10, %v4586_v4  ;;  %v4926_v25 = vsel %vm2017_vm10, %v11699_v44, -inf  ;;  %v7675_v37 = vld [vmem:[%s10917_s21 + $0x150] sm:$0xff]  ;;  %v7693_v4 = vld [vmem:[%s10917_s21 + $0x1e0] sm:$0xff]  ;;  %v7696_v50 = vld [vmem:[%s10917_s21 + $0x1f8] sm:$0xff] }
 0xbe1   : > { %7875 = vmatpush3.bf16.msra.mxu0 %v6183_v60  ;;  %v4923_v32 = vmax.f32 %v4921_v38, %v4922_v2  ;;  %v7691_v60 = vld [vmem:[%s10917_s21 + $0x1d0] sm:$0xff]  ;;  %v7694_v38 = vld [vmem:[%s10917_s21 + $0x1e8] sm:$0xff]  ;;  %v6187_v2 = vpack.c.bf16 %v7676_v20, %v7675_v37 }
 0xbe2   : > { %7876 = vmatprep.subr.bf16.mxu0 %v6192_v55  ;;  %v6195_v22 = vpack.c.bf16 %v7692_v19, %v7691_v60  ;;  %v11727_v36 = vld [vmem:[#allocation3 + $0x2f8] sm:$0xff] }
 0xbe3   : > { %v4925_v57 = vmax.f32 %v4923_v32, %v4924_v61  ;;  %v11711_v39 = vld [vmem:[#allocation3 + $0x2e0] sm:$0xff]  ;;  %v6196_v32 = vpack.c.bf16 %v7694_v38, %v7693_v4 }
 0xbe4   : > { %v7677_v61 = vld [vmem:[%s10917_s21 + $0x160] sm:$0xff] }
 0xbe5   : > { %7877 = vmatpush3.bf16.msra.mxu0 %v6184_v14  ;;  %v4927_v55 = vmax.f32 %v4925_v57, %v4926_v25  ;;  %v4930_v14 = vsel %vm2017_vm10, %v11711_v39, -inf  ;;  %v4936_v25 = vsel %vm2017_vm10, %v11727_v36, -inf  ;;  %v8751_v4 = vld [vmem:[%s12716_s8] sm:$0xff] }
 0xbe6   : > { %7878 = vmatprep.subr.bf16.mxu0 %v6193_v46 }
 0xbe7   : > { %v4929_v12 = vmax.f32 %v4927_v55, %v4928_v0  ;;  %v11723_v46 = vld [vmem:[#allocation3 + $0x2f0] sm:$0xff] }
 0xbe8   : > { %v4934_v57 = vsel %vm2017_vm10, %v11723_v46, -inf  ;;  %v7679_v0 = vld [vmem:[%s10917_s21 + $0x170] sm:$0xff] }
 0xbe9   : > { %7879 = vmatpush3.bf16.msra.mxu0 %v6185_v53  ;;  %v4931_v27 = vmax.f32 %v4929_v12, %v4930_v14  ;;  %v7678_v53 = vld [vmem:[%s10917_s21 + $0x168] sm:$0xff] }
 0xbea   : > { %7880 = vmatprep.subr.bf16.mxu0 %v6194_v40  ;;  %v7695_v40 = vld [vmem:[%s10917_s21 + $0x1f0] sm:$0xff]  ;;  %v6188_v60 = vpack.c.bf16 %v7678_v53, %v7677_v61 }
 0xbeb   : > { %v4933_v34 = vmax.f32 %v4931_v27, %v4932_v3  ;;  %v6197_v55 = vpack.c.bf16 %v7696_v50, %v7695_v40 }
 0xbed   : > { %7881 = vmatpush3.bf16.msra.mxu0 %v6186_v17  ;;  %v4935_v47 = vmax.f32 %v4933_v34, %v4934_v57  ;;  %v7680_v17 = vld [vmem:[%s10917_s21 + $0x178] sm:$0xff] }
 0xbee   : > { %7882 = vmatprep.subr.bf16.mxu0 %v6195_v22  ;;  %v6189_v22 = vpack.c.bf16 %v7680_v17, %v7679_v0 }
 0xbef   : > { %v4937_v19 = vmax.f32 %v4935_v47, %v4936_v25 }
 0xbf1   : > { %7883 = vmatpush3.bf16.msra.mxu0 %v6187_v2  ;;  %v4938_v12 = vrot.slane %v4937_v19, 4 }
 0xbf2   : > { %7884 = vmatprep.subr.bf16.mxu0 %v6196_v32 }
 0xbf3   : > { %v4939_v37 = vmax.f32 %v4937_v19, %v4938_v12 }
 0xbf5   : > { %7885 = vmatpush3.bf16.msra.mxu0 %v6188_v60  ;;  %v4940_v20 = vrot.slane %v4939_v37, 2 }
 0xbf6   : > { %7886 = vmatprep.subr.bf16.mxu0 %v6197_v55 }
 0xbf7   : > { %v4941_v14 = vmax.f32 %v4939_v37, %v4940_v20 }
 0xbf9   : > { %7887 = vmatpush3.bf16.msra.mxu0 %v6189_v22  ;;  %v4942_v38 = vrot.slane %v4941_v14, 1 }
 0xbfa   : > { %8106 = vmatprep.subr.mxu0 %v8751_v4 }
 0xbfb   : > { %v11743_v27 = vmax.f32 %v4941_v14, %v4942_v38 }
 0xbfc   : > { %6263 = vmatmul.mubr.bf16.vlgmr.msra.gmra.mrb[88].mxu0 %v11543_v11 }
 0xbfd   : > { %8107 = vmatpush3.msra.mxu0 %v8751_v4  ;;  %v5077_v3 = vsub.f32 %v11552_v13, %v11743_v27  ;;  %v5078_v2 = vsub.f32 %v11550_v30, %v11743_v27  ;;  %v5079_v34 = vsub.f32 %v11562_v18, %v11743_v27  ;;  %v5080_v32 = vsub.f32 %v11560_v7, %v11743_v27 }
 0xbfe   : > { %8111 = vmatprep.subr.mxu0 %v11523_v42  ;;  %v5081_v11 = vsub.f32 %v11572_v31, %v11743_v27  ;;  %v5082_v42 = vsub.f32 %v11570_v63, %v11743_v27  ;;  %v5083_v30 = vsub.f32 %v11582_v24, %v11743_v27  ;;  %v5084_v7 = vsub.f32 %v11580_v59, %v11743_v27 }
 0xbff   : > { %v5269_v61 = vmul.f32 1.442695, %v5077_v3  ;;  %v5271_v53 = vmul.f32 1.442695, %v5078_v2  ;;  %v5273_v57 = vmul.f32 1.442695, %v5079_v34  ;;  %v5085_v31 = vsub.f32 %v11592_v48, %v11743_v27 }
 0xc00   : > { %v5275_v40 = vmul.f32 1.442695, %v5080_v32  ;;  %v5277_v13 = vmul.f32 1.442695, %v5081_v11  ;;  %v5279_v18 = vmul.f32 1.442695, %v5082_v42  ;;  %v5086_v63 = vsub.f32 %v11590_v5, %v11743_v27 }
 0xc01   : > { %8587 = vpow2.f32 %v5269_v61  ;;  %v5281_v50 = vmul.f32 1.442695, %v5083_v30  ;;  %v5283_v47 = vmul.f32 1.442695, %v5084_v7  ;;  %v5087_v24 = vsub.f32 %v11602_v43, %v11743_v27 }
 0xc02   : > { %8589 = vpow2.f32 %v5271_v53  ;;  %v5285_v25 = vmul.f32 1.442695, %v5085_v31  ;;  %v5088_v19 = vsub.f32 %v11600_v58, %v11743_v27  ;;  %v5287_v48 = vmul.f32 1.442695, %v5086_v63 }
 0xc03   : > { %8591 = vpow2.f32 %v5273_v57  ;;  %v5089_v17 = vsub.f32 %v11610_v41, %v11743_v27  ;;  %v5289_v12 = vmul.f32 1.442695, %v5087_v24  ;;  %v5090_v4 = vsub.f32 %v11613_v49, %v11743_v27 }
 0xc04   : > { %8593 = vpow2.f32 %v5275_v40  ;;  %v5291_v20 = vmul.f32 1.442695, %v5088_v19  ;;  %v5091_v34 = vsub.f32 %v11621_v9, %v11743_v27  ;;  %v5092_v49 = vsub.f32 %v11623_v52, %v11743_v27 }
 0xc05   : > { %8595 = vpow2.f32 %v5277_v13  ;;  %v5293_v41 = vmul.f32 1.442695, %v5089_v17  ;;  %v5295_v53 = vmul.f32 1.442695, %v5090_v4  ;;  %v5093_v9 = vsub.f32 %v11628_v10, %v11743_v27 }
 0xc06   : > { %8597 = vpow2.f32 %v5279_v18  ;;  %v5297_v30 = vmul.f32 1.442695, %v5091_v34  ;;  %v5094_v52 = vsub.f32 %v11633_v45, %v11743_v27  ;;  %v5299_v31 = vmul.f32 1.442695, %v5092_v49 }
 0xc07   : > { %8599 = vpow2.f32 %v5281_v50  ;;  %v5095_v10 = vsub.f32 %v11641_v21, %v11743_v27  ;;  %v5301_v24 = vmul.f32 1.442695, %v5093_v9  ;;  %v5096_v45 = vsub.f32 %v11648_v8, %v11743_v27 }
 0xc08   : > { %8601 = vpow2.f32 %v5283_v47  ;;  %v5097_v21 = vsub.f32 %v11655_v23, %v11743_v27  ;;  %v5098_v8 = vsub.f32 %v11659_v1, %v11743_v27  ;;  %v5099_v23 = vsub.f32 %v11670_v35, %v11743_v27 }
 0xc09   : > { %8603 = vpow2.f32 %v5285_v25  ;;  %v5100_v1 = vsub.f32 %v11676_v54, %v11743_v27  ;;  %v5101_v35 = vsub.f32 %v11686_v33, %v11743_v27  ;;  %v5102_v54 = vsub.f32 %v11690_v29, %v11743_v27 }
 0xc0a   : > { %8605 = vpow2.f32 %v5287_v48  ;;  %v5311_v49 = vmul.f32 1.442695, %v5098_v8  ;;  %v5313_v9 = vmul.f32 1.442695, %v5099_v23  ;;  %v5103_v33 = vsub.f32 %v11699_v44, %v11743_v27 }
 0xc0b   : > { %v11768_v60 = vpop.eup %8587  ;;  %8607 = vpow2.f32 %v5289_v12  ;;  %v5305_v12 = vmul.f32 1.442695, %v5095_v10  ;;  %v5317_v10 = vmul.f32 1.442695, %v5101_v35  ;;  %v5104_v29 = vsub.f32 %v11703_v6, %v11743_v27 }
 0xc0c   : > { %v11770_v59 = vpop.eup %8589  ;;  %v5535_v55 = vsel %vm2017_vm10, %v11768_v60, 0.0  ;;  %8609 = vpow2.f32 %v5291_v20  ;;  %v5105_v44 = vsub.f32 %v11711_v39, %v11743_v27  ;;  %v5106_v6 = vsub.f32 %v11715_v51, %v11743_v27 }
 0xc0d   : > { %v11776_v5 = vpop.eup %8591  ;;  %v5536_v0 = vsel %vm2017_vm10, %v11770_v59, 0.0  ;;  %8611 = vpow2.f32 %v5293_v41  ;;  %v5107_v39 = vsub.f32 %v11723_v46, %v11743_v27  ;;  %v5108_v51 = vsub.f32 %v11727_v36, %v11743_v27 }
 0xc0e   : > { %v11780_v43 = vpop.eup %8593  ;;  %v5537_v22 = vadd.f32 %v5536_v0, %v5535_v55  ;;  %v5538_v58 = vsel %vm2017_vm10, %v11776_v5, 0.0  ;;  %8613 = vpow2.f32 %v5295_v53  ;;  %v5303_v55 = vmul.f32 1.442695, %v5094_v52 }
 0xc0f   : > { %v11786_v37 = vpop.eup %8595  ;;  %v5540_v38 = vsel %vm2017_vm10, %v11780_v43, 0.0  ;;  %8615 = vpow2.f32 %v5297_v30  ;;  %v5315_v52 = vmul.f32 1.442695, %v5100_v1 }
 0xc10   : > { %v5539_v14 = vadd.f32 %v5538_v58, %v5537_v22  ;;  %v11792_v3 = vpop.eup %8597  ;;  %v5542_v32 = vsel %vm2017_vm10, %v11786_v37, 0.0  ;;  %8617 = vpow2.f32 %v5299_v31 }
 0xc11   : > { %v11798_v11 = vpop.eup %8599  ;;  %v5544_v42 = vsel %vm2017_vm10, %v11792_v3, 0.0  ;;  %8619 = vpow2.f32 %v5301_v24 }
 0xc12   : > { %v5541_v2 = vadd.f32 %v5540_v38, %v5539_v14  ;;  %v11804_v57 = vpop.eup %8601  ;;  %v5546_v13 = vsel %vm2017_vm10, %v11798_v11, 0.0  ;;  %8621 = vpow2.f32 %v5303_v55  ;;  %v5307_v14 = vmul.f32 1.442695, %v5096_v45 }
 0xc13   : > { %v11810_v7 = vpop.eup %8603  ;;  %v5548_v50 = vsel %vm2017_vm10, %v11804_v57, 0.0  ;;  %8623 = vpow2.f32 %v5305_v12  ;;  %v5319_v45 = vmul.f32 1.442695, %v5102_v54  ;;  %v5321_v12 = vmul.f32 1.442695, %v5103_v33 }
 0xc14   : > { %v5543_v61 = vadd.f32 %v5542_v32, %v5541_v2  ;;  %v11816_v63 = vpop.eup %8605  ;;  %v5550_v25 = vsel %vm2017_vm10, %v11810_v7, 0.0  ;;  %v5309_v2 = vmul.f32 1.442695, %v5097_v21  ;;  %8625 = vpow2.f32 %v5307_v14 }
 0xc15   : > { %v11822_v19 = vpop.eup %8607  ;;  %v5552_v0 = vsel %vm2017_vm10, %v11816_v63, 0.0  ;;  %v5323_v14 = vmul.f32 1.442695, %v5104_v29  ;;  %v5331_v54 = vmul.f32 1.442695, %v5108_v51 }
 0xc16   : > { %v5545_v40 = vadd.f32 %v5544_v42, %v5543_v61  ;;  %v11828_v17 = vpop.eup %8609  ;;  %v5554_v58 = vsel %vm2017_vm10, %v11822_v19, 0.0  ;;  %8627 = vpow2.f32 %v5309_v2  ;;  %v5325_v2 = vmul.f32 1.442695, %v5105_v44 }
 0xc17   : > { %v11834_v20 = vpop.eup %8611  ;;  %v5556_v38 = vsel %vm2017_vm10, %v11828_v17, 0.0  ;;  %8629 = vpow2.f32 %v5311_v49  ;;  %v5327_v49 = vmul.f32 1.442695, %v5106_v6 }
 0xc18   : > { %v5547_v18 = vadd.f32 %v5546_v13, %v5545_v40  ;;  %v11840_v41 = vpop.eup %8613  ;;  %v5558_v32 = vsel %vm2017_vm10, %v11834_v20, 0.0  ;;  %8631 = vpow2.f32 %v5313_v9  ;;  %v5329_v9 = vmul.f32 1.442695, %v5107_v39 }
 0xc19   : > { %v11846_v61 = vpop.eup %8615  ;;  %v5560_v42 = vsel %vm2017_vm10, %v11840_v41, 0.0  ;;  %8633 = vpow2.f32 %v5315_v52 }
 0xc1a   : > { %v5549_v47 = vadd.f32 %v5548_v50, %v5547_v18  ;;  %v11852_v40 = vpop.eup %8617  ;;  %v5562_v13 = vsel %vm2017_vm10, %v11846_v61, 0.0  ;;  %8635 = vpow2.f32 %v5317_v10 }
 0xc1b   : > { %v11858_v18 = vpop.eup %8619  ;;  %v5564_v50 = vsel %vm2017_vm10, %v11852_v40, 0.0  ;;  %8637 = vpow2.f32 %v5319_v45 }
 0xc1c   : > { %v5551_v48 = vadd.f32 %v5550_v25, %v5549_v47  ;;  %v11864_v47 = vpop.eup %8621  ;;  %v5566_v25 = vsel %vm2017_vm10, %v11858_v18, 0.0  ;;  %8639 = vpow2.f32 %v5321_v12 }
 0xc1d   : > { %8641 = vpow2.f32 %v5323_v14 }
 0xc1e   : > { %v5553_v22 = vadd.f32 %v5552_v0, %v5551_v48  ;;  %v11870_v48 = vpop.eup %8623  ;;  %v5568_v0 = vsel %vm2017_vm10, %v11864_v47, 0.0  ;;  %8643 = vpow2.f32 %v5325_v2 }
 0xc1f   : > { %v11876_v21 = vpop.eup %8625  ;;  %8645 = vpow2.f32 %v5327_v49 }
 0xc20   : > { %v5555_v4 = vadd.f32 %v5554_v58, %v5553_v22  ;;  %v5570_v58 = vsel %vm2017_vm10, %v11870_v48, 0.0  ;;  %v11882_v8 = vpop.eup %8627  ;;  %8647 = vpow2.f32 %v5329_v9 }
 0xc21   : > { %v11888_v23 = vpop.eup %8629  ;;  %8649 = vpow2.f32 %v5331_v54 }
 0xc22   : > { %v5557_v34 = vadd.f32 %v5556_v38, %v5555_v4  ;;  %v5572_v38 = vsel %vm2017_vm10, %v11876_v21, 0.0  ;;  %v11894_v1 = vpop.eup %8631 }
 0xc23   : > { %v8634_v35 = vpop.eup %8633 }
 0xc24   : > { %v5559_v53 = vadd.f32 %v5558_v32, %v5557_v34  ;;  %v5574_v32 = vsel %vm2017_vm10, %v11882_v8, 0.0 }
 0xc26   : > { %v5561_v30 = vadd.f32 %v5560_v42, %v5559_v53  ;;  %v5576_v42 = vsel %vm2017_vm10, %v11888_v23, 0.0 }
 0xc28   : > { %v5563_v31 = vadd.f32 %v5562_v13, %v5561_v30  ;;  %v5578_v30 = vsel %vm2017_vm10, %v11894_v1, 0.0  ;;  %v8636_v13 = vpop.eup %8635 }
 0xc29   : > { %v8638_v36 = vpop.eup %8637 }
 0xc2a   : > { %v5565_v24 = vadd.f32 %v5564_v50, %v5563_v31  ;;  %v5580_v31 = vsel %vm2017_vm10, %v8634_v35, 0.0  ;;  %v5582_v50 = vsel %vm2017_vm10, %v8636_v13, 0.0  ;;  %v8640_v33 = vpop.eup %8639 }
 0xc2b   : > { %v5586_v45 = vsel %vm2017_vm10, %v8640_v33, 0.0 }
 0xc2c   : > { %v5567_v55 = vadd.f32 %v5566_v25, %v5565_v24  ;;  %v5584_v24 = vsel %vm2017_vm10, %v8638_v36, 0.0  ;;  %v8642_v25 = vpop.eup %8641 }
 0xc2d   : > { %v5588_v44 = vsel %vm2017_vm10, %v8642_v25, 0.0 }
 0xc2e   : > { %v5569_v22 = vadd.f32 %v5568_v0, %v5567_v55  ;;  %v8644_v55 = vpop.eup %8643 }
 0xc2f   : > { %v8646_v12 = vpop.eup %8645 }
 0xc30   : > { %v5571_v4 = vadd.f32 %v5570_v58, %v5569_v22  ;;  %v5590_v58 = vsel %vm2017_vm10, %v8644_v55, 0.0  ;;  %v8648_v6 = vpop.eup %8647 }
 0xc31   : > { %v5594_v2 = vsel %vm2017_vm10, %v8648_v6, 0.0 }
 0xc32   : > { %v5573_v34 = vadd.f32 %v5572_v38, %v5571_v4  ;;  %v5592_v4 = vsel %vm2017_vm10, %v8646_v12, 0.0  ;;  %v8650_v38 = vpop.eup %8649 }
 0xc34   : > { %v5575_v53 = vadd.f32 %v5574_v32, %v5573_v34  ;;  %v5596_v32 = vsel %vm2017_vm10, %v8650_v38, 0.0 }
 0xc36   : > { %v5577_v46 = vadd.f32 %v5576_v42, %v5575_v53 }
 0xc38   : > { %v5579_v52 = vadd.f32 %v5578_v30, %v5577_v46 }
 0xc3a   : > { %v5581_v27 = vadd.f32 %v5580_v31, %v5579_v52 }
 0xc3c   : > { %v5583_v10 = vadd.f32 %v5582_v50, %v5581_v27 }
 0xc3e   : > { %v5585_v29 = vadd.f32 %v5584_v24, %v5583_v10 }
 0xc40   : > { %v5587_v0 = vadd.f32 %v5586_v45, %v5585_v29 }
 0xc42   : > { %v5589_v22 = vadd.f32 %v5588_v44, %v5587_v0 }
 0xc44   : > { %v5591_v14 = vadd.f32 %v5590_v58, %v5589_v22 }
 0xc46   : > { %v5593_v39 = vadd.f32 %v5592_v4, %v5591_v14 }
 0xc48   : > { %v5595_v34 = vadd.f32 %v5594_v2, %v5593_v39 }
 0xc4a   : > { %v5597_v51 = vadd.f32 %v5596_v32, %v5595_v34 }
 0xc4c   : > { %v5598_v49 = vrot.slane %v5597_v51, 4 }
 0xc4e   : > { %v5599_v53 = vadd.f32 %v5598_v49, %v5597_v51 }
 0xc50   : > { %v5600_v42 = vrot.slane %v5599_v53, 2 }
 0xc52   : > { %v5601_v9 = vadd.f32 %v5600_v42, %v5599_v53 }
 0xc54   : > { %v5602_v46 = vrot.slane %v5601_v9, 1 }
 0xc56   : > { %v5603_v30 = vadd.f32 %v5602_v46, %v5601_v9 }
 0xc58   : > { %8651 = vrcp.f32 %v5603_v30 }
 0xc62   : > { %v8652_v54 = vpop.eup %8651 }
 0xc63   : > { %v5757_v52 = vmul.f32 %v8652_v54, %v11858_v18  ;;  %v5758_v31 = vmul.f32 %v8652_v54, %v11864_v47  ;;  %v5741_v27 = vmul.f32 %v8652_v54, %v11768_v60  ;;  %v5742_v50 = vmul.f32 %v8652_v54, %v11770_v59 }
 0xc64   : > { %v5759_v10 = vmul.f32 %v8652_v54, %v11870_v48  ;;  %v5760_v24 = vmul.f32 %v8652_v54, %v11876_v21  ;;  %v5743_v29 = vmul.f32 %v8652_v54, %v11776_v5  ;;  %v5744_v45 = vmul.f32 %v8652_v54, %v11780_v43 }
 0xc65   : > { %v6457_v0 = vpack.c.bf16 %v5758_v31, %v5757_v52  ;;  %v6449_v44 = vpack.c.bf16 %v5742_v50, %v5741_v27  ;;  %v5761_v22 = vmul.f32 %v8652_v54, %v11882_v8  ;;  %v5762_v18 = vmul.f32 %v8652_v54, %v11888_v23  ;;  %v12015_v52 = vld [vmem:[#allocation3 + $0x308] sm:$0xff]  ;;  %v12017_v27 = vld [vmem:[#allocation3 + $0x300] sm:$0xff] }
 0xc66   : > { %v6458_v58 = vpack.c.bf16 %v5760_v24, %v5759_v10  ;;  %v5763_v59 = vmul.f32 %v8652_v54, %v11894_v1  ;;  %v5764_v47 = vmul.f32 %v8652_v54, %v8634_v35  ;;  %v5745_v48 = vmul.f32 %v8652_v54, %v11786_v37 }
 0xc67   : > { %6530 = vxpose.xlu0.c.b16.start [1/8] (narrow) %v6457_v0, 16  ;;  %6514 = vxpose.xlu1.c.b16.start [1/8] (narrow) %v6449_v44, 16  ;;  %v6459_v60 = vpack.c.bf16 %v5762_v18, %v5761_v22  ;;  %v5746_v21 = vmul.f32 %v8652_v54, %v11792_v3  ;;  %v5765_v5 = vmul.f32 %v8652_v54, %v8636_v13  ;;  %v4945_v10 = vsel %vm2017_vm10, %v12015_v52, -inf }
 0xc68   : > { %v6450_v14 = vpack.c.bf16 %v5744_v45, %v5743_v29  ;;  %v6460_v43 = vpack.c.bf16 %v5764_v47, %v5763_v59  ;;  %v5766_v4 = vmul.f32 %v8652_v54, %v8638_v36  ;;  %v5767_v39 = vmul.f32 %v8652_v54, %v8640_v33 }
 0xc69   : > { %v5768_v2 = vmul.f32 %v8652_v54, %v8642_v25  ;;  %v6451_v23 = vpack.c.bf16 %v5746_v21, %v5745_v48  ;;  %v5769_v32 = vmul.f32 %v8652_v54, %v8644_v55  ;;  %v5770_v51 = vmul.f32 %v8652_v54, %v8646_v12 }
 0xc6a   : > { %v6461_v8 = vpack.c.bf16 %v5766_v4, %v5765_v5  ;;  %v5747_v1 = vmul.f32 %v8652_v54, %v11798_v11  ;;  %v5748_v35 = vmul.f32 %v8652_v54, %v11804_v57  ;;  %v5771_v37 = vmul.f32 %v8652_v54, %v8648_v6 }
 0xc6b   : > { %6531 = vxpose.xlu0.c.b16.cont [2/8] (narrow) %v6458_v58, 16  ;;  %6515 = vxpose.xlu1.c.b16.cont [2/8] (narrow) %v6450_v14, 16  ;;  %v6462_v34 = vpack.c.bf16 %v5768_v2, %v5767_v39  ;;  %v5772_v49 = vmul.f32 %v8652_v54, %v8650_v38  ;;  %v6463_v3 = vpack.c.bf16 %v5770_v51, %v5769_v32  ;;  %v4944_v24 = vsel %vm2017_vm10, %v12017_v27, -inf }
 0xc6c   : > { %v6452_v36 = vpack.c.bf16 %v5748_v35, %v5747_v1  ;;  %v5749_v33 = vmul.f32 %v8652_v54, %v11810_v7  ;;  %v5750_v25 = vmul.f32 %v8652_v54, %v11816_v63  ;;  %v5751_v55 = vmul.f32 %v8652_v54, %v11822_v19 }
 0xc6d   : > { %v6464_v13 = vpack.c.bf16 %v5772_v49, %v5771_v37  ;;  %v5752_v11 = vmul.f32 %v8652_v54, %v11828_v17  ;;  %v5753_v12 = vmul.f32 %v8652_v54, %v11834_v20  ;;  %v5754_v6 = vmul.f32 %v8652_v54, %v11840_v41 }
 0xc6e   : > { %v6453_v53 = vpack.c.bf16 %v5750_v25, %v5749_v33  ;;  %v5755_v7 = vmul.f32 %v8652_v54, %v11846_v61  ;;  %v5756_v63 = vmul.f32 %v8652_v54, %v11852_v40  ;;  %v4946_v44 = vmax.f32 %v4944_v24, %v4945_v10 }
 0xc6f   : > { %6532 = vxpose.xlu0.c.b16.cont [3/8] (narrow) %v6459_v60, 16  ;;  %6516 = vxpose.xlu1.c.b16.cont [3/8] (narrow) %v6451_v23, 16  ;;  %v6454_v57 = vpack.c.bf16 %v5752_v11, %v5751_v55  ;;  %v6455_v38 = vpack.c.bf16 %v5754_v6, %v5753_v12 }
 0xc70   : > { %v6456_v42 = vpack.c.bf16 %v5756_v63, %v5755_v7 }
 0xc73   : > { %6533 = vxpose.xlu0.c.b16.cont [4/8] (narrow) %v6460_v43, 16  ;;  %6517 = vxpose.xlu1.c.b16.cont [4/8] (narrow) %v6452_v36, 16 }
 0xc77   : > { %6534 = vxpose.xlu0.c.b16.cont [5/8] (narrow) %v6461_v8, 16  ;;  %6518 = vxpose.xlu1.c.b16.cont [5/8] (narrow) %v6453_v53, 16 }
 0xc7b   : > { %6535 = vxpose.xlu0.c.b16.cont [6/8] (narrow) %v6462_v34, 16  ;;  %6519 = vxpose.xlu1.c.b16.cont [6/8] (narrow) %v6454_v57, 16 }
 0xc7f   : > { %6536 = vxpose.xlu0.c.b16.cont [7/8] (narrow) %v6463_v3, 16  ;;  %6520 = vxpose.xlu1.c.b16.cont [7/8] (narrow) %v6455_v38, 16 }
 0xc83   : > { %6537 = vxpose.xlu0.c.b16.end [8/8] (narrow) %v6464_v13, 16  ;;  %6521 = vxpose.xlu1.c.b16.end [8/8] (narrow) %v6456_v42, 16 }
 0xc87   : > { %4159 = vrot.lane.b32.xlu1 %v10598_v15, %s8770_s16 }
 0xc8b   : > { %4191 = vrot.lane.b32.xlu1 %v10598_v15, %s8771_s17 }
 0xc8c   : > { %4157 = vrot.lane.b32.xlu0 %v10590_v28, %s8770_s16 }
 0xc8f   : > { %4223 = vrot.lane.b32.xlu1 %v10598_v15, %s8772_s18 }
 0xc90   : > { %4189 = vrot.lane.b32.xlu0 %v10590_v28, %s8771_s17 }
 0xc93   : > { %4255 = vrot.lane.b32.xlu1 %v10598_v15, %s8773_s19 }
 0xc94   : > { %4221 = vrot.lane.b32.xlu0 %v10590_v28, %s8772_s18 }
 0xc97   : > { %4287 = vrot.lane.b32.xlu1 %v10598_v15, %s8774_s20 }
 0xc98   : > { %4253 = vrot.lane.b32.xlu0 %v10590_v28, %s8773_s19 }
 0xc9b   : > { %4319 = vrot.lane.b32.xlu1 %v10598_v15, %s8775_s23 }
 0xc9c   : > { %4285 = vrot.lane.b32.xlu0 %v10590_v28, %s8774_s20 }
 0xc9f   : > { %4351 = vrot.lane.b32.xlu1 %v10598_v15, %s8776_s24 }
 0xca0   : > { %4317 = vrot.lane.b32.xlu0 %v10590_v28, %s8775_s23 }
 0xca3   : > { %4399 = vrot.lane.b32.xlu1 %v10604_v62, %s8770_s16 }
 0xca4   : > { %4349 = vrot.lane.b32.xlu0 %v10590_v28, %s8776_s24 }
 0xca7   : > { %4431 = vrot.lane.b32.xlu1 %v10604_v62, %s8771_s17 }
 0xca8   : > { %4397 = vrot.lane.b32.xlu0 %v10594_v26, %s8770_s16 }
 0xcab   : > { %4463 = vrot.lane.b32.xlu1 %v10604_v62, %s8772_s18 }
 0xcac   : > { %4429 = vrot.lane.b32.xlu0 %v10594_v26, %s8771_s17 }
 0xcaf   : > { %v11968_v19 = vpop.f32.mrb[84].mxu0  ;;  %4495 = vrot.lane.b32.xlu1 %v10604_v62, %s8773_s19 }
 0xcb0   : > { %v11970_v17 = vpop.f32.mrb[85].mxu0  ;;  %4461 = vrot.lane.b32.xlu0 %v10594_v26, %s8772_s18 }
 0xcb3   : > { %4527 = vrot.lane.b32.xlu1 %v10604_v62, %s8774_s20 }
 0xcb4   : > { %4493 = vrot.lane.b32.xlu0 %v10594_v26, %s8773_s19 }
 0xcb7   : > { %4559 = vrot.lane.b32.xlu1 %v10604_v62, %s8775_s23 }
 0xcb8   : > { %4525 = vrot.lane.b32.xlu0 %v10594_v26, %s8774_s20 }
 0xcbb   : > { %4591 = vrot.lane.b32.xlu1 %v10604_v62, %s8776_s24  ;;  %v12005_v62 = vld [vmem:[%s12716_s8 + $0x8] sm:$0xff] }
 0xcbc   : > { %4557 = vrot.lane.b32.xlu0 %v10594_v26, %s8775_s23 }
 0xcc0   : > { %4589 = vrot.lane.b32.xlu0 %v10594_v26, %s8776_s24 }
 0xccd   : > { %v12008_v26 = vpop.trf.xlu1  ;;  %v12010_v9 = vpop.trf.xlu0 }
 0xccf   : > { %v7888_v28 = vpop.f32.mrb[88].mxu0 }
 0xcd0   : > { %v7889_v15 = vpop.f32.mrb[89].mxu0 }
 0xcd1   : > { %v11994_v20 = vadd.f32 %v7889_v15, %v7888_v28  ;;  %v7891_v41 = vpop.f32.mrb[90].mxu0 }
 0xcd2   : > { %v7892_v61 = vpop.f32.mrb[91].mxu0 }
 0xcd3   : > { %v11996_v40 = vadd.f32 %v7892_v61, %v7891_v41  ;;  %8108 = vmatprep.mubr.msk.f32.mxu0 %vm2105_vm3, %v11994_v20 }
 0xcd5   : > { %8109 = vmatmul.mubr.msk.f32.vlgmr.msra.gmra.mrb[86].mxu0 %vm2105_vm3, %v11996_v40 }
 0xcd6   : > { %8112 = vmatpush3.msra.mxu0 %v12005_v62 }
 0xcf9   : > { %v4160_v46 = vpop.permute.xlu1 %4159 }
 0xcfa   : > { %4176 = vst.msk [vmem:[#allocation3 + $0x318] sm:$0xff] %vm2017_vm10, %v4160_v46 }
 0xcfd   : > { %v4192_v30 = vpop.permute.xlu1 %4191 }
 0xcfe   : > { %4208 = vst.msk [vmem:[#allocation3 + $0x328] sm:$0xff] %vm2017_vm10, %v4192_v30  ;;  %v4158_v54 = vpop.permute.xlu0 %4157 }
 0xcff   : > { %4175 = vst.msk [vmem:[#allocation3 + $0x310] sm:$0xff] %vm2017_vm10, %v4158_v54 }
 0xd01   : > { %v4224_v31 = vpop.permute.xlu1 %4223  ;;  %v12025_v45 = vld [vmem:[#allocation3 + $0x318] sm:$0xff] }
 0xd02   : > { %4240 = vst.msk [vmem:[#allocation3 + $0x338] sm:$0xff] %vm2017_vm10, %v4224_v31  ;;  %v4190_v50 = vpop.permute.xlu0 %4189  ;;  %v4949_v60 = vsel %vm2017_vm10, %v12025_v45, -inf }
 0xd03   : > { %4207 = vst.msk [vmem:[#allocation3 + $0x320] sm:$0xff] %vm2017_vm10, %v4190_v50 }
 0xd05   : > { %v4256_v29 = vpop.permute.xlu1 %4255  ;;  %v12035_v47 = vld [vmem:[#allocation3 + $0x328] sm:$0xff] }
 0xd06   : > { %v12027_v0 = vld [vmem:[#allocation3 + $0x310] sm:$0xff]  ;;  %4272 = vst.msk [vmem:[#allocation3 + $0x348] sm:$0xff] %vm2017_vm10, %v4256_v29  ;;  %v4222_v22 = vpop.permute.xlu0 %4221  ;;  %v4953_v4 = vsel %vm2017_vm10, %v12035_v47, -inf }
 0xd07   : > { %v4947_v18 = vsel %vm2017_vm10, %v12027_v0, -inf  ;;  %4239 = vst.msk [vmem:[#allocation3 + $0x330] sm:$0xff] %vm2017_vm10, %v4222_v22 }
 0xd08   : > { %v4948_v58 = vmax.f32 %v4946_v44, %v4947_v18  ;;  %v12093_v44 = vld [vmem:[#allocation3 + $0x380] sm:$0xff] }
 0xd09   : > { %v4288_v59 = vpop.permute.xlu1 %4287  ;;  %v12045_v2 = vld [vmem:[#allocation3 + $0x338] sm:$0xff] }
 0xd0a   : > { %v12037_v48 = vld [vmem:[#allocation3 + $0x320] sm:$0xff]  ;;  %v4950_v21 = vmax.f32 %v4948_v58, %v4949_v60  ;;  %4304 = vst.msk [vmem:[#allocation3 + $0x358] sm:$0xff] %vm2017_vm10, %v4288_v59  ;;  %v4254_v5 = vpop.permute.xlu0 %4253  ;;  %v4957_v1 = vsel %vm2017_vm10, %v12045_v2, -inf  ;;  %v12098_v59 = vld [vmem:[#allocation3 + $0x388] sm:$0xff] }
 0xd0b   : > { %v4951_v14 = vsel %vm2017_vm10, %v12037_v48, -inf  ;;  %4271 = vst.msk [vmem:[#allocation3 + $0x340] sm:$0xff] %vm2017_vm10, %v4254_v5  ;;  %v4975_v5 = vsel %vm2017_vm10, %v12093_v44, -inf }
 0xd0c   : > { %v4952_v43 = vmax.f32 %v4950_v21, %v4951_v14 }
 0xd0d   : > { %v4320_v39 = vpop.permute.xlu1 %4319  ;;  %v12055_v37 = vld [vmem:[#allocation3 + $0x348] sm:$0xff] }
 0xd0e   : > { %v12047_v8 = vld [vmem:[#allocation3 + $0x330] sm:$0xff]  ;;  %v4954_v23 = vmax.f32 %v4952_v43, %v4953_v4  ;;  %4336 = vst.msk [vmem:[#allocation3 + $0x368] sm:$0xff] %vm2017_vm10, %v4320_v39  ;;  %v4286_v34 = vpop.permute.xlu0 %4285  ;;  %v4961_v25 = vsel %vm2017_vm10, %v12055_v37, -inf  ;;  %v4977_v39 = vsel %vm2017_vm10, %v12098_v59, -inf }
 0xd0f   : > { %v4955_v32 = vsel %vm2017_vm10, %v12047_v8, -inf  ;;  %4303 = vst.msk [vmem:[#allocation3 + $0x350] sm:$0xff] %vm2017_vm10, %v4286_v34 }
 0xd10   : > { %v4956_v51 = vmax.f32 %v4954_v23, %v4955_v32 }
 0xd11   : > { %v4352_v35 = vpop.permute.xlu1 %4351  ;;  %v12065_v55 = vld [vmem:[#allocation3 + $0x358] sm:$0xff] }
 0xd12   : > { %v12057_v49 = vld [vmem:[#allocation3 + $0x340] sm:$0xff]  ;;  %v4958_v3 = vmax.f32 %v4956_v51, %v4957_v1  ;;  %4368 = vst.msk [vmem:[#allocation3 + $0x378] sm:$0xff] %vm2017_vm10, %v4352_v35  ;;  %v4318_v13 = vpop.permute.xlu0 %4317  ;;  %v4965_v7 = vsel %vm2017_vm10, %v12065_v55, -inf  ;;  %v7718_v35 = vld [vmem:[%s10917_s21 + $0x288] sm:$0xff] }
 0xd13   : > { %v4959_v36 = vsel %vm2017_vm10, %v12057_v49, -inf  ;;  %4335 = vst.msk [vmem:[#allocation3 + $0x360] sm:$0xff] %vm2017_vm10, %v4318_v13  ;;  %v7717_v1 = vld [vmem:[%s10917_s21 + $0x280] sm:$0xff] }
 0xd14   : > { %v4960_v33 = vmax.f32 %v4958_v3, %v4959_v36  ;;  %v6506_v36 = vpack.c.bf16 %v7718_v35, %v7717_v1 }
 0xd15   : > { %v4400_v53 = vpop.permute.xlu1 %4399  ;;  %v12078_v15 = vld [vmem:[#allocation3 + $0x368] sm:$0xff] }
 0xd16   : > { %v12067_v11 = vld [vmem:[#allocation3 + $0x350] sm:$0xff]  ;;  %v4962_v57 = vmax.f32 %v4960_v33, %v4961_v25  ;;  %4416 = vst.msk [vmem:[#allocation3 + $0x398] sm:$0xff] %vm2017_vm10, %v4400_v53  ;;  %v4350_v12 = vpop.permute.xlu0 %4349  ;;  %v4969_v54 = vsel %vm2017_vm10, %v12078_v15, -inf  ;;  %7900 = vmatprep.subr.bf16.mxu0 %v6506_v36 }
 0xd17   : > { %v4963_v6 = vsel %vm2017_vm10, %v12067_v11, -inf  ;;  %4367 = vst.msk [vmem:[#allocation3 + $0x370] sm:$0xff] %vm2017_vm10, %v4350_v12 }
 0xd18   : > { %v4964_v38 = vmax.f32 %v4962_v57, %v4963_v6 }
 0xd19   : > { %v4432_v63 = vpop.permute.xlu1 %4431  ;;  %v12088_v10 = vld [vmem:[#allocation3 + $0x378] sm:$0xff] }
 0xd1a   : > { %v12075_v42 = vld [vmem:[#allocation3 + $0x360] sm:$0xff]  ;;  %4448 = vst.msk [vmem:[#allocation3 + $0x3a8] sm:$0xff] %vm2017_vm10, %v4432_v63  ;;  %v4398_v28 = vpop.permute.xlu0 %4397  ;;  %v4966_v41 = vmax.f32 %v4964_v38, %v4965_v7  ;;  %v4973_v58 = vsel %vm2017_vm10, %v12088_v10, -inf }
 0xd1b   : > { %4415 = vst.msk [vmem:[#allocation3 + $0x390] sm:$0xff] %vm2017_vm10, %v4398_v28  ;;  %v4967_v61 = vsel %vm2017_vm10, %v12075_v42, -inf }
 0xd1c   : > { %v4968_v46 = vmax.f32 %v4966_v41, %v4967_v61 }
 0xd1d   : > { %v4464_v30 = vpop.permute.xlu1 %4463  ;;  %v12108_v34 = vld [vmem:[#allocation3 + $0x398] sm:$0xff] }
 0xd1e   : > { %4480 = vst.msk [vmem:[#allocation3 + $0x3b8] sm:$0xff] %vm2017_vm10, %v4464_v30  ;;  %v4430_v31 = vpop.permute.xlu0 %4429  ;;  %v12086_v50 = vld [vmem:[#allocation3 + $0x370] sm:$0xff]  ;;  %v4970_v24 = vmax.f32 %v4968_v46, %v4969_v54  ;;  %v4981_v25 = vsel %vm2017_vm10, %v12108_v34, -inf }
 0xd1f   : > { %4447 = vst.msk [vmem:[#allocation3 + $0x3a0] sm:$0xff] %vm2017_vm10, %v4430_v31  ;;  %v4971_v29 = vsel %vm2017_vm10, %v12086_v50, -inf }
 0xd20   : > { %v4972_v22 = vmax.f32 %v4970_v24, %v4971_v29 }
 0xd21   : > { %v4496_v18 = vpop.permute.xlu1 %4495  ;;  %v12119_v53 = vld [vmem:[#allocation3 + $0x3a8] sm:$0xff] }
 0xd22   : > { %4512 = vst.msk [vmem:[#allocation3 + $0x3c8] sm:$0xff] %vm2017_vm10, %v4496_v18  ;;  %v4462_v60 = vpop.permute.xlu0 %4461  ;;  %v4974_v21 = vmax.f32 %v4972_v22, %v4973_v58  ;;  %v12103_v14 = vld [vmem:[#allocation3 + $0x390] sm:$0xff]  ;;  %v4985_v28 = vsel %vm2017_vm10, %v12119_v53, -inf }
 0xd23   : > { %4479 = vst.msk [vmem:[#allocation3 + $0x3b0] sm:$0xff] %vm2017_vm10, %v4462_v60  ;;  %v4979_v51 = vsel %vm2017_vm10, %v12103_v14, -inf }
 0xd24   : > { %v4976_v43 = vmax.f32 %v4974_v21, %v4975_v5 }
 0xd25   : > { %v4528_v4 = vpop.permute.xlu1 %4527  ;;  %v12129_v41 = vld [vmem:[#allocation3 + $0x3b8] sm:$0xff] }
 0xd26   : > { %4544 = vst.msk [vmem:[#allocation3 + $0x3d8] sm:$0xff] %vm2017_vm10, %v4528_v4  ;;  %v4494_v23 = vpop.permute.xlu0 %4493  ;;  %v4978_v32 = vmax.f32 %v4976_v43, %v4977_v39  ;;  %v12115_v3 = vld [vmem:[#allocation3 + $0x3a0] sm:$0xff]  ;;  %v4989_v24 = vsel %vm2017_vm10, %v12129_v41, -inf }
 0xd27   : > { %4511 = vst.msk [vmem:[#allocation3 + $0x3c0] sm:$0xff] %vm2017_vm10, %v4494_v23  ;;  %v4983_v6 = vsel %vm2017_vm10, %v12115_v3, -inf }
 0xd28   : > { %v4980_v13 = vmax.f32 %v4978_v32, %v4979_v51 }
 0xd29   : > { %v4560_v33 = vpop.permute.xlu1 %4559  ;;  %v12139_v29 = vld [vmem:[#allocation3 + $0x3c8] sm:$0xff] }
 0xd2a   : > { %4576 = vst.msk [vmem:[#allocation3 + $0x3e8] sm:$0xff] %vm2017_vm10, %v4560_v33  ;;  %v4526_v57 = vpop.permute.xlu0 %4525  ;;  %v4982_v12 = vmax.f32 %v4980_v13, %v4981_v25  ;;  %v12125_v38 = vld [vmem:[#allocation3 + $0x3b0] sm:$0xff]  ;;  %v4993_v5 = vsel %vm2017_vm10, %v12139_v29, -inf }
 0xd2b   : > { %4543 = vst.msk [vmem:[#allocation3 + $0x3d0] sm:$0xff] %vm2017_vm10, %v4526_v57  ;;  %v4987_v30 = vsel %vm2017_vm10, %v12125_v38, -inf }
 0xd2c   : > { %v4984_v7 = vmax.f32 %v4982_v12, %v4983_v6 }
 0xd2d   : > { %v4592_v63 = vpop.permute.xlu1 %4591  ;;  %v12148_v43 = vld [vmem:[#allocation3 + $0x3d8] sm:$0xff] }
 0xd2e   : > { %4608 = vst.msk [vmem:[#allocation3 + $0x3f8] sm:$0xff] %vm2017_vm10, %v4592_v63  ;;  %v4558_v61 = vpop.permute.xlu0 %4557  ;;  %v4986_v46 = vmax.f32 %v4984_v7, %v4985_v28  ;;  %v12135_v54 = vld [vmem:[#allocation3 + $0x3c0] sm:$0xff]  ;;  %v4997_v51 = vsel %vm2017_vm10, %v12148_v43, -inf }
 0xd2f   : > { %4575 = vst.msk [vmem:[#allocation3 + $0x3e0] sm:$0xff] %vm2017_vm10, %v4558_v61  ;;  %v4991_v58 = vsel %vm2017_vm10, %v12135_v54, -inf }
 0xd30   : > { %v4988_v31 = vmax.f32 %v4986_v46, %v4987_v30 }
 0xd31   : > { %v12156_v1 = vld [vmem:[#allocation3 + $0x3e8] sm:$0xff] }
 0xd32   : > { %v4590_v22 = vpop.permute.xlu0 %4589  ;;  %v4990_v18 = vmax.f32 %v4988_v31, %v4989_v24  ;;  %v12144_v60 = vld [vmem:[#allocation3 + $0x3d0] sm:$0xff]  ;;  %v5001_v25 = vsel %vm2017_vm10, %v12156_v1, -inf }
 0xd33   : > { %4607 = vst.msk [vmem:[#allocation3 + $0x3f0] sm:$0xff] %vm2017_vm10, %v4590_v22  ;;  %v4995_v39 = vsel %vm2017_vm10, %v12144_v60, -inf }
 0xd34   : > { %v4992_v21 = vmax.f32 %v4990_v18, %v4991_v58 }
 0xd35   : > { %v12164_v57 = vld [vmem:[#allocation3 + $0x3f8] sm:$0xff] }
 0xd36   : > { %v4994_v4 = vmax.f32 %v4992_v21, %v4993_v5  ;;  %v12152_v23 = vld [vmem:[#allocation3 + $0x3e0] sm:$0xff]  ;;  %v5005_v63 = vsel %vm2017_vm10, %v12164_v57, -inf }
 0xd37   : > { %v4999_v13 = vsel %vm2017_vm10, %v12152_v23, -inf }
 0xd38   : > { %v4996_v32 = vmax.f32 %v4994_v4, %v4995_v39 }
 0xd3a   : > { %v4998_v35 = vmax.f32 %v4996_v32, %v4997_v51  ;;  %v12160_v36 = vld [vmem:[#allocation3 + $0x3f0] sm:$0xff] }
 0xd3b   : > { %v5003_v6 = vsel %vm2017_vm10, %v12160_v36, -inf }
 0xd3c   : > { %v5000_v33 = vmax.f32 %v4998_v35, %v4999_v13 }
 0xd3e   : > { %v5002_v12 = vmax.f32 %v5000_v33, %v5001_v25 }
 0xd40   : > { %v5004_v7 = vmax.f32 %v5002_v12, %v5003_v6 }
 0xd42   : > { %v5006_v28 = vmax.f32 %v5004_v7, %v5005_v63 }
 0xd44   : > { %v5007_v61 = vrot.slane %v5006_v28, 4 }
 0xd46   : > { %v5008_v46 = vmax.f32 %v5006_v28, %v5007_v61 }
 0xd48   : > { %v5009_v30 = vrot.slane %v5008_v46, 2 }
 0xd4a   : > { %v5010_v31 = vmax.f32 %v5008_v46, %v5009_v30 }
 0xd4c   : > { %v5011_v24 = vrot.slane %v5010_v31, 1 }
 0xd4e   : > { %v12170_v22 = vmax.f32 %v5010_v31, %v5011_v24 }
 0xd50   : > { %v5109_v18 = vsub.f32 %v12017_v27, %v12170_v22  ;;  %v5110_v58 = vsub.f32 %v12015_v52, %v12170_v22  ;;  %v5111_v21 = vsub.f32 %v12027_v0, %v12170_v22  ;;  %v5112_v5 = vsub.f32 %v12025_v45, %v12170_v22 }
 0xd51   : > { %v5113_v4 = vsub.f32 %v12037_v48, %v12170_v22  ;;  %v5114_v51 = vsub.f32 %v12035_v47, %v12170_v22  ;;  %v5115_v52 = vsub.f32 %v12047_v8, %v12170_v22  ;;  %v5116_v45 = vsub.f32 %v12045_v2, %v12170_v22 }
 0xd52   : > { %v5333_v39 = vmul.f32 1.442695, %v5109_v18  ;;  %v5335_v32 = vmul.f32 1.442695, %v5110_v58  ;;  %v5337_v35 = vmul.f32 1.442695, %v5111_v21  ;;  %v5117_v48 = vsub.f32 %v12057_v49, %v12170_v22 }
 0xd53   : > { %v5339_v13 = vmul.f32 1.442695, %v5112_v5  ;;  %v5341_v27 = vmul.f32 1.442695, %v5113_v4  ;;  %v5343_v0 = vmul.f32 1.442695, %v5114_v51  ;;  %v5118_v47 = vsub.f32 %v12055_v37, %v12170_v22 }
 0xd54   : > { %8653 = vpow2.f32 %v5333_v39  ;;  %v5345_v33 = vmul.f32 1.442695, %v5115_v52  ;;  %v5347_v25 = vmul.f32 1.442695, %v5116_v45  ;;  %v5119_v8 = vsub.f32 %v12067_v11, %v12170_v22 }
 0xd55   : > { %8655 = vpow2.f32 %v5335_v32  ;;  %v5349_v12 = vmul.f32 1.442695, %v5117_v48  ;;  %v5120_v7 = vsub.f32 %v12065_v55, %v12170_v22  ;;  %v5351_v49 = vmul.f32 1.442695, %v5118_v47 }
 0xd56   : > { %8657 = vpow2.f32 %v5337_v35  ;;  %v5121_v61 = vsub.f32 %v12075_v42, %v12170_v22  ;;  %v5353_v46 = vmul.f32 1.442695, %v5119_v8  ;;  %v5122_v58 = vsub.f32 %v12078_v15, %v12170_v22 }
 0xd57   : > { %8659 = vpow2.f32 %v5339_v13  ;;  %v5355_v24 = vmul.f32 1.442695, %v5120_v7  ;;  %v5123_v39 = vsub.f32 %v12086_v50, %v12170_v22  ;;  %v5124_v15 = vsub.f32 %v12088_v10, %v12170_v22 }
 0xd58   : > { %8661 = vpow2.f32 %v5341_v27  ;;  %v5357_v42 = vmul.f32 1.442695, %v5121_v61  ;;  %v5359_v13 = vmul.f32 1.442695, %v5122_v58  ;;  %v5125_v50 = vsub.f32 %v12093_v44, %v12170_v22 }
 0xd59   : > { %8663 = vpow2.f32 %v5343_v0  ;;  %v5361_v0 = vmul.f32 1.442695, %v5123_v39  ;;  %v5126_v10 = vsub.f32 %v12098_v59, %v12170_v22  ;;  %v5127_v44 = vsub.f32 %v12103_v14, %v12170_v22 }
 0xd5a   : > { %8665 = vpow2.f32 %v5345_v33  ;;  %v5128_v59 = vsub.f32 %v12108_v34, %v12170_v22  ;;  %v5129_v14 = vsub.f32 %v12115_v3, %v12170_v22  ;;  %v5130_v34 = vsub.f32 %v12119_v53, %v12170_v22 }
 0xd5b   : > { %8667 = vpow2.f32 %v5347_v25  ;;  %v5363_v25 = vmul.f32 1.442695, %v5124_v15  ;;  %v5131_v3 = vsub.f32 %v12125_v38, %v12170_v22  ;;  %v5132_v53 = vsub.f32 %v12129_v41, %v12170_v22 }
 0xd5c   : > { %8669 = vpow2.f32 %v5349_v12  ;;  %v5133_v38 = vsub.f32 %v12135_v54, %v12170_v22  ;;  %v5134_v41 = vsub.f32 %v12139_v29, %v12170_v22  ;;  %v5135_v54 = vsub.f32 %v12144_v60, %v12170_v22 }
 0xd5d   : > { %8671 = vpow2.f32 %v5351_v49  ;;  %v5365_v49 = vmul.f32 1.442695, %v5125_v50  ;;  %v5136_v29 = vsub.f32 %v12148_v43, %v12170_v22  ;;  %v5137_v60 = vsub.f32 %v12152_v23, %v12170_v22 }
 0xd5e   : > { %v12194_v6 = vpop.eup %8653  ;;  %8673 = vpow2.f32 %v5353_v46  ;;  %v5367_v46 = vmul.f32 1.442695, %v5126_v10  ;;  %v5138_v43 = vsub.f32 %v12156_v1, %v12170_v22  ;;  %v5139_v23 = vsub.f32 %v12160_v36, %v12170_v22 }
 0xd5f   : > { %v12196_v2 = vpop.eup %8655  ;;  %v5604_v63 = vsel %vm2017_vm10, %v12194_v6, 0.0  ;;  %8675 = vpow2.f32 %v5355_v24  ;;  %v5369_v24 = vmul.f32 1.442695, %v5127_v44  ;;  %v5140_v1 = vsub.f32 %v12164_v57, %v12170_v22 }
 0xd60   : > { %v12202_v37 = vpop.eup %8657  ;;  %v5605_v28 = vsel %vm2017_vm10, %v12196_v2, 0.0  ;;  %8677 = vpow2.f32 %v5357_v42  ;;  %v5371_v42 = vmul.f32 1.442695, %v5128_v59  ;;  %v5393_v36 = vmul.f32 1.442695, %v5139_v23 }
 0xd61   : > { %v12206_v11 = vpop.eup %8659  ;;  %v5606_v30 = vadd.f32 %v5605_v28, %v5604_v63  ;;  %v5607_v55 = vsel %vm2017_vm10, %v12202_v37, 0.0  ;;  %8679 = vpow2.f32 %v5359_v13 }
 0xd62   : > { %v12212_v31 = vpop.eup %8661  ;;  %v5609_v21 = vsel %vm2017_vm10, %v12206_v11, 0.0  ;;  %8681 = vpow2.f32 %v5361_v0 }
 0xd63   : > { %v5608_v18 = vadd.f32 %v5607_v55, %v5606_v30  ;;  %v12218_v5 = vpop.eup %8663  ;;  %v5611_v32 = vsel %vm2017_vm10, %v12212_v31, 0.0  ;;  %8683 = vpow2.f32 %v5363_v25 }
 0xd64   : > { %v12224_v51 = vpop.eup %8665  ;;  %v5613_v52 = vsel %vm2017_vm10, %v12218_v5, 0.0  ;;  %8685 = vpow2.f32 %v5365_v49 }
 0xd65   : > { %v5610_v4 = vadd.f32 %v5609_v21, %v5608_v18  ;;  %v12230_v27 = vpop.eup %8667  ;;  %v5615_v48 = vsel %vm2017_vm10, %v12224_v51, 0.0  ;;  %8687 = vpow2.f32 %v5367_v46 }
 0xd66   : > { %v12236_v33 = vpop.eup %8669  ;;  %v5617_v8 = vsel %vm2017_vm10, %v12230_v27, 0.0  ;;  %8689 = vpow2.f32 %v5369_v24 }
 0xd67   : > { %v5612_v35 = vadd.f32 %v5611_v32, %v5610_v4  ;;  %v12242_v12 = vpop.eup %8671  ;;  %v5619_v63 = vsel %vm2017_vm10, %v12236_v33, 0.0  ;;  %8691 = vpow2.f32 %v5371_v42 }
 0xd68   : > { %v12248_v28 = vpop.eup %8673  ;;  %v5621_v30 = vsel %vm2017_vm10, %v12242_v12, 0.0 }
 0xd69   : > { %v5614_v45 = vadd.f32 %v5613_v52, %v5612_v35  ;;  %v12254_v55 = vpop.eup %8675  ;;  %v5623_v58 = vsel %vm2017_vm10, %v12248_v28, 0.0  ;;  %v5373_v35 = vmul.f32 1.442695, %v5129_v14  ;;  %v5383_v14 = vmul.f32 1.442695, %v5134_v41 }
 0xd6a   : > { %v12260_v21 = vpop.eup %8677  ;;  %v5625_v39 = vsel %vm2017_vm10, %v12254_v55, 0.0 }
 0xd6b   : > { %v5616_v47 = vadd.f32 %v5615_v48, %v5614_v45  ;;  %v12266_v32 = vpop.eup %8679  ;;  %v5627_v13 = vsel %vm2017_vm10, %v12260_v21, 0.0  ;;  %v5375_v45 = vmul.f32 1.442695, %v5130_v34  ;;  %8693 = vpow2.f32 %v5373_v35 }
 0xd6c   : > { %v12272_v52 = vpop.eup %8681  ;;  %v5629_v0 = vsel %vm2017_vm10, %v12266_v32, 0.0  ;;  %v5385_v34 = vmul.f32 1.442695, %v5135_v54 }
 0xd6d   : > { %v5618_v7 = vadd.f32 %v5617_v8, %v5616_v47  ;;  %v12278_v48 = vpop.eup %8683  ;;  %v5377_v47 = vmul.f32 1.442695, %v5131_v3  ;;  %v5631_v25 = vsel %vm2017_vm10, %v12272_v52, 0.0  ;;  %8695 = vpow2.f32 %v5375_v45 }
 0xd6e   : > { %v12284_v8 = vpop.eup %8685  ;;  %v5633_v49 = vsel %vm2017_vm10, %v12278_v48, 0.0  ;;  %v5387_v3 = vmul.f32 1.442695, %v5136_v29 }
 0xd6f   : > { %v5620_v61 = vadd.f32 %v5619_v63, %v5618_v7  ;;  %v5379_v7 = vmul.f32 1.442695, %v5132_v53  ;;  %v12290_v63 = vpop.eup %8687  ;;  %8697 = vpow2.f32 %v5377_v47  ;;  %v5635_v46 = vsel %vm2017_vm10, %v12284_v8, 0.0 }
 0xd70   : > { %v5389_v53 = vmul.f32 1.442695, %v5137_v60 }
 0xd71   : > { %v5622_v18 = vadd.f32 %v5621_v30, %v5620_v61  ;;  %v5381_v61 = vmul.f32 1.442695, %v5133_v38  ;;  %v12296_v30 = vpop.eup %8689  ;;  %8699 = vpow2.f32 %v5379_v7  ;;  %v5391_v38 = vmul.f32 1.442695, %v5138_v43 }
 0xd73   : > { %v5624_v4 = vadd.f32 %v5623_v58, %v5622_v18  ;;  %v5637_v18 = vsel %vm2017_vm10, %v12290_v63, 0.0  ;;  %v12302_v58 = vpop.eup %8691  ;;  %8701 = vpow2.f32 %v5381_v61 }
 0xd74   : > { %8703 = vpow2.f32 %v5383_v14 }
 0xd75   : > { %v5626_v15 = vadd.f32 %v5625_v39, %v5624_v4  ;;  %v5639_v4 = vsel %vm2017_vm10, %v12296_v30, 0.0  ;;  %v12308_v39 = vpop.eup %8693  ;;  %8705 = vpow2.f32 %v5385_v34 }
 0xd76   : > { %8707 = vpow2.f32 %v5387_v3 }
 0xd77   : > { %v5628_v50 = vadd.f32 %v5627_v13, %v5626_v15  ;;  %v5641_v15 = vsel %vm2017_vm10, %v12302_v58, 0.0  ;;  %v12314_v13 = vpop.eup %8695  ;;  %8709 = vpow2.f32 %v5389_v53 }
 0xd78   : > { %8711 = vpow2.f32 %v5391_v38 }
 0xd79   : > { %v5630_v10 = vadd.f32 %v5629_v0, %v5628_v50  ;;  %v5643_v50 = vsel %vm2017_vm10, %v12308_v39, 0.0  ;;  %v12320_v0 = vpop.eup %8697  ;;  %8713 = vpow2.f32 %v5393_v36 }
 0xd7a   : > { %v5647_v7 = vsel %vm2017_vm10, %v12320_v0, 0.0 }
 0xd7b   : > { %v5632_v44 = vadd.f32 %v5631_v25, %v5630_v10  ;;  %v5645_v10 = vsel %vm2017_vm10, %v12314_v13, 0.0  ;;  %v12326_v25 = vpop.eup %8699 }
 0xd7c   : > { %v5649_v57 = vsel %vm2017_vm10, %v12326_v25, 0.0 }
 0xd7d   : > { %v5634_v59 = vadd.f32 %v5633_v49, %v5632_v44  ;;  %v12330_v44 = vpop.eup %8701  ;;  %v5395_v49 = vmul.f32 1.442695, %v5140_v1 }
 0xd7e   : > { %v12334_v22 = vpop.eup %8703 }
 0xd7f   : > { %v5636_v24 = vadd.f32 %v5635_v46, %v5634_v59  ;;  %v5651_v59 = vsel %vm2017_vm10, %v12330_v44, 0.0  ;;  %v12338_v46 = vpop.eup %8705  ;;  %8715 = vpow2.f32 %v5395_v49  ;;  %v5653_v14 = vsel %vm2017_vm10, %v12334_v22, 0.0 }
 0xd80   : > { %v5655_v60 = vsel %vm2017_vm10, %v12338_v46, 0.0 }
 0xd81   : > { %v5638_v42 = vadd.f32 %v5637_v18, %v5636_v24  ;;  %v12342_v24 = vpop.eup %8707 }
 0xd82   : > { %v12346_v34 = vpop.eup %8709 }
 0xd83   : > { %v5640_v35 = vadd.f32 %v5639_v4, %v5638_v42  ;;  %v5657_v4 = vsel %vm2017_vm10, %v12342_v24, 0.0  ;;  %v12350_v43 = vpop.eup %8711 }
 0xd84   : > { %v5661_v53 = vsel %vm2017_vm10, %v12350_v43, 0.0 }
 0xd85   : > { %v5642_v45 = vadd.f32 %v5641_v15, %v5640_v35  ;;  %v5659_v35 = vsel %vm2017_vm10, %v12346_v34, 0.0  ;;  %v12354_v15 = vpop.eup %8713 }
 0xd86   : > { %v5663_v1 = vsel %vm2017_vm10, %v12354_v15, 0.0 }
 0xd87   : > { %v5644_v47 = vadd.f32 %v5643_v50, %v5642_v45 }
 0xd89   : > { %v5646_v41 = vadd.f32 %v5645_v10, %v5644_v47  ;;  %v12358_v45 = vpop.eup %8715 }
 0xd8a   : > { %v5665_v47 = vsel %vm2017_vm10, %v12358_v45, 0.0  ;;  %vm7128_vm10 = vcmask 326916  }
 0xd8b   : > { %v5648_v54 = vadd.f32 %v5647_v7, %v5646_v41  ;;  %v12367_v41 = vld [vmem:[%s12717_s9] ss:$0 sm:$0xff] }
 0xd8d   : > { %v5650_v61 = vadd.f32 %v5649_v57, %v5648_v54  ;;  %v7701_v54 = vld [vmem:[%s10917_s21 + $0x200] sm:$0xff]  ;;  %v7702_v57 = vld [vmem:[%s10917_s21 + $0x208] sm:$0xff] }
 0xd8f   : > { %v5652_v29 = vadd.f32 %v5651_v59, %v5650_v61  ;;  %v7719_v59 = vld [vmem:[%s10917_s21 + $0x290] sm:$0xff] }
 0xd91   : > { %v5654_v18 = vadd.f32 %v5653_v14, %v5652_v29  ;;  %v7720_v29 = vld [vmem:[%s10917_s21 + $0x298] sm:$0xff] }
 0xd93   : > { %v5656_v42 = vadd.f32 %v5655_v60, %v5654_v18  ;;  %v6498_v60 = vpack.c.bf16 %v7702_v57, %v7701_v54  ;;  %v7723_v54 = vld [vmem:[%s10917_s21 + $0x2b0] sm:$0xff]  ;;  %v7724_v57 = vld [vmem:[%s10917_s21 + $0x2b8] sm:$0xff] }
 0xd95   : > { %v5658_v3 = vadd.f32 %v5657_v4, %v5656_v42 }
 0xd97   : > { %v5660_v23 = vadd.f32 %v5659_v35, %v5658_v3  ;;  %v6507_v3 = vpack.c.bf16 %v7720_v29, %v7719_v59  ;;  %v7703_v35 = vld [vmem:[%s10917_s21 + $0x210] sm:$0xff]  ;;  %v6509_v29 = vpack.c.bf16 %v7724_v57, %v7723_v54 }
 0xd99   : > { %v5662_v50 = vadd.f32 %v5661_v53, %v5660_v23  ;;  %v7704_v23 = vld [vmem:[%s10917_s21 + $0x218] sm:$0xff]  ;;  %v7721_v53 = vld [vmem:[%s10917_s21 + $0x2a0] sm:$0xff] }
 0xd9b   : > { %v5664_v38 = vadd.f32 %v5663_v1, %v5662_v50  ;;  %v7722_v50 = vld [vmem:[%s10917_s21 + $0x2a8] sm:$0xff] }
 0xd9d   : > { %v5666_v36 = vadd.f32 %v5665_v47, %v5664_v38  ;;  %v6499_v38 = vpack.c.bf16 %v7704_v23, %v7703_v35  ;;  %v7709_v35 = vld [vmem:[%s10917_s21 + $0x240] sm:$0xff]  ;;  %v7710_v23 = vld [vmem:[%s10917_s21 + $0x248] sm:$0xff] }
 0xd9f   : > { %v5667_v14 = vrot.slane %v5666_v36, 4 }
 0xda1   : > { %v5668_v42 = vadd.f32 %v5667_v14, %v5666_v36  ;;  %v7705_v36 = vld [vmem:[%s10917_s21 + $0x220] sm:$0xff]  ;;  %v7707_v14 = vld [vmem:[%s10917_s21 + $0x230] sm:$0xff] }
 0xda3   : > { %v5669_v1 = vrot.slane %v5668_v42, 2 }
 0xda5   : > { %v5670_v47 = vadd.f32 %v5669_v1, %v5668_v42 }
 0xda8   : > { %v8110_v10 = vpop.f32.mrb[86].mxu0 }
 0xda9   : > { %v6349_v7 = vadd.f32 %v12367_v41, %v8110_v10  ;;  %v6343_v49 = vpop.f32.mrb[87].mxu0  ;;  %v6508_v10 = vpack.c.bf16 %v7722_v50, %v7721_v53  ;;  %v7727_v53 = vld [vmem:[%s10917_s21 + $0x2d0] sm:$0xff]  ;;  %v7728_v50 = vld [vmem:[%s10917_s21 + $0x2d8] sm:$0xff] }
 0xdaa   : > { %v6344_v61 = vadd.f32 %v12367_v41, %v6343_v49  ;;  %v5671_v49 = vrot.slane %v5670_v47, 1 }
 0xdab   : > { %v6353_v4 = vmax.f32 %v6349_v7, 0.0  ;;  %v7706_v7 = vld [vmem:[%s10917_s21 + $0x228] sm:$0xff] }
 0xdac   : > { %v6352_v18 = vmax.f32 %v6344_v61, 0.0  ;;  %v6500_v61 = vpack.c.bf16 %v7706_v7, %v7705_v36  ;;  %v5672_v59 = vadd.f32 %v5671_v49, %v5670_v47  ;;  %v7711_v47 = vld [vmem:[%s10917_s21 + $0x250] sm:$0xff]  ;;  %v7712_v36 = vld [vmem:[%s10917_s21 + $0x258] sm:$0xff]  ;;  %v7729_v7 = vld [vmem:[%s10917_s21 + $0x2e0] sm:$0xff] }
 0xdad   : > { %v7730_v49 = vld [vmem:[%s10917_s21 + $0x2e8] sm:$0xff] }
 0xdae   : > { %8113 = vmatprep.mubr.msk.f32.mxu0 %vm2105_vm3, %v6352_v18  ;;  %8717 = vrcp.f32 %v5672_v59  ;;  %v7725_v18 = vld [vmem:[%s10917_s21 + $0x2c0] sm:$0xff]  ;;  %v6512_v59 = vpack.c.bf16 %v7730_v49, %v7729_v7 }
 0xdaf   : > { %8114 = vmatmul.mubr.msk.f32.vlgmr.msra.gmra.mrb[92].mxu0 %vm2105_vm3, %v6353_v4  ;;  %v12393_v4 = vld [vmem:[%s12717_s9 + $0x1] ss:$0 sm:$0xff] }
 0xdb0   : > { %7901 = vmatpush3.bf16.msra.mxu0 %v6498_v60  ;;  %6578 = vmatprep.mubr.bf16.mxu0 %v12010_v9  ;;  %v7708_v9 = vld [vmem:[%s10917_s21 + $0x238] sm:$0xff]  ;;  %v7726_v60 = vld [vmem:[%s10917_s21 + $0x2c8] sm:$0xff]  ;;  %v6111_v1 = vadd.f32 %v12393_v4, %v11970_v17 }
 0xdb1   : > { %7902 = vmatprep.subr.bf16.mxu0 %v6507_v3  ;;  %v6501_v42 = vpack.c.bf16 %v7708_v9, %v7707_v14  ;;  %v6510_v3 = vpack.c.bf16 %v7726_v60, %v7725_v18  ;;  %v7713_v18 = vld [vmem:[%s10917_s21 + $0x260] sm:$0xff]  ;;  %v7714_v60 = vld [vmem:[%s10917_s21 + $0x268] sm:$0xff] }
 0xdb2   : > { %v6119_v57 = vsub.f32 0.0, %v6111_v1 }
 0xdb4   : > { %7903 = vmatpush3.bf16.msra.mxu0 %v6499_v38  ;;  %v6502_v38 = vpack.c.bf16 %v7710_v23, %v7709_v35  ;;  %v6121_v1 = vmul.f32 1.442695, %v6119_v57 }
 0xdb5   : > { %7904 = vmatprep.subr.bf16.mxu0 %v6508_v10  ;;  %v6511_v10 = vpack.c.bf16 %v7728_v50, %v7727_v53  ;;  %v7732_v53 = vld [vmem:[%s10917_s21 + $0x2f8] sm:$0xff] }
 0xdb6   : > { %8719 = vpow2.f32 %v6121_v1 }
 0xdb8   : > { %7905 = vmatpush3.bf16.msra.mxu0 %v6500_v61  ;;  %v12405_v54 = vpop.eup %8717  ;;  %v6503_v61 = vpack.c.bf16 %v7712_v36, %v7711_v47  ;;  %v7715_v47 = vld [vmem:[%s10917_s21 + $0x270] sm:$0xff] }
 0xdb9   : > { %7906 = vmatprep.subr.bf16.mxu0 %v6509_v29  ;;  %v5789_v17 = vmul.f32 %v12405_v54, %v12284_v8  ;;  %v5790_v29 = vmul.f32 %v12405_v54, %v12290_v63  ;;  %v5773_v14 = vmul.f32 %v12405_v54, %v12194_v6  ;;  %v5774_v9 = vmul.f32 %v12405_v54, %v12196_v2 }
 0xdba   : > { %v5775_v8 = vmul.f32 %v12405_v54, %v12202_v37  ;;  %v5776_v63 = vmul.f32 %v12405_v54, %v12206_v11  ;;  %v5793_v2 = vmul.f32 %v12405_v54, %v12308_v39  ;;  %v5794_v23 = vmul.f32 %v12405_v54, %v12314_v13  ;;  %v7716_v39 = vld [vmem:[%s10917_s21 + $0x278] sm:$0xff] }
 0xdbb   : > { %v6773_v6 = vpack.c.bf16 %v5790_v29, %v5789_v17  ;;  %v6765_v35 = vpack.c.bf16 %v5774_v9, %v5773_v14  ;;  %v5795_v11 = vmul.f32 %v12405_v54, %v12320_v0  ;;  %v5777_v13 = vmul.f32 %v12405_v54, %v12212_v31 }
 0xdbc   : > { %7907 = vmatpush3.bf16.msra.mxu0 %v6501_v42  ;;  %v5791_v42 = vmul.f32 %v12405_v54, %v12296_v30  ;;  %v7731_v30 = vld [vmem:[%s10917_s21 + $0x2f0] sm:$0xff]  ;;  %v6775_v37 = vpack.c.bf16 %v5794_v23, %v5793_v2  ;;  %v5797_v36 = vmul.f32 %v12405_v54, %v12330_v44  ;;  %v6766_v49 = vpack.c.bf16 %v5776_v63, %v5775_v8 }
 0xdbd   : > { %7908 = vmatprep.subr.bf16.mxu0 %v6510_v3  ;;  %v5792_v3 = vmul.f32 %v12405_v54, %v12302_v58  ;;  %v6504_v58 = vpack.c.bf16 %v7714_v60, %v7713_v18  ;;  %6846 = vxpose.xlu0.c.b16.start [1/8] (narrow) %v6773_v6, 16  ;;  %v6513_v7 = vpack.c.bf16 %v7732_v53, %v7731_v30 }
 0xdbe   : > { %6830 = vxpose.xlu1.c.b16.start [1/8] (narrow) %v6765_v35, 16  ;;  %v5798_v0 = vmul.f32 %v12405_v54, %v12334_v22  ;;  %v5800_v31 = vmul.f32 %v12405_v54, %v12342_v24  ;;  %v5801_v17 = vmul.f32 %v12405_v54, %v12346_v34  ;;  %v5802_v22 = vmul.f32 %v12405_v54, %v12350_v43  ;;  %v12464_v43 = vld [vmem:[%s12716_s8] sm:$0xff] }
 0xdbf   : > { %v6774_v50 = vpack.c.bf16 %v5792_v3, %v5791_v42  ;;  %v5779_v29 = vmul.f32 %v12405_v54, %v12224_v51  ;;  %v5803_v24 = vmul.f32 %v12405_v54, %v12354_v15  ;;  %v5804_v14 = vmul.f32 %v12405_v54, %v12358_v45 }
 0xdc0   : > { %7909 = vmatpush3.bf16.msra.mxu0 %v6502_v38  ;;  %v5796_v38 = vmul.f32 %v12405_v54, %v12326_v25  ;;  %v6505_v25 = vpack.c.bf16 %v7716_v39, %v7715_v47  ;;  %v6779_v9 = vpack.c.bf16 %v5802_v22, %v5801_v17  ;;  %v5782_v15 = vmul.f32 %v12405_v54, %v12242_v12  ;;  %v8720_v45 = vpop.eup %8719  ;;  %v7753_v47 = vld [vmem:[%s10917_s21 + $0x380] sm:$0xff]  ;;  %v7754_v39 = vld [vmem:[%s10917_s21 + $0x388] sm:$0xff]  ;;  %v7739_v17 = vld [vmem:[%s10917_s21 + $0x310] sm:$0xff] }
 0xdc1   : > { %7910 = vmatprep.subr.bf16.mxu0 %v6511_v10  ;;  %v5778_v10 = vmul.f32 %v12405_v54, %v12218_v5  ;;  %6847 = vxpose.xlu0.c.b16.cont [2/8] (narrow) %v6774_v50, 16  ;;  %v6777_v5 = vpack.c.bf16 %v5798_v0, %v5797_v36  ;;  %v6780_v34 = vpack.c.bf16 %v5804_v14, %v5803_v24  ;;  %v7740_v22 = vld [vmem:[%s10917_s21 + $0x318] sm:$0xff] }
 0xdc2   : > { %v6776_v57 = vpack.c.bf16 %v5796_v38, %v5795_v11  ;;  %6831 = vxpose.xlu1.c.b16.cont [2/8] (narrow) %v6766_v49, 16  ;;  %v5783_v60 = vmul.f32 %v12405_v54, %v12248_v28  ;;  %v5784_v42 = vmul.f32 %v12405_v54, %v12254_v55  ;;  %v5786_v3 = vmul.f32 %v12405_v54, %v12266_v32  ;;  %v8755_v38 = vld [vmem:[%s12716_s8 + $0x8] sm:$0xff]  ;;  %v7737_v49 = vld [vmem:[%s10917_s21 + $0x300] sm:$0xff] }
 0xdc3   : > { %v5787_v28 = vmul.f32 %v12405_v54, %v12272_v52  ;;  %v5788_v55 = vmul.f32 %v12405_v54, %v12278_v48  ;;  %v6815_v14 = vpack.c.bf16 %v7740_v22, %v7739_v17 }
 0xdc4   : > { %7911 = vmatpush3.bf16.msra.mxu0 %v6503_v61  ;;  %v5799_v61 = vmul.f32 %v12405_v54, %v12338_v46  ;;  %v5780_v46 = vmul.f32 %v12405_v54, %v12230_v27  ;;  %v5781_v27 = vmul.f32 %v12405_v54, %v12236_v33  ;;  %v6125_v33 = vadd.f32 1.0, %v8720_v45 }
 0xdc5   : > { %7912 = vmatprep.subr.bf16.mxu0 %v6512_v59  ;;  %v6767_v59 = vpack.c.bf16 %v5778_v10, %v5777_v13  ;;  %6848 = vxpose.xlu0.c.b16.cont [3/8] (narrow) %v6775_v37, 16  ;;  %v6770_v12 = vpack.c.bf16 %v5784_v42, %v5783_v60  ;;  %v6772_v8 = vpack.c.bf16 %v5788_v55, %v5787_v28  ;;  %v7743_v60 = vld [vmem:[%s10917_s21 + $0x330] sm:$0xff]  ;;  %v7744_v42 = vld [vmem:[%s10917_s21 + $0x338] sm:$0xff]  ;;  %v7746_v28 = vld [vmem:[%s10917_s21 + $0x348] sm:$0xff] }
 0xdc6   : > { %v6778_v44 = vpack.c.bf16 %v5800_v31, %v5799_v61  ;;  %v6768_v51 = vpack.c.bf16 %v5780_v46, %v5779_v29  ;;  %v6769_v18 = vpack.c.bf16 %v5782_v15, %v5781_v27  ;;  %8721 = vrcp.f32 %v6125_v33  ;;  %v7756_v61 = vld [vmem:[%s10917_s21 + $0x398] sm:$0xff]  ;;  %v7757_v29 = vld [vmem:[%s10917_s21 + $0x3a0] sm:$0xff]  ;;  %v7758_v46 = vld [vmem:[%s10917_s21 + $0x3a8] sm:$0xff] }
 0xdc7   : > { %6832 = vxpose.xlu1.c.b16.cont [3/8] (narrow) %v6767_v59, 16  ;;  %v6822_v13 = vpack.c.bf16 %v7754_v39, %v7753_v47  ;;  %v7759_v27 = vld [vmem:[%s10917_s21 + $0x3b0] sm:$0xff]  ;;  %v7760_v15 = vld [vmem:[%s10917_s21 + $0x3b8] sm:$0xff]  ;;  %v7761_v33 = vld [vmem:[%s10917_s21 + $0x3c0] sm:$0xff] }
 0xdc8   : > { %7913 = vmatpush3.bf16.msra.mxu0 %v6504_v58  ;;  %v7763_v55 = vld [vmem:[%s10917_s21 + $0x3d0] sm:$0xff]  ;;  %v7752_v47 = vld [vmem:[%s10917_s21 + $0x378] sm:$0xff] }
 0xdc9   : > { %7914 = vmatprep.subr.bf16.mxu0 %v6513_v7  ;;  %6849 = vxpose.xlu0.c.b16.cont [4/8] (narrow) %v6776_v57, 16  ;;  %v7738_v57 = vld [vmem:[%s10917_s21 + $0x308] sm:$0xff] }
 0xdcb   : > { %6833 = vxpose.xlu1.c.b16.cont [4/8] (narrow) %v6768_v51, 16  ;;  %v7742_v51 = vld [vmem:[%s10917_s21 + $0x328] sm:$0xff] }
 0xdcc   : > { %7915 = vmatpush3.bf16.msra.mxu0 %v6505_v25  ;;  %v7755_v25 = vld [vmem:[%s10917_s21 + $0x390] sm:$0xff] }
 0xdcd   : > { %8116 = vmatprep.subr.mxu0 %v12464_v43  ;;  %6850 = vxpose.xlu0.c.b16.cont [5/8] (narrow) %v6777_v5, 16  ;;  %v6814_v5 = vpack.c.bf16 %v7738_v57, %v7737_v49 }
 0xdcf   : > { %6579 = vmatmul.mubr.bf16.vlgmr.msra.gmra.mrb[96].mxu0 %v12008_v26  ;;  %6834 = vxpose.xlu1.c.b16.cont [5/8] (narrow) %v6769_v18, 16  ;;  %v5785_v26 = vmul.f32 %v12405_v54, %v12260_v21  ;;  %v6825_v18 = vpack.c.bf16 %v7760_v15, %v7759_v27 }
 0xdd0   : > { %8117 = vmatpush3.msra.mxu0 %v12464_v43  ;;  %v8722_v63 = vpop.eup %8721 }
 0xdd1   : > { %8121 = vmatprep.subr.mxu0 %v12005_v62  ;;  %6851 = vxpose.xlu0.c.b16.cont [6/8] (narrow) %v6778_v44, 16  ;;  %v6771_v62 = vpack.c.bf16 %v5786_v3, %v5785_v26  ;;  %v12487_v21 = vmul.f32 %v8722_v63, %v11442_v16  ;;  %v6823_v44 = vpack.c.bf16 %v7756_v61, %v7755_v25 }
 0xdd2   : > { %v6817_v26 = vpack.c.bf16 %v7744_v42, %v7743_v60 }
 0xdd3   : > { %6835 = vxpose.xlu1.c.b16.cont [6/8] (narrow) %v6770_v12, 16  ;;  %v7762_v12 = vld [vmem:[%s10917_s21 + $0x3c8] sm:$0xff] }
 0xdd4   : > { %v6826_v3 = vpack.c.bf16 %v7762_v12, %v7761_v33 }
 0xdd5   : > { %6852 = vxpose.xlu0.c.b16.cont [7/8] (narrow) %v6779_v9, 16  ;;  %v6824_v9 = vpack.c.bf16 %v7758_v46, %v7757_v29 }
 0xdd7   : > { %6836 = vxpose.xlu1.c.b16.cont [7/8] (narrow) %v6771_v62, 16  ;;  %v7745_v62 = vld [vmem:[%s10917_s21 + $0x340] sm:$0xff] }
 0xdd8   : > { %v6818_v63 = vpack.c.bf16 %v7746_v28, %v7745_v62 }
 0xdd9   : > { %6853 = vxpose.xlu0.c.b16.end [8/8] (narrow) %v6780_v34, 16  ;;  %v7741_v34 = vld [vmem:[%s10917_s21 + $0x320] sm:$0xff] }
 0xdda   : > { %v6816_v45 = vpack.c.bf16 %v7742_v51, %v7741_v34 }
 0xddb   : > { %6837 = vxpose.xlu1.c.b16.end [8/8] (narrow) %v6772_v8, 16  ;;  %v7764_v8 = vld [vmem:[%s10917_s21 + $0x3d8] sm:$0xff] }
 0xde2   : > { %7156 = vrot.lane.b32.xlu0 %v12487_v21, %s8777_s25 }
 0xe23   : > { %v6854_v24 = vpop.trf.xlu0 }
 0xe82   : > { %v12491_v32 = vpop.f32.mrb[92].mxu0 }
 0xe83   : > { %v6426_v6 = vpop.f32.mrb[93].mxu0 }
 0xe84   : > { %v6427_v52 = vadd.f32 %v12393_v4, %v6426_v6  ;;  %v6827_v6 = vpack.c.bf16 %v7764_v8, %v7763_v55 }
 0xe86   : > { %v6435_v35 = vsub.f32 0.0, %v6427_v52  ;;  %v7747_v52 = vld [vmem:[%s10917_s21 + $0x350] sm:$0xff] }
 0xe88   : > { %v6437_v48 = vmul.f32 1.442695, %v6435_v35  ;;  %v7748_v35 = vld [vmem:[%s10917_s21 + $0x358] sm:$0xff] }
 0xe8a   : > { %8723 = vpow2.f32 %v6437_v48  ;;  %v7765_v48 = vld [vmem:[%s10917_s21 + $0x3e0] sm:$0xff] }
 0xe94   : > { %v8724_v54 = vpop.eup %8723 }
 0xe95   : > { %v6441_v2 = vadd.f32 1.0, %v8724_v54  ;;  %v7766_v54 = vld [vmem:[%s10917_s21 + $0x3e8] sm:$0xff] }
 0xe97   : > { %8725 = vrcp.f32 %v6441_v2  ;;  %v6819_v2 = vpack.c.bf16 %v7748_v35, %v7747_v52 }
 0xea1   : > { %v8726_v23 = vpop.eup %8725 }
 0xea2   : > { %v6447_v16 = vmul.f32 %v8726_v23, %v11994_v20  ;;  %v7916_v30 = vpop.f32.mrb[96].mxu0  ;;  %v6828_v23 = vpack.c.bf16 %v7766_v54, %v7765_v48 }
 0xea3   : > { %v7917_v53 = vpop.f32.mrb[97].mxu0 }
 0xea4   : > { %v12495_v50 = vrot.slane %v6447_v16, 7  ;;  %v12497_v58 = vadd.f32 %v7917_v53, %v7916_v30  ;;  %v7919_v1 = vpop.f32.mrb[98].mxu0  ;;  %v7749_v16 = vld [vmem:[%s10917_s21 + $0x360] sm:$0xff]  ;;  %v7750_v30 = vld [vmem:[%s10917_s21 + $0x368] sm:$0xff]  ;;  %v7767_v53 = vld [vmem:[%s10917_s21 + $0x3f0] sm:$0xff] }
 0xea5   : > { %v7920_v37 = vpop.f32.mrb[99].mxu0 }
 0xea6   : > { %v12499_v11 = vadd.f32 %v7920_v37, %v7919_v1  ;;  %8118 = vmatprep.mubr.msk.f32.mxu0 %vm2105_vm3, %v12497_v58  ;;  %v7142_v20 = vsel %vm7123_vm0, %v12495_v50, %v12487_v21  ;;  %v7768_v1 = vld [vmem:[%s10917_s21 + $0x3f8] sm:$0xff]  ;;  %v6820_v37 = vpack.c.bf16 %v7750_v30, %v7749_v16 }
 0xea7   : > { %7144 = vrot.lane.b32.xlu0 %v7142_v20, %s8774_s20  ;;  %v6829_v20 = vpack.c.bf16 %v7768_v1, %v7767_v53 }
 0xea8   : > { %8119 = vmatmul.mubr.msk.f32.vlgmr.msra.gmra.mrb[94].mxu0 %vm2105_vm3, %v12499_v11 }
 0xea9   : > { %8122 = vmatpush3.msra.mxu0 %v8755_v38  ;;  %v7751_v38 = vld [vmem:[%s10917_s21 + $0x370] sm:$0xff]  ;;  %s8778_s21 = smov 104  }
 0xeaa   : > { %7928 = vmatprep.subr.bf16.mxu0 %v6822_v13  ;;  %v6821_v39 = vpack.c.bf16 %v7752_v47, %v7751_v38  ;;  %v6838_v13 = vpop.trf.xlu1 }
 0xf7b   : > { %v8120_v10 = vpop.f32.mrb[94].mxu0 }
 0xf7c   : > { %v6665_v36 = vadd.f32 %v12367_v41, %v8120_v10  ;;  %v6659_v7 = vpop.f32.mrb[95].mxu0  ;;  %v6432_v10 = vadd.f32 %v12491_v32, %v12393_v4 }
 0xf7d   : > { %v6660_v0 = vadd.f32 %v12367_v41, %v6659_v7  ;;  %v6116_v7 = vadd.f32 %v11968_v19, %v12393_v4 }
 0xf7e   : > { %v6669_v59 = vmax.f32 %v6665_v36, 0.0  ;;  %v6436_v36 = vsub.f32 0.0, %v6432_v10 }
 0xf7f   : > { %v6668_v31 = vmax.f32 %v6660_v0, 0.0  ;;  %v6120_v57 = vsub.f32 0.0, %v6116_v7 }
 0xf80   : > { %v6439_v49 = vmul.f32 1.442695, %v6436_v36 }
 0xf81   : > { %8123 = vmatprep.mubr.msk.f32.mxu0 %vm2105_vm3, %v6668_v31  ;;  %v6123_v0 = vmul.f32 1.442695, %v6120_v57 }
 0xf82   : > { %8124 = vmatmul.mubr.msk.f32.vlgmr.msra.gmra.mrb[100].mxu0 %vm2105_vm3, %v6669_v59  ;;  %8727 = vpow2.f32 %v6439_v49 }
 0xf83   : > { %7929 = vmatpush3.bf16.msra.mxu0 %v6814_v5  ;;  %6894 = vmatprep.mubr.bf16.mxu0 %v6854_v24  ;;  %8729 = vpow2.f32 %v6123_v0 }
 0xf84   : > { %7930 = vmatprep.subr.bf16.mxu0 %v6823_v44 }
 0xf87   : > { %7931 = vmatpush3.bf16.msra.mxu0 %v6815_v14 }
 0xf88   : > { %7932 = vmatprep.subr.bf16.mxu0 %v6824_v9 }
 0xf8b   : > { %7933 = vmatpush3.bf16.msra.mxu0 %v6816_v45 }
 0xf8c   : > { %7934 = vmatprep.subr.bf16.mxu0 %v6825_v18  ;;  %v8728_v17 = vpop.eup %8727 }
 0xf8d   : > { %v6442_v22 = vadd.f32 1.0, %v8728_v17  ;;  %v8730_v19 = vpop.eup %8729 }
 0xf8e   : > { %v6126_v29 = vadd.f32 1.0, %v8730_v19 }
 0xf8f   : > { %7935 = vmatpush3.bf16.msra.mxu0 %v6817_v26 }
 0xf90   : > { %7936 = vmatprep.subr.bf16.mxu0 %v6826_v3 }
 0xf93   : > { %7937 = vmatpush3.bf16.msra.mxu0 %v6818_v63 }
 0xf94   : > { %7938 = vmatprep.subr.bf16.mxu0 %v6827_v6 }
 0xf97   : > { %7939 = vmatpush3.bf16.msra.mxu0 %v6819_v2 }
 0xf98   : > { %7940 = vmatprep.subr.bf16.mxu0 %v6828_v23 }
 0xf9b   : > { %7941 = vmatpush3.bf16.msra.mxu0 %v6820_v37 }
 0xf9c   : > { %7942 = vmatprep.subr.bf16.mxu0 %v6829_v20 }
 0xf9f   : > { %7943 = vmatpush3.bf16.msra.mxu0 %v6821_v39 }
 0xfa0   : > { %8126 = vmatprep.subr.mxu0 %v12464_v43 }
 0xfa2   : > { %6895 = vmatmul.mubr.bf16.vlgmr.msra.gmra.mrb[104].mxu0 %v6838_v13 }
 0xfa3   : > { %8127 = vmatpush3.msra.mxu0 %v12464_v43 }
0x1055   : > { %v8125_v25 = vpop.f32.mrb[100].mxu0 }
0x1056   : > { %v6748_v61 = vadd.f32 %v8125_v25, %v12393_v4  ;;  %v6742_v31 = vpop.f32.mrb[101].mxu0 }
0x1057   : > { %v6743_v5 = vadd.f32 %v12393_v4, %v6742_v31  ;;  %v7086_v31 = vsel %vm1686_vm6, %v12495_v50, %v12487_v21 }
0x1058   : > { %v6752_v59 = vsub.f32 0.0, %v6748_v61 }
0x1059   : > { %v6751_v43 = vsub.f32 0.0, %v6743_v5 }
0x105a   : > { %v6755_v44 = vmul.f32 1.442695, %v6752_v59 }
0x105b   : > { %v6753_v32 = vmul.f32 1.442695, %v6751_v43 }
0x105c   : > { %8731 = vpow2.f32 %v6755_v44 }
0x105d   : > { %8733 = vpow2.f32 %v6753_v32 }
0x105e   : > { %8735 = vrcp.f32 %v6442_v22 }
0x105f   : > { %8737 = vrcp.f32 %v6126_v29 }
0x1066   : > { %v8732_v46 = vpop.eup %8731 }
0x1067   : > { %v8734_v24 = vpop.eup %8733  ;;  %v6758_v14 = vadd.f32 1.0, %v8732_v46 }
0x1068   : > { %v6757_v9 = vadd.f32 1.0, %v8734_v24  ;;  %v8736_v34 = vpop.eup %8735 }
0x1069   : > { %8739 = vrcp.f32 %v6758_v14  ;;  %v6448_v51 = vmul.f32 %v8736_v34, %v11996_v40  ;;  %v8738_v27 = vpop.eup %8737 }
0x106a   : > { %8741 = vrcp.f32 %v6757_v9  ;;  %v12561_v42 = vmul.f32 %v8738_v27, %v11444_v56  ;;  %v7130_v56 = vsel %vm7114_vm2, %v12495_v50, %v12487_v21  ;;  %v7094_v27 = vsel %vm1688_vm7, %v12495_v50, %v12487_v21 }
0x106b   : > { %v12557_v45 = vrot.slane %v6448_v51, 7  ;;  %v7103_v51 = vsel %vm1690_vm8, %v12495_v50, %v12487_v21 }
0x106d   : > { %v7213_v55 = vsel %vm7114_vm2, %v12557_v45, %v12561_v42  ;;  %v7189_v5 = vsel %vm1690_vm8, %v12557_v45, %v12561_v42  ;;  %v7181_v59 = vsel %vm1688_vm7, %v12557_v45, %v12561_v42  ;;  %v7205_v29 = vsel %vm7105_vm9, %v12557_v45, %v12561_v42 }
0x106e   : > { %v7197_v46 = vsel %vm7096_vm5, %v12557_v45, %v12561_v42 }
0x1073   : > { %v8740_v15 = vpop.eup %8739 }
0x1074   : > { %v8742_v18 = vpop.eup %8741  ;;  %v6764_v60 = vmul.f32 %v8740_v15, %v12499_v11 }
0x1075   : > { %v6763_v33 = vmul.f32 %v8742_v18, %v12497_v58  ;;  %v7944_v12 = vpop.f32.mrb[104].mxu0 }
0x1076   : > { %v12564_v26 = vrot.slane %v6764_v60, 6  ;;  %v7945_v3 = vpop.f32.mrb[105].mxu0 }
0x1077   : > { %v12566_v62 = vrot.slane %v6763_v33, 6  ;;  %v7946_v40 = vadd.f32 %v7945_v3, %v7944_v12  ;;  %v7947_v28 = vpop.f32.mrb[106].mxu0  ;;  %v7121_v12 = vsel %vm7105_vm9, %v12495_v50, %v12487_v21  ;;  %v7112_v3 = vsel %vm7096_vm5, %v12495_v50, %v12487_v21 }
0x1078   : > { %v7948_v8 = vpop.f32.mrb[107].mxu0  ;;  %v7214_v11 = vsel %vm7123_vm0, %v12564_v26, %v7213_v55  ;;  %v7190_v44 = vsel %vm7096_vm5, %v12564_v26, %v7189_v5  ;;  %v7182_v17 = vsel %vm1690_vm8, %v12564_v26, %v7181_v59  ;;  %v7206_v24 = vsel %vm7114_vm2, %v12564_v26, %v7205_v29 }
0x1079   : > { %v7949_v58 = vadd.f32 %v7948_v8, %v7947_v28  ;;  %8128 = vmatprep.mubr.msk.f32.mxu0 %vm2105_vm3, %v7946_v40  ;;  %7215 = vrot.lane.b32.xlu1 %v7214_v11, %s8778_s21  ;;  %v7131_v63 = vsel %vm7123_vm0, %v12566_v62, %v7130_v56  ;;  %v7088_v43 = vsel %vm1688_vm7, %v12566_v62, %v7086_v31 }
0x107a   : > { %7132 = vrot.lane.b32.xlu0 %v7131_v63, %s8779_s29  ;;  %v7198_v14 = vsel %vm7105_vm9, %v12564_v26, %v7197_v46  ;;  %v7104_v15 = vsel %vm7096_vm5, %v12566_v62, %v7103_v51  ;;  %v7095_v18 = vsel %vm1690_vm8, %v12566_v62, %v7094_v27  ;;  %v7113_v28 = vsel %vm7105_vm9, %v12566_v62, %v7112_v3 }
0x107b   : > { %8129 = vmatmul.mubr.msk.f32.vlgmr.msra.gmra.mrb[102].mxu0 %vm2105_vm3, %v7949_v58  ;;  %v7154_v21 = vsel %vm1686_vm6, %v12566_v62, %v12495_v50  ;;  %v7237_v63 = vsel %vm1686_vm6, %v12564_v26, %v12557_v45  ;;  %v7157_v50 = vpop.permute.xlu0 %7156 }
0x114e   : > { %v8130_v6 = vpop.f32.mrb[102].mxu0 }
0x114f   : > { %v6981_v52 = vadd.f32 %v12367_v41, %v8130_v6  ;;  %v6975_v35 = vpop.f32.mrb[103].mxu0  ;;  %v7225_v6 = vsel %vm7123_vm0, %v12557_v45, %v12561_v42 }
0x1150   : > { %v6976_v48 = vadd.f32 %v12367_v41, %v6975_v35  ;;  %v7216_v35 = vpop.permute.xlu1 %7215 }
0x1151   : > { %v6985_v2 = vmax.f32 %v6981_v52, 0.0 }
0x1152   : > { %v6984_v54 = vmax.f32 %v6976_v48, 0.0 }
0x1154   : > { %8133 = vmatprep.mubr.msk.f32.mxu1 %vm2105_vm3, %v6984_v54 }
0x1155   : > { %8134 = vmatmul.mubr.msk.f32.vlgmr.msra.gmra.mrb[54].mxu1 %vm2105_vm3, %v6985_v2  ;;  %vm7179_vm3 = vcmask 585216  }
0x1228   : > { %v8135_v23 = vpop.f32.mrb[54].mxu1 }
0x1229   : > { %v7064_v16 = vadd.f32 %v8135_v23, %v12393_v4  ;;  %v7058_v30 = vpop.f32.mrb[55].mxu1 }
0x122a   : > { %v7059_v53 = vadd.f32 %v12393_v4, %v7058_v30  ;;  %v7171_v4 = vsel %vm1686_vm6, %v12557_v45, %v12561_v42 }
0x122b   : > { %v7068_v1 = vsub.f32 0.0, %v7064_v16  ;;  %v7173_v25 = vsel %vm1688_vm7, %v12564_v26, %v7171_v4 }
0x122c   : > { %v7067_v37 = vsub.f32 0.0, %v7059_v53 }
0x122d   : > { %v7071_v20 = vmul.f32 1.442695, %v7068_v1 }
0x122e   : > { %v7069_v38 = vmul.f32 1.442695, %v7067_v37 }
0x122f   : > { %8743 = vpow2.f32 %v7071_v20 }
0x1230   : > { %8745 = vpow2.f32 %v7069_v38 }
0x1239   : > { %v8744_v41 = vpop.eup %8743 }
0x123a   : > { %v8746_v47 = vpop.eup %8745  ;;  %v7074_v39 = vadd.f32 1.0, %v8744_v41 }
0x123b   : > { %v7073_v13 = vadd.f32 1.0, %v8746_v47 }
0x123c   : > { %8747 = vrcp.f32 %v7074_v39 }
0x123d   : > { %8749 = vrcp.f32 %v7073_v13 }
0x1246   : > { %v8748_v10 = vpop.eup %8747 }
0x1247   : > { %v8750_v36 = vpop.eup %8749  ;;  %v7080_v7 = vmul.f32 %v8748_v10, %v7949_v58 }
0x1248   : > { %v7079_v49 = vmul.f32 %v8750_v36, %v7946_v40  ;;  %v7122_v40 = vsel %vm7114_vm2, %v12566_v62, %v7121_v12 }
0x1249   : > { %v7174_v57 = vrot.slane %v7080_v7, 5 }
0x124a   : > { %v7089_v0 = vrot.slane %v7079_v49, 5 }
0x124b   : > { %v7175_v61 = vsel %vm1690_vm8, %v7174_v57, %v7173_v25  ;;  %v7191_v22 = vsel %vm7105_vm9, %v7174_v57, %v7190_v44  ;;  %v7183_v19 = vsel %vm7096_vm5, %v7174_v57, %v7182_v17  ;;  %v7207_v9 = vsel %vm7123_vm0, %v7174_v57, %v7206_v24 }
0x124c   : > { %7176 = vrot.lane.b32.xlu0 %v7175_v61, %s8773_s19  ;;  %7134 = vrot.lane.b32.xlu1 %v7089_v0, %s8779_s29  ;;  %v7090_v32 = vsel %vm1690_vm8, %v7089_v0, %v7088_v43  ;;  %v7199_v34 = vsel %vm7114_vm2, %v7174_v57, %v7198_v14  ;;  %v7106_v60 = vsel %vm7105_vm9, %v7089_v0, %v7104_v15  ;;  %vm7119_vm8 = vcmask 260291  }
0x124d   : > { %7093 = vst.msk [vmem:[%s12601_s15] sm:$0xf] %vm7092_vm4, %v7090_v32  ;;  %v7097_v33 = vsel %vm7096_vm5, %v7089_v0, %v7095_v18  ;;  %v7124_v55 = vsel %vm7123_vm0, %v7089_v0, %v7122_v40  ;;  %v7115_v8 = vsel %vm7114_vm2, %v7089_v0, %v7113_v28  ;;  %v7143_v11 = vsel %vm1686_vm6, %v7089_v0, %v12566_v62  ;;  %v7145_v62 = vpop.permute.xlu0 %7144 }
0x124e   : > { %v7155_v56 = vsel %vm1688_vm7, %v7089_v0, %v7154_v21  ;;  %v7226_v58 = vsel %vm1686_vm6, %v7174_v57, %v12564_v26  ;;  %v7238_v52 = vsel %vm1688_vm7, %v7174_v57, %v7237_v63  ;;  %vm7101_vm6 = vcmask 127041  }
0x124f   : > { %vm7110_vm7 = vcmask 193666   ;;  %vm7187_vm0 = vcmask 651841   ;;  %vm7195_vm2 = vcmask 718466   ;;  %vm7203_vm4 = vcmask 785091  }
0x1250   : > { %7192 = vrot.lane.b32.xlu0 %v7191_v22, %s8772_s18  ;;  %7184 = vrot.lane.b32.xlu1 %v7183_v19, %s8780_s14  ;;  %s8781_s18 = smov 88   ;;  %vm7211_vm5 = vcmask 851716   ;;  %vm7221_vm9 = vcmask 917317  }
0x1251   : > { %v7133_v48 = vpop.permute.xlu0 %7132 }
0x1254   : > { %7208 = vrot.lane.b32.xlu0 %v7207_v9, %s8771_s17  ;;  %7200 = vrot.lane.b32.xlu1 %v7199_v34, %s8781_s18  ;;  %s8783_s17 = smov 120  }
0x1258   : > { %7107 = vrot.lane.b32.xlu1 %v7106_v60, %s8776_s24  ;;  %7098 = vrot.lane.b32.xlu0 %v7097_v33, %s8769_s27  ;;  %s8782_s27 = smov 24  }
0x125c   : > { %7125 = vrot.lane.b32.xlu1 %v7124_v55, %s8775_s23  ;;  %7116 = vrot.lane.b32.xlu0 %v7115_v8, %s8782_s27 }
0x1260   : > { %7146 = vrot.lane.b32.xlu1 %v7143_v11, %s8774_s20  ;;  %7217 = vrot.lane.b32.xlu0 %v7174_v57, %s8778_s21 }
0x1264   : > { %7158 = vrot.lane.b32.xlu1 %v7155_v56, %s8777_s25  ;;  %7229 = vrot.lane.b32.xlu0 %v7226_v58, %s8770_s16 }
0x1268   : > { %7227 = vrot.lane.b32.xlu1 %v7225_v6, %s8770_s16  ;;  %7241 = vrot.lane.b32.xlu0 %v7238_v52, %s8783_s17 }
0x126c   : > { %7239 = vrot.lane.b32.xlu1 %v12561_v42, %s8783_s17 }
0x12be   : > { %v7177_v54 = vpop.permute.xlu0 %7176  ;;  %v7135_v26 = vpop.permute.xlu1 %7134 }
0x12c2   : > { %v7193_v2 = vpop.permute.xlu0 %7192  ;;  %v7185_v23 = vpop.permute.xlu1 %7184 }
0x12c6   : > { %v7209_v45 = vpop.permute.xlu0 %7208  ;;  %v7201_v16 = vpop.permute.xlu1 %7200 }
0x12ca   : > { %v7099_v30 = vpop.permute.xlu0 %7098  ;;  %v7108_v53 = vpop.permute.xlu1 %7107 }
0x12cb   : > { %7102 = vst.msk [vmem:[%s12601_s15 - $0x1] sm:$0x1e] %vm7101_vm6, %v7099_v30  ;;  %vm7223_vm6 = vcmask 910144  }
0x12cc   : > { %7111 = vst.msk [vmem:[%s12601_s15 - $0x2] sm:$0x3c] %vm7110_vm7, %v7108_v53  ;;  %vm7233_vm7 = vcmask 982918  }
0x12ce   : > { %v7117_v42 = vpop.permute.xlu0 %7116  ;;  %v7126_v1 = vpop.permute.xlu1 %7125 }
0x12cf   : > { %7120 = vst.msk [vmem:[%s12601_s15 - $0x3] sm:$0x78] %vm7119_vm8, %v7117_v42  ;;  %vm7235_vm8 = vcmask 976768  }
0x12d0   : > { %7129 = vst.msk [vmem:[%s12601_s15 - $0x4] sm:$0xf0] %vm7128_vm10, %v7126_v1  ;;  %vm7247_vm10 = vcmask 1043392  }
0x12d1   : > { %7139 = vst.msk [vmem:[%s12601_s15 - $0x5] sm:$0xe0] %vm7138_vm11, %v7133_v48  ;;  %vm7245_vm11 = vcmask 1048519  }
0x12d2   : > { %7141 = vst.msk [vmem:[%s12601_s15 + $0x3] sm:$0x1] %vm7140_vm12, %v7135_v26  ;;  %v7218_v37 = vpop.permute.xlu0 %7217  ;;  %v7147_v20 = vpop.permute.xlu1 %7146 }
0x12d3   : > { %7151 = vst.msk [vmem:[%s12601_s15 - $0x6] sm:$0xc0] %vm7150_vm13, %v7145_v62 }
0x12d4   : > { %7163 = vst.msk [vmem:[%s12601_s15 - $0x7] sm:$0x80] %vm7162_vm14, %v7157_v50 }
0x12d5   : > { %7153 = vst.msk [vmem:[%s12601_s15 + $0x2] sm:$0x3] %vm7152_vm15, %v7147_v20 }
0x12d6   : > { %v7159_v38 = vpop.permute.xlu1 %7158  ;;  %v7230_v41 = vpop.permute.xlu0 %7229 }
0x12d7   : > { %7165 = vst.msk [vmem:[%s12601_s15 + $0x1] sm:$0x7] %vm7164_vm1, %v7159_v38 }
0x12d8   : > { %7180 = vst.msk [vmem:[%s12601_s15] sm:$0xf] %vm7179_vm3, %v7177_v54 }
0x12d9   : > { %7188 = vst.msk [vmem:[%s12601_s15 - $0x1] sm:$0x1e] %vm7187_vm0, %v7185_v23 }
0x12da   : > { %7196 = vst.msk [vmem:[%s12601_s15 - $0x2] sm:$0x3c] %vm7195_vm2, %v7193_v2  ;;  %v7228_v47 = vpop.permute.xlu1 %7227  ;;  %v7242_v39 = vpop.permute.xlu0 %7241 }
0x12db   : > { %7204 = vst.msk [vmem:[%s12601_s15 - $0x3] sm:$0x78] %vm7203_vm4, %v7201_v16 }
0x12dc   : > { %7212 = vst.msk [vmem:[%s12601_s15 - $0x4] sm:$0xf0] %vm7211_vm5, %v7209_v45 }
0x12dd   : > { %7222 = vst.msk [vmem:[%s12601_s15 - $0x5] sm:$0xe0] %vm7221_vm9, %v7216_v35 }
0x12de   : > { %7224 = vst.msk [vmem:[%s12601_s15 + $0x3] sm:$0x1] %vm7223_vm6, %v7218_v37  ;;  %v7240_v13 = vpop.permute.xlu1 %7239 }
0x12df   : > { %7236 = vst.msk [vmem:[%s12601_s15 + $0x2] sm:$0x3] %vm7235_vm8, %v7230_v41 }
0x12e0   : > { %7234 = vst.msk [vmem:[%s12601_s15 - $0x6] sm:$0xc0] %vm7233_vm7, %v7228_v47 }
0x12e1   : > { %7248 = vst.msk [vmem:[%s12601_s15 + $0x1] sm:$0x7] %vm7247_vm10, %v7242_v39 }
0x12e2   : > { %7246 = vst.msk [vmem:[%s12601_s15 - $0x7] sm:$0x80] %vm7245_vm11, %v7240_v13 }
0x12e3 PF: > { %s20_s13 = sadd.s32 1, %s8762_s13  }
0x12e4   : > { %p17_p5 = scmp.ge.s32.totalorder %s20_s13, 4  }
0x12e6   :  { %19 = sbr.rel (!%p17_p5) target bundleno = 1 (0x1), region = 105 }

</bundles_post_ra>
